<compile_context>
chip_gen: v5e
topology: v5e:2x2
jax: 0.10.0
libtpu: 0.0.40
codegen_flags: <defaults>
</compile_context>

<pallas_src>
import functools
import numpy as np

import jax
import jax.numpy as jnp
from jax.experimental import pallas as pl
from jax.experimental.pallas import tpu as pltpu


# ----------------------------------------------------------------------------
# Pallas kernel: tiled  out = act(x @ w + b)  with f32 accumulation.
# Grid = (M/tm, N/tn, K/tk); K is the (last) reduction axis.
# If a VMEM scratch is supplied it is the accumulator and the output may be a
# narrower dtype (bf16 conv outputs); otherwise the resident f32 output block
# doubles as the accumulator (tiny-M FC layers).
# ----------------------------------------------------------------------------
def _matmul_bias_act_kernel(x_ref, w_ref, b_ref, o_ref, *scratch, relu):
    acc_ref = scratch[0] if scratch else o_ref

    @pl.when(pl.program_id(2) == 0)
    def _init():
        # bias-init: removes the bias add (and one output RMW pass) from finalize
        acc_ref[...] = jnp.broadcast_to(b_ref[...], acc_ref.shape).astype(jnp.float32)

    acc_ref[...] += jnp.dot(x_ref[...], w_ref[...],
                            preferred_element_type=jnp.float32)

    if relu or scratch:                      # trace-time decision
        @pl.when(pl.program_id(2) == pl.num_programs(2) - 1)
        def _finalize():
            r = acc_ref[...]
            if relu:
                r = jnp.maximum(r, 0.0)
            o_ref[...] = r.astype(o_ref.dtype)


def _round_up(x, m):
    return ((x + m - 1) // m) * m


def _generous_vmem():
    """True on v6e / v7x (32 MiB scoped-VMEM default); False on v5e / unknown."""
    try:
        kind = jax.devices()[0].device_kind.lower()
    except Exception:
        return False
    return ("v6" in kind) or ("v7" in kind)


def _pick_tile(dim_p, cap, min_blocks=1):
    """Largest multiple-of-128 tile <= cap dividing dim_p (dim_p % 128 == 0),
    keeping at least `min_blocks` blocks when possible (megacore sharding)."""
    if dim_p <= 128:
        return dim_p
    limit = min(cap, dim_p)
    if min_blocks > 1 and dim_p >= 128 * min_blocks:
        limit = min(limit, dim_p // min_blocks)
    t = max((limit // 128) * 128, 128)
    while dim_p % t != 0:
        t -= 128
    return t


def matmul_bias_act(x, w_padded, b, relu=False, out_dtype=jnp.float32):
    """out = act(x @ w + b).

    x:        [M, K]  activations (cast to bf16 internally if not already)
    w_padded: [Kp, Np] bfloat16 weight, pre-padded at init (Kp,Np multiples of 128)
    b:        [N]     float32 bias (unpadded; defines the logical output width)
    """
    M, K = x.shape
    Kp, Np = w_padded.shape
    N = b.shape[0]
    assert K <= Kp and N <= Np

    # Tile caps gated by generation: big tiles on v6e/v7x (32 MiB scoped VMEM),
    # conservative on v5e (16 MiB scoped default) so no vmem_limit_bytes needed.
    if _generous_vmem():
        cap_tk, cap_tn = 4096, 1024
    else:
        cap_tk, cap_tn = 1792, 512

    if M >= 256:
        tm = 256
        Mp = _round_up(M, 256)
    elif M >= 128:
        tm = 128
        Mp = _round_up(M, 128)
    else:
        Mp = _round_up(M, 8)
        tm = Mp

    tk = _pick_tile(Kp, cap_tk, min_blocks=1)
    tn = _pick_tile(Np, cap_tn, min_blocks=2)

    # Activations: bf16; pad only if misaligned (tiny for this model).
    xb = x.astype(jnp.bfloat16)
    if (Mp, Kp) != (M, K):
        xb = jnp.zeros((Mp, Kp), jnp.bfloat16).at[:M, :K].set(xb)

    # Bias row, padded (negligible size).
    if N == Np:
        bp = b.reshape(1, Np).astype(jnp.float32)
    else:
        bp = jnp.zeros((1, Np), jnp.float32).at[0, :N].set(b.astype(jnp.float32))

    acc_in_out = (out_dtype == jnp.float32)
    scratch_shapes = [] if acc_in_out else [pltpu.VMEM((tm, tn), jnp.float32)]

    grid = (Mp // tm, Np // tn, Kp // tk)

    # TODO(synk): on v7x consider pipeline_mode=pl.Buffered(3) on the weight
    # BlockSpec for the FC layers to hide HBM jitter with 2 TCs contending.
    out = pl.pallas_call(
        functools.partial(_matmul_bias_act_kernel, relu=relu),
        out_shape=jax.ShapeDtypeStruct((Mp, Np), out_dtype),
        grid_spec=pltpu.PrefetchScalarGridSpec(
            num_scalar_prefetch=0,
            grid=grid,
            in_specs=[
                pl.BlockSpec((tm, tk), lambda i, j, k: (i, k)),
                pl.BlockSpec((tk, tn), lambda i, j, k: (k, j)),
                pl.BlockSpec((1, tn), lambda i, j, k: (0, j)),
            ],
            out_specs=pl.BlockSpec((tm, tn), lambda i, j, k: (i, j)),
            scratch_shapes=scratch_shapes,
        ),
        compiler_params=pltpu.CompilerParams(
            dimension_semantics=("parallel", "parallel", "arbitrary")),
    )(xb, w_padded, bp)
    return out[:M, :N]


# ----------------------------------------------------------------------------
# Glue ops (cheap at these sizes; not the hot path)
# ----------------------------------------------------------------------------
def conv3x3_relu(x, w_padded, b):
    """x:[N,H,W,Cin], w_padded:[round_up(9*Cin,128), round_up(Cout,128)] bf16,
    b:[Cout]; stride=1, pad=1, fused ReLU.  im2col + Pallas matmul kernel."""
    # TODO(synk): at real VGG resolutions fold the 3x3 taps into the kernel as
    # an extra reduction grid axis (index_map offsets into padded NHWC) instead
    # of materializing the 9x im2col tensor in HBM.
    N, H, W, Cin = x.shape
    Cout = b.shape[0]
    xb = x.astype(jnp.bfloat16)                       # halve im2col HBM traffic
    xp = jnp.pad(xb, ((0, 0), (1, 1), (1, 1), (0, 0)))
    patches = jnp.concatenate(
        [xp[:, dh:dh + H, dw:dw + W, :] for dh in range(3) for dw in range(3)],
        axis=-1)                                      # [N,H,W,9*Cin] (dh,dw,c)
    patches = patches.reshape(N * H * W, 9 * Cin)
    out = matmul_bias_act(patches, w_padded, b, relu=True, out_dtype=jnp.bfloat16)
    return out.reshape(N, H, W, Cout)


def maxpool2x2(x):
    N, H, W, C = x.shape
    return x.reshape(N, H // 2, 2, W // 2, 2, C).max(axis=(2, 4))


def adaptive_avg_pool_matrix(in_size, out_size):
    """Separable averaging matrix reproducing nn.AdaptiveAvgPool2d bin edges."""
    P = np.zeros((out_size, in_size), np.float32)
    for i in range(out_size):
        s = (i * in_size) // out_size
        e = -(-((i + 1) * in_size) // out_size)   # ceil
        P[i, s:e] = 1.0 / (e - s)
    return jnp.asarray(P)


# ----------------------------------------------------------------------------
# VGG forward
# ----------------------------------------------------------------------------
def vgg_forward(params, x_nchw):
    x = jnp.transpose(x_nchw, (0, 2, 3, 1))                 # NCHW -> NHWC

    # features
    x = conv3x3_relu(x, params['conv1_w'], params['conv1_b'])
    x = maxpool2x2(x)
    x = conv3x3_relu(x, params['conv2_w'], params['conv2_b'])

    # AdaptiveAvgPool2d((7, 7))
    N, H, W, C = x.shape
    Ph = adaptive_avg_pool_matrix(H, 7)
    Pw = adaptive_avg_pool_matrix(W, 7)
    x = jnp.einsum('ih,jw,nhwc->nijc', Ph, Pw, x.astype(jnp.float32))  # [N,7,7,C]

    # Flatten in NHWC order; fc1_w rows were permuted at init to match, so this
    # equals torch.flatten(NCHW, 1) with the PyTorch Linear weight convention.
    x = x.reshape(N, 7 * 7 * C)

    # classifier: Linear+ReLU, Dropout, Linear+ReLU, Dropout, Linear
    # TODO(synk): training-mode Dropout RNG masking not implemented (eval-mode identity).
    x = matmul_bias_act(x, params['fc1_w'], params['fc1_b'], relu=True)
    x = matmul_bias_act(x, params['fc2_w'], params['fc2_b'], relu=True)
    x = matmul_bias_act(x, params['fc3_w'], params['fc3_b'], relu=False)
    return x


# ----------------------------------------------------------------------------
# Parameter init: weights are reshaped/padded to MXU tiles and cast to bf16
# ONCE here (static), so no padding copies or transposes happen per call.
# ----------------------------------------------------------------------------
def _pad_weight_for_matmul(w2d):
    K, N = w2d.shape
    Kp, Np = _round_up(K, 128), _round_up(N, 128)
    wb = w2d.astype(jnp.bfloat16)
    if (Kp, Np) == (K, N):
        return wb
    return jnp.zeros((Kp, Np), jnp.bfloat16).at[:K, :N].set(wb)


def _nhwc_flatten_perm(C, H=7, W=7):
    """perm[k_nhwc] = k_nchw : reorders (c,h,w)-ordered fc1 rows (PyTorch
    NCHW-flatten) into NHWC (h,w,c) flatten order."""
    h, w, c = np.meshgrid(np.arange(H), np.arange(W), np.arange(C), indexing='ij')
    return (c * H * W + h * W + w).reshape(-1)


def init_params(key, num_classes=1000):
    ks = jax.random.split(key, 5)

    def conv_kaiming_fan_out(k, cin, cout):
        std = np.sqrt(2.0 / (cout * 3 * 3))                  # fan_out, relu
        w = jax.random.normal(k, (3, 3, cin, cout), jnp.float32) * std
        return _pad_weight_for_matmul(w.reshape(9 * cin, cout))  # (dh,dw,c) order

    def linear(k, fan_in, fan_out, row_perm=None):
        # Rows generated in the PyTorch input-feature order; optionally permuted
        # once here so runtime activations can stay in NHWC flatten order.
        w = jax.random.normal(k, (fan_in, fan_out), jnp.float32) * 0.01
        if row_perm is not None:
            w = w[row_perm]
        return _pad_weight_for_matmul(w)

    return {
        'conv1_w': conv_kaiming_fan_out(ks[0], 3, 64),
        'conv1_b': jnp.zeros((64,), jnp.float32),
        'conv2_w': conv_kaiming_fan_out(ks[1], 64, 512),
        'conv2_b': jnp.zeros((512,), jnp.float32),
        'fc1_w': linear(ks[2], 512 * 7 * 7, 4096, row_perm=_nhwc_flatten_perm(512)),
        'fc1_b': jnp.zeros((4096,), jnp.float32),
        'fc2_w': linear(ks[3], 4096, 4096),
        'fc2_b': jnp.zeros((4096,), jnp.float32),
        'fc3_w': linear(ks[4], 4096, num_classes),
        'fc3_b': jnp.zeros((num_classes,), jnp.float32),
    }


if __name__ == "__main__":
    key = jax.random.PRNGKey(0)
    k_params, k_x = jax.random.split(key)

    num_classes = 1000
    params = init_params(k_params, num_classes=num_classes)

    # small NCHW input, VGG-style: batch=2, 3 channels, 16x16 spatial
    x = jax.random.normal(k_x, (2, 3, 16, 16), jnp.float32)

    fwd = jax.jit(vgg_forward)
    out = fwd(params, x)
    out = jax.block_until_ready(out)

    assert out.shape == (2, num_classes), out.shape
    assert jnp.all(jnp.isfinite(out))
    print("KERNEL_OK")
</pallas_src>

<mosaic_0001>
module attributes {stable_mosaic.version = 11 : i64} {
  func.func @_matmul_bias_act_kernel(%arg0: i32, %arg1: i32, %arg2: i32, %arg3: memref<256x128xbf16, #tpu.memory_space<vmem>>, %arg4: memref<128x128xbf16, #tpu.memory_space<vmem>>, %arg5: memref<1x128xf32, #tpu.memory_space<vmem>>, %arg6: memref<256x128xbf16, #tpu.memory_space<vmem>>, %arg7: memref<256x128xf32, #tpu.memory_space<vmem>>) attributes {dimension_semantics = [#tpu.dimension_semantics<parallel>, #tpu.dimension_semantics<parallel>, #tpu.dimension_semantics<arbitrary>], iteration_bounds = array<i64: 2, 1, 1>, scalar_prefetch = 0 : i64, scratch_operands = 1 : i64, tpu.core_type = #tpu.core_type<tc>, window_params = [{transform_indices = @transform_0, window_bounds = array<i64: 256, 128>}, {transform_indices = @transform_1, window_bounds = array<i64: 128, 128>}, {transform_indices = @transform_2, window_bounds = array<i64: 1, 128>}, {transform_indices = @transform_3, window_bounds = array<i64: 256, 128>}]} {
    %c0_i32 = arith.constant 0 : i32
    %0 = arith.cmpi eq, %arg2, %c0_i32 : i32
    %1 = arith.extui %0 : i1 to i32
    %c0_i32_0 = arith.constant 0 : i32
    %2 = arith.cmpi ne, %1, %c0_i32_0 : i32
    scf.if %2 {
      %c0_10 = arith.constant 0 : index
      %c0_11 = arith.constant 0 : index
      %12 = vector.load %arg5[%c0_10, %c0_11] : memref<1x128xf32, #tpu.memory_space<vmem>>, vector<1x128xf32>
      %13 = vector.shape_cast %12 : vector<1x128xf32> to vector<1x128xf32>
      %14 = vector.broadcast %13 : vector<1x128xf32> to vector<256x128xf32>
      %c0_12 = arith.constant 0 : index
      %c0_13 = arith.constant 0 : index
      %15 = vector.load %arg7[%c0_12, %c0_13] : memref<256x128xf32, #tpu.memory_space<vmem>>, vector<256x128xf32>
      tpu.vector_store %arg7[%c0_12, %c0_13], %14 {strides = array<i32>} : memref<256x128xf32, #tpu.memory_space<vmem>>, vector<256x128xf32>,
    } else {
    }
    %c0 = arith.constant 0 : index
    %c0_1 = arith.constant 0 : index
    %3 = vector.load %arg7[%c0, %c0_1] : memref<256x128xf32, #tpu.memory_space<vmem>>, vector<256x128xf32>
    %c0_2 = arith.constant 0 : index
    %c0_3 = arith.constant 0 : index
    %4 = vector.load %arg3[%c0_2, %c0_3] : memref<256x128xbf16, #tpu.memory_space<vmem>>, vector<256x128xbf16>
    %c0_4 = arith.constant 0 : index
    %c0_5 = arith.constant 0 : index
    %5 = vector.load %arg4[%c0_4, %c0_5] : memref<128x128xbf16, #tpu.memory_space<vmem>>, vector<128x128xbf16>
    %cst = arith.constant dense<0.000000e+00> : vector<256x128xf32>
    %6 = tpu.matmul %4, %5, %cst {dimension_numbers = #tpu.dot_dimension_numbers<[1], [0], [0], [1], [0, 0, 1, 1], [], []>} : vector<256x128xbf16>, vector<128x128xbf16>, vector<256x128xf32> -> vector<256x128xf32>
    %7 = arith.addf %3, %6 : vector<256x128xf32>
    %c0_6 = arith.constant 0 : index
    %c0_7 = arith.constant 0 : index
    %8 = vector.load %arg7[%c0_6, %c0_7] : memref<256x128xf32, #tpu.memory_space<vmem>>, vector<256x128xf32>
    tpu.vector_store %arg7[%c0_6, %c0_7], %7 {strides = array<i32>} : memref<256x128xf32, #tpu.memory_space<vmem>>, vector<256x128xf32>,
    %c0_i32_8 = arith.constant 0 : i32
    %9 = arith.cmpi eq, %arg2, %c0_i32_8 : i32
    %10 = arith.extui %9 : i1 to i32
    %c0_i32_9 = arith.constant 0 : i32
    %11 = arith.cmpi ne, %10, %c0_i32_9 : i32
    scf.if %11 {
      %c0_10 = arith.constant 0 : index
      %c0_11 = arith.constant 0 : index
      %12 = vector.load %arg7[%c0_10, %c0_11] : memref<256x128xf32, #tpu.memory_space<vmem>>, vector<256x128xf32>
      %cst_12 = arith.constant 0.000000e+00 : f32
      %13 = vector.broadcast %cst_12 : f32 to vector<256x128xf32>
      %14 = arith.maximumf %12, %13 : vector<256x128xf32>
      %15 = arith.truncf %14 : vector<256x128xf32> to vector<256x128xbf16>
      %c0_13 = arith.constant 0 : index
      %c0_14 = arith.constant 0 : index
      %16 = vector.load %arg6[%c0_13, %c0_14] : memref<256x128xbf16, #tpu.memory_space<vmem>>, vector<256x128xbf16>
      tpu.vector_store %arg6[%c0_13, %c0_14], %15 {strides = array<i32>} : memref<256x128xbf16, #tpu.memory_space<vmem>>, vector<256x128xbf16>,
    } else {
    }
    return
  }
  func.func @transform_0(%arg0: i32, %arg1: i32, %arg2: i32) -> (i32, i32) {
    %c0_i32 = arith.constant 0 : i32
    return %arg0, %arg2 : i32, i32
  }
  func.func @transform_1(%arg0: i32, %arg1: i32, %arg2: i32) -> (i32, i32) {
    %c0_i32 = arith.constant 0 : i32
    return %arg2, %arg1 : i32, i32
  }
  func.func @transform_2(%arg0: i32, %arg1: i32, %arg2: i32) -> (i32, i32) {
    %c0_i32 = arith.constant 0 : i32
    %c0_i32_0 = arith.constant 0 : i32
    return %c0_i32, %arg1 : i32, i32
  }
  func.func @transform_3(%arg0: i32, %arg1: i32, %arg2: i32) -> (i32, i32) {
    %c0_i32 = arith.constant 0 : i32
    return %arg0, %arg1 : i32, i32
  }
}

module attributes {stable_mosaic.version = 11 : i64} {
  func.func @_matmul_bias_act_kernel(%arg0: i32, %arg1: i32, %arg2: i32, %arg3: memref<8x1792xbf16, #tpu.memory_space<vmem>>, %arg4: memref<1792x512xbf16, #tpu.memory_space<vmem>>, %arg5: memref<1x512xf32, #tpu.memory_space<vmem>>, %arg6: memref<8x512xf32, #tpu.memory_space<vmem>>) attributes {dimension_semantics = [#tpu.dimension_semantics<parallel>, #tpu.dimension_semantics<parallel>, #tpu.dimension_semantics<arbitrary>], iteration_bounds = array<i64: 1, 8, 14>, scalar_prefetch = 0 : i64, scratch_operands = 0 : i64, tpu.core_type = #tpu.core_type<tc>, window_params = [{transform_indices = @transform_0, window_bounds = array<i64: 8, 1792>}, {transform_indices = @transform_1, window_bounds = array<i64: 1792, 512>}, {transform_indices = @transform_2, window_bounds = array<i64: 1, 512>}, {transform_indices = @transform_3, window_bounds = array<i64: 8, 512>}]} {
    %c0_i32 = arith.constant 0 : i32
    %0 = arith.cmpi eq, %arg2, %c0_i32 : i32
    %1 = arith.extui %0 : i1 to i32
    %c0_i32_0 = arith.constant 0 : i32
    %2 = arith.cmpi ne, %1, %c0_i32_0 : i32
    scf.if %2 {
      %c0_9 = arith.constant 0 : index
      %c0_10 = arith.constant 0 : index
      %12 = vector.load %arg5[%c0_9, %c0_10] : memref<1x512xf32, #tpu.memory_space<vmem>>, vector<1x512xf32>
      %13 = vector.shape_cast %12 : vector<1x512xf32> to vector<1x512xf32>
      %14 = vector.broadcast %13 : vector<1x512xf32> to vector<8x512xf32>
      %c0_11 = arith.constant 0 : index
      %c0_12 = arith.constant 0 : index
      %15 = vector.load %arg6[%c0_11, %c0_12] : memref<8x512xf32, #tpu.memory_space<vmem>>, vector<8x512xf32>
      tpu.vector_store %arg6[%c0_11, %c0_12], %14 {strides = array<i32>} : memref<8x512xf32, #tpu.memory_space<vmem>>, vector<8x512xf32>,
    } else {
    }
    %c0 = arith.constant 0 : index
    %c0_1 = arith.constant 0 : index
    %3 = vector.load %arg6[%c0, %c0_1] : memref<8x512xf32, #tpu.memory_space<vmem>>, vector<8x512xf32>
    %c0_2 = arith.constant 0 : index
    %c0_3 = arith.constant 0 : index
    %4 = vector.load %arg3[%c0_2, %c0_3] : memref<8x1792xbf16, #tpu.memory_space<vmem>>, vector<8x1792xbf16>
    %c0_4 = arith.constant 0 : index
    %c0_5 = arith.constant 0 : index
    %5 = vector.load %arg4[%c0_4, %c0_5] : memref<1792x512xbf16, #tpu.memory_space<vmem>>, vector<1792x512xbf16>
    %cst = arith.constant dense<0.000000e+00> : vector<8x512xf32>
    %6 = tpu.matmul %4, %5, %cst {dimension_numbers = #tpu.dot_dimension_numbers<[1], [0], [0], [1], [0, 0, 1, 1], [], []>} : vector<8x1792xbf16>, vector<1792x512xbf16>, vector<8x512xf32> -> vector<8x512xf32>
    %7 = arith.addf %3, %6 : vector<8x512xf32>
    %c0_6 = arith.constant 0 : index
    %c0_7 = arith.constant 0 : index
    %8 = vector.load %arg6[%c0_6, %c0_7] : memref<8x512xf32, #tpu.memory_space<vmem>>, vector<8x512xf32>
    tpu.vector_store %arg6[%c0_6, %c0_7], %7 {strides = array<i32>} : memref<8x512xf32, #tpu.memory_space<vmem>>, vector<8x512xf32>,
    %c13_i32 = arith.constant 13 : i32
    %9 = arith.cmpi eq, %arg2, %c13_i32 : i32
    %10 = arith.extui %9 : i1 to i32
    %c0_i32_8 = arith.constant 0 : i32
    %11 = arith.cmpi ne, %10, %c0_i32_8 : i32
    scf.if %11 {
      %c0_9 = arith.constant 0 : index
      %c0_10 = arith.constant 0 : index
      %12 = vector.load %arg6[%c0_9, %c0_10] : memref<8x512xf32, #tpu.memory_space<vmem>>, vector<8x512xf32>
      %cst_11 = arith.constant 0.000000e+00 : f32
      %13 = vector.broadcast %cst_11 : f32 to vector<8x512xf32>
      %14 = arith.maximumf %12, %13 : vector<8x512xf32>
      %c0_12 = arith.constant 0 : index
      %c0_13 = arith.constant 0 : index
      %15 = vector.load %arg6[%c0_12, %c0_13] : memref<8x512xf32, #tpu.memory_space<vmem>>, vector<8x512xf32>
      tpu.vector_store %arg6[%c0_12, %c0_13], %14 {strides = array<i32>} : memref<8x512xf32, #tpu.memory_space<vmem>>, vector<8x512xf32>,
    } else {
    }
    return
  }
  func.func @transform_0(%arg0: i32, %arg1: i32, %arg2: i32) -> (i32, i32) {
    %c0_i32 = arith.constant 0 : i32
    return %arg0, %arg2 : i32, i32
  }
  func.func @transform_1(%arg0: i32, %arg1: i32, %arg2: i32) -> (i32, i32) {
    %c0_i32 = arith.constant 0 : i32
    return %arg2, %arg1 : i32, i32
  }
  func.func @transform_2(%arg0: i32, %arg1: i32, %arg2: i32) -> (i32, i32) {
    %c0_i32 = arith.constant 0 : i32
    %c0_i32_0 = arith.constant 0 : i32
    return %c0_i32, %arg1 : i32, i32
  }
  func.func @transform_3(%arg0: i32, %arg1: i32, %arg2: i32) -> (i32, i32) {
    %c0_i32 = arith.constant 0 : i32
    return %arg0, %arg1 : i32, i32
  }
}

module attributes {stable_mosaic.version = 11 : i64} {
  func.func @_matmul_bias_act_kernel(%arg0: i32, %arg1: i32, %arg2: i32, %arg3: memref<128x640xbf16, #tpu.memory_space<vmem>>, %arg4: memref<640x256xbf16, #tpu.memory_space<vmem>>, %arg5: memref<1x256xf32, #tpu.memory_space<vmem>>, %arg6: memref<128x256xbf16, #tpu.memory_space<vmem>>, %arg7: memref<128x256xf32, #tpu.memory_space<vmem>>) attributes {dimension_semantics = [#tpu.dimension_semantics<parallel>, #tpu.dimension_semantics<parallel>, #tpu.dimension_semantics<arbitrary>], iteration_bounds = array<i64: 1, 2, 1>, scalar_prefetch = 0 : i64, scratch_operands = 1 : i64, tpu.core_type = #tpu.core_type<tc>, window_params = [{transform_indices = @transform_0, window_bounds = array<i64: 128, 640>}, {transform_indices = @transform_1, window_bounds = array<i64: 640, 256>}, {transform_indices = @transform_2, window_bounds = array<i64: 1, 256>}, {transform_indices = @transform_3, window_bounds = array<i64: 128, 256>}]} {
    %c0_i32 = arith.constant 0 : i32
    %0 = arith.cmpi eq, %arg2, %c0_i32 : i32
    %1 = arith.extui %0 : i1 to i32
    %c0_i32_0 = arith.constant 0 : i32
    %2 = arith.cmpi ne, %1, %c0_i32_0 : i32
    scf.if %2 {
      %c0_10 = arith.constant 0 : index
      %c0_11 = arith.constant 0 : index
      %12 = vector.load %arg5[%c0_10, %c0_11] : memref<1x256xf32, #tpu.memory_space<vmem>>, vector<1x256xf32>
      %13 = vector.shape_cast %12 : vector<1x256xf32> to vector<1x256xf32>
      %14 = vector.broadcast %13 : vector<1x256xf32> to vector<128x256xf32>
      %c0_12 = arith.constant 0 : index
      %c0_13 = arith.constant 0 : index
      %15 = vector.load %arg7[%c0_12, %c0_13] : memref<128x256xf32, #tpu.memory_space<vmem>>, vector<128x256xf32>
      tpu.vector_store %arg7[%c0_12, %c0_13], %14 {strides = array<i32>} : memref<128x256xf32, #tpu.memory_space<vmem>>, vector<128x256xf32>,
    } else {
    }
    %c0 = arith.constant 0 : index
    %c0_1 = arith.constant 0 : index
    %3 = vector.load %arg7[%c0, %c0_1] : memref<128x256xf32, #tpu.memory_space<vmem>>, vector<128x256xf32>
    %c0_2 = arith.constant 0 : index
    %c0_3 = arith.constant 0 : index
    %4 = vector.load %arg3[%c0_2, %c0_3] : memref<128x640xbf16, #tpu.memory_space<vmem>>, vector<128x640xbf16>
    %c0_4 = arith.constant 0 : index
    %c0_5 = arith.constant 0 : index
    %5 = vector.load %arg4[%c0_4, %c0_5] : memref<640x256xbf16, #tpu.memory_space<vmem>>, vector<640x256xbf16>
    %cst = arith.constant dense<0.000000e+00> : vector<128x256xf32>
    %6 = tpu.matmul %4, %5, %cst {dimension_numbers = #tpu.dot_dimension_numbers<[1], [0], [0], [1], [0, 0, 1, 1], [], []>} : vector<128x640xbf16>, vector<640x256xbf16>, vector<128x256xf32> -> vector<128x256xf32>
    %7 = arith.addf %3, %6 : vector<128x256xf32>
    %c0_6 = arith.constant 0 : index
    %c0_7 = arith.constant 0 : index
    %8 = vector.load %arg7[%c0_6, %c0_7] : memref<128x256xf32, #tpu.memory_space<vmem>>, vector<128x256xf32>
    tpu.vector_store %arg7[%c0_6, %c0_7], %7 {strides = array<i32>} : memref<128x256xf32, #tpu.memory_space<vmem>>, vector<128x256xf32>,
    %c0_i32_8 = arith.constant 0 : i32
    %9 = arith.cmpi eq, %arg2, %c0_i32_8 : i32
    %10 = arith.extui %9 : i1 to i32
    %c0_i32_9 = arith.constant 0 : i32
    %11 = arith.cmpi ne, %10, %c0_i32_9 : i32
    scf.if %11 {
      %c0_10 = arith.constant 0 : index
      %c0_11 = arith.constant 0 : index
      %12 = vector.load %arg7[%c0_10, %c0_11] : memref<128x256xf32, #tpu.memory_space<vmem>>, vector<128x256xf32>
      %cst_12 = arith.constant 0.000000e+00 : f32
      %13 = vector.broadcast %cst_12 : f32 to vector<128x256xf32>
      %14 = arith.maximumf %12, %13 : vector<128x256xf32>
      %15 = arith.truncf %14 : vector<128x256xf32> to vector<128x256xbf16>
      %c0_13 = arith.constant 0 : index
      %c0_14 = arith.constant 0 : index
      %16 = vector.load %arg6[%c0_13, %c0_14] : memref<128x256xbf16, #tpu.memory_space<vmem>>, vector<128x256xbf16>
      tpu.vector_store %arg6[%c0_13, %c0_14], %15 {strides = array<i32>} : memref<128x256xbf16, #tpu.memory_space<vmem>>, vector<128x256xbf16>,
    } else {
    }
    return
  }
  func.func @transform_0(%arg0: i32, %arg1: i32, %arg2: i32) -> (i32, i32) {
    %c0_i32 = arith.constant 0 : i32
    return %arg0, %arg2 : i32, i32
  }
  func.func @transform_1(%arg0: i32, %arg1: i32, %arg2: i32) -> (i32, i32) {
    %c0_i32 = arith.constant 0 : i32
    return %arg2, %arg1 : i32, i32
  }
  func.func @transform_2(%arg0: i32, %arg1: i32, %arg2: i32) -> (i32, i32) {
    %c0_i32 = arith.constant 0 : i32
    %c0_i32_0 = arith.constant 0 : i32
    return %c0_i32, %arg1 : i32, i32
  }
  func.func @transform_3(%arg0: i32, %arg1: i32, %arg2: i32) -> (i32, i32) {
    %c0_i32 = arith.constant 0 : i32
    return %arg0, %arg1 : i32, i32
  }
}

module attributes {stable_mosaic.version = 11 : i64} {
  func.func @_matmul_bias_act_kernel(%arg0: i32, %arg1: i32, %arg2: i32, %arg3: memref<8x1024xbf16, #tpu.memory_space<vmem>>, %arg4: memref<1024x512xbf16, #tpu.memory_space<vmem>>, %arg5: memref<1x512xf32, #tpu.memory_space<vmem>>, %arg6: memref<8x512xf32, #tpu.memory_space<vmem>>) attributes {dimension_semantics = [#tpu.dimension_semantics<parallel>, #tpu.dimension_semantics<parallel>, #tpu.dimension_semantics<arbitrary>], iteration_bounds = array<i64: 1, 8, 4>, scalar_prefetch = 0 : i64, scratch_operands = 0 : i64, tpu.core_type = #tpu.core_type<tc>, window_params = [{transform_indices = @transform_0, window_bounds = array<i64: 8, 1024>}, {transform_indices = @transform_1, window_bounds = array<i64: 1024, 512>}, {transform_indices = @transform_2, window_bounds = array<i64: 1, 512>}, {transform_indices = @transform_3, window_bounds = array<i64: 8, 512>}]} {
    %c0_i32 = arith.constant 0 : i32
    %0 = arith.cmpi eq, %arg2, %c0_i32 : i32
    %1 = arith.extui %0 : i1 to i32
    %c0_i32_0 = arith.constant 0 : i32
    %2 = arith.cmpi ne, %1, %c0_i32_0 : i32
    scf.if %2 {
      %c0_9 = arith.constant 0 : index
      %c0_10 = arith.constant 0 : index
      %12 = vector.load %arg5[%c0_9, %c0_10] : memref<1x512xf32, #tpu.memory_space<vmem>>, vector<1x512xf32>
      %13 = vector.shape_cast %12 : vector<1x512xf32> to vector<1x512xf32>
      %14 = vector.broadcast %13 : vector<1x512xf32> to vector<8x512xf32>
      %c0_11 = arith.constant 0 : index
      %c0_12 = arith.constant 0 : index
      %15 = vector.load %arg6[%c0_11, %c0_12] : memref<8x512xf32, #tpu.memory_space<vmem>>, vector<8x512xf32>
      tpu.vector_store %arg6[%c0_11, %c0_12], %14 {strides = array<i32>} : memref<8x512xf32, #tpu.memory_space<vmem>>, vector<8x512xf32>,
    } else {
    }
    %c0 = arith.constant 0 : index
    %c0_1 = arith.constant 0 : index
    %3 = vector.load %arg6[%c0, %c0_1] : memref<8x512xf32, #tpu.memory_space<vmem>>, vector<8x512xf32>
    %c0_2 = arith.constant 0 : index
    %c0_3 = arith.constant 0 : index
    %4 = vector.load %arg3[%c0_2, %c0_3] : memref<8x1024xbf16, #tpu.memory_space<vmem>>, vector<8x1024xbf16>
    %c0_4 = arith.constant 0 : index
    %c0_5 = arith.constant 0 : index
    %5 = vector.load %arg4[%c0_4, %c0_5] : memref<1024x512xbf16, #tpu.memory_space<vmem>>, vector<1024x512xbf16>
    %cst = arith.constant dense<0.000000e+00> : vector<8x512xf32>
    %6 = tpu.matmul %4, %5, %cst {dimension_numbers = #tpu.dot_dimension_numbers<[1], [0], [0], [1], [0, 0, 1, 1], [], []>} : vector<8x1024xbf16>, vector<1024x512xbf16>, vector<8x512xf32> -> vector<8x512xf32>
    %7 = arith.addf %3, %6 : vector<8x512xf32>
    %c0_6 = arith.constant 0 : index
    %c0_7 = arith.constant 0 : index
    %8 = vector.load %arg6[%c0_6, %c0_7] : memref<8x512xf32, #tpu.memory_space<vmem>>, vector<8x512xf32>
    tpu.vector_store %arg6[%c0_6, %c0_7], %7 {strides = array<i32>} : memref<8x512xf32, #tpu.memory_space<vmem>>, vector<8x512xf32>,
    %c3_i32 = arith.constant 3 : i32
    %9 = arith.cmpi eq, %arg2, %c3_i32 : i32
    %10 = arith.extui %9 : i1 to i32
    %c0_i32_8 = arith.constant 0 : i32
    %11 = arith.cmpi ne, %10, %c0_i32_8 : i32
    scf.if %11 {
      %c0_9 = arith.constant 0 : index
      %c0_10 = arith.constant 0 : index
      %12 = vector.load %arg6[%c0_9, %c0_10] : memref<8x512xf32, #tpu.memory_space<vmem>>, vector<8x512xf32>
      %cst_11 = arith.constant 0.000000e+00 : f32
      %13 = vector.broadcast %cst_11 : f32 to vector<8x512xf32>
      %14 = arith.maximumf %12, %13 : vector<8x512xf32>
      %c0_12 = arith.constant 0 : index
      %c0_13 = arith.constant 0 : index
      %15 = vector.load %arg6[%c0_12, %c0_13] : memref<8x512xf32, #tpu.memory_space<vmem>>, vector<8x512xf32>
      tpu.vector_store %arg6[%c0_12, %c0_13], %14 {strides = array<i32>} : memref<8x512xf32, #tpu.memory_space<vmem>>, vector<8x512xf32>,
    } else {
    }
    return
  }
  func.func @transform_0(%arg0: i32, %arg1: i32, %arg2: i32) -> (i32, i32) {
    %c0_i32 = arith.constant 0 : i32
    return %arg0, %arg2 : i32, i32
  }
  func.func @transform_1(%arg0: i32, %arg1: i32, %arg2: i32) -> (i32, i32) {
    %c0_i32 = arith.constant 0 : i32
    return %arg2, %arg1 : i32, i32
  }
  func.func @transform_2(%arg0: i32, %arg1: i32, %arg2: i32) -> (i32, i32) {
    %c0_i32 = arith.constant 0 : i32
    %c0_i32_0 = arith.constant 0 : i32
    return %c0_i32, %arg1 : i32, i32
  }
  func.func @transform_3(%arg0: i32, %arg1: i32, %arg2: i32) -> (i32, i32) {
    %c0_i32 = arith.constant 0 : i32
    return %arg0, %arg1 : i32, i32
  }
}

module attributes {stable_mosaic.version = 11 : i64} {
  func.func @_matmul_bias_act_kernel(%arg0: i32, %arg1: i32, %arg2: i32, %arg3: memref<8x1024xbf16, #tpu.memory_space<vmem>>, %arg4: memref<1024x512xbf16, #tpu.memory_space<vmem>>, %arg5: memref<1x512xf32, #tpu.memory_space<vmem>>, %arg6: memref<8x512xf32, #tpu.memory_space<vmem>>) attributes {dimension_semantics = [#tpu.dimension_semantics<parallel>, #tpu.dimension_semantics<parallel>, #tpu.dimension_semantics<arbitrary>], iteration_bounds = array<i64: 1, 2, 4>, scalar_prefetch = 0 : i64, scratch_operands = 0 : i64, tpu.core_type = #tpu.core_type<tc>, window_params = [{transform_indices = @transform_0, window_bounds = array<i64: 8, 1024>}, {transform_indices = @transform_1, window_bounds = array<i64: 1024, 512>}, {transform_indices = @transform_2, window_bounds = array<i64: 1, 512>}, {transform_indices = @transform_3, window_bounds = array<i64: 8, 512>}]} {
    %c0_i32 = arith.constant 0 : i32
    %0 = arith.cmpi eq, %arg2, %c0_i32 : i32
    %1 = arith.extui %0 : i1 to i32
    %c0_i32_0 = arith.constant 0 : i32
    %2 = arith.cmpi ne, %1, %c0_i32_0 : i32
    scf.if %2 {
      %c0_8 = arith.constant 0 : index
      %c0_9 = arith.constant 0 : index
      %9 = vector.load %arg5[%c0_8, %c0_9] : memref<1x512xf32, #tpu.memory_space<vmem>>, vector<1x512xf32>
      %10 = vector.shape_cast %9 : vector<1x512xf32> to vector<1x512xf32>
      %11 = vector.broadcast %10 : vector<1x512xf32> to vector<8x512xf32>
      %c0_10 = arith.constant 0 : index
      %c0_11 = arith.constant 0 : index
      %12 = vector.load %arg6[%c0_10, %c0_11] : memref<8x512xf32, #tpu.memory_space<vmem>>, vector<8x512xf32>
      tpu.vector_store %arg6[%c0_10, %c0_11], %11 {strides = array<i32>} : memref<8x512xf32, #tpu.memory_space<vmem>>, vector<8x512xf32>,
    } else {
    }
    %c0 = arith.constant 0 : index
    %c0_1 = arith.constant 0 : index
    %3 = vector.load %arg6[%c0, %c0_1] : memref<8x512xf32, #tpu.memory_space<vmem>>, vector<8x512xf32>
    %c0_2 = arith.constant 0 : index
    %c0_3 = arith.constant 0 : index
    %4 = vector.load %arg3[%c0_2, %c0_3] : memref<8x1024xbf16, #tpu.memory_space<vmem>>, vector<8x1024xbf16>
    %c0_4 = arith.constant 0 : index
    %c0_5 = arith.constant 0 : index
    %5 = vector.load %arg4[%c0_4, %c0_5] : memref<1024x512xbf16, #tpu.memory_space<vmem>>, vector<1024x512xbf16>
    %cst = arith.constant dense<0.000000e+00> : vector<8x512xf32>
    %6 = tpu.matmul %4, %5, %cst {dimension_numbers = #tpu.dot_dimension_numbers<[1], [0], [0], [1], [0, 0, 1, 1], [], []>} : vector<8x1024xbf16>, vector<1024x512xbf16>, vector<8x512xf32> -> vector<8x512xf32>
    %7 = arith.addf %3, %6 : vector<8x512xf32>
    %c0_6 = arith.constant 0 : index
    %c0_7 = arith.constant 0 : index
    %8 = vector.load %arg6[%c0_6, %c0_7] : memref<8x512xf32, #tpu.memory_space<vmem>>, vector<8x512xf32>
    tpu.vector_store %arg6[%c0_6, %c0_7], %7 {strides = array<i32>} : memref<8x512xf32, #tpu.memory_space<vmem>>, vector<8x512xf32>,
    return
  }
  func.func @transform_0(%arg0: i32, %arg1: i32, %arg2: i32) -> (i32, i32) {
    %c0_i32 = arith.constant 0 : i32
    return %arg0, %arg2 : i32, i32
  }
  func.func @transform_1(%arg0: i32, %arg1: i32, %arg2: i32) -> (i32, i32) {
    %c0_i32 = arith.constant 0 : i32
    return %arg2, %arg1 : i32, i32
  }
  func.func @transform_2(%arg0: i32, %arg1: i32, %arg2: i32) -> (i32, i32) {
    %c0_i32 = arith.constant 0 : i32
    %c0_i32_0 = arith.constant 0 : i32
    return %c0_i32, %arg1 : i32, i32
  }
  func.func @transform_3(%arg0: i32, %arg1: i32, %arg2: i32) -> (i32, i32) {
    %c0_i32 = arith.constant 0 : i32
    return %arg0, %arg1 : i32, i32
  }
}

</mosaic_0001>

<bundles_post_ra>
// kernel: vgg_forward.5
= control target key start
LH: loop header
LB: loop body
LE: loop exit
PB: predicated region body
PF: predicated region fallthrough
CT: control target
= control target key end

     0   :  { %8 = vsyncpa [#allocation4], 0  ;;  %s1284_s12 = smov 0   ;;  %s1286_s13 = smov 0   ;;  %s1404_s0 = inlined_call_operand.vmem [shape: bf16[512,128], index: 0, kind: input, shape index: {}]   ;;  %s1405_s1 = inlined_call_operand.hbm [shape: bf16[128,128], index: 1, kind: input, shape index: {}]   ;;  %s1406_s2 = inlined_call_operand.vmem [shape: f32[1,128], index: 2, kind: input, shape index: {}]   ;;  %s1407_s3 = inlined_call_operand.vmem [shape: bf16[512,128], index: 3, kind: output, shape index: {}]  }
   0x1   :  { %s1288_s14 = smov 0  }
   0x2 LB: > { %s912_s15 = sadd.s32 4294967295, %s1259_s14   ;;  %s33_s16 = sadd.s32 1, %s1255_s13  ;;  %s1259_s14 = sphi %s1288_s14, %s14_s14   ;;  %s1255_s13 = sphi %s1286_s13, %s1409_s13   ;;  %s1251_s12 = sphi %s1284_s12, %s1408_s12  }
   0x3   : > { %p35_p0 = scmp.ge.s32.totalorder %s33_s16, 2  ;;  %p914_p1 = scmp.ge.s32.totalorder %s1259_s14, 1 }
   0x4   : > { %p148_p2 = scmp.lt.s32.totalorder %s1259_s14, 3  ;;  %p1173_p4 = scmp.eq.s32.totalorder %s912_s15, 0 }
   0x5   : > { %s1411_s16 = smov (%p35_p0, %s33_s16), 0  ;;  %s163_s19 = sshll.u32 %s1405_s1, 4  ;;  %s164_s19 = int_to_ptr.hbm [resolvable:$true] %s163_s19 }
   0x6   : > { %p149_p3 = pnand %p914_p1, %p148_p2  ;;  %s1261_s20 = smov [#allocation3]  }
   0x7   : > { %s165_s21 = sshll.u32 %s1261_s20, 4  ;;  %s1262_s22 = smov 64   ;;  %s166_s21 = int_to_ptr.vmem [resolvable:$true] %s165_s21 }
   0x8   : > { %p1169_p5 = pneg %p149_p3  ;;  %s1263_s23 = smov 4  }
   0x9   : > { %199 = sbr.rel (%p149_p3) target bundleno = 244 (0xf4), region = 32 }
   0xa   : > { %p1170_p6 = pnand %p1173_p4, %p1169_p5 }
   0xc   : > { %1172 = dma.hbm_to_vmem [thread:$0]  (!%p1170_p6), %s164_s19, 1024, %s166_s21, [#allocation4], %s1262_s22, %s1262_s22, %s1263_s23  }
   0xe   : > { %1246 = dma.done.wait (%p1173_p4), [#allocation4], 1024  }
   0xf   : > { %1248 = vsyncadd (%p1173_p4), [#allocation4], 4294966272  ;;  %v1045_v0 = vld [vmem:[#allocation3 + $0x38] sm:$0xff]  ;;  %v1044_v1 = vld [vmem:[#allocation3 + $0x30] sm:$0xff]  ;;  %s920_s24 = sshll.u32 %s1251_s12, 5 }
  0x10   : > { %519 = vmatpush.bf16.msra.mxu0 %v1045_v0  ;;  %1141 = vmatpush.bf16.msra.mxu1 %v1045_v0  ;;  %v1043_v2 = vld [vmem:[#allocation3 + $0x28] sm:$0xff]  ;;  %v1042_v3 = vld [vmem:[#allocation3 + $0x20] sm:$0xff]  ;;  %v1041_v4 = vld [vmem:[#allocation3 + $0x18] sm:$0xff]  ;;  %p234_p7 = scmp.lt.s32.totalorder %s920_s24, 63 }
  0x11   : > { %1142 = vmatpush.bf16.msra.mxu2 %v1045_v0  ;;  %1143 = vmatpush.bf16.msra.mxu3 %v1045_v0  ;;  %v1040_v5 = vld [vmem:[#allocation3 + $0x10] sm:$0xff]  ;;  %v1039_v6 = vld [vmem:[#allocation3 + $0x8] sm:$0xff]  ;;  %v1038_v7 = vld [vmem:[#allocation3] sm:$0xff] }
  0x12   : > { %s1413_s24 = smov (!%p234_p7, %s920_s24), 63  ;;  %v1338_v26 = vld [vmem:[%s1406_s2] ss:$0 sm:$0xff] }
  0x13   : > { %s921_s25 = sshll.u32 %s1413_s24, 2 }
  0x14   : > { %520 = vmatpush.bf16.msra.mxu0 %v1044_v1  ;;  %1144 = vmatpush.bf16.msra.mxu1 %v1044_v1  ;;  %s1317_s28 = scalar_lea.vmem %s1404_s0, %s921_s25  ;;  %s1349_s6 = scalar_lea.vmem %s1407_s3, %s921_s25 }
  0x15   : > { %1145 = vmatpush.bf16.msra.mxu2 %v1044_v1  ;;  %1146 = vmatpush.bf16.msra.mxu3 %v1044_v1  ;;  %v1022_v8 = vld [vmem:[%s1317_s28] sm:$0xff]  ;;  %v1023_v12 = vld [vmem:[%s1317_s28 + $0x8] sm:$0xff]  ;;  %v1024_v16 = vld [vmem:[%s1317_s28 + $0x10] sm:$0xff] }
  0x16   : > { %v1026_v9 = vld [vmem:[%s1317_s28 + $0x20] sm:$0xff]  ;;  %v1027_v13 = vld [vmem:[%s1317_s28 + $0x28] sm:$0xff]  ;;  %v1028_v17 = vld [vmem:[%s1317_s28 + $0x30] sm:$0xff] }
  0x17   : > { %v1030_v10 = vld [vmem:[%s1317_s28 + $0x40] sm:$0xff]  ;;  %v1031_v14 = vld [vmem:[%s1317_s28 + $0x48] sm:$0xff]  ;;  %v1032_v18 = vld [vmem:[%s1317_s28 + $0x50] sm:$0xff] }
  0x18   : > { %521 = vmatpush.bf16.msra.mxu0 %v1043_v2  ;;  %1147 = vmatpush.bf16.msra.mxu1 %v1043_v2  ;;  %v1034_v11 = vld [vmem:[%s1317_s28 + $0x60] sm:$0xff]  ;;  %v1035_v15 = vld [vmem:[%s1317_s28 + $0x68] sm:$0xff]  ;;  %v1036_v19 = vld [vmem:[%s1317_s28 + $0x70] sm:$0xff] }
  0x19   : > { %1148 = vmatpush.bf16.msra.mxu2 %v1043_v2  ;;  %1149 = vmatpush.bf16.msra.mxu3 %v1043_v2  ;;  %v1025_v20 = vld [vmem:[%s1317_s28 + $0x18] sm:$0xff] }
  0x1a   : > { %v1029_v21 = vld [vmem:[%s1317_s28 + $0x38] sm:$0xff] }
  0x1b   : > { %v1033_v22 = vld [vmem:[%s1317_s28 + $0x58] sm:$0xff] }
  0x1c   : > { %522 = vmatpush.bf16.msra.mxu0 %v1042_v3  ;;  %1150 = vmatpush.bf16.msra.mxu1 %v1042_v3  ;;  %v1037_v23 = vld [vmem:[%s1317_s28 + $0x78] sm:$0xff] }
  0x1d   : > { %1151 = vmatpush.bf16.msra.mxu2 %v1042_v3  ;;  %1152 = vmatpush.bf16.msra.mxu3 %v1042_v3 }
  0x20   : > { %523 = vmatpush.bf16.msra.mxu0 %v1041_v4  ;;  %1153 = vmatpush.bf16.msra.mxu1 %v1041_v4 }
  0x21   : > { %1154 = vmatpush.bf16.msra.mxu2 %v1041_v4  ;;  %1155 = vmatpush.bf16.msra.mxu3 %v1041_v4 }
  0x24   : > { %524 = vmatpush.bf16.msra.mxu0 %v1040_v5  ;;  %1156 = vmatpush.bf16.msra.mxu1 %v1040_v5 }
  0x25   : > { %1157 = vmatpush.bf16.msra.mxu2 %v1040_v5  ;;  %1158 = vmatpush.bf16.msra.mxu3 %v1040_v5 }
  0x28   : > { %525 = vmatpush.bf16.msra.mxu0 %v1039_v6  ;;  %1159 = vmatpush.bf16.msra.mxu1 %v1039_v6 }
  0x29   : > { %1160 = vmatpush.bf16.msra.mxu2 %v1039_v6  ;;  %1161 = vmatpush.bf16.msra.mxu3 %v1039_v6 }
  0x2c   : > { %526 = vmatpush.bf16.msra.mxu0 %v1038_v7  ;;  %1162 = vmatpush.bf16.msra.mxu1 %v1038_v7 }
  0x2d   : > { %1163 = vmatpush.bf16.msra.mxu2 %v1038_v7  ;;  %1164 = vmatpush.bf16.msra.mxu3 %v1038_v7 }
  0x2f   : > { %527 = vmatmul.bf16.vlgmr.msra.gmra.mxu0 %v1022_v8  ;;  %547 = vmatmul.bf16.vlgmr.msra.gmra.mxu1 %v1026_v9 }
  0x30   : > { %567 = vmatmul.bf16.vlgmr.msra.gmra.mxu2 %v1030_v10  ;;  %587 = vmatmul.bf16.vlgmr.msra.gmra.mxu3 %v1034_v11 }
  0x3f   : > { %532 = vmatmul.bf16.gmra.mxu0 %v1023_v12  ;;  %552 = vmatmul.bf16.gmra.mxu1 %v1027_v13 }
  0x40   : > { %572 = vmatmul.bf16.gmra.mxu2 %v1031_v14  ;;  %592 = vmatmul.bf16.gmra.mxu3 %v1035_v15 }
  0x4f   : > { %537 = vmatmul.bf16.gmra.mxu0 %v1024_v16  ;;  %557 = vmatmul.bf16.gmra.mxu1 %v1028_v17 }
  0x50   : > { %577 = vmatmul.bf16.gmra.mxu2 %v1032_v18  ;;  %597 = vmatmul.bf16.gmra.mxu3 %v1036_v19 }
  0x5f   : > { %542 = vmatmul.bf16.gmra.mxu0 %v1025_v20  ;;  %562 = vmatmul.bf16.gmra.mxu1 %v1029_v21 }
  0x60   : > { %582 = vmatmul.bf16.gmra.mxu2 %v1033_v22  ;;  %602 = vmatmul.bf16.gmra.mxu3 %v1037_v23 }
  0xac   : > { %v528_v24 = vpop.f32.mrf.mxu0  ;;  %v548_v25 = vpop.f32.mrf.mxu1 }
  0xad   : > { %v608_v27 = vadd.f32 %v1338_v26, %v528_v24  ;;  %v616_v28 = vadd.f32 %v1338_v26, %v548_v25 }
  0xaf   : > { %v707_v35 = vmax.f32 %v608_v27, 0.0  ;;  %v715_v36 = vmax.f32 %v616_v28, 0.0 }
  0xb3   : > { %v568_v29 = vpop.f32.mrf.mxu2  ;;  %v588_v30 = vpop.f32.mrf.mxu3 }
  0xb4   : > { %v530_v31 = vpop.f32.mrf.mxu0  ;;  %v550_v32 = vpop.f32.mrf.mxu1  ;;  %v624_v41 = vadd.f32 %v1338_v26, %v568_v29  ;;  %v632_v42 = vadd.f32 %v1338_v26, %v588_v30 }
  0xb5   : > { %v609_v33 = vadd.f32 %v1338_v26, %v530_v31  ;;  %v617_v34 = vadd.f32 %v1338_v26, %v550_v32 }
  0xb6   : > { %v723_v49 = vmax.f32 %v624_v41, 0.0  ;;  %v731_v50 = vmax.f32 %v632_v42, 0.0 }
  0xb7   : > { %v708_v37 = vmax.f32 %v609_v33, 0.0  ;;  %v716_v38 = vmax.f32 %v617_v34, 0.0 }
  0xb9   : > { %v1049_v39 = vpack.c.bf16 %v708_v37, %v707_v35  ;;  %v1069_v40 = vpack.c.bf16 %v716_v38, %v715_v36 }
  0xbb   : > { %1050 = vst [vmem:[%s1349_s6] sm:$0xff] %v1049_v39   ;;  %v570_v43 = vpop.f32.mrf.mxu2  ;;  %v590_v44 = vpop.f32.mrf.mxu3 }
  0xbc   : > { %1129 = vst [vmem:[%s1349_s6 + $0x20] sm:$0xff] %v1069_v40   ;;  %v625_v45 = vadd.f32 %v1338_v26, %v570_v43  ;;  %v633_v46 = vadd.f32 %v1338_v26, %v590_v44  ;;  %v533_v47 = vpop.f32.mrf.mxu0  ;;  %v553_v48 = vpop.f32.mrf.mxu1 }
  0xbd   : > { %v610_v55 = vadd.f32 %v1338_v26, %v533_v47  ;;  %v618_v56 = vadd.f32 %v1338_v26, %v553_v48 }
  0xbe   : > { %v724_v51 = vmax.f32 %v625_v45, 0.0  ;;  %v732_v52 = vmax.f32 %v633_v46, 0.0 }
  0xbf   : > { %v709_v63 = vmax.f32 %v610_v55, 0.0  ;;  %v717_v0 = vmax.f32 %v618_v56, 0.0 }
  0xc0   : > { %v1089_v53 = vpack.c.bf16 %v724_v51, %v723_v49  ;;  %v1109_v54 = vpack.c.bf16 %v732_v52, %v731_v50 }
  0xc2   : > { %1133 = vst [vmem:[%s1349_s6 + $0x40] sm:$0xff] %v1089_v53  }
  0xc3   : > { %1137 = vst [vmem:[%s1349_s6 + $0x60] sm:$0xff] %v1109_v54   ;;  %v573_v57 = vpop.f32.mrf.mxu2  ;;  %v593_v58 = vpop.f32.mrf.mxu3 }
  0xc4   : > { %v535_v59 = vpop.f32.mrf.mxu0  ;;  %v555_v60 = vpop.f32.mrf.mxu1  ;;  %v626_v5 = vadd.f32 %v1338_v26, %v573_v57  ;;  %v634_v6 = vadd.f32 %v1338_v26, %v593_v58 }
  0xc5   : > { %v611_v61 = vadd.f32 %v1338_v26, %v535_v59  ;;  %v619_v62 = vadd.f32 %v1338_v26, %v555_v60 }
  0xc6   : > { %v725_v13 = vmax.f32 %v626_v5, 0.0  ;;  %v733_v14 = vmax.f32 %v634_v6, 0.0 }
  0xc7   : > { %v710_v1 = vmax.f32 %v611_v61, 0.0  ;;  %v718_v2 = vmax.f32 %v619_v62, 0.0 }
  0xc9   : > { %v1054_v3 = vpack.c.bf16 %v710_v1, %v709_v63  ;;  %v1074_v4 = vpack.c.bf16 %v718_v2, %v717_v0 }
  0xcb   : > { %1126 = vst [vmem:[%s1349_s6 + $0x8] sm:$0xff] %v1054_v3   ;;  %v575_v7 = vpop.f32.mrf.mxu2  ;;  %v595_v8 = vpop.f32.mrf.mxu3 }
  0xcc   : > { %1130 = vst [vmem:[%s1349_s6 + $0x28] sm:$0xff] %v1074_v4   ;;  %v627_v9 = vadd.f32 %v1338_v26, %v575_v7  ;;  %v635_v10 = vadd.f32 %v1338_v26, %v595_v8  ;;  %v538_v11 = vpop.f32.mrf.mxu0  ;;  %v558_v12 = vpop.f32.mrf.mxu1 }
  0xcd   : > { %v612_v19 = vadd.f32 %v1338_v26, %v538_v11  ;;  %v620_v20 = vadd.f32 %v1338_v26, %v558_v12 }
  0xce   : > { %v726_v15 = vmax.f32 %v627_v9, 0.0  ;;  %v734_v16 = vmax.f32 %v635_v10, 0.0 }
  0xcf   : > { %v711_v28 = vmax.f32 %v612_v19, 0.0  ;;  %v719_v29 = vmax.f32 %v620_v20, 0.0 }
  0xd0   : > { %v1094_v17 = vpack.c.bf16 %v726_v15, %v725_v13  ;;  %v1114_v18 = vpack.c.bf16 %v734_v16, %v733_v14 }
  0xd2   : > { %1134 = vst [vmem:[%s1349_s6 + $0x48] sm:$0xff] %v1094_v17  }
  0xd3   : > { %1138 = vst [vmem:[%s1349_s6 + $0x68] sm:$0xff] %v1114_v18   ;;  %v578_v21 = vpop.f32.mrf.mxu2  ;;  %v598_v22 = vpop.f32.mrf.mxu3 }
  0xd4   : > { %v540_v23 = vpop.f32.mrf.mxu0  ;;  %v560_v24 = vpop.f32.mrf.mxu1  ;;  %v628_v34 = vadd.f32 %v1338_v26, %v578_v21  ;;  %v636_v35 = vadd.f32 %v1338_v26, %v598_v22 }
  0xd5   : > { %v613_v25 = vadd.f32 %v1338_v26, %v540_v23  ;;  %v621_v27 = vadd.f32 %v1338_v26, %v560_v24 }
  0xd6   : > { %v727_v42 = vmax.f32 %v628_v34, 0.0  ;;  %v735_v43 = vmax.f32 %v636_v35, 0.0 }
  0xd7   : > { %v712_v30 = vmax.f32 %v613_v25, 0.0  ;;  %v720_v31 = vmax.f32 %v621_v27, 0.0 }
  0xd9   : > { %v1059_v32 = vpack.c.bf16 %v712_v30, %v711_v28  ;;  %v1079_v33 = vpack.c.bf16 %v720_v31, %v719_v29 }
  0xdb   : > { %1127 = vst [vmem:[%s1349_s6 + $0x10] sm:$0xff] %v1059_v32   ;;  %v580_v36 = vpop.f32.mrf.mxu2  ;;  %v600_v37 = vpop.f32.mrf.mxu3 }
  0xdc   : > { %1131 = vst [vmem:[%s1349_s6 + $0x30] sm:$0xff] %v1079_v33   ;;  %v629_v38 = vadd.f32 %v1338_v26, %v580_v36  ;;  %v637_v39 = vadd.f32 %v1338_v26, %v600_v37  ;;  %v543_v40 = vpop.f32.mrf.mxu0  ;;  %v563_v41 = vpop.f32.mrf.mxu1 }
  0xdd   : > { %v614_v48 = vadd.f32 %v1338_v26, %v543_v40  ;;  %v622_v49 = vadd.f32 %v1338_v26, %v563_v41 }
  0xde   : > { %v728_v44 = vmax.f32 %v629_v38, 0.0  ;;  %v736_v45 = vmax.f32 %v637_v39, 0.0 }
  0xdf   : > { %v713_v56 = vmax.f32 %v614_v48, 0.0  ;;  %v721_v57 = vmax.f32 %v622_v49, 0.0 }
  0xe0   : > { %v1099_v46 = vpack.c.bf16 %v728_v44, %v727_v42  ;;  %v1119_v47 = vpack.c.bf16 %v736_v45, %v735_v43 }
  0xe2   : > { %1135 = vst [vmem:[%s1349_s6 + $0x50] sm:$0xff] %v1099_v46  }
  0xe3   : > { %1139 = vst [vmem:[%s1349_s6 + $0x70] sm:$0xff] %v1119_v47   ;;  %v583_v50 = vpop.f32.mrf.mxu2  ;;  %v603_v51 = vpop.f32.mrf.mxu3 }
  0xe4   : > { %v545_v52 = vpop.f32.mrf.mxu0  ;;  %v565_v53 = vpop.f32.mrf.mxu1  ;;  %v630_v62 = vadd.f32 %v1338_v26, %v583_v50  ;;  %v638_v63 = vadd.f32 %v1338_v26, %v603_v51 }
  0xe5   : > { %v615_v54 = vadd.f32 %v1338_v26, %v545_v52  ;;  %v623_v55 = vadd.f32 %v1338_v26, %v565_v53 }
  0xe6   : > { %v729_v4 = vmax.f32 %v630_v62, 0.0  ;;  %v737_v5 = vmax.f32 %v638_v63, 0.0 }
  0xe7   : > { %v714_v58 = vmax.f32 %v615_v54, 0.0  ;;  %v722_v59 = vmax.f32 %v623_v55, 0.0 }
  0xe9   : > { %v1064_v60 = vpack.c.bf16 %v714_v58, %v713_v56  ;;  %v1084_v61 = vpack.c.bf16 %v722_v59, %v721_v57 }
  0xeb   : > { %1128 = vst [vmem:[%s1349_s6 + $0x18] sm:$0xff] %v1064_v60   ;;  %v585_v0 = vpop.f32.mrf.mxu2  ;;  %v605_v1 = vpop.f32.mrf.mxu3 }
  0xec   : > { %1132 = vst [vmem:[%s1349_s6 + $0x38] sm:$0xff] %v1084_v61   ;;  %v631_v2 = vadd.f32 %v1338_v26, %v585_v0  ;;  %v639_v3 = vadd.f32 %v1338_v26, %v605_v1 }
  0xee   : > { %v730_v6 = vmax.f32 %v631_v2, 0.0  ;;  %v738_v7 = vmax.f32 %v639_v3, 0.0 }
  0xf0   : > { %v1104_v8 = vpack.c.bf16 %v730_v6, %v729_v4  ;;  %v1124_v9 = vpack.c.bf16 %v738_v7, %v737_v5 }
  0xf2   : > { %1136 = vst [vmem:[%s1349_s6 + $0x58] sm:$0xff] %v1104_v8  }
  0xf3   : > { %1140 = vst [vmem:[%s1349_s6 + $0x78] sm:$0xff] %v1124_v9  }
  0xf4 PF: > { %s14_s14 = sadd.s32 1, %s1259_s14   ;;  %s1408_s12 = smov %s1255_s13 }
  0xf5   : > { %p11_p8 = scmp.ge.s32.totalorder %s14_s14, 4   ;;  %s1409_s13 = smov %s1411_s16 }
  0xf7   :  { %13 = sbr.rel (!%p11_p8) target bundleno = 2 (0x2), region = 79 }
  0xfc   :  { %831 = vsyncpa [#allocation4], 1 }
  0xfd   :  { %833 = vsyncpa [#allocation4 + $0x1], 1 }

// kernel: vgg_forward.6
= control target key start
LH: loop header
LB: loop body
LE: loop exit
PB: predicated region body
PF: predicated region fallthrough
CT: control target
= control target key end

     0   :  { %8 = vsyncpa [#allocation4], 0  ;;  %s3730_s0 = inlined_call_operand.vmem [shape: bf16[128,640], index: 0, kind: input, shape index: {}]   ;;  %s3731_s1 = inlined_call_operand.hbm [shape: bf16[640,512], index: 1, kind: input, shape index: {}]   ;;  %s3732_s2 = inlined_call_operand.hbm [shape: f32[1,512], index: 2, kind: input, shape index: {}]   ;;  %s3733_s3 = inlined_call_operand.vmem [shape: bf16[128,512], index: 3, kind: output, shape index: {}]  }
   0x1   :  { %10 = vsyncpa [#allocation4 + $0x1], 0 }
   0x2   :  { %11 = vsyncpa [#allocation6], 0 }
   0x3   :  { %13 = vsyncpa [#allocation6 + $0x1], 0  ;;  %s2829_s12 = smov 0   ;;  %s2831_s13 = smov 0  }
   0x4   :  { %s2833_s14 = smov 0   ;;  %s2835_s15 = smov 0  }
   0x5   :  { %s2837_s16 = smov 0   ;;  %s2839_s17 = smov 0  }
   0x6 LB: > { %s1990_s18 = sadd.s32 4294967295, %s2804_s17   ;;  %s34_s19 = sadd.s32 1, %s2800_s16  ;;  %s2804_s17 = sphi %s2839_s17, %s19_s17   ;;  %s2800_s16 = sphi %s2837_s16, %s3742_s16   ;;  %s2796_s15 = sphi %s2835_s15, %s3741_s15   ;;  %s2792_s14 = sphi %s2833_s14, %s3740_s14   ;;  %s2788_s13 = sphi %s2831_s13, %s3739_s13   ;;  %s2784_s12 = sphi %s2829_s12, %s3738_s12  }
   0x7   : > { %p36_p0 = scmp.ge.s32.totalorder %s34_s19, 2  ;;  %s75_s20 = sadd.s32 1, %s2792_s14 }
   0x8   : > { %p82_p1 = scmp.ne.s32.totalorder %s2792_s14, %s2788_s13  ;;  %p83_p2 = scmp.eq.s32.totalorder %s2804_s17, 0 }
   0x9   : > { %s3744_s19 = smov (%p36_p0, %s34_s19), 0  ;;  %p88_p4 = scmp.ne.s32.totalorder %s2788_s13, %s2784_s12 }
   0xa   : > { %p2865_p3 = por %p83_p2, %p82_p1  ;;  %s71_s22 = ssub.s32 %s2800_s16, %s3744_s19 }
   0xb   : > { %p89_p5 = scmp.eq.s32.totalorder %s1990_s18, 0  ;;  %p73_p6 = scmp.eq.s32.totalorder %s71_s22, 0 }
   0xc   : > { %p140_p7 = scmp.eq.s32.totalorder %s1990_s18, 1  ;;  %p2638_p10 = scmp.lt.s32.totalorder %s2804_s17, 2 }
   0xd   : > { %p2872_p8 = por %p89_p5, %p88_p4  ;;  %s2885_s26 = sand.u32 1, %s2792_s14  }
   0xe   : > { %s2877_s24 = scalar_select %p73_p6, %s2792_s14, %s75_s20  }
   0xf   : > { %p2879_p9 = por %p140_p7, %p82_p1  ;;  %s2487_s27 = sshll.u32 %s2800_s16, 3 }
  0x10   : > { %s2625_s28 = smul.u32 640, %s2885_s26  ;;  %s193_s4 = scalar_lea.hbm %s3731_s1, %s2487_s27 }
  0x11   : > { %p2894_p11 = pnand %p2638_p10, %p2865_p3  ;;  %s194_s6 = sshll.u32 %s193_s4, 4  ;;  %s195_s6 = int_to_ptr.hbm [resolvable:$true] %s194_s6 }
  0x12   : > { %s185_s7 = scalar_lea.vmem [#allocation3], %s2625_s28  ;;  %p1999_p12 = scmp.ge.s32.totalorder %s2804_s17, 1 }
  0x13   : > { %s196_s8 = sshll.u32 %s185_s7, 4  ;;  %s182_s9 = scalar_lea.sflag [#allocation4], %s2885_s26  ;;  %s197_s8 = int_to_ptr.vmem [resolvable:$true] %s196_s8 }
  0x14   : > { %s2806_s10 = smov 256   ;;  %s2807_s11 = smov 128  }
  0x15   : > { %s2808_s12 = smov 8   ;;  %p223_p13 = scmp.lt.s32.totalorder %s2804_s17, 3 }
  0x16   : > { %2634 = dma.hbm_to_vmem [thread:$0]  (!%p2894_p11), %s195_s6, 10240, %s197_s8, %s182_s9, %s2806_s10, %s2807_s11, %s2808_s12  }
  0x17   : > { %s1997_s18 = sshll.u32 %s2885_s26, 1  ;;  %s1998_s20 = sshll.u32 %s2800_s16, 1 }
  0x18   : > { %p224_p0 = pnand %p1999_p12, %p223_p13  ;;  %s214_s27 = scalar_lea.hbm %s3732_s2, %s1998_s20 }
  0x19   : > { %s210_s28 = scalar_lea.vmem [#allocation5], %s1997_s18  ;;  %s216_s30 = sshll.u32 %s214_s27, 4  ;;  %s217_s30 = int_to_ptr.hbm [resolvable:$true] %s216_s30 }
  0x1a   : > { %s218_s29 = sshll.u32 %s210_s28, 4  ;;  %s207_s4 = scalar_lea.sflag [#allocation6], %s2885_s26  ;;  %s219_s29 = int_to_ptr.vmem [resolvable:$true] %s218_s29 }
  0x1b   : > { %2637 = dma.hbm_to_vmem [thread:$0]  (!%p2894_p11), %s217_s30, 32, %s219_s29, %s207_s4  }
  0x1c   : > { %227 = sbr.rel (%p224_p0) target bundleno = 538 (0x21a), region = 32  ;;  %s2912_s6 = sand.u32 (!%p224_p0), 1, %s2788_s13  }
  0x1d   : > { %s2626_s7 = smul.u32 (!%p224_p0), 640, %s2912_s6  ;;  %s230_s8 = scalar_lea.sflag (!%p224_p0), [#allocation4], %s2912_s6 }
  0x1f   : > { %s2916_s9 = scalar_lea.vmem (!%p224_p0), [#allocation3], %s2626_s7 }
  0x21   : > { %2775 = dma.done.wait (%p2872_p8), %s230_s8, 10240  }
  0x22   : > { %2777 = vsyncadd (%p2872_p8), %s230_s8, 4294957056  ;;  %s2000_s26 = sshll.u32 %s2912_s6, 1  ;;  %s240_s5 = scalar_lea.sflag [#allocation6], %s2912_s6 }
  0x23   : > { %s2924_s10 = scalar_lea.vmem [#allocation5], %s2000_s26 }
  0x24   : > { %2779 = dma.done.wait (%p2872_p8), %s240_s5, 32  }
  0x25   : > { %2781 = vsyncadd (%p2872_p8), %s240_s5, 4294967264  ;;  %v2220_v0 = vld [vmem:[%s2916_s9 + $0x70] sm:$0xf]  ;;  %v2543_v1 = vld [vmem:[%s2916_s9 + $0x74] sm:$0xf0]  ;;  %s2001_s5 = sshll.u32 %s2912_s6, 7 }
  0x26   : > { %v2284_v2 = vld [vmem:[%s2916_s9 + $0xf0] sm:$0xf]  ;;  %v2221_v3 = vor.u32 %v2543_v1, %v2220_v0  ;;  %v2559_v4 = vld [vmem:[%s2916_s9 + $0xf4] sm:$0xf0]  ;;  %v2212_v5 = vld [vmem:[%s2916_s9 + $0x60] sm:$0xf] }
  0x27   : > { %v2541_v6 = vld [vmem:[%s2916_s9 + $0x64] sm:$0xf0]  ;;  %v2285_v7 = vor.u32 %v2559_v4, %v2284_v2  ;;  %v2276_v8 = vld [vmem:[%s2916_s9 + $0xe0] sm:$0xf]  ;;  %v2204_v12 = vld [vmem:[%s2916_s9 + $0x50] sm:$0xf] }
  0x28   : > { %v2557_v9 = vld [vmem:[%s2916_s9 + $0xe4] sm:$0xf0]  ;;  %2609 = vmatpush.bf16.msra.mxu2 %v2221_v3  ;;  %1108 = vmatpush.bf16.msra.mxu0 %v2221_v3  ;;  %v2213_v10 = vor.u32 %v2541_v6, %v2212_v5  ;;  %v2539_v13 = vld [vmem:[%s2916_s9 + $0x54] sm:$0xf0]  ;;  %v2268_v14 = vld [vmem:[%s2916_s9 + $0xd0] sm:$0xf] }
  0x29   : > { %2617 = vmatpush.bf16.msra.mxu3 %v2285_v7  ;;  %1157 = vmatpush.bf16.msra.mxu1 %v2285_v7  ;;  %v2277_v11 = vor.u32 %v2557_v9, %v2276_v8  ;;  %v2555_v15 = vld [vmem:[%s2916_s9 + $0xd4] sm:$0xf0]  ;;  %v2205_v16 = vor.u32 %v2539_v13, %v2204_v12  ;;  %v2196_v18 = vld [vmem:[%s2916_s9 + $0x40] sm:$0xf]  ;;  %v2537_v19 = vld [vmem:[%s2916_s9 + $0x44] sm:$0xf0] }
  0x2a   : > { %v2269_v17 = vor.u32 %v2555_v15, %v2268_v14  ;;  %v2260_v20 = vld [vmem:[%s2916_s9 + $0xc0] sm:$0xf]  ;;  %v2553_v21 = vld [vmem:[%s2916_s9 + $0xc4] sm:$0xf0]  ;;  %v2197_v22 = vor.u32 %v2537_v19, %v2196_v18  ;;  %v2188_v24 = vld [vmem:[%s2916_s9 + $0x30] sm:$0xf] }
  0x2b   : > { %v2261_v23 = vor.u32 %v2553_v21, %v2260_v20  ;;  %v2535_v25 = vld [vmem:[%s2916_s9 + $0x34] sm:$0xf0]  ;;  %v2252_v26 = vld [vmem:[%s2916_s9 + $0xb0] sm:$0xf]  ;;  %v2180_v30 = vld [vmem:[%s2916_s9 + $0x20] sm:$0xf] }
  0x2c   : > { %2610 = vmatpush.bf16.msra.mxu2 %v2213_v10  ;;  %1109 = vmatpush.bf16.msra.mxu0 %v2213_v10  ;;  %v2551_v27 = vld [vmem:[%s2916_s9 + $0xb4] sm:$0xf0]  ;;  %v2189_v28 = vor.u32 %v2535_v25, %v2188_v24  ;;  %v2533_v31 = vld [vmem:[%s2916_s9 + $0x24] sm:$0xf0]  ;;  %v2244_v32 = vld [vmem:[%s2916_s9 + $0xa0] sm:$0xf] }
  0x2d   : > { %2618 = vmatpush.bf16.msra.mxu3 %v2277_v11  ;;  %1158 = vmatpush.bf16.msra.mxu1 %v2277_v11  ;;  %v2253_v29 = vor.u32 %v2551_v27, %v2252_v26  ;;  %v2549_v33 = vld [vmem:[%s2916_s9 + $0xa4] sm:$0xf0]  ;;  %v2181_v34 = vor.u32 %v2533_v31, %v2180_v30  ;;  %v2172_v36 = vld [vmem:[%s2916_s9 + $0x10] sm:$0xf]  ;;  %v2531_v37 = vld [vmem:[%s2916_s9 + $0x14] sm:$0xf0] }
  0x2e   : > { %v2245_v35 = vor.u32 %v2549_v33, %v2244_v32  ;;  %v2236_v38 = vld [vmem:[%s2916_s9 + $0x90] sm:$0xf]  ;;  %v2547_v39 = vld [vmem:[%s2916_s9 + $0x94] sm:$0xf0]  ;;  %v2173_v40 = vor.u32 %v2531_v37, %v2172_v36  ;;  %v2164_v41 = vld [vmem:[%s2916_s9] sm:$0xf] }
  0x2f   : > { %v2237_v42 = vor.u32 %v2547_v39, %v2236_v38  ;;  %v2529_v43 = vld [vmem:[%s2916_s9 + $0x4] sm:$0xf0]  ;;  %v2228_v44 = vld [vmem:[%s2916_s9 + $0x80] sm:$0xf]  ;;  %v2510_v47 = vld [vmem:[%s3730_s0 + $0xb0] sm:$0xf0] }
  0x30   : > { %2611 = vmatpush.bf16.msra.mxu2 %v2205_v16  ;;  %1110 = vmatpush.bf16.msra.mxu0 %v2205_v16  ;;  %v2545_v45 = vld [vmem:[%s2916_s9 + $0x84] sm:$0xf0]  ;;  %v2084_v46 = vld [vmem:[%s3730_s0 + $0xa0] sm:$0xf]  ;;  %v2348_v48 = vld [vmem:[%s2916_s9 + $0x170] sm:$0xf]  ;;  %v2165_v54 = vor.u32 %v2529_v43, %v2164_v41 }
  0x31   : > { %2619 = vmatpush.bf16.msra.mxu3 %v2269_v17  ;;  %1159 = vmatpush.bf16.msra.mxu1 %v2269_v17  ;;  %v2508_v49 = vld [vmem:[%s3730_s0 + $0xa4] sm:$0xf]  ;;  %v2086_v50 = vld [vmem:[%s3730_s0 + $0xb4] sm:$0xf0]  ;;  %v2412_v52 = vld [vmem:[%s2916_s9 + $0x1f0] sm:$0xf]  ;;  %v2229_v58 = vor.u32 %v2545_v45, %v2228_v44  ;;  %v2995_v3 = vor.u32 %v2510_v47, %v2084_v46 }
  0x32   : > { %v2575_v51 = vld [vmem:[%s2916_s9 + $0x174] sm:$0xf0]  ;;  %v2004_v55 = vld [vmem:[%s3730_s0] sm:$0xf]  ;;  %v2490_v56 = vld [vmem:[%s3730_s0 + $0x10] sm:$0xf0]  ;;  %v3002_v8 = vor.u32 %v2508_v49, %v2086_v50 }
  0x33   : > { %v2591_v53 = vld [vmem:[%s2916_s9 + $0x1f4] sm:$0xf0]  ;;  %v2488_v57 = vld [vmem:[%s3730_s0 + $0x4] sm:$0xf]  ;;  %v2340_v60 = vld [vmem:[%s2916_s9 + $0x160] sm:$0xf]  ;;  %v2349_v62 = vor.u32 %v2575_v51, %v2348_v48  ;;  %v2997_v4 = vor.u32 %v2490_v56, %v2004_v55 }
  0x34   : > { %2612 = vmatpush.bf16.msra.mxu2 %v2197_v22  ;;  %1111 = vmatpush.bf16.msra.mxu0 %v2197_v22  ;;  %v2006_v59 = vld [vmem:[%s3730_s0 + $0x14] sm:$0xf0]  ;;  %v2476_v61 = vld [vmem:[%s2916_s9 + $0x270] sm:$0xf]  ;;  %v2413_v63 = vor.u32 %v2591_v53, %v2412_v52  ;;  %v2542_v1 = vld [vmem:[%s2916_s9 + $0x74] sm:$0xf] }
  0x35   : > { %2620 = vmatpush.bf16.msra.mxu3 %v2261_v23  ;;  %1160 = vmatpush.bf16.msra.mxu1 %v2261_v23  ;;  %v2607_v0 = vld [vmem:[%s2916_s9 + $0x274] sm:$0xf0]  ;;  %v2222_v2 = vld [vmem:[%s2916_s9 + $0x78] sm:$0xf0]  ;;  %v2573_v5 = vld [vmem:[%s2916_s9 + $0x164] sm:$0xf0]  ;;  %v3004_v9 = vor.u32 %v2488_v57, %v2006_v59 }
  0x36   : > { %v2404_v6 = vld [vmem:[%s2916_s9 + $0x1e0] sm:$0xf]  ;;  %v2589_v7 = vld [vmem:[%s2916_s9 + $0x1e4] sm:$0xf0]  ;;  %v2477_v10 = vor.u32 %v2607_v0, %v2476_v61  ;;  %v2225_v11 = vor.u32 %v2542_v1, %v2222_v2  ;;  %v2332_v12 = vld [vmem:[%s2916_s9 + $0x150] sm:$0xf]  ;;  %v2341_v14 = vor.u32 %v2573_v5, %v2340_v60 }
  0x37   : > { %v2468_v13 = vld [vmem:[%s2916_s9 + $0x260] sm:$0xf]  ;;  %v2405_v15 = vor.u32 %v2589_v7, %v2404_v6  ;;  %v2605_v16 = vld [vmem:[%s2916_s9 + $0x264] sm:$0xf0]  ;;  %v2540_v17 = vld [vmem:[%s2916_s9 + $0x64] sm:$0xf] }
  0x38   : > { %2613 = vmatpush.bf16.msra.mxu2 %v2189_v28  ;;  %1112 = vmatpush.bf16.msra.mxu0 %v2189_v28  ;;  %v2214_v18 = vld [vmem:[%s2916_s9 + $0x68] sm:$0xf0]  ;;  %v2571_v19 = vld [vmem:[%s2916_s9 + $0x154] sm:$0xf0]  ;;  %v2396_v20 = vld [vmem:[%s2916_s9 + $0x1d0] sm:$0xf]  ;;  %v2469_v22 = vor.u32 %v2605_v16, %v2468_v13 }
  0x39   : > { %2621 = vmatpush.bf16.msra.mxu3 %v2253_v29  ;;  %1161 = vmatpush.bf16.msra.mxu1 %v2253_v29  ;;  %v2587_v21 = vld [vmem:[%s2916_s9 + $0x1d4] sm:$0xf0]  ;;  %v2217_v23 = vor.u32 %v2540_v17, %v2214_v18  ;;  %v2324_v24 = vld [vmem:[%s2916_s9 + $0x140] sm:$0xf]  ;;  %v2460_v25 = vld [vmem:[%s2916_s9 + $0x250] sm:$0xf]  ;;  %v2333_v26 = vor.u32 %v2571_v19, %v2332_v12 }
  0x3a   : > { %v2397_v27 = vor.u32 %v2587_v21, %v2396_v20  ;;  %v2603_v28 = vld [vmem:[%s2916_s9 + $0x254] sm:$0xf0]  ;;  %v2538_v29 = vld [vmem:[%s2916_s9 + $0x54] sm:$0xf]  ;;  %v2206_v30 = vld [vmem:[%s2916_s9 + $0x58] sm:$0xf0] }
  0x3b   : > { %v2569_v31 = vld [vmem:[%s2916_s9 + $0x144] sm:$0xf0]  ;;  %v2388_v32 = vld [vmem:[%s2916_s9 + $0x1c0] sm:$0xf]  ;;  %v2316_v36 = vld [vmem:[%s2916_s9 + $0x130] sm:$0xf] }
  0x3c   : > { %2614 = vmatpush.bf16.msra.mxu2 %v2181_v34  ;;  %1113 = vmatpush.bf16.msra.mxu0 %v2181_v34  ;;  %v2585_v33 = vld [vmem:[%s2916_s9 + $0x1c4] sm:$0xf0]  ;;  %v2461_v34 = vor.u32 %v2603_v28, %v2460_v25  ;;  %v2452_v37 = vld [vmem:[%s2916_s9 + $0x240] sm:$0xf]  ;;  %v2515_v39 = vld [vmem:[%s3730_s0 + $0xd8] sm:$0xf0] }
  0x3d   : > { %2622 = vmatpush.bf16.msra.mxu3 %v2245_v35  ;;  %1162 = vmatpush.bf16.msra.mxu1 %v2245_v35  ;;  %v2209_v35 = vor.u32 %v2538_v29, %v2206_v30  ;;  %v2104_v38 = vld [vmem:[%s3730_s0 + $0xc8] sm:$0xf]  ;;  %v2389_v41 = vor.u32 %v2585_v33, %v2388_v32  ;;  %v2536_v43 = vld [vmem:[%s2916_s9 + $0x44] sm:$0xf]  ;;  %v2198_v44 = vld [vmem:[%s2916_s9 + $0x48] sm:$0xf0] }
  0x3e   : > { %v2513_v45 = vld [vmem:[%s3730_s0 + $0xcc] sm:$0xf]  ;;  %v2106_v46 = vld [vmem:[%s3730_s0 + $0xdc] sm:$0xf0]  ;;  %v2567_v47 = vld [vmem:[%s2916_s9 + $0x134] sm:$0xf0]  ;;  %v2201_v55 = vor.u32 %v2536_v43, %v2198_v44 }
  0x3f   : > { %v2380_v48 = vld [vmem:[%s2916_s9 + $0x1b0] sm:$0xf]  ;;  %v2583_v49 = vld [vmem:[%s2916_s9 + $0x1b4] sm:$0xf0]  ;;  %v2024_v50 = vld [vmem:[%s3730_s0 + $0x28] sm:$0xf]  ;;  %v3070_v6 = vor.u32 %v2513_v45, %v2106_v46 }
  0x40   : > { %2615 = vmatpush.bf16.msra.mxu2 %v2173_v40  ;;  %1114 = vmatpush.bf16.msra.mxu0 %v2173_v40  ;;  %v2325_v40 = vor.u32 %v2569_v31, %v2324_v24  ;;  %v2495_v51 = vld [vmem:[%s3730_s0 + $0x38] sm:$0xf0]  ;;  %v2493_v52 = vld [vmem:[%s3730_s0 + $0x2c] sm:$0xf]  ;;  %v2026_v53 = vld [vmem:[%s3730_s0 + $0x3c] sm:$0xf0]  ;;  %v2381_v59 = vor.u32 %v2583_v49, %v2380_v48 }
  0x41   : > { %2623 = vmatpush.bf16.msra.mxu3 %v2237_v42  ;;  %1163 = vmatpush.bf16.msra.mxu1 %v2237_v42  ;;  %v2601_v42 = vld [vmem:[%s2916_s9 + $0x244] sm:$0xf0]  ;;  %v2308_v56 = vld [vmem:[%s2916_s9 + $0x120] sm:$0xf]  ;;  %v2444_v57 = vld [vmem:[%s2916_s9 + $0x230] sm:$0xf]  ;;  %v3065_v0 = vor.u32 %v2495_v51, %v2024_v50  ;;  %v3072_v7 = vor.u32 %v2493_v52, %v2026_v53 }
  0x42   : > { %v2599_v60 = vld [vmem:[%s2916_s9 + $0x234] sm:$0xf0]  ;;  %v2534_v61 = vld [vmem:[%s2916_s9 + $0x34] sm:$0xf]  ;;  %v2565_v1 = vld [vmem:[%s2916_s9 + $0x124] sm:$0xf0] }
  0x43   : > { %v2372_v2 = vld [vmem:[%s2916_s9 + $0x1a0] sm:$0xf]  ;;  %v2581_v5 = vld [vmem:[%s2916_s9 + $0x1a4] sm:$0xf0]  ;;  %v2309_v12 = vor.u32 %v2565_v1, %v2308_v56  ;;  %v2364_v16 = vld [vmem:[%s2916_s9 + $0x190] sm:$0xf] }
  0x44   : > { %2616 = vmatpush.bf16.msra.mxu2 %v2165_v54  ;;  %1115 = vmatpush.bf16.msra.mxu0 %v2165_v54  ;;  %v2453_v54 = vor.u32 %v2601_v42, %v2452_v37  ;;  %v2373_v13 = vor.u32 %v2581_v5, %v2372_v2  ;;  %v2579_v17 = vld [vmem:[%s2916_s9 + $0x194] sm:$0xf0]  ;;  %v2436_v18 = vld [vmem:[%s2916_s9 + $0x220] sm:$0xf]  ;;  %v2597_v21 = vld [vmem:[%s2916_s9 + $0x224] sm:$0xf0] }
  0x45   : > { %2624 = vmatpush.bf16.msra.mxu3 %v2229_v58  ;;  %1164 = vmatpush.bf16.msra.mxu1 %v2229_v58  ;;  %v2317_v58 = vor.u32 %v2567_v47, %v2316_v36  ;;  %v2365_v20 = vor.u32 %v2579_v17, %v2364_v16  ;;  %v2437_v24 = vor.u32 %v2597_v21, %v2436_v18  ;;  %v2356_v28 = vld [vmem:[%s2916_s9 + $0x180] sm:$0xf]  ;;  %v2577_v29 = vld [vmem:[%s2916_s9 + $0x184] sm:$0xf0]  ;;  %v2428_v30 = vld [vmem:[%s2916_s9 + $0x210] sm:$0xf] }
  0x46   : > { %v2595_v31 = vld [vmem:[%s2916_s9 + $0x214] sm:$0xf0]  ;;  %v2530_v33 = vld [vmem:[%s2916_s9 + $0x14] sm:$0xf]  ;;  %v2357_v36 = vor.u32 %v2577_v29, %v2356_v28  ;;  %v2044_v43 = vld [vmem:[%s3730_s0 + $0x50] sm:$0xf] }
  0x47   : > { %1136 = vmatmul.bf16.vlgmr.msra.gmra.mxu2 %v2995_v3  ;;  %1116 = vmatmul.bf16.vlgmr.msra.gmra.mxu0 %v2997_v4  ;;  %v2429_v32 = vor.u32 %v2595_v31, %v2428_v30  ;;  %v2518_v42 = vld [vmem:[%s3730_s0 + $0xf4] sm:$0xf]  ;;  %v2500_v44 = vld [vmem:[%s3730_s0 + $0x60] sm:$0xf0]  ;;  %v2126_v45 = vld [vmem:[%s3730_s0 + $0x104] sm:$0xf0] }
  0x48   : > { %1206 = vmatpush.bf16.msrb.mxu2 %v2349_v62  ;;  %1185 = vmatmul.bf16.vlgmr.msra.gmra.mxu3 %v3002_v8  ;;  %v2190_v62 = vld [vmem:[%s2916_s9 + $0x38] sm:$0xf0]  ;;  %v2498_v46 = vld [vmem:[%s3730_s0 + $0x54] sm:$0xf]  ;;  %v2046_v47 = vld [vmem:[%s3730_s0 + $0x64] sm:$0xf0]  ;;  %v3122_v50 = vor.u32 %v2500_v44, %v2044_v43  ;;  %v3124_v51 = vor.u32 %v2518_v42, %v2126_v45 }
  0x49   : > { %1255 = vmatpush.bf16.msrb.mxu3 %v2413_v63  ;;  %1165 = vmatmul.bf16.vlgmr.msra.gmra.mxu1 %v3004_v9  ;;  %v3063_v63 = vor.u32 %v2515_v39, %v2104_v38  ;;  %v2420_v38 = vld [vmem:[%s2916_s9 + $0x200] sm:$0xf]  ;;  %v2593_v39 = vld [vmem:[%s2916_s9 + $0x204] sm:$0xf0]  ;;  %v3126_v52 = vor.u32 %v2498_v46, %v2046_v47  ;;  %v2528_v53 = vld [vmem:[%s2916_s9 + $0x4] sm:$0xf] }
  0x4a   : > { %1304 = vmatpush.bf16.msrb.mxu0 %v2477_v10  ;;  %1353 = vmatpush.bf16.msrb.mxu1 %v2225_v11  ;;  %v2445_v10 = vor.u32 %v2599_v60, %v2444_v57  ;;  %v2193_v11 = vor.u32 %v2534_v61, %v2190_v62  ;;  %v2421_v48 = vor.u32 %v2593_v39, %v2420_v38  ;;  %v2558_v56 = vld [vmem:[%s2916_s9 + $0xf4] sm:$0xf]  ;;  %v2286_v57 = vld [vmem:[%s2916_s9 + $0xf8] sm:$0xf0]  ;;  %v2505_v16 = vld [vmem:[%s3730_s0 + $0x88] sm:$0xf0] }
  0x4b   : > { %v2350_v60 = vld [vmem:[%s2916_s9 + $0x178] sm:$0xf0]  ;;  %v2590_v61 = vld [vmem:[%s2916_s9 + $0x1f4] sm:$0xf]  ;;  %v2146_v17 = vld [vmem:[%s3730_s0 + $0x12c] sm:$0xf0] }
  0x4c   : > { %1207 = vmatpush.bf16.msrb.mxu2 %v2341_v14  ;;  %v2300_v14 = vld [vmem:[%s2916_s9 + $0x110] sm:$0xf]  ;;  %v2414_v62 = vld [vmem:[%s2916_s9 + $0x1f8] sm:$0xf0]  ;;  %v2606_v5 = vld [vmem:[%s2916_s9 + $0x274] sm:$0xf] }
  0x4d   : > { %1256 = vmatpush.bf16.msrb.mxu3 %v2405_v15  ;;  %v2563_v15 = vld [vmem:[%s2916_s9 + $0x114] sm:$0xf0]  ;;  %v2417_v2 = vor.u32 %v2590_v61, %v2414_v62  ;;  %v2503_v18 = vld [vmem:[%s3730_s0 + $0x7c] sm:$0xf]  ;;  %v2342_v28 = vld [vmem:[%s2916_s9 + $0x168] sm:$0xf0] }
  0x4e   : > { %1305 = vmatpush.bf16.msrb.mxu0 %v2469_v22  ;;  %1354 = vmatpush.bf16.msrb.mxu1 %v2217_v23  ;;  %v2301_v19 = vor.u32 %v2563_v15, %v2300_v14  ;;  %v2532_v22 = vld [vmem:[%s2916_s9 + $0x24] sm:$0xf]  ;;  %v2182_v23 = vld [vmem:[%s2916_s9 + $0x28] sm:$0xf0]  ;;  %v2523_v14 = vld [vmem:[%s3730_s0 + $0x11c] sm:$0xf] }
  0x4f   : > { %v2185_v25 = vor.u32 %v2532_v22, %v2182_v23  ;;  %v2064_v15 = vld [vmem:[%s3730_s0 + $0x78] sm:$0xf]  ;;  %v3170_v22 = vor.u32 %v2523_v14, %v2146_v17  ;;  %v2588_v29 = vld [vmem:[%s2916_s9 + $0x1e4] sm:$0xf]  ;;  %v2406_v30 = vld [vmem:[%s2916_s9 + $0x1e8] sm:$0xf0] }
  0x50   : > { %1208 = vmatpush.bf16.msrb.mxu2 %v2333_v26  ;;  %v2292_v26 = vld [vmem:[%s2916_s9 + $0x100] sm:$0xf]  ;;  %v3168_v21 = vor.u32 %v2505_v16, %v2064_v15  ;;  %v2020_v38 = vld [vmem:[%s3730_s0 + $0x10] sm:$0xf]  ;;  %v2492_v39 = vld [vmem:[%s3730_s0 + $0x20] sm:$0xf0] }
  0x51   : > { %1257 = vmatpush.bf16.msrb.mxu3 %v2397_v27  ;;  %v2561_v27 = vld [vmem:[%s2916_s9 + $0x104] sm:$0xf0]  ;;  %v3206_v43 = vor.u32 %v2492_v39, %v2020_v38  ;;  %v2554_v45 = vld [vmem:[%s2916_s9 + $0xd4] sm:$0xf]  ;;  %v2270_v46 = vld [vmem:[%s2916_s9 + $0xd8] sm:$0xf0] }
  0x52   : > { %1306 = vmatpush.bf16.msrb.mxu0 %v2461_v34  ;;  %1355 = vmatpush.bf16.msrb.mxu1 %v2209_v35  ;;  %v2174_v34 = vld [vmem:[%s2916_s9 + $0x18] sm:$0xf0]  ;;  %v2293_v35 = vor.u32 %v2561_v27, %v2292_v26  ;;  %v2572_v26 = vld [vmem:[%s2916_s9 + $0x164] sm:$0xf]  ;;  %v2570_v47 = vld [vmem:[%s2916_s9 + $0x154] sm:$0xf] }
  0x53   : > { %v2177_v37 = vor.u32 %v2530_v33, %v2174_v34  ;;  %v2345_v31 = vor.u32 %v2572_v26, %v2342_v28  ;;  %v2604_v33 = vld [vmem:[%s2916_s9 + $0x264] sm:$0xf]  ;;  %v2470_v34 = vld [vmem:[%s2916_s9 + $0x268] sm:$0xf0]  ;;  %v2040_v62 = vld [vmem:[%s3730_s0 + $0x38] sm:$0xf] }
  0x54   : > { %1209 = vmatpush.bf16.msrb.mxu2 %v2325_v40  ;;  %v2124_v40 = vld [vmem:[%s3730_s0 + $0xf0] sm:$0xf]  ;;  %v2496_v61 = vld [vmem:[%s3730_s0 + $0x40] sm:$0xf0]  ;;  %v2262_v14 = vld [vmem:[%s2916_s9 + $0xc8] sm:$0xf0] }
  0x55   : > { %1258 = vmatpush.bf16.msrb.mxu3 %v2389_v41  ;;  %v2520_v41 = vld [vmem:[%s3730_s0 + $0x100] sm:$0xf0]  ;;  %v2326_v17 = vld [vmem:[%s2916_s9 + $0x148] sm:$0xf0]  ;;  %v2254_v38 = vld [vmem:[%s2916_s9 + $0xb8] sm:$0xf0] }
  0x56   : > { %1307 = vmatpush.bf16.msrb.mxu0 %v2453_v54  ;;  %1356 = vmatpush.bf16.msrb.mxu1 %v2201_v55  ;;  %v3120_v49 = vor.u32 %v2520_v41, %v2124_v40  ;;  %v2166_v54 = vld [vmem:[%s2916_s9 + $0x8] sm:$0xf0]  ;;  %v2014_v41 = vld [vmem:[%s3730_s0 + $0x1c] sm:$0xf0]  ;;  %v2568_v15 = vld [vmem:[%s2916_s9 + $0x144] sm:$0xf] }
  0x57   : > { %1141 = vmatmul.bf16.gmra.mxu2 %v3063_v63  ;;  %1121 = vmatmul.bf16.gmra.mxu0 %v3065_v0  ;;  %v2169_v55 = vor.u32 %v2528_v53, %v2166_v54  ;;  %v2489_v40 = vld [vmem:[%s3730_s0 + $0xc] sm:$0xf]  ;;  %v2334_v53 = vld [vmem:[%s2916_s9 + $0x158] sm:$0xf0]  ;;  %v2586_v54 = vld [vmem:[%s2916_s9 + $0x1d4] sm:$0xf] }
  0x58   : > { %1210 = vmatpush.bf16.msrb.mxu2 %v2317_v58  ;;  %1190 = vmatmul.bf16.gmra.mxu3 %v3070_v6  ;;  %v2574_v58 = vld [vmem:[%s2916_s9 + $0x174] sm:$0xf]  ;;  %v3208_v44 = vor.u32 %v2489_v40, %v2014_v41  ;;  %v2600_v26 = vld [vmem:[%s2916_s9 + $0x244] sm:$0xf]  ;;  %v2318_v41 = vld [vmem:[%s2916_s9 + $0x138] sm:$0xf0] }
  0x59   : > { %1259 = vmatpush.bf16.msrb.mxu3 %v2381_v59  ;;  %1170 = vmatmul.bf16.gmra.mxu1 %v3072_v7  ;;  %v2289_v59 = vor.u32 %v2558_v56, %v2286_v57  ;;  %v2353_v1 = vor.u32 %v2574_v58, %v2350_v60  ;;  %v2337_v56 = vor.u32 %v2570_v47, %v2334_v53  ;;  %v2602_v58 = vld [vmem:[%s2916_s9 + $0x254] sm:$0xf]  ;;  %v2382_v47 = vld [vmem:[%s2916_s9 + $0x1b8] sm:$0xf0]  ;;  %s2608_s6 = sshll.u32 (%p2879_p9), %s2796_s15, 3 }
  0x5a   : > { %1308 = vmatpush.bf16.msrb.mxu0 %v2445_v10  ;;  %1357 = vmatpush.bf16.msrb.mxu1 %v2193_v11  ;;  %v2478_v10 = vld [vmem:[%s2916_s9 + $0x278] sm:$0xf0]  ;;  %v2566_v39 = vld [vmem:[%s2916_s9 + $0x134] sm:$0xf]  ;;  %s1773_s12 = scalar_lea.vmem (%p2879_p9), %s3733_s3, %s2608_s6 }
  0x5b   : > { %v2481_v11 = vor.u32 %v2606_v5, %v2478_v10  ;;  %v2034_v5 = vld [vmem:[%s3730_s0 + $0x44] sm:$0xf0] }
  0x5c   : > { %1211 = vmatpush.bf16.msrb.mxu2 %v2309_v12  ;;  %v2144_v12 = vld [vmem:[%s3730_s0 + $0x118] sm:$0xf] }
  0x5d   : > { %1260 = vmatpush.bf16.msrb.mxu3 %v2373_v13  ;;  %v2525_v13 = vld [vmem:[%s3730_s0 + $0x128] sm:$0xf0] }
  0x5e   : > { %1309 = vmatpush.bf16.msrb.mxu0 %v2437_v24  ;;  %1358 = vmatpush.bf16.msrb.mxu1 %v2185_v25  ;;  %v2556_v24 = vld [vmem:[%s2916_s9 + $0xe4] sm:$0xf]  ;;  %v2278_v25 = vld [vmem:[%s2916_s9 + $0xe8] sm:$0xf0] }
  0x5f   : > { %v2281_v27 = vor.u32 %v2556_v24, %v2278_v25  ;;  %v2329_v24 = vor.u32 %v2568_v15, %v2326_v17  ;;  %v2374_v17 = vld [vmem:[%s2916_s9 + $0x1a8] sm:$0xf0] }
  0x60   : > { %1212 = vmatpush.bf16.msrb.mxu2 %v2301_v19  ;;  %v2066_v19 = vld [vmem:[%s3730_s0 + $0x8c] sm:$0xf0] }
  0x61   : > { %1261 = vmatpush.bf16.msrb.mxu3 %v2365_v20  ;;  %v3166_v20 = vor.u32 %v2525_v13, %v2144_v12  ;;  %v3172_v23 = vor.u32 %v2503_v18, %v2066_v19  ;;  %v2552_v13 = vld [vmem:[%s2916_s9 + $0xc4] sm:$0xf]  ;;  %v2390_v19 = vld [vmem:[%s2916_s9 + $0x1c8] sm:$0xf0] }
  0x62   : > { %1310 = vmatpush.bf16.msrb.mxu0 %v2429_v32  ;;  %1359 = vmatpush.bf16.msrb.mxu1 %v2177_v37  ;;  %v2409_v32 = vor.u32 %v2588_v29, %v2406_v30  ;;  %v2491_v37 = vld [vmem:[%s3730_s0 + $0x18] sm:$0xf0]  ;;  %v2265_v16 = vor.u32 %v2552_v13, %v2262_v14  ;;  %v2584_v18 = vld [vmem:[%s2916_s9 + $0x1c4] sm:$0xf]  ;;  %v2501_v29 = vld [vmem:[%s3730_s0 + $0x68] sm:$0xf0] }
  0x63   : > { %v2393_v25 = vor.u32 %v2584_v18, %v2390_v19  ;;  %v2060_v30 = vld [vmem:[%s3730_s0 + $0x60] sm:$0xf]  ;;  %v2310_v14 = vld [vmem:[%s2916_s9 + $0x128] sm:$0xf0]  ;;  %v2092_v18 = vld [vmem:[%s3730_s0 + $0xa8] sm:$0xf] }
  0x64   : > { %1213 = vmatpush.bf16.msrb.mxu2 %v2293_v35  ;;  %v2473_v35 = vor.u32 %v2604_v33, %v2470_v34  ;;  %v2054_v33 = vld [vmem:[%s3730_s0 + $0x6c] sm:$0xf0] }
  0x65   : > { %1262 = vmatpush.bf16.msrb.mxu3 %v2357_v36  ;;  %v2012_v36 = vld [vmem:[%s3730_s0 + $0x8] sm:$0xf] }
  0x66   : > { %1311 = vmatpush.bf16.msrb.mxu0 %v2421_v48  ;;  %1360 = vmatpush.bf16.msrb.mxu1 %v2169_v55  ;;  %v3204_v42 = vor.u32 %v2491_v37, %v2012_v36  ;;  %v2273_v48 = vor.u32 %v2554_v45, %v2270_v46  ;;  %v2398_v55 = vld [vmem:[%s2916_s9 + $0x1d8] sm:$0xf0]  ;;  %v2550_v37 = vld [vmem:[%s2916_s9 + $0xb4] sm:$0xf]  ;;  %v2321_v45 = vor.u32 %v2566_v39, %v2318_v41 }
  0x67   : > { %1146 = vmatmul.bf16.gmra.mxu2 %v3120_v49  ;;  %1126 = vmatmul.bf16.gmra.mxu0 %v3122_v50  ;;  %v2401_v57 = vor.u32 %v2586_v54, %v2398_v55  ;;  %v2257_v40 = vor.u32 %v2550_v37, %v2254_v38  ;;  %v2582_v46 = vld [vmem:[%s2916_s9 + $0x1b4] sm:$0xf]  ;;  %v2080_v54 = vld [vmem:[%s3730_s0 + $0x88] sm:$0xf]  ;;  %v2507_v55 = vld [vmem:[%s3730_s0 + $0x98] sm:$0xf0] }
  0x68   : > { %1195 = vmatmul.bf16.gmra.mxu3 %v3124_v51  ;;  %1402 = vmatpush.bf16.msra.mxu2 %v2289_v59  ;;  %v2462_v59 = vld [vmem:[%s2916_s9 + $0x258] sm:$0xf0]  ;;  %v2385_v53 = vor.u32 %v2582_v46, %v2382_v47  ;;  %v2546_v39 = vld [vmem:[%s2916_s9 + $0x94] sm:$0xf] }
  0x69   : > { %1175 = vmatmul.bf16.gmra.mxu1 %v3126_v52  ;;  %1451 = vmatpush.bf16.msra.mxu3 %v2353_v1  ;;  %v2465_v60 = vor.u32 %v2602_v58, %v2462_v59  ;;  %v2497_v1 = vld [vmem:[%s3730_s0 + $0x48] sm:$0xf0]  ;;  %v3312_v59 = vor.u32 %v2507_v55, %v2080_v54  ;;  %v2562_v41 = vld [vmem:[%s2916_s9 + $0x114] sm:$0xf]  ;;  %v2302_v46 = vld [vmem:[%s2916_s9 + $0x118] sm:$0xf0] }
  0x6a   : > { %1500 = vmatpush.bf16.msra.mxu0 %v2417_v2  ;;  %1549 = vmatpush.bf16.msra.mxu1 %v2481_v11  ;;  %v2494_v2 = vld [vmem:[%s3730_s0 + $0x34] sm:$0xf]  ;;  %v3242_v11 = vor.u32 %v2497_v1, %v2040_v62  ;;  %v2548_v1 = vld [vmem:[%s2916_s9 + $0xa4] sm:$0xf] }
  0x6b   : > { %v3244_v12 = vor.u32 %v2494_v2, %v2034_v5  ;;  %v2246_v2 = vld [vmem:[%s2916_s9 + $0xa8] sm:$0xf0]  ;;  %v2564_v5 = vld [vmem:[%s2916_s9 + $0x124] sm:$0xf] }
  0x6c   : > { %1403 = vmatpush.bf16.msra.mxu2 %v2281_v27  ;;  %v2454_v27 = vld [vmem:[%s2916_s9 + $0x248] sm:$0xf0]  ;;  %v2249_v13 = vor.u32 %v2548_v1, %v2246_v2  ;;  %v2313_v15 = vor.u32 %v2564_v5, %v2310_v14  ;;  %v2120_v1 = vld [vmem:[%s3730_s0 + $0xd8] sm:$0xf]  ;;  %v2514_v5 = vld [vmem:[%s3730_s0 + $0xd4] sm:$0xf] }
  0x6d   : > { %1452 = vmatpush.bf16.msra.mxu3 %v2345_v31  ;;  %v2457_v28 = vor.u32 %v2600_v26, %v2454_v27  ;;  %v2502_v31 = vld [vmem:[%s3730_s0 + $0x70] sm:$0xf0]  ;;  %v2509_v26 = vld [vmem:[%s3730_s0 + $0xac] sm:$0xf]  ;;  %v2094_v27 = vld [vmem:[%s3730_s0 + $0xbc] sm:$0xf0] }
  0x6e   : > { %1501 = vmatpush.bf16.msra.mxu0 %v2409_v32  ;;  %1550 = vmatpush.bf16.msra.mxu1 %v2473_v35  ;;  %v2499_v32 = vld [vmem:[%s3730_s0 + $0x5c] sm:$0xf]  ;;  %v3278_v35 = vor.u32 %v2502_v31, %v2060_v30  ;;  %v3350_v30 = vor.u32 %v2509_v26, %v2094_v27  ;;  %v2596_v31 = vld [vmem:[%s2916_s9 + $0x224] sm:$0xf]  ;;  %v2517_v2 = vld [vmem:[%s3730_s0 + $0xe8] sm:$0xf0] }
  0x6f   : > { %v3280_v36 = vor.u32 %v2499_v32, %v2054_v33  ;;  %v2438_v32 = vld [vmem:[%s2916_s9 + $0x228] sm:$0xf0] }
  0x70   : > { %1404 = vmatpush.bf16.msra.mxu2 %v2273_v48  ;;  %v2072_v48 = vld [vmem:[%s3730_s0 + $0x80] sm:$0xf]  ;;  %v2441_v37 = vor.u32 %v2596_v31, %v2438_v32  ;;  %v2544_v31 = vld [vmem:[%s2916_s9 + $0x84] sm:$0xf]  ;;  %v2230_v32 = vld [vmem:[%s2916_s9 + $0x88] sm:$0xf0] }
  0x71   : > { %1453 = vmatpush.bf16.msra.mxu3 %v2337_v56  ;;  %v2504_v56 = vld [vmem:[%s3730_s0 + $0x84] sm:$0xf] }
  0x72   : > { %1502 = vmatpush.bf16.msra.mxu0 %v2401_v57  ;;  %1551 = vmatpush.bf16.msra.mxu1 %v2465_v60  ;;  %v2074_v57 = vld [vmem:[%s3730_s0 + $0x94] sm:$0xf0] }
  0x73   : > { %v3314_v60 = vor.u32 %v2504_v56, %v2074_v57  ;;  %v2366_v57 = vld [vmem:[%s2916_s9 + $0x198] sm:$0xf0] }
  0x74   : > { %1405 = vmatpush.bf16.msra.mxu2 %v2265_v16  ;;  %v2580_v16 = vld [vmem:[%s2916_s9 + $0x1a4] sm:$0xf] }
  0x75   : > { %1454 = vmatpush.bf16.msra.mxu3 %v2329_v24  ;;  %v2377_v19 = vor.u32 %v2580_v16, %v2374_v17  ;;  %v2100_v24 = vld [vmem:[%s3730_s0 + $0xb0] sm:$0xf]  ;;  %v3390_v17 = vor.u32 %v2517_v2, %v2120_v1 }
  0x76   : > { %1503 = vmatpush.bf16.msra.mxu0 %v2393_v25  ;;  %1552 = vmatpush.bf16.msra.mxu1 %v2457_v28  ;;  %v2512_v25 = vld [vmem:[%s3730_s0 + $0xc0] sm:$0xf0]  ;;  %v2134_v1 = vld [vmem:[%s3730_s0 + $0x10c] sm:$0xf0] }
  0x77   : > { %1151 = vmatmul.bf16.gmra.mxu2 %v3166_v20  ;;  %1131 = vmatmul.bf16.gmra.mxu0 %v3168_v21 }
  0x78   : > { %1200 = vmatmul.bf16.gmra.mxu3 %v3170_v22  ;;  %1406 = vmatpush.bf16.msra.mxu2 %v2257_v40  ;;  %v2238_v40 = vld [vmem:[%s2916_s9 + $0x98] sm:$0xf0] }
  0x79   : > { %1180 = vmatmul.bf16.gmra.mxu1 %v3172_v23  ;;  %1455 = vmatpush.bf16.msra.mxu3 %v2321_v45  ;;  %v2241_v45 = vor.u32 %v2546_v39, %v2238_v40  ;;  %v2294_v39 = vld [vmem:[%s2916_s9 + $0x108] sm:$0xf0] }
  0x7a   : > { %1504 = vmatpush.bf16.msra.mxu0 %v2385_v53 }
  0x7c   : > { %1407 = vmatpush.bf16.msra.mxu2 %v2249_v13  ;;  %v2114_v13 = vld [vmem:[%s3730_s0 + $0xe4] sm:$0xf0] }
  0x7d   : > { %1456 = vmatpush.bf16.msra.mxu3 %v2313_v15 }
  0x7e   : > { %1505 = vmatpush.bf16.msra.mxu0 %v2377_v19 }
  0x80   : > { %1408 = vmatpush.bf16.msra.mxu2 %v2241_v45 }
  0x87   : > { %1214 = vmatmul.bf16.vlgmr.msrb.gmra.mxu2 %v3204_v42  ;;  %1312 = vmatmul.bf16.vlgmr.msrb.gmra.mxu0 %v3206_v43 }
  0x88   : > { %1263 = vmatmul.bf16.vlgmr.msrb.gmra.mxu3 %v3208_v44 }
  0x89   : > { %1361 = vmatmul.bf16.vlgmr.msrb.gmra.mxu1 %v2997_v4  ;;  %v2032_v4 = vld [vmem:[%s3730_s0 + $0x30] sm:$0xf] }
  0x8a   : > { %v3240_v10 = vor.u32 %v2496_v61, %v2032_v4  ;;  %v2598_v4 = vld [vmem:[%s2916_s9 + $0x234] sm:$0xf]  ;;  %v2446_v61 = vld [vmem:[%s2916_s9 + $0x238] sm:$0xf0] }
  0x8b   : > { %v2449_v62 = vor.u32 %v2598_v4, %v2446_v61  ;;  %v2112_v4 = vld [vmem:[%s3730_s0 + $0xd0] sm:$0xf] }
  0x8d   : > { %1553 = vmatpush.bf16.msra.mxu1 %v2449_v62  ;;  %v2516_v62 = vld [vmem:[%s3730_s0 + $0xe0] sm:$0xf0] }
  0x8e   : > { %v3388_v16 = vor.u32 %v2516_v62, %v2112_v4  ;;  %v2140_v4 = vld [vmem:[%s3730_s0 + $0x100] sm:$0xf]  ;;  %v2519_v62 = vld [vmem:[%s3730_s0 + $0xfc] sm:$0xf] }
  0x91   : > { %1554 = vmatpush.bf16.msra.mxu1 %v2441_v37  ;;  %v2233_v37 = vor.u32 %v2544_v31, %v2230_v32 }
  0x93   : > { %1409 = vmatpush.bf16.msra.mxu2 %v2233_v37 }
  0x97   : > { %1219 = vmatmul.bf16.gmra.mxu2 %v3240_v10  ;;  %1317 = vmatmul.bf16.gmra.mxu0 %v3242_v11 }
  0x98   : > { %1268 = vmatmul.bf16.gmra.mxu3 %v3244_v12 }
  0x99   : > { %1366 = vmatmul.bf16.gmra.mxu1 %v3065_v0  ;;  %v2052_v0 = vld [vmem:[%s3730_s0 + $0x58] sm:$0xf] }
  0x9a   : > { %v3276_v34 = vor.u32 %v2501_v29, %v2052_v0  ;;  %v3348_v0 = vor.u32 %v2512_v25, %v2100_v24  ;;  %v2594_v24 = vld [vmem:[%s2916_s9 + $0x214] sm:$0xf]  ;;  %v2430_v25 = vld [vmem:[%s2916_s9 + $0x218] sm:$0xf0] }
  0x9b   : > { %v2433_v27 = vor.u32 %v2594_v24, %v2430_v25  ;;  %v3438_v24 = vor.u32 %v2519_v62, %v2134_v1  ;;  %v2592_v25 = vld [vmem:[%s2916_s9 + $0x204] sm:$0xf] }
  0x9d   : > { %1555 = vmatpush.bf16.msra.mxu1 %v2433_v27 }
  0xa7   : > { %1224 = vmatmul.bf16.gmra.mxu2 %v3276_v34  ;;  %1322 = vmatmul.bf16.gmra.mxu0 %v3278_v35 }
  0xa8   : > { %1273 = vmatmul.bf16.gmra.mxu3 %v3280_v36 }
  0xa9   : > { %1371 = vmatmul.bf16.gmra.mxu1 %v3122_v50  ;;  %v2506_v50 = vld [vmem:[%s3730_s0 + $0x90] sm:$0xf0] }
  0xaa   : > { %v3310_v58 = vor.u32 %v2506_v50, %v2072_v48  ;;  %v2305_v48 = vor.u32 %v2562_v41, %v2302_v46 }
  0xac   : > { %1457 = vmatpush.bf16.msra.mxu3 %v2305_v48 }
  0xb7   : > { %1229 = vmatmul.bf16.gmra.mxu2 %v3310_v58  ;;  %1327 = vmatmul.bf16.gmra.mxu0 %v3312_v59 }
  0xb8   : > { %1278 = vmatmul.bf16.gmra.mxu3 %v3314_v60 }
  0xb9   : > { %1376 = vmatmul.bf16.gmra.mxu1 %v3168_v21  ;;  %v2511_v21 = vld [vmem:[%s3730_s0 + $0xb8] sm:$0xf0] }
  0xba   : > { %v3346_v28 = vor.u32 %v2511_v21, %v2092_v18  ;;  %v3394_v21 = vor.u32 %v2514_v5, %v2114_v13 }
  0xc4   : > { %v1117_v29 = vpop.f32.mrf.mxu0 }
  0xc6   : > { %v1166_v33 = vpop.f32.mrf.mxu1 }
  0xc7   : > { %v3354_v38 = vadd.f32 %v1166_v33, %v1117_v29  ;;  %1234 = vmatmul.bf16.gmra.mxu2 %v3346_v28  ;;  %1332 = vmatmul.bf16.gmra.mxu0 %v3348_v0  ;;  %v2560_v33 = vld [vmem:[%s2916_s9 + $0x104] sm:$0xf] }
  0xc8   : > { %1283 = vmatmul.bf16.gmra.mxu3 %v3350_v30  ;;  %v2297_v41 = vor.u32 %v2560_v33, %v2294_v39 }
  0xc9   : > { %1381 = vmatmul.bf16.gmra.mxu1 %v2995_v3  ;;  %v2578_v3 = vld [vmem:[%s2916_s9 + $0x194] sm:$0xf] }
  0xca   : > { %v1137_v47 = vpop.f32.mrf.mxu2  ;;  %v2369_v61 = vor.u32 %v2578_v3, %v2366_v57  ;;  %1458 = vmatpush.bf16.msra.mxu3 %v2297_v41  ;;  %v2521_v57 = vld [vmem:[%s3730_s0 + $0x108] sm:$0xf0] }
  0xcb   : > { %v1186_v53 = vpop.f32.mrf.mxu3 }
  0xcc   : > { %v3364_v50 = vadd.f32 %v1186_v53, %v1137_v47  ;;  %v1119_v54 = vpop.f32.mrf.mxu0  ;;  %1506 = vmatpush.bf16.msra.mxu0 %v2369_v61  ;;  %v2522_v61 = vld [vmem:[%s3730_s0 + $0x110] sm:$0xf0] }
  0xce   : > { %v1168_v55 = vpop.f32.mrf.mxu1 }
  0xcf   : > { %v3366_v56 = vadd.f32 %v1168_v55, %v1119_v54  ;;  %v2358_v54 = vld [vmem:[%s2916_s9 + $0x188] sm:$0xf0]  ;;  %v2132_v55 = vld [vmem:[%s3730_s0 + $0xf8] sm:$0xf] }
  0xd0   : > { %v3432_v13 = vor.u32 %v2521_v57, %v2132_v55  ;;  %v2154_v55 = vld [vmem:[%s3730_s0 + $0x134] sm:$0xf0] }
  0xd2   : > { %v1139_v14 = vpop.f32.mrf.mxu2 }
  0xd3   : > { %v1188_v15 = vpop.f32.mrf.mxu3 }
  0xd4   : > { %v3392_v18 = vadd.f32 %v1188_v15, %v1139_v14  ;;  %v1122_v19 = vpop.f32.mrf.mxu0  ;;  %v3434_v14 = vor.u32 %v2522_v61, %v2140_v4 }
  0xd6   : > { %v1171_v26 = vpop.f32.mrf.mxu1 }
  0xd7   : > { %v3398_v29 = vadd.f32 %v1171_v26, %v1122_v19  ;;  %1239 = vmatmul.bf16.gmra.mxu2 %v3388_v16  ;;  %1337 = vmatmul.bf16.gmra.mxu0 %v3390_v17  ;;  %v2422_v26 = vld [vmem:[%s2916_s9 + $0x208] sm:$0xf0] }
  0xd8   : > { %1288 = vmatmul.bf16.gmra.mxu3 %v3394_v21  ;;  %v2425_v31 = vor.u32 %v2592_v25, %v2422_v26 }
  0xd9   : > { %1386 = vmatmul.bf16.gmra.mxu1 %v3063_v63  ;;  %v2576_v63 = vld [vmem:[%s2916_s9 + $0x184] sm:$0xf] }
  0xda   : > { %v1142_v40 = vpop.f32.mrf.mxu2  ;;  %v2361_v3 = vor.u32 %v2576_v63, %v2358_v54  ;;  %1556 = vmatpush.bf16.msra.mxu1 %v2425_v31  ;;  %v2527_v63 = vld [vmem:[%s3730_s0 + $0x138] sm:$0xf0]  ;;  %v2524_v54 = vld [vmem:[%s3730_s0 + $0x124] sm:$0xf] }
  0xdb   : > { %v1191_v45 = vpop.f32.mrf.mxu3 }
  0xdc   : > { %v3408_v46 = vadd.f32 %v1191_v45, %v1142_v40  ;;  %v1124_v47 = vpop.f32.mrf.mxu0  ;;  %1507 = vmatpush.bf16.msra.mxu0 %v2361_v3 }
  0xde   : > { %v1173_v48 = vpop.f32.mrf.mxu1 }
  0xdf   : > { %v3410_v53 = vadd.f32 %v1173_v48, %v1124_v47  ;;  %v2152_v47 = vld [vmem:[%s3730_s0 + $0x120] sm:$0xf]  ;;  %v2526_v48 = vld [vmem:[%s3730_s0 + $0x130] sm:$0xf0] }
  0xe0   : > { %v3470_v4 = vor.u32 %v2526_v48, %v2152_v47 }
  0xe2   : > { %v1144_v2 = vpop.f32.mrf.mxu2 }
  0xe3   : > { %v1193_v5 = vpop.f32.mrf.mxu3 }
  0xe4   : > { %v3436_v15 = vadd.f32 %v1193_v5, %v1144_v2  ;;  %v1127_v19 = vpop.f32.mrf.mxu0  ;;  %v3476_v2 = vor.u32 %v2524_v54, %v2154_v55 }
  0xe6   : > { %v1176_v27 = vpop.f32.mrf.mxu1 }
  0xe7   : > { %v3442_v32 = vadd.f32 %v1176_v27, %v1127_v19  ;;  %1244 = vmatmul.bf16.gmra.mxu2 %v3432_v13  ;;  %1342 = vmatmul.bf16.gmra.mxu0 %v3434_v14 }
  0xe8   : > { %1293 = vmatmul.bf16.gmra.mxu3 %v3438_v24 }
  0xe9   : > { %1391 = vmatmul.bf16.gmra.mxu1 %v3120_v49  ;;  %v2160_v49 = vld [vmem:[%s3730_s0 + $0x128] sm:$0xf] }
  0xea   : > { %v1147_v33 = vpop.f32.mrf.mxu2  ;;  %v3472_v61 = vor.u32 %v2527_v63, %v2160_v49 }
  0xeb   : > { %v1196_v37 = vpop.f32.mrf.mxu3 }
  0xec   : > { %v3448_v39 = vadd.f32 %v1196_v37, %v1147_v33  ;;  %v1129_v40 = vpop.f32.mrf.mxu0 }
  0xee   : > { %v1178_v41 = vpop.f32.mrf.mxu1 }
  0xef   : > { %v3450_v45 = vadd.f32 %v1178_v41, %v1129_v40 }
  0xf2   : > { %v1149_v3 = vpop.f32.mrf.mxu2 }
  0xf3   : > { %v1198_v57 = vpop.f32.mrf.mxu3 }
  0xf4   : > { %v3474_v62 = vadd.f32 %v1198_v57, %v1149_v3  ;;  %v1132_v1 = vpop.f32.mrf.mxu0 }
  0xf6   : > { %v1181_v5 = vpop.f32.mrf.mxu1 }
  0xf7   : > { %v3478_v19 = vadd.f32 %v1181_v5, %v1132_v1  ;;  %1249 = vmatmul.bf16.gmra.mxu2 %v3470_v4  ;;  %1347 = vmatmul.bf16.gmra.mxu0 %v3472_v61 }
  0xf8   : > { %1298 = vmatmul.bf16.gmra.mxu3 %v3476_v2 }
  0xf9   : > { %1396 = vmatmul.bf16.gmra.mxu1 %v3166_v20 }
  0xfa   : > { %v1152_v25 = vpop.f32.mrf.mxu2 }
  0xfb   : > { %v1201_v26 = vpop.f32.mrf.mxu3 }
  0xfc   : > { %v3484_v27 = vadd.f32 %v1201_v26, %v1152_v25  ;;  %v1134_v31 = vpop.f32.mrf.mxu0 }
  0xfe   : > { %v1183_v33 = vpop.f32.mrf.mxu1 }
  0xff   : > { %v3486_v37 = vadd.f32 %v1183_v33, %v1134_v31 }
 0x102   : > { %v1154_v40 = vpop.f32.mrf.mxu2 }
 0x103   : > { %v1203_v41 = vpop.f32.mrf.mxu3 }
 0x104   : > { %v3488_v47 = vadd.f32 %v1203_v41, %v1154_v40  ;;  %v1313_v48 = vpop.f32.mrf.mxu0 }
 0x106   : > { %v3490_v49 = vpop.f32.mrf.mxu1 }
 0x107   : > { %1410 = vmatmul.bf16.vlgmr.msra.gmra.mxu2 %v3004_v9  ;;  %1508 = vmatmul.bf16.vlgmr.msra.gmra.mxu0 %v3208_v44 }
 0x108   : > { %1459 = vmatmul.bf16.vlgmr.msra.gmra.mxu3 %v3204_v42 }
 0x109   : > { %1557 = vmatmul.bf16.vlgmr.msra.gmra.mxu1 %v3206_v43 }
 0x10a   : > { %v1215_v20 = vpop.f32.mrf.mxu2 }
 0x10b   : > { %v1216_v63 = vadd.f32 %v1215_v20, %v3354_v38  ;;  %v1264_v54 = vpop.f32.mrf.mxu3 }
 0x10c   : > { %v1315_v55 = vpop.f32.mrf.mxu0 }
 0x10d   : > { %v1265_v3 = vadd.f32 %v1264_v54, %v1216_v63 }
 0x10e   : > { %v3497_v57 = vpop.f32.mrf.mxu1 }
 0x10f   : > { %v3499_v1 = vadd.f32 %v1313_v48, %v1265_v3 }
 0x112   : > { %v1217_v5 = vpop.f32.mrf.mxu2 }
 0x113   : > { %v1218_v25 = vadd.f32 %v1217_v5, %v3366_v56  ;;  %v1266_v9 = vpop.f32.mrf.mxu3 }
 0x114   : > { %v1318_v26 = vpop.f32.mrf.mxu0 }
 0x115   : > { %v1267_v44 = vadd.f32 %v1266_v9, %v1218_v25 }
 0x116   : > { %v3502_v31 = vpop.f32.mrf.mxu1 }
 0x117   : > { %v3504_v42 = vadd.f32 %v1315_v55, %v1267_v44  ;;  %1415 = vmatmul.bf16.gmra.mxu2 %v3072_v7  ;;  %1513 = vmatmul.bf16.gmra.mxu0 %v3244_v12 }
 0x118   : > { %1464 = vmatmul.bf16.gmra.mxu3 %v3240_v10 }
 0x119   : > { %1562 = vmatmul.bf16.gmra.mxu1 %v3242_v11 }
 0x11a   : > { %v1220_v43 = vpop.f32.mrf.mxu2 }
 0x11b   : > { %v1221_v38 = vadd.f32 %v1220_v43, %v3398_v29  ;;  %v1269_v33 = vpop.f32.mrf.mxu3 }
 0x11c   : > { %v1320_v56 = vpop.f32.mrf.mxu0 }
 0x11d   : > { %v1270_v40 = vadd.f32 %v1269_v33, %v1221_v38 }
 0x11e   : > { %v3511_v41 = vpop.f32.mrf.mxu1 }
 0x11f   : > { %v3513_v48 = vadd.f32 %v1318_v26, %v1270_v40 }
 0x122   : > { %v1222_v20 = vpop.f32.mrf.mxu2 }
 0x123   : > { %v1223_v63 = vadd.f32 %v1222_v20, %v3410_v53  ;;  %v1271_v7 = vpop.f32.mrf.mxu3 }
 0x124   : > { %v1323_v54 = vpop.f32.mrf.mxu0 }
 0x125   : > { %v1272_v12 = vadd.f32 %v1271_v7, %v1223_v63 }
 0x126   : > { %v3516_v55 = vpop.f32.mrf.mxu1 }
 0x127   : > { %v3518_v10 = vadd.f32 %v1320_v56, %v1272_v12  ;;  %1420 = vmatmul.bf16.gmra.mxu2 %v3126_v52  ;;  %1518 = vmatmul.bf16.gmra.mxu0 %v3280_v36 }
 0x128   : > { %1469 = vmatmul.bf16.gmra.mxu3 %v3276_v34 }
 0x129   : > { %1567 = vmatmul.bf16.gmra.mxu1 %v3278_v35 }
 0x12a   : > { %v1225_v11 = vpop.f32.mrf.mxu2 }
 0x12b   : > { %v1226_v29 = vadd.f32 %v1225_v11, %v3442_v32  ;;  %v1274_v3 = vpop.f32.mrf.mxu3 }
 0x12c   : > { %v1325_v53 = vpop.f32.mrf.mxu0 }
 0x12d   : > { %v1275_v5 = vadd.f32 %v1274_v3, %v1226_v29 }
 0x12e   : > { %v3525_v25 = vpop.f32.mrf.mxu1 }
 0x12f   : > { %v3527_v9 = vadd.f32 %v1323_v54, %v1275_v5 }
 0x132   : > { %v1227_v26 = vpop.f32.mrf.mxu2 }
 0x133   : > { %v1228_v44 = vadd.f32 %v1227_v26, %v3450_v45  ;;  %v1276_v52 = vpop.f32.mrf.mxu3 }
 0x134   : > { %v1328_v43 = vpop.f32.mrf.mxu0 }
 0x135   : > { %v1277_v36 = vadd.f32 %v1276_v52, %v1228_v44 }
 0x136   : > { %v3530_v38 = vpop.f32.mrf.mxu1 }
 0x137   : > { %v3532_v34 = vadd.f32 %v1325_v53, %v1277_v36  ;;  %1425 = vmatmul.bf16.gmra.mxu2 %v3172_v23  ;;  %1523 = vmatmul.bf16.gmra.mxu0 %v3314_v60 }
 0x138   : > { %1474 = vmatmul.bf16.gmra.mxu3 %v3310_v58 }
 0x139   : > { %1572 = vmatmul.bf16.gmra.mxu1 %v3312_v59 }
 0x13a   : > { %v1230_v35 = vpop.f32.mrf.mxu2 }
 0x13b   : > { %v1231_v32 = vadd.f32 %v1230_v35, %v3478_v19  ;;  %v1279_v33 = vpop.f32.mrf.mxu3 }
 0x13c   : > { %v1330_v45 = vpop.f32.mrf.mxu0 }
 0x13d   : > { %v1280_v56 = vadd.f32 %v1279_v33, %v1231_v32 }
 0x13e   : > { %v3539_v40 = vpop.f32.mrf.mxu1 }
 0x13f   : > { %v3541_v20 = vadd.f32 %v1328_v43, %v1280_v56 }
 0x142   : > { %v1232_v63 = vpop.f32.mrf.mxu2 }
 0x143   : > { %v1233_v7 = vadd.f32 %v1232_v63, %v3486_v37  ;;  %v1281_v23 = vpop.f32.mrf.mxu3 }
 0x144   : > { %v1333_v54 = vpop.f32.mrf.mxu0 }
 0x145   : > { %v1282_v60 = vadd.f32 %v1281_v23, %v1233_v7 }
 0x146   : > { %v3544_v12 = vpop.f32.mrf.mxu1 }
 0x147   : > { %v3546_v58 = vadd.f32 %v1330_v45, %v1282_v60  ;;  %1430 = vmatmul.bf16.gmra.mxu2 %v3002_v8  ;;  %1528 = vmatmul.bf16.gmra.mxu0 %v3350_v30 }
 0x148   : > { %1479 = vmatmul.bf16.gmra.mxu3 %v3346_v28 }
 0x149   : > { %1577 = vmatmul.bf16.gmra.mxu1 %v3348_v0 }
 0x14a   : > { %v1235_v59 = vpop.f32.mrf.mxu2 }
 0x14b   : > { %v1236_v19 = vadd.f32 %v1235_v59, %v3364_v50  ;;  %v1284_v11 = vpop.f32.mrf.mxu3 }
 0x14c   : > { %v1335_v37 = vpop.f32.mrf.mxu0 }
 0x14d   : > { %v1285_v29 = vadd.f32 %v1284_v11, %v1236_v19 }
 0x14e   : > { %v3553_v3 = vpop.f32.mrf.mxu1 }
 0x14f   : > { %v3555_v53 = vadd.f32 %v1333_v54, %v1285_v29 }
 0x152   : > { %v1237_v5 = vpop.f32.mrf.mxu2 }
 0x153   : > { %v1238_v26 = vadd.f32 %v1237_v5, %v3392_v18  ;;  %v1286_v8 = vpop.f32.mrf.mxu3 }
 0x154   : > { %v1338_v44 = vpop.f32.mrf.mxu0 }
 0x155   : > { %v1287_v30 = vadd.f32 %v1286_v8, %v1238_v26 }
 0x156   : > { %v3558_v52 = vpop.f32.mrf.mxu1 }
 0x157   : > { %v3560_v28 = vadd.f32 %v1335_v37, %v1287_v30  ;;  %1435 = vmatmul.bf16.gmra.mxu2 %v3070_v6  ;;  %1533 = vmatmul.bf16.gmra.mxu0 %v3394_v21 }
 0x158   : > { %1484 = vmatmul.bf16.gmra.mxu3 %v3388_v16 }
 0x159   : > { %1582 = vmatmul.bf16.gmra.mxu1 %v3390_v17 }
 0x15a   : > { %v1240_v0 = vpop.f32.mrf.mxu2 }
 0x15b   : > { %v1241_v50 = vadd.f32 %v1240_v0, %v3408_v46  ;;  %v1289_v43 = vpop.f32.mrf.mxu3 }
 0x15c   : > { %v1340_v18 = vpop.f32.mrf.mxu0 }
 0x15d   : > { %v1290_v36 = vadd.f32 %v1289_v43, %v1241_v50 }
 0x15e   : > { %v3567_v35 = vpop.f32.mrf.mxu1 }
 0x15f   : > { %v3569_v32 = vadd.f32 %v1338_v44, %v1290_v36 }
 0x162   : > { %v1242_v33 = vpop.f32.mrf.mxu2 }
 0x163   : > { %v1243_v45 = vadd.f32 %v1242_v33, %v3436_v15  ;;  %v1291_v6 = vpop.f32.mrf.mxu3 }
 0x164   : > { %v1343_v56 = vpop.f32.mrf.mxu0 }
 0x165   : > { %v1292_v21 = vadd.f32 %v1291_v6, %v1243_v45 }
 0x166   : > { %v3572_v63 = vpop.f32.mrf.mxu1 }
 0x167   : > { %v3574_v16 = vadd.f32 %v1340_v18, %v1292_v21  ;;  %1440 = vmatmul.bf16.gmra.mxu2 %v3124_v51  ;;  %1538 = vmatmul.bf16.gmra.mxu0 %v3438_v24 }
 0x168   : > { %1489 = vmatmul.bf16.gmra.mxu3 %v3432_v13 }
 0x169   : > { %1587 = vmatmul.bf16.gmra.mxu1 %v3434_v14 }
 0x16a   : > { %v1245_v17 = vpop.f32.mrf.mxu2 }
 0x16b   : > { %v1246_v46 = vadd.f32 %v1245_v17, %v3448_v39  ;;  %v1294_v7 = vpop.f32.mrf.mxu3 }
 0x16c   : > { %v1345_v15 = vpop.f32.mrf.mxu0 }
 0x16d   : > { %v1295_v23 = vadd.f32 %v1294_v7, %v1246_v46 }
 0x16e   : > { %v3581_v54 = vpop.f32.mrf.mxu1 }
 0x16f   : > { %v3583_v60 = vadd.f32 %v1343_v56, %v1295_v23 }
 0x172   : > { %v1247_v59 = vpop.f32.mrf.mxu2 }
 0x173   : > { %v1248_v19 = vadd.f32 %v1247_v59, %v3474_v62  ;;  %v1296_v51 = vpop.f32.mrf.mxu3 }
 0x174   : > { %v1348_v11 = vpop.f32.mrf.mxu0 }
 0x175   : > { %v1297_v24 = vadd.f32 %v1296_v51, %v1248_v19 }
 0x176   : > { %v3586_v37 = vpop.f32.mrf.mxu1 }
 0x177   : > { %v3588_v13 = vadd.f32 %v1345_v15, %v1297_v24  ;;  %1445 = vmatmul.bf16.gmra.mxu2 %v3170_v22  ;;  %1543 = vmatmul.bf16.gmra.mxu0 %v3476_v2 }
 0x178   : > { %1494 = vmatmul.bf16.gmra.mxu3 %v3470_v4 }
 0x179   : > { %1592 = vmatmul.bf16.gmra.mxu1 %v3472_v61  ;;  %v302_v61 = vld [vmem:[%s2924_s10] sm:$0x3]  ;;  %s3615_s10 = scalar_lea.vmem [#allocation7], %s2001_s5 }
 0x17a   : > { %v1250_v14 = vpop.f32.mrf.mxu2  ;;  %v3604_v33 = vperm.slane %v302_v61, 0  ;;  %v3606_v56 = vperm.slane %v302_v61, 1 }
 0x17b   : > { %v1251_v39 = vadd.f32 %v1250_v14, %v3484_v27  ;;  %v1299_v62 = vpop.f32.mrf.mxu3 }
 0x17c   : > { %v1350_v29 = vpop.f32.mrf.mxu0  ;;  %v1598_v21 = vadd.f32 %v3499_v1, %v3604_v33 }
 0x17d   : > { %v1300_v5 = vadd.f32 %v1299_v62, %v1251_v39  ;;  %v1600_v39 = vadd.f32 %v3504_v42, %v3604_v33  ;;  %v1602_v42 = vadd.f32 %v3513_v48, %v3604_v33 }
 0x17e   : > { %v3595_v26 = vpop.f32.mrf.mxu1  ;;  %v1697_v59 = vmax.f32 %v1598_v21, 0.0 }
 0x17f   : > { %v3597_v8 = vadd.f32 %v1348_v11, %v1300_v5 }
 0x182   : > { %v1252_v44 = vpop.f32.mrf.mxu2 }
 0x183   : > { %v1253_v22 = vadd.f32 %v1252_v44, %v3488_v47  ;;  %v1301_v30 = vpop.f32.mrf.mxu3 }
 0x184   : > { %v1509_v2 = vpop.f32.mrf.mxu0 }
 0x185   : > { %v1302_v0 = vadd.f32 %v1301_v30, %v1253_v22  ;;  %v1699_v22 = vmax.f32 %v1600_v39, 0.0 }
 0x186   : > { %v1558_v4 = vpop.f32.mrf.mxu1 }
 0x187   : > { %v3600_v50 = vadd.f32 %v1350_v29, %v1302_v0 }
 0x18a   : > { %v1411_v43 = vpop.f32.mrf.mxu2 }
 0x18b   : > { %v1412_v27 = vadd.f32 %v1411_v43, %v3490_v49  ;;  %v1460_v18 = vpop.f32.mrf.mxu3 }
 0x18c   : > { %v1511_v36 = vpop.f32.mrf.mxu0 }
 0x18d   : > { %v1461_v45 = vadd.f32 %v1460_v18, %v1412_v27 }
 0x18e   : > { %v1560_v6 = vpop.f32.mrf.mxu1 }
 0x18f   : > { %v1510_v47 = vadd.f32 %v1509_v2, %v1461_v45 }
 0x191   : > { %v1559_v17 = vadd.f32 %v1558_v4, %v1510_v47 }
 0x192   : > { %v1413_v46 = vpop.f32.mrf.mxu2 }
 0x193   : > { %v1599_v7 = vadd.f32 %v1559_v17, %v3606_v56  ;;  %v1414_v15 = vadd.f32 %v1413_v46, %v3497_v57  ;;  %v1462_v49 = vpop.f32.mrf.mxu3 }
 0x194   : > { %v1514_v23 = vpop.f32.mrf.mxu0 }
 0x195   : > { %v1698_v19 = vmax.f32 %v1599_v7, 0.0  ;;  %v1463_v51 = vadd.f32 %v1462_v49, %v1414_v15  ;;  %v1604_v15 = vadd.f32 %v3518_v10, %v3604_v33 }
 0x196   : > { %v1563_v11 = vpop.f32.mrf.mxu1 }
 0x197   : > { %v1729_v24 = vpack.c.bf16 %v1698_v19, %v1697_v59  ;;  %v1512_v14 = vadd.f32 %v1511_v36, %v1463_v51  ;;  %v1703_v51 = vmax.f32 %v1604_v15, 0.0 }
 0x199   : > { %1745 = vst [vmem:[%s3615_s10] sm:$0xff] %v1729_v24  ;;  %v1561_v1 = vadd.f32 %v1560_v6, %v1512_v14  ;;  %v1701_v6 = vmax.f32 %v1602_v42, 0.0  ;;  %v1608_v42 = vadd.f32 %v3532_v34, %v3604_v33 }
 0x19a   : > { %v1416_v62 = vpop.f32.mrf.mxu2 }
 0x19b   : > { %v1601_v57 = vadd.f32 %v1561_v1, %v3606_v56  ;;  %v1417_v29 = vadd.f32 %v1416_v62, %v3502_v31  ;;  %v1465_v5 = vpop.f32.mrf.mxu3  ;;  %v1606_v62 = vadd.f32 %v3527_v9, %v3604_v33 }
 0x19c   : > { %v1516_v44 = vpop.f32.mrf.mxu0 }
 0x19d   : > { %v1700_v30 = vmax.f32 %v1601_v57, 0.0  ;;  %v1466_v2 = vadd.f32 %v1465_v5, %v1417_v29 }
 0x19e   : > { %v1565_v0 = vpop.f32.mrf.mxu1 }
 0x19f   : > { %v1730_v4 = vpack.c.bf16 %v1700_v30, %v1699_v22  ;;  %v1515_v61 = vadd.f32 %v1514_v23, %v1466_v2  ;;  %v1705_v22 = vmax.f32 %v1606_v62, 0.0 }
 0x1a1   : > { %1746 = vst [vmem:[%s3615_s10 + $0x8] sm:$0xff] %v1730_v4  ;;  %v1564_v43 = vadd.f32 %v1563_v11, %v1515_v61 }
 0x1a2   : > { %v1418_v27 = vpop.f32.mrf.mxu2 }
 0x1a3   : > { %v1603_v18 = vadd.f32 %v1564_v43, %v3606_v56  ;;  %v1419_v36 = vadd.f32 %v1418_v27, %v3511_v41  ;;  %v1467_v31 = vpop.f32.mrf.mxu3 }
 0x1a4   : > { %v1519_v45 = vpop.f32.mrf.mxu0 }
 0x1a5   : > { %v1702_v47 = vmax.f32 %v1603_v18, 0.0  ;;  %v1468_v21 = vadd.f32 %v1467_v31, %v1419_v36  ;;  %v1707_v31 = vmax.f32 %v1608_v42, 0.0 }
 0x1a6   : > { %v1568_v17 = vpop.f32.mrf.mxu1 }
 0x1a7   : > { %v1731_v46 = vpack.c.bf16 %v1702_v47, %v1701_v6  ;;  %v1517_v7 = vadd.f32 %v1516_v44, %v1468_v21 }
 0x1a9   : > { %1747 = vst [vmem:[%s3615_s10 + $0x10] sm:$0xff] %v1731_v46  ;;  %v1566_v48 = vadd.f32 %v1565_v0, %v1517_v7  ;;  %v1610_v46 = vadd.f32 %v3541_v20, %v3604_v33 }
 0x1aa   : > { %v1421_v49 = vpop.f32.mrf.mxu2 }
 0x1ab   : > { %v1605_v23 = vadd.f32 %v1566_v48, %v3606_v56  ;;  %v1422_v59 = vadd.f32 %v1421_v49, %v3516_v55  ;;  %v1470_v41 = vpop.f32.mrf.mxu3 }
 0x1ac   : > { %v1521_v19 = vpop.f32.mrf.mxu0 }
 0x1ad   : > { %v1704_v11 = vmax.f32 %v1605_v23, 0.0  ;;  %v1471_v24 = vadd.f32 %v1470_v41, %v1422_v59  ;;  %v1709_v23 = vmax.f32 %v1610_v46, 0.0 }
 0x1ae   : > { %v1570_v14 = vpop.f32.mrf.mxu1 }
 0x1af   : > { %v1732_v39 = vpack.c.bf16 %v1704_v11, %v1703_v51  ;;  %v1520_v1 = vadd.f32 %v1519_v45, %v1471_v24  ;;  %v1612_v24 = vadd.f32 %v3546_v58, %v3604_v33 }
 0x1b1   : > { %1748 = vst [vmem:[%s3615_s10 + $0x18] sm:$0xff] %v1732_v39  ;;  %v1569_v10 = vadd.f32 %v1568_v17, %v1520_v1 }
 0x1b2   : > { %v1423_v57 = vpop.f32.mrf.mxu2 }
 0x1b3   : > { %v1607_v29 = vadd.f32 %v1569_v10, %v3606_v56  ;;  %v1424_v5 = vadd.f32 %v1423_v57, %v3525_v25  ;;  %v1472_v55 = vpop.f32.mrf.mxu3  ;;  %v1711_v10 = vmax.f32 %v1612_v24, 0.0  ;;  %v1620_v24 = vadd.f32 %v3574_v16, %v3604_v33 }
 0x1b4   : > { %v1524_v44 = vpop.f32.mrf.mxu0 }
 0x1b5   : > { %v1706_v30 = vmax.f32 %v1607_v29, 0.0  ;;  %v1473_v2 = vadd.f32 %v1472_v55, %v1424_v5 }
 0x1b6   : > { %v1573_v0 = vpop.f32.mrf.mxu1 }
 0x1b7   : > { %v1733_v4 = vpack.c.bf16 %v1706_v30, %v1705_v22  ;;  %v1522_v61 = vadd.f32 %v1521_v19, %v1473_v2  ;;  %v1614_v22 = vadd.f32 %v3555_v53, %v3604_v33 }
 0x1b9   : > { %1749 = vst [vmem:[%s3615_s10 + $0x20] sm:$0xff] %v1733_v4  ;;  %v1571_v9 = vadd.f32 %v1570_v14, %v1522_v61  ;;  %v1713_v61 = vmax.f32 %v1614_v22, 0.0 }
 0x1ba   : > { %v1426_v43 = vpop.f32.mrf.mxu2 }
 0x1bb   : > { %v1609_v27 = vadd.f32 %v1571_v9, %v3606_v56  ;;  %v1427_v18 = vadd.f32 %v1426_v43, %v3530_v38  ;;  %v1475_v25 = vpop.f32.mrf.mxu3 }
 0x1bc   : > { %v1526_v36 = vpop.f32.mrf.mxu0 }
 0x1bd   : > { %v1708_v45 = vmax.f32 %v1609_v27, 0.0  ;;  %v1476_v6 = vadd.f32 %v1475_v25, %v1427_v18  ;;  %v1616_v25 = vadd.f32 %v3560_v28, %v3604_v33 }
 0x1be   : > { %v1575_v47 = vpop.f32.mrf.mxu1 }
 0x1bf   : > { %v1734_v21 = vpack.c.bf16 %v1708_v45, %v1707_v31  ;;  %v1525_v17 = vadd.f32 %v1524_v44, %v1476_v6  ;;  %v1715_v6 = vmax.f32 %v1616_v25, 0.0 }
 0x1c1   : > { %1750 = vst [vmem:[%s3615_s10 + $0x28] sm:$0xff] %v1734_v21  ;;  %v1574_v34 = vadd.f32 %v1573_v0, %v1525_v17 }
 0x1c2   : > { %v1428_v7 = vpop.f32.mrf.mxu2 }
 0x1c3   : > { %v1611_v15 = vadd.f32 %v1574_v34, %v3606_v56  ;;  %v1429_v48 = vadd.f32 %v1428_v7, %v3539_v40  ;;  %v1477_v38 = vpop.f32.mrf.mxu3 }
 0x1c4   : > { %v1529_v49 = vpop.f32.mrf.mxu0 }
 0x1c5   : > { %v1710_v59 = vmax.f32 %v1611_v15, 0.0  ;;  %v1478_v41 = vadd.f32 %v1477_v38, %v1429_v48  ;;  %v1618_v15 = vadd.f32 %v3569_v32, %v3604_v33 }
 0x1c6   : > { %v1578_v19 = vpop.f32.mrf.mxu1 }
 0x1c7   : > { %v1735_v51 = vpack.c.bf16 %v1710_v59, %v1709_v23  ;;  %v1527_v11 = vadd.f32 %v1526_v36, %v1478_v41  ;;  %v1717_v23 = vmax.f32 %v1618_v15, 0.0 }
 0x1c9   : > { %1751 = vst [vmem:[%s3615_s10 + $0x30] sm:$0xff] %v1735_v51  ;;  %v1576_v20 = vadd.f32 %v1575_v47, %v1527_v11 }
 0x1ca   : > { %v1431_v14 = vpop.f32.mrf.mxu2 }
 0x1cb   : > { %v1613_v39 = vadd.f32 %v1576_v20, %v3606_v56  ;;  %v1432_v1 = vadd.f32 %v1431_v14, %v3544_v12  ;;  %v1480_v40 = vpop.f32.mrf.mxu3 }
 0x1cc   : > { %v1531_v62 = vpop.f32.mrf.mxu0 }
 0x1cd   : > { %v1712_v57 = vmax.f32 %v1613_v39, 0.0  ;;  %v1481_v29 = vadd.f32 %v1480_v40, %v1432_v1  ;;  %v1719_v40 = vmax.f32 %v1620_v24, 0.0 }
 0x1ce   : > { %v1580_v5 = vpop.f32.mrf.mxu1 }
 0x1cf   : > { %v1736_v55 = vpack.c.bf16 %v1712_v57, %v1711_v10  ;;  %v1530_v44 = vadd.f32 %v1529_v49, %v1481_v29 }
 0x1d1   : > { %1752 = vst [vmem:[%s3615_s10 + $0x38] sm:$0xff] %v1736_v55  ;;  %v1579_v58 = vadd.f32 %v1578_v19, %v1530_v44 }
 0x1d2   : > { %v1433_v30 = vpop.f32.mrf.mxu2 }
 0x1d3   : > { %v1615_v2 = vadd.f32 %v1579_v58, %v3606_v56  ;;  %v1434_v0 = vadd.f32 %v1433_v30, %v3553_v3  ;;  %v1482_v12 = vpop.f32.mrf.mxu3 }
 0x1d4   : > { %v1534_v4 = vpop.f32.mrf.mxu0 }
 0x1d5   : > { %v1714_v42 = vmax.f32 %v1615_v2, 0.0  ;;  %v1483_v9 = vadd.f32 %v1482_v12, %v1434_v0 }
 0x1d6   : > { %v1583_v43 = vpop.f32.mrf.mxu1 }
 0x1d7   : > { %v1737_v27 = vpack.c.bf16 %v1714_v42, %v1713_v61  ;;  %v1532_v18 = vadd.f32 %v1531_v62, %v1483_v9  ;;  %v1624_v42 = vadd.f32 %v3588_v13, %v3604_v33 }
 0x1d8   : > { %v1846_v24 = vld [vmem:[%s3615_s10 + $0x38] sm:$0xff] (%p2879_p9) }
 0x1d9   : > { %1753 = vst [vmem:[%s3615_s10 + $0x40] sm:$0xff] %v1737_v27  ;;  %v1581_v53 = vadd.f32 %v1580_v5, %v1532_v18  ;;  %v1622_v5 = vadd.f32 %v3583_v60, %v3604_v33  ;;  %v1723_v25 = vmax.f32 %v1624_v42, 0.0 }
 0x1da   : > { %v1436_v36 = vpop.f32.mrf.mxu2  ;;  %1847 = vst [vmem:[%s1773_s12 + $0x70] sm:$0xff] (%p2879_p9), %v1846_v24 }
 0x1db   : > { %v1617_v31 = vadd.f32 %v1581_v53, %v3606_v56  ;;  %v1437_v45 = vadd.f32 %v1436_v36, %v3558_v52  ;;  %v1485_v3 = vpop.f32.mrf.mxu3  ;;  %v1721_v2 = vmax.f32 %v1622_v5, 0.0 }
 0x1dc   : > { %v1536_v17 = vpop.f32.mrf.mxu0 }
 0x1dd   : > { %v1716_v47 = vmax.f32 %v1617_v31, 0.0  ;;  %v1486_v21 = vadd.f32 %v1485_v3, %v1437_v45 }
 0x1de   : > { %v1585_v7 = vpop.f32.mrf.mxu1 }
 0x1df   : > { %v1738_v46 = vpack.c.bf16 %v1716_v47, %v1715_v6  ;;  %v1535_v34 = vadd.f32 %v1534_v4, %v1486_v21  ;;  %v1626_v6 = vadd.f32 %v3597_v8, %v3604_v33 }
 0x1e1   : > { %1754 = vst [vmem:[%s3615_s10 + $0x48] sm:$0xff] %v1738_v46  ;;  %v1584_v28 = vadd.f32 %v1583_v43, %v1535_v34  ;;  %v1725_v46 = vmax.f32 %v1626_v6, 0.0 }
 0x1e2   : > { %v1438_v48 = vpop.f32.mrf.mxu2 }
 0x1e3   : > { %v1619_v38 = vadd.f32 %v1584_v28, %v3606_v56  ;;  %v1439_v49 = vadd.f32 %v1438_v48, %v3567_v35  ;;  %v1487_v52 = vpop.f32.mrf.mxu3 }
 0x1e4   : > { %v1539_v11 = vpop.f32.mrf.mxu0 }
 0x1e5   : > { %v1718_v59 = vmax.f32 %v1619_v38, 0.0  ;;  %v1488_v41 = vadd.f32 %v1487_v52, %v1439_v49  ;;  %v1628_v49 = vadd.f32 %v3600_v50, %v3604_v33  ;;  %v1834_v50 = vld [vmem:[%s3615_s10 + $0x8] sm:$0xff] (%p2879_p9)  ;;  %v1836_v33 = vld [vmem:[%s3615_s10 + $0x10] sm:$0xff] (%p2879_p9) }
 0x1e6   : > { %v1588_v20 = vpop.f32.mrf.mxu1  ;;  %1835 = vst [vmem:[%s1773_s12 + $0x10] sm:$0xff] (%p2879_p9), %v1834_v50 }
 0x1e7   : > { %v1739_v19 = vpack.c.bf16 %v1718_v59, %v1717_v23  ;;  %v1537_v51 = vadd.f32 %v1536_v17, %v1488_v41  ;;  %v1727_v23 = vmax.f32 %v1628_v49, 0.0  ;;  %1837 = vst [vmem:[%s1773_s12 + $0x20] sm:$0xff] (%p2879_p9), %v1836_v33 }
 0x1e9   : > { %1755 = vst [vmem:[%s3615_s10 + $0x50] sm:$0xff] %v1739_v19  ;;  %v1586_v32 = vadd.f32 %v1585_v7, %v1537_v51  ;;  %v1840_v19 = vld [vmem:[%s3615_s10 + $0x20] sm:$0xff] (%p2879_p9)  ;;  %v1842_v51 = vld [vmem:[%s3615_s10 + $0x28] sm:$0xff] (%p2879_p9) }
 0x1ea   : > { %v1441_v14 = vpop.f32.mrf.mxu2  ;;  %1841 = vst [vmem:[%s1773_s12 + $0x40] sm:$0xff] (%p2879_p9), %v1840_v19 }
 0x1eb   : > { %v1621_v39 = vadd.f32 %v1586_v32, %v3606_v56  ;;  %v1442_v1 = vadd.f32 %v1441_v14, %v3572_v63  ;;  %v1490_v35 = vpop.f32.mrf.mxu3  ;;  %1843 = vst [vmem:[%s1773_s12 + $0x50] sm:$0xff] (%p2879_p9), %v1842_v51  ;;  %v1848_v32 = vld [vmem:[%s3615_s10 + $0x40] sm:$0xff] (%p2879_p9) }
 0x1ec   : > { %v1541_v55 = vpop.f32.mrf.mxu0  ;;  %1849 = vst [vmem:[%s1773_s12 + $0x80] sm:$0xff] (%p2879_p9), %v1848_v32 }
 0x1ed   : > { %v1720_v62 = vmax.f32 %v1621_v39, 0.0  ;;  %v1491_v10 = vadd.f32 %v1490_v35, %v1442_v1 }
 0x1ee   : > { %v1590_v63 = vpop.f32.mrf.mxu1 }
 0x1ef   : > { %v1740_v57 = vpack.c.bf16 %v1720_v62, %v1719_v40  ;;  %v1540_v29 = vadd.f32 %v1539_v11, %v1491_v10  ;;  %v1844_v11 = vld [vmem:[%s3615_s10 + $0x30] sm:$0xff] (%p2879_p9) }
 0x1f0   : > { %1845 = vst [vmem:[%s1773_s12 + $0x60] sm:$0xff] (%p2879_p9), %v1844_v11  ;;  %v1852_v14 = vld [vmem:[%s3615_s10 + $0x50] sm:$0xff] (%p2879_p9) }
 0x1f1   : > { %1756 = vst [vmem:[%s3615_s10 + $0x58] sm:$0xff] %v1740_v57  ;;  %v1589_v16 = vadd.f32 %v1588_v20, %v1540_v29  ;;  %v1850_v20 = vld [vmem:[%s3615_s10 + $0x48] sm:$0xff] (%p2879_p9) }
 0x1f2   : > { %v1443_v44 = vpop.f32.mrf.mxu2  ;;  %1851 = vst [vmem:[%s1773_s12 + $0x90] sm:$0xff] (%p2879_p9), %v1850_v20 }
 0x1f3   : > { %v1623_v22 = vadd.f32 %v1589_v16, %v3606_v56  ;;  %v1444_v58 = vadd.f32 %v1443_v44, %v3581_v54  ;;  %v1492_v30 = vpop.f32.mrf.mxu3  ;;  %1853 = vst [vmem:[%s1773_s12 + $0xa0] sm:$0xff] (%p2879_p9), %v1852_v14 }
 0x1f4   : > { %v1544_v54 = vpop.f32.mrf.mxu0 }
 0x1f5   : > { %v1722_v0 = vmax.f32 %v1623_v22, 0.0  ;;  %v1493_v12 = vadd.f32 %v1492_v30, %v1444_v58 }
 0x1f6   : > { %v1593_v31 = vpop.f32.mrf.mxu1 }
 0x1f7   : > { %v1741_v4 = vpack.c.bf16 %v1722_v0, %v1721_v2  ;;  %v1542_v61 = vadd.f32 %v1541_v55, %v1493_v12 }
 0x1f8   : > { %v1854_v39 = vld [vmem:[%s3615_s10 + $0x58] sm:$0xff] (%p2879_p9) }
 0x1f9   : > { %1757 = vst [vmem:[%s3615_s10 + $0x60] sm:$0xff] %v1741_v4  ;;  %v1591_v60 = vadd.f32 %v1590_v63, %v1542_v61 }
 0x1fa   : > { %v1446_v9 = vpop.f32.mrf.mxu2  ;;  %1855 = vst [vmem:[%s1773_s12 + $0xb0] sm:$0xff] (%p2879_p9), %v1854_v39 }
 0x1fb   : > { %v1625_v43 = vadd.f32 %v1591_v60, %v3606_v56  ;;  %v1447_v27 = vadd.f32 %v1446_v9, %v3586_v37  ;;  %v1495_v18 = vpop.f32.mrf.mxu3 }
 0x1fc   : > { %v1546_v15 = vpop.f32.mrf.mxu0 }
 0x1fd   : > { %v1724_v53 = vmax.f32 %v1625_v43, 0.0  ;;  %v1496_v36 = vadd.f32 %v1495_v18, %v1447_v27 }
 0x1fe   : > { %v1595_v38 = vpop.f32.mrf.mxu1 }
 0x1ff   : > { %v1742_v45 = vpack.c.bf16 %v1724_v53, %v1723_v25  ;;  %v1545_v3 = vadd.f32 %v1544_v54, %v1496_v36 }
 0x200   : > { %v1856_v1 = vld [vmem:[%s3615_s10 + $0x60] sm:$0xff] (%p2879_p9) }
 0x201   : > { %1758 = vst [vmem:[%s3615_s10 + $0x68] sm:$0xff] %v1742_v45  ;;  %v1594_v13 = vadd.f32 %v1593_v31, %v1545_v3 }
 0x202   : > { %v1448_v47 = vpop.f32.mrf.mxu2  ;;  %1857 = vst [vmem:[%s1773_s12 + $0xc0] sm:$0xff] (%p2879_p9), %v1856_v1 }
 0x203   : > { %v1627_v21 = vadd.f32 %v1594_v13, %v3606_v56  ;;  %v1449_v17 = vadd.f32 %v1448_v47, %v3595_v26  ;;  %v1497_v37 = vpop.f32.mrf.mxu3  ;;  %v1832_v26 = vld [vmem:[%s3615_s10] sm:$0xff] (%p2879_p9) }
 0x204   : > { %1833 = vst [vmem:[%s1773_s12] sm:$0xff] (%p2879_p9), %v1832_v26 }
 0x205   : > { %v1726_v34 = vmax.f32 %v1627_v21, 0.0  ;;  %v1498_v7 = vadd.f32 %v1497_v37, %v1449_v17 }
 0x207   : > { %v1743_v28 = vpack.c.bf16 %v1726_v34, %v1725_v46  ;;  %v1547_v48 = vadd.f32 %v1546_v15, %v1498_v7 }
 0x208   : > { %v1858_v35 = vld [vmem:[%s3615_s10 + $0x68] sm:$0xff] (%p2879_p9) }
 0x209   : > { %1759 = vst [vmem:[%s3615_s10 + $0x70] sm:$0xff] %v1743_v28  ;;  %v1596_v8 = vadd.f32 %v1595_v38, %v1547_v48 }
 0x20a   : > { %1859 = vst [vmem:[%s1773_s12 + $0xd0] sm:$0xff] (%p2879_p9), %v1858_v35 }
 0x20b   : > { %v1629_v52 = vadd.f32 %v1596_v8, %v3606_v56  ;;  %v1838_v56 = vld [vmem:[%s3615_s10 + $0x18] sm:$0xff] (%p2879_p9) }
 0x20c   : > { %1839 = vst [vmem:[%s1773_s12 + $0x30] sm:$0xff] (%p2879_p9), %v1838_v56 }
 0x20d   : > { %v1728_v59 = vmax.f32 %v1629_v52, 0.0  ;;  %1767 = sbr.rel (!%p2879_p9) target bundleno = 538 (0x21a), region = 52 }
 0x20f   : > { %v1744_v41 = vpack.c.bf16 %v1728_v59, %v1727_v23 }
 0x210   : > { %v1860_v40 = vld [vmem:[%s3615_s10 + $0x70] sm:$0xff] (%p2879_p9) }
 0x211   : > { %1760 = vst [vmem:[%s3615_s10 + $0x78] sm:$0xff] %v1744_v41 }
 0x212   : > { %1861 = vst [vmem:[%s1773_s12 + $0xe0] sm:$0xff] %v1860_v40 }
 0x218   : > { %v1862_v62 = vld [vmem:[%s3615_s10 + $0x78] sm:$0xff] }
 0x219   : > { %1863 = vst [vmem:[%s1773_s12 + $0xf0] sm:$0xff] %v1862_v62 }
 0x21a PF: > { %s19_s17 = sadd.s32 1, %s2804_s17   ;;  %s3738_s12 = smov %s2788_s13 }
 0x21b   : > { %p16_p1 = scmp.ge.s32.totalorder %s19_s17, 4   ;;  %s3739_s13 = smov %s2792_s14 }
 0x21c   : > { %s3740_s14 = smov %s2877_s24  ;;  %s3741_s15 = smov %s2800_s16 }
 0x21d   : > { %s3742_s16 = smov %s3744_s19  ;;  %18 = sbr.rel (!%p16_p1) target bundleno = 6 (0x6), region = 134 }
 0x222   :  { %1879 = vsyncpa [#allocation4], 1 }
 0x223   :  { %1881 = vsyncpa [#allocation4 + $0x1], 1 }
 0x224   :  { %1882 = vsyncpa [#allocation6], 1 }
 0x225   :  { %1884 = vsyncpa [#allocation6 + $0x1], 1 }

// kernel: vgg_forward.8
= control target key start
LH: loop header
LB: loop body
LE: loop exit
PB: predicated region body
PF: predicated region fallthrough
CT: control target
= control target key end

     0   :  { %s4847_s0 = inlined_call_operand.vmem [shape: bf16[8,4096], index: 0, kind: input, shape index: {}]   ;;  %s4848_s1 = inlined_call_operand.hbm [shape: bf16[4096,4096], index: 1, kind: input, shape index: {}]   ;;  %s4849_s2 = inlined_call_operand.hbm [shape: f32[1,4096], index: 2, kind: input, shape index: {}]   ;;  %s4850_s3 = inlined_call_operand.vmem [shape: f32[8,4096], index: 3, kind: output, shape index: {}]  }
   0x1   :  { %4853 = sst [smem:[#allocation10_spill]] %s4848_s1 }
   0x2   :  { %8 = vsyncpa [#allocation3], 0 }
   0x3   :  { %10 = vsyncpa [#allocation3 + $0x1], 0 }
   0x4   :  { %11 = vsyncpa [#allocation5], 0 }
   0x5   :  { %13 = vsyncpa [#allocation5 + $0x1], 0  ;;  %s4063_s12 = smov 0   ;;  %s4065_s13 = smov 0  }
   0x6   :  { %s4067_s14 = smov 0   ;;  %s4069_s15 = smov 0  }
   0x7   :  { %s4071_s16 = smov 0   ;;  %s4073_s17 = smov 0  }
   0x8   :  { %s4075_s18 = smov 0   ;;  %s4077_s19 = smov 0  }
   0x9   :  { %s4079_s20 = smov 0   ;;  %s4081_s21 = smov 0  }
   0xa   :  { %s4083_s22 = smov 0  }
   0xb LB: > { %s31_s23 = sadd.s32 1, %s4030_s20  ;;  %s34_s24 = sadd.s32 1, %s4034_s21  ;;  %s4038_s22 = sphi %s4083_s22, %s19_s22   ;;  %s4034_s21 = sphi %s4081_s21, %s4872_s21   ;;  %s4030_s20 = sphi %s4079_s20, %s4871_s20   ;;  %s4026_s19 = sphi %s4077_s19, %s4870_s19   ;;  %s4022_s18 = sphi %s4075_s18, %s4869_s18   ;;  %s4018_s17 = sphi %s4073_s17, %s4868_s17   ;;  %s4014_s16 = sphi %s4071_s16, %s4867_s16   ;;  %s4010_s15 = sphi %s4069_s15, %s4866_s15   ;;  %s4006_s14 = sphi %s4067_s14, %s4865_s14   ;;  %s4002_s13 = sphi %s4065_s13, %s4864_s13   ;;  %s3998_s12 = sphi %s4063_s12, %s4863_s12  }
   0xc   : > { %p32_p0 = scmp.ge.s32.totalorder %s31_s23, 4  ;;  %p82_p1 = scmp.ne.s32.totalorder %s4018_s17, %s4014_s16 }
   0xd   : > { %p83_p2 = scmp.eq.s32.totalorder %s4038_s22, 0  ;;  %s75_s25 = sadd.s32 1, %s4018_s17 }
   0xe   : > { %s4874_s23 = smov (%p32_p0, %s31_s23), 0  ;;  %s4876_s24 = smov (!%p32_p0, %s34_s24), %s4034_s21 }
   0xf   : > { %4854 = sst [smem:[#allocation8_spill]] %s4874_s23  ;;  %p84_p3 = por %p83_p2, %p82_p1 }
  0x10   : > { %p3792_p4 = scmp.lt.s32.totalorder %s4038_s22, 32  ;;  %s179_s26 = sand.u32 1, %s4018_s17  }
  0x11   : > { %s2484_s27 = sshll.u32 %s4034_s21, 2  ;;  %s2482_s28 = sshll.u32 %s179_s26, 11 }
  0x12   : > { %s3524_s29 = sshll.u32 %s4030_s20, 12  ;;  %s183_s4 = scalar_lea.vmem [#allocation2], %s2482_s28 }
  0x13   : > { %s189_s30 = sadd.s32 %s3524_s29, %s2484_s27  ;;  %s194_s5 = sshll.u32 %s183_s4, 4  ;;  %s195_s5 = int_to_ptr.vmem [resolvable:$true] %s194_s5 }
  0x14   : > { %s2486_s6 = sshll.u32 %s189_s30, 2  ;;  %s4855_s1 = sld [smem:[#allocation10_spill]] }
  0x15   : > { %p3786_p5 = pnand %p3792_p4, %p84_p3  ;;  %s180_s11 = scalar_lea.sflag [#allocation3], %s179_s26 }
  0x16   : > { %s4040_s28 = smov 2048   ;;  %s4041_s29 = smov 256  }
  0x17   : > { %s4042_s30 = smov 16   ;;  %p2489_p6 = scmp.ge.s32.totalorder %s4038_s22, 1 }
  0x18   : > { %p221_p7 = scmp.lt.s32.totalorder %s4038_s22, 33  ;;  %s70_s4 = ssub.s32 %s4030_s20, %s4874_s23 }
  0x19   : > { %s2478_s26 = sadd.s32 4294967295, %s4038_s22   ;;  %p36_p9 = scmp.ge.s32.totalorder %s4876_s24, 8 }
  0x1a   : > { %s191_s9 = scalar_lea.hbm %s4855_s1, %s2486_s6  ;;  %p4146_p8 = pnand %p2489_p6, %p221_p7 }
  0x1b   : > { %s192_s10 = sshll.u32 %s191_s9, 4  ;;  %p88_p10 = scmp.ne.s32.totalorder %s4014_s16, %s4010_s15  ;;  %s193_s10 = int_to_ptr.hbm [resolvable:$true] %s192_s10 }
  0x1c   : > { %3788 = dma.hbm_to_vmem [thread:$0]  (!%p3786_p5), %s193_s10, 32768, %s195_s5, %s180_s11, %s4040_s28, %s4041_s29, %s4042_s30  }
  0x1d   : > { %p89_p11 = scmp.eq.s32.totalorder %s2478_s26, 0  ;;  %s4878_s24 = smov (%p36_p9, %s4876_s24), 0 }
  0x1e   : > { %4857 = sst [smem:[#allocation9_spill]] %s4878_s24  ;;  %s101_s7 = sadd.s32 1, %s4006_s14 }
  0x1f   : > { %p4157_p12 = por %p89_p11, %p88_p10  ;;  %s71_s8 = ssub.s32 %s4034_s21, %s4878_s24 }
  0x20   : > { %p114_p13 = scmp.ne.s32.totalorder %s4002_s13, %s3998_s12  ;;  %s72_s9 = sor.u32 %s71_s8, %s70_s4 }
  0x21   : > { %p99_p0 = scmp.eq.s32.totalorder %s71_s8, 0  ;;  %p73_p1 = scmp.eq.s32.totalorder %s72_s9, 0 }
  0x22   : > { %p108_p3 = scmp.ne.s32.totalorder %s4006_s14, %s4002_s13  ;;  %p4176_p5 = por %p114_p13, %p89_p11 }
  0x23   : > { %s4169_s10 = scalar_select %p99_p0, %s4006_s14, %s101_s7  }
  0x24   : > { %s4174_s15 = scalar_select %p73_p1, %s4018_s17, %s75_s25  }
  0x25   : > { %s204_s28 = sand.u32 1, %s4006_s14   ;;  %p110_p6 = por %p108_p3, %p83_p2 }
  0x26   : > { %s2487_s29 = sshll.u32 %s204_s28, 2  ;;  %s212_s4 = scalar_lea.hbm %s4849_s2, %s2484_s27 }
  0x27   : > { %s214_s26 = sshll.u32 %s212_s4, 4  ;;  %s208_s8 = scalar_lea.vmem [#allocation4], %s2487_s29  ;;  %s215_s26 = int_to_ptr.hbm [resolvable:$true] %s214_s26 }
  0x28   : > { %s216_s7 = sshll.u32 %s208_s8, 4  ;;  %p3789_p7 = pnand %p3792_p4, %p110_p6  ;;  %s217_s7 = int_to_ptr.vmem [resolvable:$true] %s216_s7 }
  0x29   : > { %s205_s25 = scalar_lea.sflag [#allocation5], %s204_s28  ;;  %225 = sbr.rel (%p4146_p8) target bundleno = 479 (0x1df), region = 32 }
  0x2a   : > { %3791 = dma.hbm_to_vmem [thread:$0]  (!%p3789_p7), %s215_s26, 64, %s217_s7, %s205_s25  }
  0x2b   : > { %s227_s9 = sand.u32 (!%p4146_p8), 1, %s4014_s16  }
  0x2c   : > { %s2490_s1 = sshll.u32 (!%p4146_p8), %s227_s9, 11  ;;  %s228_s24 = scalar_lea.sflag (!%p4146_p8), [#allocation3], %s227_s9 }
  0x2d   : > { %s4193_s23 = scalar_lea.vmem (!%p4146_p8), [#allocation2], %s2490_s1 }
  0x2e   : > { %3989 = dma.done.wait (%p4157_p12), %s228_s24, 32768  }
  0x2f   : > { %3991 = vsyncadd (%p4157_p12), %s228_s24, 4294934528  ;;  %s237_s27 = sand.u32 1, %s4002_s13  }
  0x30   : > { %s2491_s28 = sshll.u32 %s237_s27, 2  ;;  %s238_s29 = scalar_lea.sflag [#allocation5], %s237_s27 }
  0x31   : > { %s241_s12 = scalar_lea.vmem [#allocation4], %s2491_s28 }
  0x32   : > { %3993 = dma.done.wait (%p4176_p5), %s238_s29, 64  }
  0x33   : > { %3995 = vsyncadd (%p4176_p5), %s238_s29, 4294967232  ;;  %s2492_s1 = sshll.u32 %s4022_s18, 3  ;;  %s2494_s6 = sshll.u32 %s4026_s19, 2 }
  0x34   : > { %p286_p2 = scmp.lt.s32.totalorder %s2492_s1, 31  ;;  %p299_p4 = scmp.lt.s32.totalorder %s2494_s6, 31 }
  0x35   : > { %p2496_p8 = scmp.ne.s32.totalorder %s4022_s18, 0 }
  0x36   : > { %s4880_s1 = smov (!%p286_p2, %s2492_s1), 31  ;;  %s4882_s6 = smov (!%p299_p4, %s2494_s6), 31 }
  0x37   : > { %s2493_s24 = sshll.u32 %s4880_s1, 2  ;;  %s2495_s26 = sshll.u32 %s4882_s6, 3 }
  0x38   : > { %s4209_s4 = scalar_lea.vmem %s4847_s0, %s2493_s24  ;;  %s4214_s11 = scalar_lea.vmem %s4850_s3, %s2495_s26 }
  0x39   : > { %309 = sbr.rel (%p2496_p8) target bundleno = 69 (0x45), region = 44 }
  0x3e   : > { %v310_v0 = vld [vmem:[%s241_s12] sm:$0xf] }
  0x3f   : > { %v312_v1 = vperm.slane %v310_v0, 0  ;;  %v313_v2 = vperm.slane %v310_v0, 1  ;;  %v314_v3 = vperm.slane %v310_v0, 2  ;;  %v315_v4 = vperm.slane %v310_v0, 3 }
  0x41   : > { %320 = vst [vmem:[%s4214_s11] sm:$0xff] %v312_v1 }
  0x42   : > { %321 = vst [vmem:[%s4214_s11 + $0x8] sm:$0xff] %v313_v2 }
  0x43   : > { %322 = vst [vmem:[%s4214_s11 + $0x10] sm:$0xff] %v314_v3 }
  0x44   : > { %323 = vst [vmem:[%s4214_s11 + $0x18] sm:$0xff] %v315_v4 }
  0x45 PF: > { %v2611_v5 = vld [vmem:[%s4193_s23 + $0xe0] sm:$0xf]  ;;  %v3555_v6 = vld [vmem:[%s4193_s23 + $0xec] sm:$0xf0]  ;;  %p3521_p9 = scmp.ne.s32.totalorder %s4022_s18, 3 }
  0x46   : > { %v2739_v7 = vld [vmem:[%s4193_s23 + $0x1e0] sm:$0xf]  ;;  %v2612_v8 = vor.u32 %v3555_v6, %v2611_v5  ;;  %v3587_v9 = vld [vmem:[%s4193_s23 + $0x1ec] sm:$0xf0] }
  0x47   : > { %v2867_v10 = vld [vmem:[%s4193_s23 + $0x2e0] sm:$0xf]  ;;  %v3619_v11 = vld [vmem:[%s4193_s23 + $0x2ec] sm:$0xf0]  ;;  %v2740_v12 = vor.u32 %v3587_v9, %v2739_v7 }
  0x48   : > { %v2868_v13 = vor.u32 %v3619_v11, %v2867_v10  ;;  %v2995_v14 = vld [vmem:[%s4193_s23 + $0x3e0] sm:$0xf]  ;;  %v3651_v15 = vld [vmem:[%s4193_s23 + $0x3ec] sm:$0xf0]  ;;  %1896 = vmatpush.bf16.msra.mxu0 %v2612_v8 }
  0x49   : > { %v2595_v16 = vld [vmem:[%s4193_s23 + $0xc0] sm:$0xf]  ;;  %v2996_v17 = vor.u32 %v3651_v15, %v2995_v14  ;;  %v3551_v18 = vld [vmem:[%s4193_s23 + $0xcc] sm:$0xf0]  ;;  %1909 = vmatpush.bf16.msra.mxu1 %v2740_v12 }
  0x4a   : > { %v2723_v19 = vld [vmem:[%s4193_s23 + $0x1c0] sm:$0xf]  ;;  %v3583_v20 = vld [vmem:[%s4193_s23 + $0x1cc] sm:$0xf0]  ;;  %1922 = vmatpush.bf16.msra.mxu2 %v2868_v13  ;;  %v2596_v21 = vor.u32 %v3551_v18, %v2595_v16 }
  0x4b   : > { %v2724_v22 = vor.u32 %v3583_v20, %v2723_v19  ;;  %v2851_v23 = vld [vmem:[%s4193_s23 + $0x2c0] sm:$0xf]  ;;  %v3615_v24 = vld [vmem:[%s4193_s23 + $0x2cc] sm:$0xf0]  ;;  %1935 = vmatpush.bf16.msra.mxu3 %v2996_v17 }
  0x4c   : > { %v2979_v25 = vld [vmem:[%s4193_s23 + $0x3c0] sm:$0xf]  ;;  %v2852_v26 = vor.u32 %v3615_v24, %v2851_v23  ;;  %v3647_v27 = vld [vmem:[%s4193_s23 + $0x3cc] sm:$0xf0]  ;;  %1897 = vmatpush.bf16.msra.mxu0 %v2596_v21 }
  0x4d   : > { %v2579_v28 = vld [vmem:[%s4193_s23 + $0xa0] sm:$0xf]  ;;  %v3547_v29 = vld [vmem:[%s4193_s23 + $0xac] sm:$0xf0]  ;;  %v2980_v30 = vor.u32 %v3647_v27, %v2979_v25  ;;  %1910 = vmatpush.bf16.msra.mxu1 %v2724_v22 }
  0x4e   : > { %v2707_v31 = vld [vmem:[%s4193_s23 + $0x1a0] sm:$0xf]  ;;  %v3579_v32 = vld [vmem:[%s4193_s23 + $0x1ac] sm:$0xf0]  ;;  %v2580_v34 = vor.u32 %v3547_v29, %v2579_v28  ;;  %1923 = vmatpush.bf16.msra.mxu2 %v2852_v26 }
  0x4f   : > { %v2835_v33 = vld [vmem:[%s4193_s23 + $0x2a0] sm:$0xf]  ;;  %v3611_v35 = vld [vmem:[%s4193_s23 + $0x2ac] sm:$0xf0]  ;;  %v2708_v38 = vor.u32 %v3579_v32, %v2707_v31  ;;  %1936 = vmatpush.bf16.msra.mxu3 %v2980_v30 }
  0x50   : > { %v2963_v36 = vld [vmem:[%s4193_s23 + $0x3a0] sm:$0xf]  ;;  %v3643_v37 = vld [vmem:[%s4193_s23 + $0x3ac] sm:$0xf0]  ;;  %v2836_v39 = vor.u32 %v3611_v35, %v2835_v33  ;;  %1898 = vmatpush.bf16.msra.mxu0 %v2580_v34 }
  0x51   : > { %v2563_v40 = vld [vmem:[%s4193_s23 + $0x80] sm:$0xf]  ;;  %v3543_v41 = vld [vmem:[%s4193_s23 + $0x8c] sm:$0xf0]  ;;  %v2964_v43 = vor.u32 %v3643_v37, %v2963_v36  ;;  %1911 = vmatpush.bf16.msra.mxu1 %v2708_v38 }
  0x52   : > { %v2691_v42 = vld [vmem:[%s4193_s23 + $0x180] sm:$0xf]  ;;  %v3575_v44 = vld [vmem:[%s4193_s23 + $0x18c] sm:$0xf0]  ;;  %v2564_v49 = vor.u32 %v3543_v41, %v2563_v40  ;;  %1924 = vmatpush.bf16.msra.mxu2 %v2836_v39 }
  0x53   : > { %v2819_v45 = vld [vmem:[%s4193_s23 + $0x280] sm:$0xf]  ;;  %v3607_v46 = vld [vmem:[%s4193_s23 + $0x28c] sm:$0xf0]  ;;  %v2692_v50 = vor.u32 %v3575_v44, %v2691_v42  ;;  %1937 = vmatpush.bf16.msra.mxu3 %v2964_v43 }
  0x54   : > { %v2947_v47 = vld [vmem:[%s4193_s23 + $0x380] sm:$0xf]  ;;  %v3639_v48 = vld [vmem:[%s4193_s23 + $0x38c] sm:$0xf0]  ;;  %v2820_v51 = vor.u32 %v3607_v46, %v2819_v45  ;;  %1899 = vmatpush.bf16.msra.mxu0 %v2564_v49 }
  0x55   : > { %v2547_v52 = vld [vmem:[%s4193_s23 + $0x60] sm:$0xf]  ;;  %v3539_v53 = vld [vmem:[%s4193_s23 + $0x6c] sm:$0xf0]  ;;  %v2948_v55 = vor.u32 %v3639_v48, %v2947_v47  ;;  %1912 = vmatpush.bf16.msra.mxu1 %v2692_v50 }
  0x56   : > { %v2675_v54 = vld [vmem:[%s4193_s23 + $0x160] sm:$0xf]  ;;  %v3571_v56 = vld [vmem:[%s4193_s23 + $0x16c] sm:$0xf0]  ;;  %v2548_v61 = vor.u32 %v3539_v53, %v2547_v52  ;;  %1925 = vmatpush.bf16.msra.mxu2 %v2820_v51 }
  0x57   : > { %v2803_v57 = vld [vmem:[%s4193_s23 + $0x260] sm:$0xf]  ;;  %v3603_v58 = vld [vmem:[%s4193_s23 + $0x26c] sm:$0xf0]  ;;  %v2676_v62 = vor.u32 %v3571_v56, %v2675_v54  ;;  %1938 = vmatpush.bf16.msra.mxu3 %v2948_v55 }
  0x58   : > { %v2931_v59 = vld [vmem:[%s4193_s23 + $0x360] sm:$0xf]  ;;  %v3635_v60 = vld [vmem:[%s4193_s23 + $0x36c] sm:$0xf0]  ;;  %v2804_v63 = vor.u32 %v3603_v58, %v2803_v57  ;;  %1900 = vmatpush.bf16.msra.mxu0 %v2548_v61 }
  0x59   : > { %v2531_v0 = vld [vmem:[%s4193_s23 + $0x40] sm:$0xf]  ;;  %v3535_v1 = vld [vmem:[%s4193_s23 + $0x4c] sm:$0xf0]  ;;  %v2932_v3 = vor.u32 %v3635_v60, %v2931_v59  ;;  %1913 = vmatpush.bf16.msra.mxu1 %v2676_v62 }
  0x5a   : > { %v2659_v2 = vld [vmem:[%s4193_s23 + $0x140] sm:$0xf]  ;;  %v3567_v4 = vld [vmem:[%s4193_s23 + $0x14c] sm:$0xf0]  ;;  %v2532_v9 = vor.u32 %v3535_v1, %v2531_v0  ;;  %1926 = vmatpush.bf16.msra.mxu2 %v2804_v63  ;;  %v329_v63 = vld [vmem:[%s4209_s4 + $0x8] sm:$0xff] }
  0x5b   : > { %v2787_v5 = vld [vmem:[%s4193_s23 + $0x240] sm:$0xf]  ;;  %v3599_v6 = vld [vmem:[%s4193_s23 + $0x24c] sm:$0xf0]  ;;  %v2660_v10 = vor.u32 %v3567_v4, %v2659_v2  ;;  %1939 = vmatpush.bf16.msra.mxu3 %v2932_v3  ;;  %v594_v4 = vunpack.c.l.b16 %v329_v63 }
  0x5c   : > { %v2915_v7 = vld [vmem:[%s4193_s23 + $0x340] sm:$0xf]  ;;  %v3631_v8 = vld [vmem:[%s4193_s23 + $0x34c] sm:$0xf0]  ;;  %v2788_v11 = vor.u32 %v3599_v6, %v2787_v5  ;;  %1901 = vmatpush.bf16.msra.mxu0 %v2532_v9  ;;  %v595_v5 = vunpack.c.h.b16 %v329_v63 }
  0x5d   : > { %v2515_v12 = vld [vmem:[%s4193_s23 + $0x20] sm:$0xf]  ;;  %v3531_v13 = vld [vmem:[%s4193_s23 + $0x2c] sm:$0xf0]  ;;  %v2916_v15 = vor.u32 %v3631_v8, %v2915_v7  ;;  %1914 = vmatpush.bf16.msra.mxu1 %v2660_v10  ;;  %v4310_v9 = vpack.c.b16 %v594_v4, %v594_v4 }
  0x5e   : > { %v2643_v14 = vld [vmem:[%s4193_s23 + $0x120] sm:$0xf]  ;;  %v3563_v16 = vld [vmem:[%s4193_s23 + $0x12c] sm:$0xf0]  ;;  %v2516_v21 = vor.u32 %v3531_v13, %v2515_v12  ;;  %1927 = vmatpush.bf16.msra.mxu2 %v2788_v11  ;;  %v4313_v11 = vpack.c.b16 %v595_v5, %v595_v5 }
  0x5f   : > { %v2771_v17 = vld [vmem:[%s4193_s23 + $0x220] sm:$0xf]  ;;  %v3595_v18 = vld [vmem:[%s4193_s23 + $0x22c] sm:$0xf0]  ;;  %v2644_v24 = vor.u32 %v3563_v16, %v2643_v14  ;;  %1940 = vmatpush.bf16.msra.mxu3 %v2916_v15 }
  0x60   : > { %v2899_v19 = vld [vmem:[%s4193_s23 + $0x320] sm:$0xf]  ;;  %v3627_v20 = vld [vmem:[%s4193_s23 + $0x32c] sm:$0xf0]  ;;  %v2772_v25 = vor.u32 %v3595_v18, %v2771_v17  ;;  %1902 = vmatpush.bf16.msra.mxu0 %v2516_v21 }
  0x61   : > { %v2499_v22 = vld [vmem:[%s4193_s23] sm:$0xf]  ;;  %v3527_v23 = vld [vmem:[%s4193_s23 + $0xc] sm:$0xf0]  ;;  %v2900_v29 = vor.u32 %v3627_v20, %v2899_v19  ;;  %1915 = vmatpush.bf16.msra.mxu1 %v2644_v24 }
  0x62   : > { %v2627_v26 = vld [vmem:[%s4193_s23 + $0x100] sm:$0xf]  ;;  %v3559_v27 = vld [vmem:[%s4193_s23 + $0x10c] sm:$0xf0]  ;;  %v2500_v36 = vor.u32 %v3527_v23, %v2499_v22  ;;  %1928 = vmatpush.bf16.msra.mxu2 %v2772_v25 }
  0x63   : > { %v2755_v28 = vld [vmem:[%s4193_s23 + $0x200] sm:$0xf]  ;;  %v3591_v30 = vld [vmem:[%s4193_s23 + $0x20c] sm:$0xf0]  ;;  %v2628_v40 = vor.u32 %v3559_v27, %v2627_v26  ;;  %1941 = vmatpush.bf16.msra.mxu3 %v2900_v29 }
  0x64   : > { %v2883_v31 = vld [vmem:[%s4193_s23 + $0x300] sm:$0xf]  ;;  %v3623_v32 = vld [vmem:[%s4193_s23 + $0x30c] sm:$0xf0]  ;;  %v2756_v41 = vor.u32 %v3591_v30, %v2755_v28  ;;  %1903 = vmatpush.bf16.msra.mxu0 %v2500_v36 }
  0x65   : > { %v3123_v33 = vld [vmem:[%s4193_s23 + $0x4e0] sm:$0xf]  ;;  %v3683_v34 = vld [vmem:[%s4193_s23 + $0x4ec] sm:$0xf0]  ;;  %v2884_v44 = vor.u32 %v3623_v32, %v2883_v31  ;;  %1916 = vmatpush.bf16.msra.mxu1 %v2628_v40 }
  0x66   : > { %v3251_v35 = vld [vmem:[%s4193_s23 + $0x5e0] sm:$0xf]  ;;  %v3715_v37 = vld [vmem:[%s4193_s23 + $0x5ec] sm:$0xf0]  ;;  %v3124_v45 = vor.u32 %v3683_v34, %v3123_v33  ;;  %1929 = vmatpush.bf16.msra.mxu2 %v2756_v41 }
  0x67   : > { %v3379_v38 = vld [vmem:[%s4193_s23 + $0x6e0] sm:$0xf]  ;;  %v3747_v39 = vld [vmem:[%s4193_s23 + $0x6ec] sm:$0xf0]  ;;  %v3252_v46 = vor.u32 %v3715_v37, %v3251_v35  ;;  %1942 = vmatpush.bf16.msra.mxu3 %v2884_v44 }
  0x68   : > { %v3507_v42 = vld [vmem:[%s4193_s23 + $0x7e0] sm:$0xf]  ;;  %v3779_v43 = vld [vmem:[%s4193_s23 + $0x7ec] sm:$0xf0]  ;;  %v3380_v47 = vor.u32 %v3747_v39, %v3379_v38  ;;  %1948 = vmatpush.bf16.msrb.mxu0 %v3124_v45 }
  0x69   : > { %v3107_v48 = vld [vmem:[%s4193_s23 + $0x4c0] sm:$0xf]  ;;  %v3679_v49 = vld [vmem:[%s4193_s23 + $0x4cc] sm:$0xf0]  ;;  %v3508_v51 = vor.u32 %v3779_v43, %v3507_v42  ;;  %1961 = vmatpush.bf16.msrb.mxu1 %v3252_v46  ;;  %1930 = vmatmul.bf16.vlgmr.msra.gmra.mxu2 %v4310_v9 }
  0x6a   : > { %v3235_v50 = vld [vmem:[%s4193_s23 + $0x5c0] sm:$0xf]  ;;  %v3711_v52 = vld [vmem:[%s4193_s23 + $0x5cc] sm:$0xf0]  ;;  %v3108_v57 = vor.u32 %v3679_v49, %v3107_v48  ;;  %1974 = vmatpush.bf16.msrb.mxu2 %v3380_v47  ;;  %1943 = vmatmul.bf16.vlgmr.msra.gmra.mxu3 %v4313_v11 }
  0x6b   : > { %v3363_v53 = vld [vmem:[%s4193_s23 + $0x6c0] sm:$0xf]  ;;  %v3743_v54 = vld [vmem:[%s4193_s23 + $0x6cc] sm:$0xf0]  ;;  %v3236_v59 = vor.u32 %v3711_v52, %v3235_v50  ;;  %1987 = vmatpush.bf16.msrb.mxu3 %v3508_v51 }
  0x6c   : > { %v3491_v55 = vld [vmem:[%s4193_s23 + $0x7c0] sm:$0xf]  ;;  %v3775_v56 = vld [vmem:[%s4193_s23 + $0x7cc] sm:$0xf0]  ;;  %v3364_v60 = vor.u32 %v3743_v54, %v3363_v53  ;;  %1949 = vmatpush.bf16.msrb.mxu0 %v3108_v57 }
  0x6d   : > { %v3091_v58 = vld [vmem:[%s4193_s23 + $0x4a0] sm:$0xf]  ;;  %v3675_v61 = vld [vmem:[%s4193_s23 + $0x4ac] sm:$0xf0]  ;;  %v3492_v0 = vor.u32 %v3775_v56, %v3491_v55  ;;  %1962 = vmatpush.bf16.msrb.mxu1 %v3236_v59 }
  0x6e   : > { %v3219_v62 = vld [vmem:[%s4193_s23 + $0x5a0] sm:$0xf]  ;;  %v3707_v1 = vld [vmem:[%s4193_s23 + $0x5ac] sm:$0xf0]  ;;  %v3092_v8 = vor.u32 %v3675_v61, %v3091_v58  ;;  %1975 = vmatpush.bf16.msrb.mxu2 %v3364_v60 }
  0x6f   : > { %v3347_v2 = vld [vmem:[%s4193_s23 + $0x6a0] sm:$0xf]  ;;  %v3739_v3 = vld [vmem:[%s4193_s23 + $0x6ac] sm:$0xf0]  ;;  %v3220_v12 = vor.u32 %v3707_v1, %v3219_v62  ;;  %1988 = vmatpush.bf16.msrb.mxu3 %v3492_v0 }
  0x70   : > { %v3475_v6 = vld [vmem:[%s4193_s23 + $0x7a0] sm:$0xf]  ;;  %v3771_v7 = vld [vmem:[%s4193_s23 + $0x7ac] sm:$0xf0]  ;;  %v3348_v13 = vor.u32 %v3739_v3, %v3347_v2  ;;  %1950 = vmatpush.bf16.msrb.mxu0 %v3092_v8  ;;  %v331_v8 = vld [vmem:[%s4209_s4 + $0x18] sm:$0xff] }
  0x71   : > { %v328_v10 = vld [vmem:[%s4209_s4] sm:$0xff]  ;;  %v3671_v15 = vld [vmem:[%s4193_s23 + $0x48c] sm:$0xf0]  ;;  %v3476_v19 = vor.u32 %v3771_v7, %v3475_v6  ;;  %1963 = vmatpush.bf16.msrb.mxu1 %v3220_v12 }
  0x72   : > { %v3075_v14 = vld [vmem:[%s4193_s23 + $0x480] sm:$0xf]  ;;  %v592_v17 = vunpack.c.l.b16 %v328_v10  ;;  %v593_v18 = vunpack.c.h.b16 %v328_v10  ;;  %v3703_v20 = vld [vmem:[%s4193_s23 + $0x58c] sm:$0xf0]  ;;  %1976 = vmatpush.bf16.msrb.mxu2 %v3348_v13 }
  0x73   : > { %v3203_v16 = vld [vmem:[%s4193_s23 + $0x580] sm:$0xf]  ;;  %v3735_v22 = vld [vmem:[%s4193_s23 + $0x68c] sm:$0xf0]  ;;  %v3076_v27 = vor.u32 %v3671_v15, %v3075_v14  ;;  %1989 = vmatpush.bf16.msrb.mxu3 %v3476_v19  ;;  %v3553_v15 = vld [vmem:[%s4193_s23 + $0xe4] sm:$0xf] }
  0x74   : > { %v3331_v21 = vld [vmem:[%s4193_s23 + $0x680] sm:$0xf]  ;;  %v3767_v24 = vld [vmem:[%s4193_s23 + $0x78c] sm:$0xf0]  ;;  %v4324_v25 = vpack.c.b16 %v592_v17, %v592_v17  ;;  %v4327_v26 = vpack.c.b16 %v593_v18, %v593_v18  ;;  %v3204_v28 = vor.u32 %v3703_v20, %v3203_v16  ;;  %v2613_v16 = vld [vmem:[%s4193_s23 + $0xf0] sm:$0xf0] }
  0x75   : > { %v3459_v23 = vld [vmem:[%s4193_s23 + $0x780] sm:$0xf]  ;;  %v3332_v29 = vor.u32 %v3735_v22, %v3331_v21  ;;  %v3667_v31 = vld [vmem:[%s4193_s23 + $0x46c] sm:$0xf0]  ;;  %1951 = vmatpush.bf16.msrb.mxu0 %v3076_v27  ;;  %v3585_v17 = vld [vmem:[%s4193_s23 + $0x1e4] sm:$0xf]  ;;  %v598_v22 = vunpack.c.l.b16 %v331_v8 }
  0x76   : > { %v3059_v30 = vld [vmem:[%s4193_s23 + $0x460] sm:$0xf]  ;;  %v3460_v33 = vor.u32 %v3767_v24, %v3459_v23  ;;  %v3699_v34 = vld [vmem:[%s4193_s23 + $0x56c] sm:$0xf0]  ;;  %1904 = vmatmul.bf16.vlgmr.msra.gmra.mxu0 %v4324_v25  ;;  %1917 = vmatmul.bf16.vlgmr.msra.gmra.mxu1 %v4327_v26  ;;  %v2741_v19 = vld [vmem:[%s4193_s23 + $0x1f0] sm:$0xf0] }
  0x77   : > { %v3187_v32 = vld [vmem:[%s4193_s23 + $0x560] sm:$0xf]  ;;  %v3731_v36 = vld [vmem:[%s4193_s23 + $0x66c] sm:$0xf0]  ;;  %v3060_v39 = vor.u32 %v3667_v31, %v3059_v30  ;;  %1964 = vmatpush.bf16.msrb.mxu1 %v3204_v28  ;;  %1977 = vmatpush.bf16.msrb.mxu2 %v3332_v29  ;;  %v3617_v20 = vld [vmem:[%s4193_s23 + $0x2e4] sm:$0xf]  ;;  %v599_v30 = vunpack.c.h.b16 %v331_v8 }
  0x78   : > { %v3315_v35 = vld [vmem:[%s4193_s23 + $0x660] sm:$0xf]  ;;  %v3763_v38 = vld [vmem:[%s4193_s23 + $0x76c] sm:$0xf0]  ;;  %v3188_v40 = vor.u32 %v3699_v34, %v3187_v32  ;;  %1990 = vmatpush.bf16.msrb.mxu3 %v3460_v33  ;;  %v2869_v21 = vld [vmem:[%s4193_s23 + $0x2f0] sm:$0xf0]  ;;  %v2616_v32 = vor.u32 %v3553_v15, %v2613_v16  ;;  %v2744_v34 = vor.u32 %v3585_v17, %v2741_v19 }
  0x79   : > { %v3443_v37 = vld [vmem:[%s4193_s23 + $0x760] sm:$0xf]  ;;  %v3316_v41 = vor.u32 %v3731_v36, %v3315_v35  ;;  %v3663_v43 = vld [vmem:[%s4193_s23 + $0x44c] sm:$0xf0]  ;;  %1952 = vmatpush.bf16.msrb.mxu0 %v3060_v39  ;;  %v3649_v27 = vld [vmem:[%s4193_s23 + $0x3e4] sm:$0xf]  ;;  %v2872_v35 = vor.u32 %v3617_v20, %v2869_v21 }
  0x7a   : > { %v3043_v42 = vld [vmem:[%s4193_s23 + $0x440] sm:$0xf]  ;;  %v3444_v45 = vor.u32 %v3763_v38, %v3443_v37  ;;  %v3695_v46 = vld [vmem:[%s4193_s23 + $0x54c] sm:$0xf0]  ;;  %v2997_v28 = vld [vmem:[%s4193_s23 + $0x3f0] sm:$0xf0] }
  0x7b   : > { %v3171_v44 = vld [vmem:[%s4193_s23 + $0x540] sm:$0xf]  ;;  %v3727_v48 = vld [vmem:[%s4193_s23 + $0x64c] sm:$0xf0]  ;;  %v3044_v51 = vor.u32 %v3663_v43, %v3043_v42  ;;  %1965 = vmatpush.bf16.msrb.mxu1 %v3188_v40  ;;  %1978 = vmatpush.bf16.msrb.mxu2 %v3316_v41  ;;  %v3549_v36 = vld [vmem:[%s4193_s23 + $0xc4] sm:$0xf]  ;;  %v3000_v39 = vor.u32 %v3649_v27, %v2997_v28  ;;  %v4379_v43 = vpack.c.b16 %v598_v22, %v598_v22 }
  0x7c   : > { %v3299_v47 = vld [vmem:[%s4193_s23 + $0x640] sm:$0xf]  ;;  %v3759_v50 = vld [vmem:[%s4193_s23 + $0x74c] sm:$0xf0]  ;;  %v3172_v52 = vor.u32 %v3695_v46, %v3171_v44  ;;  %1991 = vmatpush.bf16.msrb.mxu3 %v3444_v45  ;;  %v2597_v37 = vld [vmem:[%s4193_s23 + $0xd0] sm:$0xf0] }
  0x7d   : > { %v3427_v49 = vld [vmem:[%s4193_s23 + $0x740] sm:$0xf]  ;;  %v3300_v53 = vor.u32 %v3727_v48, %v3299_v47  ;;  %v3659_v55 = vld [vmem:[%s4193_s23 + $0x42c] sm:$0xf0]  ;;  %1953 = vmatpush.bf16.msrb.mxu0 %v3044_v51  ;;  %v3581_v38 = vld [vmem:[%s4193_s23 + $0x1c4] sm:$0xf]  ;;  %v4385_v47 = vpack.c.b16 %v599_v30, %v599_v30  ;;  %v2600_v48 = vor.u32 %v3549_v36, %v2597_v37 }
  0x7e   : > { %v3027_v54 = vld [vmem:[%s4193_s23 + $0x420] sm:$0xf]  ;;  %v3428_v57 = vor.u32 %v3759_v50, %v3427_v49  ;;  %v3691_v58 = vld [vmem:[%s4193_s23 + $0x52c] sm:$0xf0]  ;;  %v2725_v40 = vld [vmem:[%s4193_s23 + $0x1d0] sm:$0xf0] }
  0x7f   : > { %v3155_v56 = vld [vmem:[%s4193_s23 + $0x520] sm:$0xf]  ;;  %v3723_v60 = vld [vmem:[%s4193_s23 + $0x62c] sm:$0xf0]  ;;  %v3028_v0 = vor.u32 %v3659_v55, %v3027_v54  ;;  %1966 = vmatpush.bf16.msrb.mxu1 %v3172_v52  ;;  %1979 = vmatpush.bf16.msrb.mxu2 %v3300_v53  ;;  %v3613_v41 = vld [vmem:[%s4193_s23 + $0x2c4] sm:$0xf]  ;;  %v2728_v50 = vor.u32 %v3581_v38, %v2725_v40 }
  0x80   : > { %v3283_v59 = vld [vmem:[%s4193_s23 + $0x620] sm:$0xf]  ;;  %v3755_v62 = vld [vmem:[%s4193_s23 + $0x72c] sm:$0xf0]  ;;  %v3156_v4 = vor.u32 %v3691_v58, %v3155_v56  ;;  %1992 = vmatpush.bf16.msrb.mxu3 %v3428_v57  ;;  %v2853_v42 = vld [vmem:[%s4193_s23 + $0x2d0] sm:$0xf0] }
  0x81   : > { %v3411_v61 = vld [vmem:[%s4193_s23 + $0x720] sm:$0xf]  ;;  %v3655_v1 = vld [vmem:[%s4193_s23 + $0x40c] sm:$0xf0]  ;;  %v3284_v5 = vor.u32 %v3723_v60, %v3283_v59  ;;  %1954 = vmatpush.bf16.msrb.mxu0 %v3028_v0  ;;  %v3645_v44 = vld [vmem:[%s4193_s23 + $0x3c4] sm:$0xf]  ;;  %v2856_v51 = vor.u32 %v3613_v41, %v2853_v42 }
  0x82   : > { %v3011_v63 = vld [vmem:[%s4193_s23 + $0x400] sm:$0xf]  ;;  %v3687_v3 = vld [vmem:[%s4193_s23 + $0x50c] sm:$0xf0]  ;;  %v3412_v10 = vor.u32 %v3755_v62, %v3411_v61  ;;  %v2981_v45 = vld [vmem:[%s4193_s23 + $0x3d0] sm:$0xf0] }
  0x83   : > { %v3139_v2 = vld [vmem:[%s4193_s23 + $0x500] sm:$0xf]  ;;  %v3719_v7 = vld [vmem:[%s4193_s23 + $0x60c] sm:$0xf0]  ;;  %v3012_v18 = vor.u32 %v3655_v1, %v3011_v63  ;;  %1967 = vmatpush.bf16.msrb.mxu1 %v3156_v4  ;;  %1980 = vmatpush.bf16.msrb.mxu2 %v3284_v5  ;;  %v3545_v52 = vld [vmem:[%s4193_s23 + $0xa4] sm:$0xf]  ;;  %v2984_v55 = vor.u32 %v3645_v44, %v2981_v45 }
  0x84   : > { %v3267_v6 = vld [vmem:[%s4193_s23 + $0x600] sm:$0xf]  ;;  %v3751_v13 = vld [vmem:[%s4193_s23 + $0x70c] sm:$0xf0]  ;;  %v3140_v23 = vor.u32 %v3687_v3, %v3139_v2  ;;  %1993 = vmatpush.bf16.msrb.mxu3 %v3412_v10  ;;  %v2581_v53 = vld [vmem:[%s4193_s23 + $0xb0] sm:$0xf0] }
  0x85   : > { %v3395_v12 = vld [vmem:[%s4193_s23 + $0x700] sm:$0xf]  ;;  %v330_v14 = vld [vmem:[%s4209_s4 + $0x10] sm:$0xff]  ;;  %v3268_v24 = vor.u32 %v3719_v7, %v3267_v6  ;;  %1955 = vmatpush.bf16.msrb.mxu0 %v3012_v18  ;;  %v3577_v54 = vld [vmem:[%s4193_s23 + $0x1a4] sm:$0xf]  ;;  %v2584_v61 = vor.u32 %v3545_v52, %v2581_v53 }
  0x86   : > { %v596_v29 = vunpack.c.l.b16 %v330_v14  ;;  %v3396_v31 = vor.u32 %v3751_v13, %v3395_v12  ;;  %v597_v33 = vunpack.c.h.b16 %v330_v14  ;;  %v2709_v56 = vld [vmem:[%s4193_s23 + $0x1b0] sm:$0xf0]  ;;  %v3609_v57 = vld [vmem:[%s4193_s23 + $0x2a4] sm:$0xf] }
  0x87   : > { %1968 = vmatpush.bf16.msrb.mxu1 %v3140_v23  ;;  %1981 = vmatpush.bf16.msrb.mxu2 %v3268_v24  ;;  %v2837_v58 = vld [vmem:[%s4193_s23 + $0x2b0] sm:$0xf0]  ;;  %v3641_v59 = vld [vmem:[%s4193_s23 + $0x3a4] sm:$0xf]  ;;  %v2712_v62 = vor.u32 %v3577_v54, %v2709_v56 }
  0x88   : > { %v4383_v46 = vpack.c.b16 %v596_v29, %v596_v29  ;;  %1994 = vmatpush.bf16.msrb.mxu3 %v3396_v31  ;;  %v4387_v49 = vpack.c.b16 %v597_v33, %v597_v33  ;;  %v2965_v60 = vld [vmem:[%s4193_s23 + $0x3b0] sm:$0xf0]  ;;  %v2840_v63 = vor.u32 %v3609_v57, %v2837_v58  ;;  %v3541_v0 = vld [vmem:[%s4193_s23 + $0x84] sm:$0xf] }
  0x89   : > { %2000 = vmatpush.bf16.msra.mxu0 %v2616_v32  ;;  %v2565_v1 = vld [vmem:[%s4193_s23 + $0x90] sm:$0xf0]  ;;  %v3573_v2 = vld [vmem:[%s4193_s23 + $0x184] sm:$0xf]  ;;  %v2968_v3 = vor.u32 %v3641_v59, %v2965_v60 }
  0x8a   : > { %1982 = vmatmul.bf16.vlgmr.msrb.gmra.mxu2 %v4379_v43  ;;  %1956 = vmatmul.bf16.vlgmr.msrb.gmra.mxu0 %v4383_v46  ;;  %v2693_v4 = vld [vmem:[%s4193_s23 + $0x190] sm:$0xf0]  ;;  %v3605_v5 = vld [vmem:[%s4193_s23 + $0x284] sm:$0xf]  ;;  %v2568_v10 = vor.u32 %v3541_v0, %v2565_v1 }
  0x8b   : > { %2013 = vmatpush.bf16.msra.mxu1 %v2744_v34  ;;  %2026 = vmatpush.bf16.msra.mxu2 %v2872_v35  ;;  %v2821_v6 = vld [vmem:[%s4193_s23 + $0x290] sm:$0xf0]  ;;  %v3637_v7 = vld [vmem:[%s4193_s23 + $0x384] sm:$0xf]  ;;  %v2696_v12 = vor.u32 %v3573_v2, %v2693_v4 }
  0x8c   : > { %2039 = vmatpush.bf16.msra.mxu3 %v3000_v39  ;;  %1969 = vmatmul.bf16.vlgmr.msrb.gmra.mxu1 %v4387_v49  ;;  %v2949_v8 = vld [vmem:[%s4193_s23 + $0x390] sm:$0xf0]  ;;  %v2824_v13 = vor.u32 %v3605_v5, %v2821_v6  ;;  %v3537_v14 = vld [vmem:[%s4193_s23 + $0x64] sm:$0xf] }
  0x8d   : > { %1995 = vmatmul.bf16.vlgmr.msrb.gmra.mxu3 %v4385_v47  ;;  %2001 = vmatpush.bf16.msra.mxu0 %v2600_v48  ;;  %v2549_v15 = vld [vmem:[%s4193_s23 + $0x70] sm:$0xf0]  ;;  %v3569_v16 = vld [vmem:[%s4193_s23 + $0x164] sm:$0xf]  ;;  %v2952_v17 = vor.u32 %v3637_v7, %v2949_v8 }
  0x8e   : > { %v2677_v18 = vld [vmem:[%s4193_s23 + $0x170] sm:$0xf0]  ;;  %v3601_v19 = vld [vmem:[%s4193_s23 + $0x264] sm:$0xf]  ;;  %v2552_v23 = vor.u32 %v3537_v14, %v2549_v15 }
  0x8f   : > { %2014 = vmatpush.bf16.msra.mxu1 %v2728_v50  ;;  %2027 = vmatpush.bf16.msra.mxu2 %v2856_v51  ;;  %v2805_v20 = vld [vmem:[%s4193_s23 + $0x270] sm:$0xf0]  ;;  %v3633_v21 = vld [vmem:[%s4193_s23 + $0x364] sm:$0xf]  ;;  %v2680_v24 = vor.u32 %v3569_v16, %v2677_v18 }
  0x90   : > { %2040 = vmatpush.bf16.msra.mxu3 %v2984_v55  ;;  %v2933_v22 = vld [vmem:[%s4193_s23 + $0x370] sm:$0xf0]  ;;  %v2808_v27 = vor.u32 %v3601_v19, %v2805_v20  ;;  %v3533_v28 = vld [vmem:[%s4193_s23 + $0x44] sm:$0xf] }
  0x91   : > { %2002 = vmatpush.bf16.msra.mxu0 %v2584_v61  ;;  %v2533_v29 = vld [vmem:[%s4193_s23 + $0x50] sm:$0xf0]  ;;  %v3565_v30 = vld [vmem:[%s4193_s23 + $0x144] sm:$0xf]  ;;  %v2936_v31 = vor.u32 %v3633_v21, %v2933_v22 }
  0x92   : > { %v2661_v32 = vld [vmem:[%s4193_s23 + $0x150] sm:$0xf0]  ;;  %v3597_v33 = vld [vmem:[%s4193_s23 + $0x244] sm:$0xf]  ;;  %v2536_v37 = vor.u32 %v3533_v28, %v2533_v29 }
  0x93   : > { %2015 = vmatpush.bf16.msra.mxu1 %v2712_v62  ;;  %2028 = vmatpush.bf16.msra.mxu2 %v2840_v63  ;;  %v2789_v34 = vld [vmem:[%s4193_s23 + $0x250] sm:$0xf0]  ;;  %v3629_v35 = vld [vmem:[%s4193_s23 + $0x344] sm:$0xf]  ;;  %v2664_v38 = vor.u32 %v3565_v30, %v2661_v32 }
  0x94   : > { %2041 = vmatpush.bf16.msra.mxu3 %v2968_v3  ;;  %v2917_v36 = vld [vmem:[%s4193_s23 + $0x350] sm:$0xf0]  ;;  %v2792_v39 = vor.u32 %v3597_v33, %v2789_v34  ;;  %v3529_v40 = vld [vmem:[%s4193_s23 + $0x24] sm:$0xf] }
  0x95   : > { %2003 = vmatpush.bf16.msra.mxu0 %v2568_v10  ;;  %v2517_v41 = vld [vmem:[%s4193_s23 + $0x30] sm:$0xf0]  ;;  %v3561_v42 = vld [vmem:[%s4193_s23 + $0x124] sm:$0xf]  ;;  %v2920_v44 = vor.u32 %v3629_v35, %v2917_v36 }
  0x96   : > { %v2645_v45 = vld [vmem:[%s4193_s23 + $0x130] sm:$0xf0]  ;;  %v3593_v48 = vld [vmem:[%s4193_s23 + $0x224] sm:$0xf]  ;;  %v2520_v53 = vor.u32 %v3529_v40, %v2517_v41 }
  0x97   : > { %2016 = vmatpush.bf16.msra.mxu1 %v2696_v12  ;;  %2029 = vmatpush.bf16.msra.mxu2 %v2824_v13  ;;  %v2773_v50 = vld [vmem:[%s4193_s23 + $0x230] sm:$0xf0]  ;;  %v3625_v51 = vld [vmem:[%s4193_s23 + $0x324] sm:$0xf]  ;;  %v2648_v56 = vor.u32 %v3561_v42, %v2645_v45 }
  0x98   : > { %2042 = vmatpush.bf16.msra.mxu3 %v2952_v17  ;;  %v2901_v52 = vld [vmem:[%s4193_s23 + $0x330] sm:$0xf0]  ;;  %v3525_v54 = vld [vmem:[%s4193_s23 + $0x4] sm:$0xf]  ;;  %v2776_v57 = vor.u32 %v3593_v48, %v2773_v50 }
  0x99   : > { %2004 = vmatpush.bf16.msra.mxu0 %v2552_v23  ;;  %v2501_v55 = vld [vmem:[%s4193_s23 + $0x10] sm:$0xf0]  ;;  %v3557_v58 = vld [vmem:[%s4193_s23 + $0x104] sm:$0xf]  ;;  %v2904_v61 = vor.u32 %v3625_v51, %v2901_v52 }
  0x9a   : > { %v2629_v59 = vld [vmem:[%s4193_s23 + $0x110] sm:$0xf0]  ;;  %v3589_v60 = vld [vmem:[%s4193_s23 + $0x204] sm:$0xf]  ;;  %v2504_v4 = vor.u32 %v3525_v54, %v2501_v55 }
  0x9b   : > { %2017 = vmatpush.bf16.msra.mxu1 %v2680_v24  ;;  %2030 = vmatpush.bf16.msra.mxu2 %v2808_v27  ;;  %v2757_v62 = vld [vmem:[%s4193_s23 + $0x210] sm:$0xf0]  ;;  %v3621_v63 = vld [vmem:[%s4193_s23 + $0x304] sm:$0xf]  ;;  %v2632_v8 = vor.u32 %v3557_v58, %v2629_v59 }
  0x9c   : > { %2043 = vmatpush.bf16.msra.mxu3 %v2936_v31  ;;  %v2885_v0 = vld [vmem:[%s4193_s23 + $0x310] sm:$0xf0]  ;;  %v3681_v1 = vld [vmem:[%s4193_s23 + $0x4e4] sm:$0xf]  ;;  %v2760_v10 = vor.u32 %v3589_v60, %v2757_v62 }
  0x9d   : > { %2005 = vmatpush.bf16.msra.mxu0 %v2536_v37  ;;  %v3125_v2 = vld [vmem:[%s4193_s23 + $0x4f0] sm:$0xf0]  ;;  %v3713_v3 = vld [vmem:[%s4193_s23 + $0x5e4] sm:$0xf]  ;;  %v2888_v14 = vor.u32 %v3621_v63, %v2885_v0 }
  0x9e   : > { %v3253_v5 = vld [vmem:[%s4193_s23 + $0x5f0] sm:$0xf0]  ;;  %v3745_v6 = vld [vmem:[%s4193_s23 + $0x6e4] sm:$0xf]  ;;  %v3128_v15 = vor.u32 %v3681_v1, %v3125_v2 }
  0x9f   : > { %2018 = vmatpush.bf16.msra.mxu1 %v2664_v38  ;;  %2031 = vmatpush.bf16.msra.mxu2 %v2792_v39  ;;  %v3381_v7 = vld [vmem:[%s4193_s23 + $0x6f0] sm:$0xf0]  ;;  %v3777_v12 = vld [vmem:[%s4193_s23 + $0x7e4] sm:$0xf]  ;;  %v3256_v16 = vor.u32 %v3713_v3, %v3253_v5 }
  0xa0   : > { %2044 = vmatpush.bf16.msra.mxu3 %v2920_v44  ;;  %v3509_v13 = vld [vmem:[%s4193_s23 + $0x7f0] sm:$0xf0]  ;;  %v3384_v17 = vor.u32 %v3745_v6, %v3381_v7  ;;  %v3677_v18 = vld [vmem:[%s4193_s23 + $0x4c4] sm:$0xf] }
  0xa1   : > { %2006 = vmatpush.bf16.msra.mxu0 %v2520_v53  ;;  %v3109_v19 = vld [vmem:[%s4193_s23 + $0x4d0] sm:$0xf0]  ;;  %v3709_v20 = vld [vmem:[%s4193_s23 + $0x5c4] sm:$0xf]  ;;  %v3512_v21 = vor.u32 %v3777_v12, %v3509_v13 }
  0xa2   : > { %v3237_v22 = vld [vmem:[%s4193_s23 + $0x5d0] sm:$0xf0]  ;;  %v3741_v23 = vld [vmem:[%s4193_s23 + $0x6c4] sm:$0xf]  ;;  %v3112_v29 = vor.u32 %v3677_v18, %v3109_v19 }
  0xa3   : > { %2019 = vmatpush.bf16.msra.mxu1 %v2648_v56  ;;  %2032 = vmatpush.bf16.msra.mxu2 %v2776_v57  ;;  %v3365_v24 = vld [vmem:[%s4193_s23 + $0x6d0] sm:$0xf0]  ;;  %v3773_v27 = vld [vmem:[%s4193_s23 + $0x7c4] sm:$0xf]  ;;  %v3240_v30 = vor.u32 %v3709_v20, %v3237_v22 }
  0xa4   : > { %2045 = vmatpush.bf16.msra.mxu3 %v2904_v61  ;;  %v3493_v28 = vld [vmem:[%s4193_s23 + $0x7d0] sm:$0xf0]  ;;  %v3368_v31 = vor.u32 %v3741_v23, %v3365_v24  ;;  %v3673_v32 = vld [vmem:[%s4193_s23 + $0x4a4] sm:$0xf] }
  0xa5   : > { %2007 = vmatpush.bf16.msra.mxu0 %v2504_v4  ;;  %v3093_v33 = vld [vmem:[%s4193_s23 + $0x4b0] sm:$0xf0]  ;;  %v3705_v34 = vld [vmem:[%s4193_s23 + $0x5a4] sm:$0xf]  ;;  %v3496_v35 = vor.u32 %v3773_v27, %v3493_v28 }
  0xa6   : > { %v3221_v36 = vld [vmem:[%s4193_s23 + $0x5b0] sm:$0xf0]  ;;  %v3737_v37 = vld [vmem:[%s4193_s23 + $0x6a4] sm:$0xf]  ;;  %v3096_v41 = vor.u32 %v3673_v32, %v3093_v33 }
  0xa7   : > { %2020 = vmatpush.bf16.msra.mxu1 %v2632_v8  ;;  %2033 = vmatpush.bf16.msra.mxu2 %v2760_v10  ;;  %v3349_v38 = vld [vmem:[%s4193_s23 + $0x6b0] sm:$0xf0]  ;;  %v3769_v39 = vld [vmem:[%s4193_s23 + $0x7a4] sm:$0xf]  ;;  %v3224_v42 = vor.u32 %v3705_v34, %v3221_v36 }
  0xa8   : > { %2046 = vmatpush.bf16.msra.mxu3 %v2888_v14  ;;  %v3477_v40 = vld [vmem:[%s4193_s23 + $0x7b0] sm:$0xf0]  ;;  %2008 = vmatmul.bf16.vlgmr.msra.gmra.mxu0 %v4324_v25  ;;  %v3352_v44 = vor.u32 %v3737_v37, %v3349_v38  ;;  %v3669_v45 = vld [vmem:[%s4193_s23 + $0x484] sm:$0xf] }
  0xa9   : > { %2052 = vmatpush.bf16.msrb.mxu0 %v3128_v15  ;;  %v3077_v48 = vld [vmem:[%s4193_s23 + $0x490] sm:$0xf0]  ;;  %v3701_v50 = vld [vmem:[%s4193_s23 + $0x584] sm:$0xf]  ;;  %v3480_v51 = vor.u32 %v3769_v39, %v3477_v40 }
  0xaa   : > { %2034 = vmatmul.bf16.vlgmr.msra.gmra.mxu2 %v4310_v9  ;;  %2021 = vmatmul.bf16.vlgmr.msra.gmra.mxu1 %v4327_v26  ;;  %v3205_v52 = vld [vmem:[%s4193_s23 + $0x590] sm:$0xf0]  ;;  %v3733_v53 = vld [vmem:[%s4193_s23 + $0x684] sm:$0xf]  ;;  %v3080_v57 = vor.u32 %v3669_v45, %v3077_v48  ;;  %v2619_v48 = vld [vmem:[%s4193_s23 + $0xe8] sm:$0xf] }
  0xab   : > { %2065 = vmatpush.bf16.msrb.mxu1 %v3256_v16  ;;  %2078 = vmatpush.bf16.msrb.mxu2 %v3384_v17  ;;  %v3333_v54 = vld [vmem:[%s4193_s23 + $0x690] sm:$0xf0]  ;;  %v3765_v55 = vld [vmem:[%s4193_s23 + $0x784] sm:$0xf]  ;;  %v3208_v58 = vor.u32 %v3701_v50, %v3205_v52  ;;  %v3556_v50 = vld [vmem:[%s4193_s23 + $0xf4] sm:$0xf0] }
  0xac   : > { %2091 = vmatpush.bf16.msrb.mxu3 %v3512_v21  ;;  %v3461_v56 = vld [vmem:[%s4193_s23 + $0x790] sm:$0xf0]  ;;  %v3336_v59 = vor.u32 %v3733_v53, %v3333_v54  ;;  %v3665_v60 = vld [vmem:[%s4193_s23 + $0x464] sm:$0xf]  ;;  %v3588_v53 = vld [vmem:[%s4193_s23 + $0x1f4] sm:$0xf0] }
  0xad   : > { %2047 = vmatmul.bf16.vlgmr.msra.gmra.mxu3 %v4313_v11  ;;  %2053 = vmatpush.bf16.msrb.mxu0 %v3112_v29  ;;  %v3061_v61 = vld [vmem:[%s4193_s23 + $0x470] sm:$0xf0]  ;;  %v3697_v62 = vld [vmem:[%s4193_s23 + $0x564] sm:$0xf]  ;;  %v3464_v63 = vor.u32 %v3765_v55, %v3461_v56  ;;  %v2875_v54 = vld [vmem:[%s4193_s23 + $0x2e8] sm:$0xf] }
  0xae   : > { %v3189_v0 = vld [vmem:[%s4193_s23 + $0x570] sm:$0xf0]  ;;  %v3729_v1 = vld [vmem:[%s4193_s23 + $0x664] sm:$0xf]  ;;  %v3064_v5 = vor.u32 %v3665_v60, %v3061_v61  ;;  %v3620_v55 = vld [vmem:[%s4193_s23 + $0x2f4] sm:$0xf0]  ;;  %v2620_v61 = vor.u32 %v3556_v50, %v2619_v48 }
  0xaf   : > { %2066 = vmatpush.bf16.msrb.mxu1 %v3240_v30  ;;  %2079 = vmatpush.bf16.msrb.mxu2 %v3368_v31  ;;  %v3317_v2 = vld [vmem:[%s4193_s23 + $0x670] sm:$0xf0]  ;;  %v3761_v3 = vld [vmem:[%s4193_s23 + $0x764] sm:$0xf]  ;;  %v3192_v6 = vor.u32 %v3697_v62, %v3189_v0  ;;  %v2603_v0 = vld [vmem:[%s4193_s23 + $0xc8] sm:$0xf] }
  0xb0   : > { %2092 = vmatpush.bf16.msrb.mxu3 %v3496_v35  ;;  %v3445_v4 = vld [vmem:[%s4193_s23 + $0x770] sm:$0xf0]  ;;  %v3320_v7 = vor.u32 %v3729_v1, %v3317_v2  ;;  %v3661_v8 = vld [vmem:[%s4193_s23 + $0x444] sm:$0xf]  ;;  %v3552_v1 = vld [vmem:[%s4193_s23 + $0xd4] sm:$0xf0] }
  0xb1   : > { %2054 = vmatpush.bf16.msrb.mxu0 %v3096_v41  ;;  %v3045_v10 = vld [vmem:[%s4193_s23 + $0x450] sm:$0xf0]  ;;  %v3693_v12 = vld [vmem:[%s4193_s23 + $0x544] sm:$0xf]  ;;  %v3448_v13 = vor.u32 %v3761_v3, %v3445_v4  ;;  %v2731_v2 = vld [vmem:[%s4193_s23 + $0x1c8] sm:$0xf] }
  0xb2   : > { %v3173_v14 = vld [vmem:[%s4193_s23 + $0x550] sm:$0xf0]  ;;  %v3725_v15 = vld [vmem:[%s4193_s23 + $0x644] sm:$0xf]  ;;  %v3048_v19 = vor.u32 %v3661_v8, %v3045_v10  ;;  %v3584_v4 = vld [vmem:[%s4193_s23 + $0x1d4] sm:$0xf0]  ;;  %v2604_v10 = vor.u32 %v3552_v1, %v2603_v0 }
  0xb3   : > { %2067 = vmatpush.bf16.msrb.mxu1 %v3224_v42  ;;  %2080 = vmatpush.bf16.msrb.mxu2 %v3352_v44  ;;  %v3301_v16 = vld [vmem:[%s4193_s23 + $0x650] sm:$0xf0]  ;;  %v3757_v17 = vld [vmem:[%s4193_s23 + $0x744] sm:$0xf]  ;;  %v3176_v20 = vor.u32 %v3693_v12, %v3173_v14  ;;  %v3648_v8 = vld [vmem:[%s4193_s23 + $0x3d4] sm:$0xf0]  ;;  %v2732_v12 = vor.u32 %v3584_v4, %v2731_v2 }
  0xb4   : > { %2093 = vmatpush.bf16.msrb.mxu3 %v3480_v51  ;;  %v3429_v18 = vld [vmem:[%s4193_s23 + $0x750] sm:$0xf0]  ;;  %v3304_v21 = vor.u32 %v3725_v15, %v3301_v16  ;;  %v3657_v22 = vld [vmem:[%s4193_s23 + $0x424] sm:$0xf]  ;;  %v2747_v51 = vld [vmem:[%s4193_s23 + $0x1e8] sm:$0xf] }
  0xb5   : > { %2055 = vmatpush.bf16.msrb.mxu0 %v3080_v57  ;;  %v3029_v23 = vld [vmem:[%s4193_s23 + $0x430] sm:$0xf0]  ;;  %v3689_v24 = vld [vmem:[%s4193_s23 + $0x524] sm:$0xf]  ;;  %v3432_v27 = vor.u32 %v3757_v17, %v3429_v18  ;;  %v2748_v62 = vor.u32 %v3588_v53, %v2747_v51  ;;  %v2587_v14 = vld [vmem:[%s4193_s23 + $0xa8] sm:$0xf] }
  0xb6   : > { %v3157_v28 = vld [vmem:[%s4193_s23 + $0x530] sm:$0xf0]  ;;  %v3721_v29 = vld [vmem:[%s4193_s23 + $0x624] sm:$0xf]  ;;  %v3032_v33 = vor.u32 %v3657_v22, %v3029_v23  ;;  %v3548_v15 = vld [vmem:[%s4193_s23 + $0xb4] sm:$0xf0] }
  0xb7   : > { %2068 = vmatpush.bf16.msrb.mxu1 %v3208_v58  ;;  %2081 = vmatpush.bf16.msrb.mxu2 %v3336_v59  ;;  %v3285_v30 = vld [vmem:[%s4193_s23 + $0x630] sm:$0xf0]  ;;  %v3753_v31 = vld [vmem:[%s4193_s23 + $0x724] sm:$0xf]  ;;  %v3160_v36 = vor.u32 %v3689_v24, %v3157_v28  ;;  %v3003_v58 = vld [vmem:[%s4193_s23 + $0x3e8] sm:$0xf]  ;;  %v2588_v23 = vor.u32 %v3548_v15, %v2587_v14 }
  0xb8   : > { %2094 = vmatpush.bf16.msrb.mxu3 %v3464_v63  ;;  %v3413_v32 = vld [vmem:[%s4193_s23 + $0x730] sm:$0xf0]  ;;  %v3653_v34 = vld [vmem:[%s4193_s23 + $0x404] sm:$0xf]  ;;  %v3288_v37 = vor.u32 %v3721_v29, %v3285_v30  ;;  %v3652_v59 = vld [vmem:[%s4193_s23 + $0x3f4] sm:$0xf0]  ;;  %v2876_v63 = vor.u32 %v3620_v55, %v2875_v54 }
  0xb9   : > { %2056 = vmatpush.bf16.msrb.mxu0 %v3064_v5  ;;  %v3013_v35 = vld [vmem:[%s4193_s23 + $0x410] sm:$0xf0]  ;;  %v3685_v38 = vld [vmem:[%s4193_s23 + $0x504] sm:$0xf]  ;;  %v3416_v41 = vor.u32 %v3753_v31, %v3413_v32  ;;  %v3004_v3 = vor.u32 %v3652_v59, %v3003_v58  ;;  %v2859_v5 = vld [vmem:[%s4193_s23 + $0x2c8] sm:$0xf] }
  0xba   : > { %v3141_v39 = vld [vmem:[%s4193_s23 + $0x510] sm:$0xf0]  ;;  %v3717_v40 = vld [vmem:[%s4193_s23 + $0x604] sm:$0xf]  ;;  %v3016_v52 = vor.u32 %v3653_v34, %v3013_v35  ;;  %v2715_v16 = vld [vmem:[%s4193_s23 + $0x1a8] sm:$0xf] }
  0xbb   : > { %2069 = vmatpush.bf16.msrb.mxu1 %v3192_v6  ;;  %2082 = vmatpush.bf16.msrb.mxu2 %v3320_v7  ;;  %v3269_v42 = vld [vmem:[%s4193_s23 + $0x610] sm:$0xf0]  ;;  %v3749_v44 = vld [vmem:[%s4193_s23 + $0x704] sm:$0xf]  ;;  %v3144_v56 = vor.u32 %v3685_v38, %v3141_v39  ;;  %v3616_v6 = vld [vmem:[%s4193_s23 + $0x2d4] sm:$0xf0] }
  0xbc   : > { %2095 = vmatpush.bf16.msrb.mxu3 %v3448_v13  ;;  %v3397_v45 = vld [vmem:[%s4193_s23 + $0x710] sm:$0xf0]  ;;  %v3272_v57 = vor.u32 %v3717_v40, %v3269_v42  ;;  %v2987_v7 = vld [vmem:[%s4193_s23 + $0x3c8] sm:$0xf]  ;;  %v2860_v13 = vor.u32 %v3616_v6, %v2859_v5  ;;  %v3580_v18 = vld [vmem:[%s4193_s23 + $0x1b4] sm:$0xf0] }
  0xbd   : > { %2057 = vmatpush.bf16.msrb.mxu0 %v3048_v19  ;;  %v3400_v60 = vor.u32 %v3749_v44, %v3397_v45  ;;  %v2988_v17 = vor.u32 %v3648_v8, %v2987_v7  ;;  %v2843_v19 = vld [vmem:[%s4193_s23 + $0x2a8] sm:$0xf]  ;;  %v3644_v22 = vld [vmem:[%s4193_s23 + $0x3b4] sm:$0xf0]  ;;  %v2716_v24 = vor.u32 %v3580_v18, %v2715_v16 }
  0xbe   : > { %v2571_v28 = vld [vmem:[%s4193_s23 + $0x88] sm:$0xf]  ;;  %v3544_v29 = vld [vmem:[%s4193_s23 + $0x94] sm:$0xf0] }
  0xbf   : > { %2070 = vmatpush.bf16.msrb.mxu1 %v3176_v20  ;;  %2083 = vmatpush.bf16.msrb.mxu2 %v3304_v21  ;;  %v3612_v20 = vld [vmem:[%s4193_s23 + $0x2b4] sm:$0xf0]  ;;  %v2971_v21 = vld [vmem:[%s4193_s23 + $0x3a8] sm:$0xf] }
  0xc0   : > { %2096 = vmatpush.bf16.msrb.mxu3 %v3432_v27  ;;  %v2844_v27 = vor.u32 %v3612_v20, %v2843_v19  ;;  %v2699_v30 = vld [vmem:[%s4193_s23 + $0x188] sm:$0xf]  ;;  %v2972_v31 = vor.u32 %v3644_v22, %v2971_v21  ;;  %v3576_v32 = vld [vmem:[%s4193_s23 + $0x194] sm:$0xf0] }
  0xc1   : > { %2058 = vmatpush.bf16.msrb.mxu0 %v3032_v33  ;;  %v2827_v33 = vld [vmem:[%s4193_s23 + $0x288] sm:$0xf]  ;;  %v3608_v34 = vld [vmem:[%s4193_s23 + $0x294] sm:$0xf0]  ;;  %v2700_v38 = vor.u32 %v3576_v32, %v2699_v30 }
  0xc2   : > { %v2955_v35 = vld [vmem:[%s4193_s23 + $0x388] sm:$0xf]  ;;  %v2828_v39 = vor.u32 %v3608_v34, %v2827_v33  ;;  %v3572_v45 = vld [vmem:[%s4193_s23 + $0x174] sm:$0xf0] }
  0xc3   : > { %2071 = vmatpush.bf16.msrb.mxu1 %v3160_v36  ;;  %2084 = vmatpush.bf16.msrb.mxu2 %v3288_v37  ;;  %v3640_v36 = vld [vmem:[%s4193_s23 + $0x394] sm:$0xf0]  ;;  %v2572_v37 = vor.u32 %v3544_v29, %v2571_v28  ;;  %v2555_v40 = vld [vmem:[%s4193_s23 + $0x68] sm:$0xf] }
  0xc4   : > { %2097 = vmatpush.bf16.msrb.mxu3 %v3416_v41  ;;  %v3540_v41 = vld [vmem:[%s4193_s23 + $0x74] sm:$0xf0]  ;;  %v2683_v42 = vld [vmem:[%s4193_s23 + $0x168] sm:$0xf]  ;;  %v2956_v44 = vor.u32 %v3640_v36, %v2955_v35 }
  0xc5   : > { %2059 = vmatpush.bf16.msrb.mxu0 %v3016_v52  ;;  %v2811_v48 = vld [vmem:[%s4193_s23 + $0x268] sm:$0xf]  ;;  %v3604_v50 = vld [vmem:[%s4193_s23 + $0x274] sm:$0xf0]  ;;  %v2556_v53 = vor.u32 %v3540_v41, %v2555_v40  ;;  %v2684_v54 = vor.u32 %v3572_v45, %v2683_v42 }
  0xc6   : > { %v2939_v51 = vld [vmem:[%s4193_s23 + $0x368] sm:$0xf]  ;;  %v3636_v52 = vld [vmem:[%s4193_s23 + $0x374] sm:$0xf0]  ;;  %v2812_v55 = vor.u32 %v3604_v50, %v2811_v48 }
  0xc7   : > { %2072 = vmatpush.bf16.msrb.mxu1 %v3144_v56  ;;  %2085 = vmatpush.bf16.msrb.mxu2 %v3272_v57  ;;  %v2539_v56 = vld [vmem:[%s4193_s23 + $0x48] sm:$0xf]  ;;  %v3536_v57 = vld [vmem:[%s4193_s23 + $0x54] sm:$0xf0]  ;;  %v2940_v59 = vor.u32 %v3636_v52, %v2939_v51 }
  0xc8   : > { %2098 = vmatpush.bf16.msrb.mxu3 %v3400_v60  ;;  %2060 = vmatmul.bf16.vlgmr.msrb.gmra.mxu0 %v4383_v46  ;;  %v2667_v58 = vld [vmem:[%s4193_s23 + $0x148] sm:$0xf]  ;;  %v3568_v60 = vld [vmem:[%s4193_s23 + $0x154] sm:$0xf0]  ;;  %v2540_v1 = vor.u32 %v3536_v57, %v2539_v56 }
  0xc9   : > { %2104 = vmatpush.bf16.msra.mxu0 %v2620_v61  ;;  %v2795_v61 = vld [vmem:[%s4193_s23 + $0x248] sm:$0xf]  ;;  %v3632_v0 = vld [vmem:[%s4193_s23 + $0x354] sm:$0xf0]  ;;  %v2668_v2 = vor.u32 %v3568_v60, %v2667_v58 }
  0xca   : > { %2086 = vmatmul.bf16.vlgmr.msrb.gmra.mxu2 %v4379_v43  ;;  %2073 = vmatmul.bf16.vlgmr.msrb.gmra.mxu1 %v4387_v49  ;;  %v2523_v4 = vld [vmem:[%s4193_s23 + $0x28] sm:$0xf]  ;;  %v3532_v5 = vld [vmem:[%s4193_s23 + $0x34] sm:$0xf0] }
  0xcb   : > { %2117 = vmatpush.bf16.msra.mxu1 %v2748_v62  ;;  %2130 = vmatpush.bf16.msra.mxu2 %v2876_v63  ;;  %v3600_v62 = vld [vmem:[%s4193_s23 + $0x254] sm:$0xf0]  ;;  %v2923_v63 = vld [vmem:[%s4193_s23 + $0x348] sm:$0xf]  ;;  %v2524_v15 = vor.u32 %v3532_v5, %v2523_v4 }
  0xcc   : > { %2143 = vmatpush.bf16.msra.mxu3 %v3004_v3  ;;  %v2796_v3 = vor.u32 %v3600_v62, %v2795_v61  ;;  %v2651_v6 = vld [vmem:[%s4193_s23 + $0x128] sm:$0xf]  ;;  %v2924_v7 = vor.u32 %v3632_v0, %v2923_v63  ;;  %v3564_v8 = vld [vmem:[%s4193_s23 + $0x134] sm:$0xf0] }
  0xcd   : > { %2099 = vmatmul.bf16.vlgmr.msrb.gmra.mxu3 %v4385_v47  ;;  %2105 = vmatpush.bf16.msra.mxu0 %v2604_v10  ;;  %v2779_v10 = vld [vmem:[%s4193_s23 + $0x228] sm:$0xf]  ;;  %v3628_v14 = vld [vmem:[%s4193_s23 + $0x334] sm:$0xf0]  ;;  %v2652_v18 = vor.u32 %v3564_v8, %v2651_v6 }
  0xce   : > { %v2507_v16 = vld [vmem:[%s4193_s23 + $0x8] sm:$0xf]  ;;  %v3560_v21 = vld [vmem:[%s4193_s23 + $0x114] sm:$0xf0] }
  0xcf   : > { %2118 = vmatpush.bf16.msra.mxu1 %v2732_v12  ;;  %2131 = vmatpush.bf16.msra.mxu2 %v2860_v13  ;;  %v3596_v12 = vld [vmem:[%s4193_s23 + $0x234] sm:$0xf0]  ;;  %v2907_v13 = vld [vmem:[%s4193_s23 + $0x328] sm:$0xf] }
  0xd0   : > { %2144 = vmatpush.bf16.msra.mxu3 %v2988_v17  ;;  %v3528_v17 = vld [vmem:[%s4193_s23 + $0x14] sm:$0xf0]  ;;  %v2780_v19 = vor.u32 %v3596_v12, %v2779_v10  ;;  %v2635_v20 = vld [vmem:[%s4193_s23 + $0x108] sm:$0xf] }
  0xd1   : > { %2106 = vmatpush.bf16.msra.mxu0 %v2588_v23  ;;  %v2763_v22 = vld [vmem:[%s4193_s23 + $0x208] sm:$0xf]  ;;  %v2908_v23 = vor.u32 %v3628_v14, %v2907_v13  ;;  %v3624_v28 = vld [vmem:[%s4193_s23 + $0x314] sm:$0xf0]  ;;  %v2508_v32 = vor.u32 %v3528_v17, %v2507_v16  ;;  %v2636_v36 = vor.u32 %v3560_v21, %v2635_v20 }
  0xd2   : > { %v3131_v29 = vld [vmem:[%s4193_s23 + $0x4e8] sm:$0xf]  ;;  %v3684_v30 = vld [vmem:[%s4193_s23 + $0x4f4] sm:$0xf0] }
  0xd3   : > { %2119 = vmatpush.bf16.msra.mxu1 %v2716_v24  ;;  %2132 = vmatpush.bf16.msra.mxu2 %v2844_v27  ;;  %v3592_v24 = vld [vmem:[%s4193_s23 + $0x214] sm:$0xf0]  ;;  %v2891_v27 = vld [vmem:[%s4193_s23 + $0x308] sm:$0xf]  ;;  %v3132_v41 = vor.u32 %v3684_v30, %v3131_v29 }
  0xd4   : > { %2145 = vmatpush.bf16.msra.mxu3 %v2972_v31  ;;  %v3259_v31 = vld [vmem:[%s4193_s23 + $0x5e8] sm:$0xf]  ;;  %v3716_v33 = vld [vmem:[%s4193_s23 + $0x5f4] sm:$0xf0]  ;;  %v2892_v40 = vor.u32 %v3624_v28, %v2891_v27 }
  0xd5   : > { %2107 = vmatpush.bf16.msra.mxu0 %v2572_v37  ;;  %v3387_v34 = vld [vmem:[%s4193_s23 + $0x6e8] sm:$0xf]  ;;  %v3748_v35 = vld [vmem:[%s4193_s23 + $0x6f4] sm:$0xf0]  ;;  %v2764_v37 = vor.u32 %v3592_v24, %v2763_v22  ;;  %v3260_v42 = vor.u32 %v3716_v33, %v3259_v31 }
  0xd6   : > { %v3115_v45 = vld [vmem:[%s4193_s23 + $0x4c8] sm:$0xf]  ;;  %v3680_v48 = vld [vmem:[%s4193_s23 + $0x4d4] sm:$0xf0] }
  0xd7   : > { %2120 = vmatpush.bf16.msra.mxu1 %v2700_v38  ;;  %2133 = vmatpush.bf16.msra.mxu2 %v2828_v39  ;;  %v3515_v38 = vld [vmem:[%s4193_s23 + $0x7e8] sm:$0xf]  ;;  %v3780_v39 = vld [vmem:[%s4193_s23 + $0x7f4] sm:$0xf0]  ;;  %v3116_v57 = vor.u32 %v3680_v48, %v3115_v45 }
  0xd8   : > { %2146 = vmatpush.bf16.msra.mxu3 %v2956_v44  ;;  %v3388_v44 = vor.u32 %v3748_v35, %v3387_v34  ;;  %v3243_v50 = vld [vmem:[%s4193_s23 + $0x5c8] sm:$0xf]  ;;  %v3516_v51 = vor.u32 %v3780_v39, %v3515_v38  ;;  %v3712_v52 = vld [vmem:[%s4193_s23 + $0x5d4] sm:$0xf0] }
  0xd9   : > { %2108 = vmatpush.bf16.msra.mxu0 %v2556_v53  ;;  %v3371_v53 = vld [vmem:[%s4193_s23 + $0x6c8] sm:$0xf]  ;;  %v3776_v56 = vld [vmem:[%s4193_s23 + $0x7d4] sm:$0xf0]  ;;  %v3244_v58 = vor.u32 %v3712_v52, %v3243_v50 }
  0xda   : > { %v3099_v60 = vld [vmem:[%s4193_s23 + $0x4a8] sm:$0xf]  ;;  %v3676_v61 = vld [vmem:[%s4193_s23 + $0x4b4] sm:$0xf0] }
  0xdb   : > { %2121 = vmatpush.bf16.msra.mxu1 %v2684_v54  ;;  %2134 = vmatpush.bf16.msra.mxu2 %v2812_v55  ;;  %v3744_v54 = vld [vmem:[%s4193_s23 + $0x6d4] sm:$0xf0]  ;;  %v3499_v55 = vld [vmem:[%s4193_s23 + $0x7c8] sm:$0xf]  ;;  %v3100_v5 = vor.u32 %v3676_v61, %v3099_v60 }
  0xdc   : > { %2147 = vmatpush.bf16.msra.mxu3 %v2940_v59  ;;  %v3372_v59 = vor.u32 %v3744_v54, %v3371_v53  ;;  %v3227_v62 = vld [vmem:[%s4193_s23 + $0x5a8] sm:$0xf]  ;;  %v3500_v63 = vor.u32 %v3776_v56, %v3499_v55  ;;  %v3708_v0 = vld [vmem:[%s4193_s23 + $0x5b4] sm:$0xf0] }
  0xdd   : > { %2109 = vmatpush.bf16.msra.mxu0 %v2540_v1  ;;  %v3355_v1 = vld [vmem:[%s4193_s23 + $0x6a8] sm:$0xf]  ;;  %v3772_v4 = vld [vmem:[%s4193_s23 + $0x7b4] sm:$0xf0]  ;;  %v3228_v6 = vor.u32 %v3708_v0, %v3227_v62 }
  0xde   : > { %v3083_v8 = vld [vmem:[%s4193_s23 + $0x488] sm:$0xf]  ;;  %v3672_v10 = vld [vmem:[%s4193_s23 + $0x494] sm:$0xf0] }
  0xdf   : > { %2122 = vmatpush.bf16.msra.mxu1 %v2668_v2  ;;  %2135 = vmatpush.bf16.msra.mxu2 %v2796_v3  ;;  %v3740_v2 = vld [vmem:[%s4193_s23 + $0x6b4] sm:$0xf0]  ;;  %v3483_v3 = vld [vmem:[%s4193_s23 + $0x7a8] sm:$0xf] }
  0xe0   : > { %2148 = vmatpush.bf16.msra.mxu3 %v2924_v7  ;;  %v3356_v7 = vor.u32 %v3740_v2, %v3355_v1  ;;  %v3211_v12 = vld [vmem:[%s4193_s23 + $0x588] sm:$0xf]  ;;  %v3484_v13 = vor.u32 %v3772_v4, %v3483_v3  ;;  %v3704_v14 = vld [vmem:[%s4193_s23 + $0x594] sm:$0xf0] }
  0xe1   : > { %2110 = vmatpush.bf16.msra.mxu0 %v2524_v15  ;;  %v3339_v15 = vld [vmem:[%s4193_s23 + $0x688] sm:$0xf]  ;;  %v3736_v16 = vld [vmem:[%s4193_s23 + $0x694] sm:$0xf0]  ;;  %v3212_v20 = vor.u32 %v3704_v14, %v3211_v12 }
  0xe2   : > { %v3467_v17 = vld [vmem:[%s4193_s23 + $0x788] sm:$0xf]  ;;  %v3340_v21 = vor.u32 %v3736_v16, %v3339_v15  ;;  %v3700_v28 = vld [vmem:[%s4193_s23 + $0x574] sm:$0xf0]  ;;  %v3554_v15 = vld [vmem:[%s4193_s23 + $0xec] sm:$0xf] }
  0xe3   : > { %2123 = vmatpush.bf16.msra.mxu1 %v2652_v18  ;;  %2136 = vmatpush.bf16.msra.mxu2 %v2780_v19  ;;  %v3768_v18 = vld [vmem:[%s4193_s23 + $0x794] sm:$0xf0]  ;;  %v3084_v19 = vor.u32 %v3672_v10, %v3083_v8  ;;  %v3067_v22 = vld [vmem:[%s4193_s23 + $0x468] sm:$0xf]  ;;  %v2621_v16 = vld [vmem:[%s4193_s23 + $0xf8] sm:$0xf0] }
  0xe4   : > { %2149 = vmatpush.bf16.msra.mxu3 %v2908_v23  ;;  %v3668_v23 = vld [vmem:[%s4193_s23 + $0x474] sm:$0xf0]  ;;  %v3195_v24 = vld [vmem:[%s4193_s23 + $0x568] sm:$0xf]  ;;  %v3468_v27 = vor.u32 %v3768_v18, %v3467_v17  ;;  %v3586_v17 = vld [vmem:[%s4193_s23 + $0x1ec] sm:$0xf] }
  0xe5   : > { %2111 = vmatpush.bf16.msra.mxu0 %v2508_v32  ;;  %v3323_v29 = vld [vmem:[%s4193_s23 + $0x668] sm:$0xf]  ;;  %v3732_v30 = vld [vmem:[%s4193_s23 + $0x674] sm:$0xf0]  ;;  %v3068_v33 = vor.u32 %v3668_v23, %v3067_v22  ;;  %v3196_v34 = vor.u32 %v3700_v28, %v3195_v24  ;;  %v2877_v22 = vld [vmem:[%s4193_s23 + $0x2f8] sm:$0xf0] }
  0xe6   : > { %v3451_v31 = vld [vmem:[%s4193_s23 + $0x768] sm:$0xf]  ;;  %v3764_v32 = vld [vmem:[%s4193_s23 + $0x774] sm:$0xf0]  ;;  %v3324_v35 = vor.u32 %v3732_v30, %v3323_v29  ;;  %v3650_v28 = vld [vmem:[%s4193_s23 + $0x3ec] sm:$0xf] }
  0xe7   : > { %2124 = vmatpush.bf16.msra.mxu1 %v2636_v36  ;;  %2137 = vmatpush.bf16.msra.mxu2 %v2764_v37  ;;  %v3051_v36 = vld [vmem:[%s4193_s23 + $0x448] sm:$0xf]  ;;  %v3664_v37 = vld [vmem:[%s4193_s23 + $0x454] sm:$0xf0]  ;;  %v3452_v39 = vor.u32 %v3764_v32, %v3451_v31  ;;  %v3005_v29 = vld [vmem:[%s4193_s23 + $0x3f8] sm:$0xf0]  ;;  %v2624_v32 = vor.u32 %v3554_v15, %v2621_v16 }
  0xe8   : > { %2150 = vmatpush.bf16.msra.mxu3 %v2892_v40  ;;  %2112 = vmatmul.bf16.vlgmr.msra.gmra.mxu0 %v4324_v25  ;;  %v3179_v38 = vld [vmem:[%s4193_s23 + $0x548] sm:$0xf]  ;;  %v3696_v40 = vld [vmem:[%s4193_s23 + $0x554] sm:$0xf0]  ;;  %v3052_v50 = vor.u32 %v3664_v37, %v3051_v36  ;;  %v3550_v37 = vld [vmem:[%s4193_s23 + $0xcc] sm:$0xf] }
  0xe9   : > { %2156 = vmatpush.bf16.msrb.mxu0 %v3132_v41  ;;  %v3307_v41 = vld [vmem:[%s4193_s23 + $0x648] sm:$0xf]  ;;  %v3760_v45 = vld [vmem:[%s4193_s23 + $0x754] sm:$0xf0]  ;;  %v3180_v52 = vor.u32 %v3696_v40, %v3179_v38  ;;  %v2605_v38 = vld [vmem:[%s4193_s23 + $0xd8] sm:$0xf0]  ;;  %v3008_v40 = vor.u32 %v3650_v28, %v3005_v29 }
  0xea   : > { %2138 = vmatmul.bf16.vlgmr.msra.gmra.mxu2 %v4310_v9  ;;  %2125 = vmatmul.bf16.vlgmr.msra.gmra.mxu1 %v4327_v26  ;;  %v3035_v54 = vld [vmem:[%s4193_s23 + $0x428] sm:$0xf]  ;;  %v3660_v55 = vld [vmem:[%s4193_s23 + $0x434] sm:$0xf0]  ;;  %v2813_v28 = vld [vmem:[%s4193_s23 + $0x278] sm:$0xf0] }
  0xeb   : > { %2169 = vmatpush.bf16.msrb.mxu1 %v3260_v42  ;;  %2182 = vmatpush.bf16.msrb.mxu2 %v3388_v44  ;;  %v3728_v42 = vld [vmem:[%s4193_s23 + $0x654] sm:$0xf0]  ;;  %v3435_v44 = vld [vmem:[%s4193_s23 + $0x748] sm:$0xf]  ;;  %v3036_v1 = vor.u32 %v3660_v55, %v3035_v54  ;;  %v3546_v54 = vld [vmem:[%s4193_s23 + $0xac] sm:$0xf] }
  0xec   : > { %2195 = vmatpush.bf16.msrb.mxu3 %v3516_v51  ;;  %v3308_v53 = vor.u32 %v3728_v42, %v3307_v41  ;;  %v3163_v56 = vld [vmem:[%s4193_s23 + $0x528] sm:$0xf]  ;;  %v3724_v61 = vld [vmem:[%s4193_s23 + $0x634] sm:$0xf0]  ;;  %v2733_v41 = vld [vmem:[%s4193_s23 + $0x1d8] sm:$0xf0] }
  0xed   : > { %2151 = vmatmul.bf16.vlgmr.msra.gmra.mxu3 %v4313_v11  ;;  %2157 = vmatpush.bf16.msrb.mxu0 %v3116_v57  ;;  %v4632_v57 = vpop.f32.mrf.mxu2  ;;  %v3291_v60 = vld [vmem:[%s4193_s23 + $0x628] sm:$0xf]  ;;  %v4637_v62 = vpop.f32.mrf.mxu3  ;;  %v3756_v0 = vld [vmem:[%s4193_s23 + $0x734] sm:$0xf0]  ;;  %v3614_v42 = vld [vmem:[%s4193_s23 + $0x2cc] sm:$0xf] }
  0xee   : > { %v3019_v2 = vld [vmem:[%s4193_s23 + $0x408] sm:$0xf]  ;;  %v3656_v3 = vld [vmem:[%s4193_s23 + $0x414] sm:$0xf0]  ;;  %v2589_v55 = vld [vmem:[%s4193_s23 + $0xb8] sm:$0xf0] }
  0xef   : > { %2170 = vmatpush.bf16.msrb.mxu1 %v3244_v58  ;;  %2183 = vmatpush.bf16.msrb.mxu2 %v3372_v59  ;;  %v3436_v58 = vor.u32 %v3760_v45, %v3435_v44  ;;  %v3692_v59 = vld [vmem:[%s4193_s23 + $0x534] sm:$0xf0]  ;;  %v3275_v8 = vld [vmem:[%s4193_s23 + $0x608] sm:$0xf]  ;;  %v2861_v44 = vld [vmem:[%s4193_s23 + $0x2d8] sm:$0xf0] }
  0xf0   : > { %2196 = vmatpush.bf16.msrb.mxu3 %v3500_v63  ;;  %v3419_v63 = vld [vmem:[%s4193_s23 + $0x728] sm:$0xf]  ;;  %v3164_v4 = vor.u32 %v3692_v59, %v3163_v56  ;;  %v3720_v12 = vld [vmem:[%s4193_s23 + $0x614] sm:$0xf0]  ;;  %v3646_v45 = vld [vmem:[%s4193_s23 + $0x3cc] sm:$0xf] }
  0xf1   : > { %2158 = vmatpush.bf16.msrb.mxu0 %v3100_v5  ;;  %v3292_v5 = vor.u32 %v3724_v61, %v3291_v60  ;;  %v3420_v10 = vor.u32 %v3756_v0, %v3419_v63  ;;  %v3752_v14 = vld [vmem:[%s4193_s23 + $0x714] sm:$0xf0]  ;;  %v3578_v56 = vld [vmem:[%s4193_s23 + $0x1ac] sm:$0xf]  ;;  %v2717_v59 = vld [vmem:[%s4193_s23 + $0x1b8] sm:$0xf0]  ;;  %v2592_v0 = vor.u32 %v3546_v54, %v2589_v55 }
  0xf2   : > { %v3610_v60 = vld [vmem:[%s4193_s23 + $0x2ac] sm:$0xf]  ;;  %v2845_v61 = vld [vmem:[%s4193_s23 + $0x2b8] sm:$0xf0] }
  0xf3   : > { %2171 = vmatpush.bf16.msrb.mxu1 %v3228_v6  ;;  %2184 = vmatpush.bf16.msrb.mxu2 %v3356_v7  ;;  %v1905_v48 = vpop.f32.mrf.mxu0  ;;  %v1918_v51 = vpop.f32.mrf.mxu1  ;;  %v3147_v6 = vld [vmem:[%s4193_s23 + $0x508] sm:$0xf]  ;;  %v3688_v7 = vld [vmem:[%s4193_s23 + $0x514] sm:$0xf0]  ;;  %v3642_v63 = vld [vmem:[%s4193_s23 + $0x3ac] sm:$0xf] }
  0xf4   : > { %2197 = vmatpush.bf16.msrb.mxu3 %v3484_v13  ;;  %v3403_v13 = vld [vmem:[%s4193_s23 + $0x708] sm:$0xf]  ;;  %v3148_v24 = vor.u32 %v3688_v7, %v3147_v6  ;;  %v1919_v36 = vadd.f32 %v1918_v51, %v1905_v48  ;;  %v2608_v48 = vor.u32 %v3550_v37, %v2605_v38  ;;  %v3574_v6 = vld [vmem:[%s4193_s23 + $0x18c] sm:$0xf] }
  0xf5   : > { %2159 = vmatpush.bf16.msrb.mxu0 %v3084_v19  ;;  %v3020_v19 = vor.u32 %v3656_v3, %v3019_v2  ;;  %v1933_v30 = vpop.f32.mrf.mxu2  ;;  %v3404_v31 = vor.u32 %v3752_v14, %v3403_v13  ;;  %v2720_v2 = vor.u32 %v3578_v56, %v2717_v59  ;;  %v2848_v3 = vor.u32 %v3610_v60, %v2845_v61  ;;  %v3638_v13 = vld [vmem:[%s4193_s23 + $0x38c] sm:$0xf]  ;;  %v2957_v14 = vld [vmem:[%s4193_s23 + $0x398] sm:$0xf0] }
  0xf6   : > { %v3634_v29 = vld [vmem:[%s4193_s23 + $0x36c] sm:$0xf]  ;;  %v2941_v30 = vld [vmem:[%s4193_s23 + $0x378] sm:$0xf0] }
  0xf7   : > { %2172 = vmatpush.bf16.msrb.mxu1 %v3212_v20  ;;  %2185 = vmatpush.bf16.msrb.mxu2 %v3340_v21  ;;  %v2749_v20 = vld [vmem:[%s4193_s23 + $0x1f8] sm:$0xf0]  ;;  %v3618_v21 = vld [vmem:[%s4193_s23 + $0x2ec] sm:$0xf] }
  0xf8   : > { %2198 = vmatpush.bf16.msrb.mxu3 %v3468_v27  ;;  %v3276_v27 = vor.u32 %v3720_v12, %v3275_v8  ;;  %v2701_v8 = vld [vmem:[%s4193_s23 + $0x198] sm:$0xf0]  ;;  %v3566_v37 = vld [vmem:[%s4193_s23 + $0x14c] sm:$0xf] }
  0xf9   : > { %2160 = vmatpush.bf16.msrb.mxu0 %v3068_v33  ;;  %v1946_v33 = vpop.f32.mrf.mxu3  ;;  %v2829_v12 = vld [vmem:[%s4193_s23 + $0x298] sm:$0xf0]  ;;  %v2704_v16 = vor.u32 %v3574_v6, %v2701_v8  ;;  %v3562_v60 = vld [vmem:[%s4193_s23 + $0x12c] sm:$0xf] }
  0xfa   : > { %v2525_v59 = vld [vmem:[%s4193_s23 + $0x38] sm:$0xf0]  ;;  %v3526_v6 = vld [vmem:[%s4193_s23 + $0xc] sm:$0xf] }
  0xfb   : > { %2173 = vmatpush.bf16.msrb.mxu1 %v3196_v34  ;;  %2186 = vmatpush.bf16.msrb.mxu2 %v3324_v35  ;;  %v1907_v18 = vpop.f32.mrf.mxu0  ;;  %v1920_v23 = vpop.f32.mrf.mxu1  ;;  %v2752_v34 = vor.u32 %v3586_v17, %v2749_v20  ;;  %v2880_v35 = vor.u32 %v3618_v21, %v2877_v22  ;;  %v3570_v20 = vld [vmem:[%s4193_s23 + $0x16c] sm:$0xf] }
  0xfc   : > { %2199 = vmatpush.bf16.msrb.mxu3 %v3452_v39  ;;  %v3582_v39 = vld [vmem:[%s4193_s23 + $0x1cc] sm:$0xf]  ;;  %v2960_v23 = vor.u32 %v3638_v13, %v2957_v14  ;;  %v2637_v13 = vld [vmem:[%s4193_s23 + $0x118] sm:$0xf0] }
  0xfd   : > { %2161 = vmatpush.bf16.msrb.mxu0 %v3052_v50  ;;  %v2989_v50 = vld [vmem:[%s4193_s23 + $0x3d8] sm:$0xf0]  ;;  %v2736_v51 = vor.u32 %v3582_v39, %v2733_v41  ;;  %v3538_v18 = vld [vmem:[%s4193_s23 + $0x6c] sm:$0xf]  ;;  %v2944_v39 = vor.u32 %v3634_v29, %v2941_v30 }
  0xfe   : > { %v3598_v41 = vld [vmem:[%s4193_s23 + $0x24c] sm:$0xf] }
  0xff   : > { %2174 = vmatpush.bf16.msrb.mxu1 %v3180_v52  ;;  %2187 = vmatpush.bf16.msrb.mxu2 %v3308_v53  ;;  %v2864_v52 = vor.u32 %v3614_v42, %v2861_v44  ;;  %v1932_v53 = vadd.f32 %v4632_v57, %v1919_v36  ;;  %v2973_v57 = vld [vmem:[%s4193_s23 + $0x3b8] sm:$0xf0]  ;;  %v3590_v14 = vld [vmem:[%s4193_s23 + $0x20c] sm:$0xf] }
 0x100   : > { %2200 = vmatpush.bf16.msrb.mxu3 %v3436_v58  ;;  %v2992_v58 = vor.u32 %v3646_v45, %v2989_v50  ;;  %v2976_v7 = vor.u32 %v3642_v63, %v2973_v57  ;;  %v2541_v36 = vld [vmem:[%s4193_s23 + $0x58] sm:$0xf0]  ;;  %v3630_v50 = vld [vmem:[%s4193_s23 + $0x34c] sm:$0xf] }
 0x101   : > { %2162 = vmatpush.bf16.msrb.mxu0 %v3036_v1  ;;  %v1945_v1 = vadd.f32 %v4637_v62, %v1932_v53  ;;  %v2797_v42 = vld [vmem:[%s4193_s23 + $0x258] sm:$0xf0] }
 0x102   : > { %v2800_v56 = vor.u32 %v3598_v41, %v2797_v42  ;;  %v3245_v41 = vld [vmem:[%s4193_s23 + $0x5d8] sm:$0xf0]  ;;  %v3742_v42 = vld [vmem:[%s4193_s23 + $0x6cc] sm:$0xf] }
 0x103   : > { %2175 = vmatpush.bf16.msrb.mxu1 %v3164_v4  ;;  %2188 = vmatpush.bf16.msrb.mxu2 %v3292_v5  ;;  %v3542_v4 = vld [vmem:[%s4193_s23 + $0x8c] sm:$0xf]  ;;  %v2573_v5 = vld [vmem:[%s4193_s23 + $0x98] sm:$0xf0] }
 0x104   : > { %2201 = vmatpush.bf16.msrb.mxu3 %v3420_v10  ;;  %v3606_v10 = vld [vmem:[%s4193_s23 + $0x28c] sm:$0xf]  ;;  %v2576_v62 = vor.u32 %v3542_v4, %v2573_v5  ;;  %v2909_v4 = vld [vmem:[%s4193_s23 + $0x338] sm:$0xf0] }
 0x105   : > { %2163 = vmatpush.bf16.msrb.mxu0 %v3020_v19  ;;  %v2832_v17 = vor.u32 %v3606_v10, %v2829_v12  ;;  %v2557_v19 = vld [vmem:[%s4193_s23 + $0x78] sm:$0xf0]  ;;  %v3558_v12 = vld [vmem:[%s4193_s23 + $0x10c] sm:$0xf] }
 0x106   : > { %v2640_v29 = vor.u32 %v3558_v12, %v2637_v13  ;;  %v3666_v13 = vld [vmem:[%s4193_s23 + $0x46c] sm:$0xf] }
 0x107   : > { %2176 = vmatpush.bf16.msrb.mxu1 %v3148_v24  ;;  %2189 = vmatpush.bf16.msrb.mxu2 %v3276_v27  ;;  %v1957_v15 = vpop.f32.mrf.mxu0  ;;  %v2685_v24 = vld [vmem:[%s4193_s23 + $0x178] sm:$0xf0]  ;;  %v3602_v27 = vld [vmem:[%s4193_s23 + $0x26c] sm:$0xf] }
 0x108   : > { %2202 = vmatpush.bf16.msrb.mxu3 %v3404_v31  ;;  %2164 = vmatmul.bf16.vlgmr.msrb.gmra.mxu0 %v4383_v46  ;;  %v1958_v21 = vadd.f32 %v1957_v15, %v1945_v1  ;;  %v2688_v33 = vor.u32 %v3570_v20, %v2685_v24  ;;  %v3594_v1 = vld [vmem:[%s4193_s23 + $0x22c] sm:$0xf]  ;;  %v3261_v24 = vld [vmem:[%s4193_s23 + $0x5f8] sm:$0xf0] }
 0x109   : > { %2208 = vmatpush.bf16.msra.mxu0 %v2624_v32  ;;  %v1970_v22 = vpop.f32.mrf.mxu1  ;;  %v2560_v32 = vor.u32 %v3538_v18, %v2557_v19  ;;  %v2893_v18 = vld [vmem:[%s4193_s23 + $0x318] sm:$0xf0]  ;;  %v3682_v20 = vld [vmem:[%s4193_s23 + $0x4ec] sm:$0xf] }
 0x10a   : > { %2190 = vmatmul.bf16.vlgmr.msrb.gmra.mxu2 %v4379_v43  ;;  %2177 = vmatmul.bf16.vlgmr.msrb.gmra.mxu1 %v4387_v49  ;;  %v1971_v31 = vadd.f32 %v1970_v22, %v1958_v21  ;;  %v3133_v21 = vld [vmem:[%s4193_s23 + $0x4f8] sm:$0xf0]  ;;  %v3714_v22 = vld [vmem:[%s4193_s23 + $0x5ec] sm:$0xf] }
 0x10b   : > { %2221 = vmatpush.bf16.msra.mxu1 %v2752_v34  ;;  %2234 = vmatpush.bf16.msra.mxu2 %v2880_v35  ;;  %v2816_v34 = vor.u32 %v3602_v27, %v2813_v28  ;;  %v3534_v35 = vld [vmem:[%s4193_s23 + $0x4c] sm:$0xf]  ;;  %v3389_v28 = vld [vmem:[%s4193_s23 + $0x6f8] sm:$0xf0] }
 0x10c   : > { %2247 = vmatpush.bf16.msra.mxu3 %v3008_v40  ;;  %v2669_v40 = vld [vmem:[%s4193_s23 + $0x158] sm:$0xf0]  ;;  %v3746_v27 = vld [vmem:[%s4193_s23 + $0x6ec] sm:$0xf] }
 0x10d   : > { %2203 = vmatmul.bf16.vlgmr.msrb.gmra.mxu3 %v4385_v47  ;;  %2209 = vmatpush.bf16.msra.mxu0 %v2608_v48  ;;  %v1983_v38 = vpop.f32.mrf.mxu2  ;;  %v2925_v48 = vld [vmem:[%s4193_s23 + $0x358] sm:$0xf0]  ;;  %v2672_v55 = vor.u32 %v3566_v37, %v2669_v40  ;;  %v3678_v37 = vld [vmem:[%s4193_s23 + $0x4cc] sm:$0xf] }
 0x10e   : > { %v1984_v44 = vadd.f32 %v1983_v38, %v1971_v31  ;;  %v2928_v63 = vor.u32 %v3630_v50, %v2925_v48  ;;  %v3778_v31 = vld [vmem:[%s4193_s23 + $0x7ec] sm:$0xf]  ;;  %v3117_v38 = vld [vmem:[%s4193_s23 + $0x4d8] sm:$0xf0] }
 0x10f   : > { %2222 = vmatpush.bf16.msra.mxu1 %v2736_v51  ;;  %2235 = vmatpush.bf16.msra.mxu2 %v2864_v52  ;;  %v324_v51 = vld [vmem:[%s4214_s11] sm:$0xff]  ;;  %v2544_v52 = vor.u32 %v3534_v35, %v2541_v36  ;;  %v1959_v54 = vpop.f32.mrf.mxu0  ;;  %v3264_v35 = vor.u32 %v3714_v22, %v3261_v24  ;;  %v3392_v36 = vor.u32 %v3746_v27, %v3389_v28  ;;  %v3501_v50 = vld [vmem:[%s4193_s23 + $0x7d8] sm:$0xf0]  ;;  %v3662_v27 = vld [vmem:[%s4193_s23 + $0x44c] sm:$0xf] }
 0x110   : > { %2248 = vmatpush.bf16.msra.mxu3 %v2992_v58  ;;  %v1996_v45 = vpop.f32.mrf.mxu3  ;;  %v3530_v58 = vld [vmem:[%s4193_s23 + $0x2c] sm:$0xf]  ;;  %v3120_v48 = vor.u32 %v3678_v37, %v3117_v38  ;;  %v3101_v54 = vld [vmem:[%s4193_s23 + $0x4b8] sm:$0xf0] }
 0x111   : > { %2210 = vmatpush.bf16.msra.mxu0 %v2592_v0  ;;  %v1997_v53 = vadd.f32 %v1996_v45, %v1984_v44  ;;  %v1972_v61 = vpop.f32.mrf.mxu1  ;;  %v2653_v0 = vld [vmem:[%s4193_s23 + $0x138] sm:$0xf0]  ;;  %v2528_v5 = vor.u32 %v3530_v58, %v2525_v59  ;;  %v3774_v45 = vld [vmem:[%s4193_s23 + $0x7cc] sm:$0xf] }
 0x112   : > { %v2656_v8 = vor.u32 %v3562_v60, %v2653_v0  ;;  %v3373_v44 = vld [vmem:[%s4193_s23 + $0x6d8] sm:$0xf0]  ;;  %v3738_v59 = vld [vmem:[%s4193_s23 + $0x6ac] sm:$0xf] }
 0x113   : > { %2223 = vmatpush.bf16.msra.mxu1 %v2720_v2  ;;  %2236 = vmatpush.bf16.msra.mxu2 %v2848_v3  ;;  %v2312_v57 = vadd.f32 %v1997_v53, %v324_v51  ;;  %v2781_v2 = vld [vmem:[%s4193_s23 + $0x238] sm:$0xf0]  ;;  %v3626_v3 = vld [vmem:[%s4193_s23 + $0x32c] sm:$0xf] }
 0x114   : > { %2249 = vmatpush.bf16.msra.mxu3 %v2976_v7  ;;  %v2509_v7 = vld [vmem:[%s4193_s23 + $0x18] sm:$0xf0]  ;;  %v2784_v10 = vor.u32 %v3594_v1, %v2781_v2  ;;  %v2912_v15 = vor.u32 %v3626_v3, %v2909_v4  ;;  %v3674_v53 = vld [vmem:[%s4193_s23 + $0x4ac] sm:$0xf] }
 0x115   : > { %2211 = vmatpush.bf16.msra.mxu0 %v2576_v62  ;;  %2316 = vst [vmem:[%s4214_s11] sm:$0xff] %v2312_v57  ;;  %v1985_v62 = vpop.f32.mrf.mxu2  ;;  %v3229_v58 = vld [vmem:[%s4193_s23 + $0x5b8] sm:$0xf0]  ;;  %v3770_v61 = vld [vmem:[%s4193_s23 + $0x7ac] sm:$0xf]  ;;  %v3104_v57 = vor.u32 %v3674_v53, %v3101_v54 }
 0x116   : > { %v3357_v60 = vld [vmem:[%s4193_s23 + $0x6b8] sm:$0xf0]  ;;  %v3670_v1 = vld [vmem:[%s4193_s23 + $0x48c] sm:$0xf] }
 0x117   : > { %2224 = vmatpush.bf16.msra.mxu1 %v2704_v16  ;;  %2237 = vmatpush.bf16.msra.mxu2 %v2832_v17  ;;  %v2765_v16 = vld [vmem:[%s4193_s23 + $0x218] sm:$0xf0]  ;;  %v3622_v17 = vld [vmem:[%s4193_s23 + $0x30c] sm:$0xf]  ;;  %v3360_v0 = vor.u32 %v3738_v59, %v3357_v60 }
 0x118   : > { %2250 = vmatpush.bf16.msra.mxu3 %v2960_v23  ;;  %v1998_v19 = vpop.f32.mrf.mxu3  ;;  %v2512_v23 = vor.u32 %v3526_v6, %v2509_v7  ;;  %v2768_v30 = vor.u32 %v3590_v14, %v2765_v16  ;;  %v3085_v2 = vld [vmem:[%s4193_s23 + $0x498] sm:$0xf0]  ;;  %v3766_v6 = vld [vmem:[%s4193_s23 + $0x78c] sm:$0xf] }
 0x119   : > { %2212 = vmatpush.bf16.msra.mxu0 %v2560_v32  ;;  %v3517_v32 = vld [vmem:[%s4193_s23 + $0x7f8] sm:$0xf0]  ;;  %v3698_v62 = vld [vmem:[%s4193_s23 + $0x56c] sm:$0xf] }
 0x11a   : > { %v3520_v40 = vor.u32 %v3778_v31, %v3517_v32  ;;  %v3213_v4 = vld [vmem:[%s4193_s23 + $0x598] sm:$0xf0]  ;;  %v3754_v54 = vld [vmem:[%s4193_s23 + $0x72c] sm:$0xf] }
 0x11b   : > { %2225 = vmatpush.bf16.msra.mxu1 %v2688_v33  ;;  %2238 = vmatpush.bf16.msra.mxu2 %v2816_v34  ;;  %v2896_v33 = vor.u32 %v3622_v17, %v2893_v18  ;;  %v3136_v34 = vor.u32 %v3682_v20, %v3133_v21  ;;  %v3469_v7 = vld [vmem:[%s4193_s23 + $0x798] sm:$0xf0]  ;;  %v3730_v18 = vld [vmem:[%s4193_s23 + $0x66c] sm:$0xf] }
 0x11c   : > { %2251 = vmatpush.bf16.msra.mxu3 %v2944_v39  ;;  %v3710_v39 = vld [vmem:[%s4193_s23 + $0x5cc] sm:$0xf]  ;;  %v3069_v14 = vld [vmem:[%s4193_s23 + $0x478] sm:$0xf0]  ;;  %v3472_v16 = vor.u32 %v3766_v6, %v3469_v7 }
 0x11d   : > { %2213 = vmatpush.bf16.msra.mxu0 %v2544_v52  ;;  %v3248_v51 = vor.u32 %v3710_v39, %v3245_v41  ;;  %v3376_v52 = vor.u32 %v3742_v42, %v3373_v44  ;;  %v3197_v17 = vld [vmem:[%s4193_s23 + $0x578] sm:$0xf0]  ;;  %v3762_v20 = vld [vmem:[%s4193_s23 + $0x76c] sm:$0xf]  ;;  %v3072_v22 = vor.u32 %v3666_v13, %v3069_v14 }
 0x11e   : > { %v3325_v19 = vld [vmem:[%s4193_s23 + $0x678] sm:$0xf0]  ;;  %v3658_v42 = vld [vmem:[%s4193_s23 + $0x42c] sm:$0xf] }
 0x11f   : > { %2226 = vmatpush.bf16.msra.mxu1 %v2672_v55  ;;  %2239 = vmatpush.bf16.msra.mxu2 %v2800_v56  ;;  %v3706_v55 = vld [vmem:[%s4193_s23 + $0x5ac] sm:$0xf]  ;;  %v3504_v56 = vor.u32 %v3774_v45, %v3501_v50  ;;  %v3453_v21 = vld [vmem:[%s4193_s23 + $0x778] sm:$0xf0]  ;;  %v3328_v24 = vor.u32 %v3730_v18, %v3325_v19 }
 0x120   : > { %2252 = vmatpush.bf16.msra.mxu3 %v2928_v63  ;;  %v3485_v63 = vld [vmem:[%s4193_s23 + $0x7b8] sm:$0xf0]  ;;  %v3456_v31 = vor.u32 %v3762_v20, %v3453_v21  ;;  %v3690_v45 = vld [vmem:[%s4193_s23 + $0x52c] sm:$0xf] }
 0x121   : > { %2214 = vmatpush.bf16.msra.mxu0 %v2528_v5  ;;  %v3488_v3 = vor.u32 %v3770_v61, %v3485_v63  ;;  %v3341_v5 = vld [vmem:[%s4193_s23 + $0x698] sm:$0xf0]  ;;  %v3654_v60 = vld [vmem:[%s4193_s23 + $0x40c] sm:$0xf] }
 0x122   : > { %v3053_v28 = vld [vmem:[%s4193_s23 + $0x458] sm:$0xf0]  ;;  %v3686_v63 = vld [vmem:[%s4193_s23 + $0x50c] sm:$0xf] }
 0x123   : > { %2227 = vmatpush.bf16.msra.mxu1 %v2656_v8  ;;  %2240 = vmatpush.bf16.msra.mxu2 %v2784_v10  ;;  %v3181_v32 = vld [vmem:[%s4193_s23 + $0x558] sm:$0xf0]  ;;  %v3056_v38 = vor.u32 %v3662_v27, %v3053_v28  ;;  %v325_v18 = vld [vmem:[%s4214_s11 + $0x8] sm:$0xff] }
 0x124   : > { %2253 = vmatpush.bf16.msra.mxu3 %v2912_v15  ;;  %v3437_v37 = vld [vmem:[%s4193_s23 + $0x758] sm:$0xf0] }
 0x125   : > { %2215 = vmatpush.bf16.msra.mxu0 %v2512_v23  ;;  %v4757_v8 = vpop.f32.mrf.mxu0  ;;  %v3200_v23 = vor.u32 %v3698_v62, %v3197_v17  ;;  %v3037_v44 = vld [vmem:[%s4193_s23 + $0x438] sm:$0xf0] }
 0x126   : > { %v3293_v53 = vld [vmem:[%s4193_s23 + $0x638] sm:$0xf0] }
 0x127   : > { %2228 = vmatpush.bf16.msra.mxu1 %v2640_v29  ;;  %2241 = vmatpush.bf16.msra.mxu2 %v2768_v30  ;;  %v4762_v15 = vpop.f32.mrf.mxu1  ;;  %v3694_v29 = vld [vmem:[%s4193_s23 + $0x54c] sm:$0xf]  ;;  %v3021_v61 = vld [vmem:[%s4193_s23 + $0x418] sm:$0xf0] }
 0x128   : > { %2254 = vmatpush.bf16.msra.mxu3 %v2896_v33  ;;  %2216 = vmatmul.bf16.vlgmr.msra.gmra.mxu0 %v4324_v25  ;;  %v3734_v25 = vld [vmem:[%s4193_s23 + $0x68c] sm:$0xf] }
 0x129   : > { %2260 = vmatpush.bf16.msrb.mxu0 %v3136_v34  ;;  %v3344_v12 = vor.u32 %v3734_v25, %v3341_v5  ;;  %v3726_v33 = vld [vmem:[%s4193_s23 + $0x64c] sm:$0xf]  ;;  %v3309_v34 = vld [vmem:[%s4193_s23 + $0x658] sm:$0xf0]  ;;  %v3024_v25 = vor.u32 %v3654_v60, %v3021_v61 }
 0x12a   : > { %2242 = vmatmul.bf16.vlgmr.msra.gmra.mxu2 %v4310_v9  ;;  %2229 = vmatmul.bf16.vlgmr.msra.gmra.mxu1 %v4327_v26  ;;  %v3232_v9 = vor.u32 %v3706_v55, %v3229_v58  ;;  %v3088_v26 = vor.u32 %v3670_v1, %v3085_v2  ;;  %v3312_v41 = vor.u32 %v3726_v33, %v3309_v34  ;;  %v3421_v55 = vld [vmem:[%s4193_s23 + $0x738] sm:$0xf0]  ;;  %v3718_v1 = vld [vmem:[%s4193_s23 + $0x60c] sm:$0xf] }
 0x12b   : > { %2273 = vmatpush.bf16.msrb.mxu1 %v3264_v35  ;;  %2286 = vmatpush.bf16.msrb.mxu2 %v3392_v36  ;;  %v3758_v36 = vld [vmem:[%s4193_s23 + $0x74c] sm:$0xf]  ;;  %v3277_v2 = vld [vmem:[%s4193_s23 + $0x618] sm:$0xf0] }
 0x12c   : > { %2299 = vmatpush.bf16.msrb.mxu3 %v3520_v40  ;;  %v3184_v40 = vor.u32 %v3694_v29, %v3181_v32  ;;  %v3280_v6 = vor.u32 %v3718_v1, %v3277_v2 }
 0x12d   : > { %2255 = vmatmul.bf16.vlgmr.msra.gmra.mxu3 %v4313_v11  ;;  %2261 = vmatpush.bf16.msrb.mxu0 %v3120_v48  ;;  %v3702_v11 = vld [vmem:[%s4193_s23 + $0x58c] sm:$0xf]  ;;  %v2035_v30 = vpop.f32.mrf.mxu2  ;;  %v2011_v39 = vpop.f32.mrf.mxu0  ;;  %v3440_v48 = vor.u32 %v3758_v36, %v3437_v37 }
 0x12e   : > { %v3216_v10 = vor.u32 %v3702_v11, %v3213_v4  ;;  %v3405_v4 = vld [vmem:[%s4193_s23 + $0x718] sm:$0xf0] }
 0x12f   : > { %2274 = vmatpush.bf16.msrb.mxu1 %v3248_v51  ;;  %2287 = vmatpush.bf16.msrb.mxu2 %v3376_v52  ;;  %v2024_v50 = vpop.f32.mrf.mxu1  ;;  %v3165_v51 = vld [vmem:[%s4193_s23 + $0x538] sm:$0xf0]  ;;  %v3722_v52 = vld [vmem:[%s4193_s23 + $0x62c] sm:$0xf] }
 0x130   : > { %2300 = vmatpush.bf16.msrb.mxu3 %v3504_v56  ;;  %v2048_v35 = vpop.f32.mrf.mxu3  ;;  %v3040_v56 = vor.u32 %v3658_v42, %v3037_v44  ;;  %v3168_v58 = vor.u32 %v3690_v45, %v3165_v51  ;;  %v3296_v59 = vor.u32 %v3722_v52, %v3293_v53 }
 0x131   : > { %2262 = vmatpush.bf16.msrb.mxu0 %v3104_v57 }
 0x133   : > { %2275 = vmatpush.bf16.msrb.mxu1 %v3232_v9  ;;  %2288 = vmatpush.bf16.msrb.mxu2 %v3360_v0  ;;  %v3424_v9 = vor.u32 %v3754_v54, %v3421_v55  ;;  %v3149_v0 = vld [vmem:[%s4193_s23 + $0x518] sm:$0xf0] }
 0x134   : > { %2301 = vmatpush.bf16.msrb.mxu3 %v3488_v3  ;;  %v3750_v3 = vld [vmem:[%s4193_s23 + $0x70c] sm:$0xf]  ;;  %v3152_v5 = vor.u32 %v3686_v63, %v3149_v0 }
 0x135   : > { %2263 = vmatpush.bf16.msrb.mxu0 %v3088_v26  ;;  %v2037_v57 = vpop.f32.mrf.mxu2  ;;  %v3408_v7 = vor.u32 %v3750_v3, %v3405_v4  ;;  %v2023_v26 = vadd.f32 %v4762_v15, %v4757_v8 }
 0x137   : > { %2276 = vmatpush.bf16.msrb.mxu1 %v3216_v10  ;;  %2289 = vmatpush.bf16.msrb.mxu2 %v3344_v12  ;;  %v2036_v10 = vadd.f32 %v2035_v30, %v2023_v26 }
 0x138   : > { %2302 = vmatpush.bf16.msrb.mxu3 %v3472_v16  ;;  %v2050_v11 = vpop.f32.mrf.mxu3 }
 0x139   : > { %2264 = vmatpush.bf16.msrb.mxu0 %v3072_v22  ;;  %v2049_v12 = vadd.f32 %v2048_v35, %v2036_v10 }
 0x13b   : > { %2277 = vmatpush.bf16.msrb.mxu1 %v3200_v23  ;;  %2290 = vmatpush.bf16.msrb.mxu2 %v3328_v24 }
 0x13c   : > { %2303 = vmatpush.bf16.msrb.mxu3 %v3456_v31 }
 0x13d   : > { %2265 = vmatpush.bf16.msrb.mxu0 %v3056_v38 }
 0x13f   : > { %2278 = vmatpush.bf16.msrb.mxu1 %v3184_v40  ;;  %2291 = vmatpush.bf16.msrb.mxu2 %v3312_v41  ;;  %v326_v41 = vld [vmem:[%s4214_s11 + $0x10] sm:$0xff] }
 0x140   : > { %2304 = vmatpush.bf16.msrb.mxu3 %v3440_v48 }
 0x141   : > { %2266 = vmatpush.bf16.msrb.mxu0 %v3040_v56 }
 0x143   : > { %2279 = vmatpush.bf16.msrb.mxu1 %v3168_v58  ;;  %2292 = vmatpush.bf16.msrb.mxu2 %v3296_v59 }
 0x144   : > { %2305 = vmatpush.bf16.msrb.mxu3 %v3424_v9 }
 0x145   : > { %2267 = vmatpush.bf16.msrb.mxu0 %v3024_v25  ;;  %v2061_v13 = vpop.f32.mrf.mxu0 }
 0x146   : > { %v2062_v14 = vadd.f32 %v2061_v13, %v2049_v12 }
 0x147   : > { %2280 = vmatpush.bf16.msrb.mxu1 %v3152_v5  ;;  %2293 = vmatpush.bf16.msrb.mxu2 %v3280_v6  ;;  %v2074_v62 = vpop.f32.mrf.mxu1  ;;  %v327_v5 = vld [vmem:[%s4214_s11 + $0x18] sm:$0xff] }
 0x148   : > { %2306 = vmatpush.bf16.msrb.mxu3 %v3408_v7  ;;  %2268 = vmatmul.bf16.vlgmr.msrb.gmra.mxu0 %v4383_v46  ;;  %v2075_v8 = vadd.f32 %v2074_v62, %v2062_v14 }
 0x14a   : > { %2281 = vmatmul.bf16.vlgmr.msrb.gmra.mxu1 %v4387_v49  ;;  %2294 = vmatmul.bf16.vlgmr.msrb.gmra.mxu2 %v4379_v43 }
 0x14b   : > { %2307 = vmatmul.bf16.vlgmr.msrb.gmra.mxu3 %v4385_v47 }
 0x14d   : > { %v2087_v15 = vpop.f32.mrf.mxu2  ;;  %v2063_v20 = vpop.f32.mrf.mxu0 }
 0x14e   : > { %v2088_v16 = vadd.f32 %v2087_v15, %v2075_v8 }
 0x14f   : > { %v2076_v46 = vpop.f32.mrf.mxu1 }
 0x150   : > { %v2100_v17 = vpop.f32.mrf.mxu3 }
 0x151   : > { %v2101_v19 = vadd.f32 %v2100_v17, %v2088_v16 }
 0x153   : > { %v2313_v21 = vadd.f32 %v2101_v19, %v325_v18 }
 0x155   : > { %2317 = vst [vmem:[%s4214_s11 + $0x8] sm:$0xff] %v2313_v21  ;;  %v2089_v49 = vpop.f32.mrf.mxu2 }
 0x158   : > { %v2102_v22 = vpop.f32.mrf.mxu3 }
 0x165   : > { %v2113_v23 = vpop.f32.mrf.mxu0 }
 0x167   : > { %v2126_v43 = vpop.f32.mrf.mxu1 }
 0x168   : > { %v2127_v31 = vadd.f32 %v2126_v43, %v2113_v23 }
 0x16d   : > { %v2139_v24 = vpop.f32.mrf.mxu2  ;;  %v2115_v27 = vpop.f32.mrf.mxu0 }
 0x16e   : > { %v2140_v32 = vadd.f32 %v2139_v24, %v2127_v31 }
 0x16f   : > { %v2128_v28 = vpop.f32.mrf.mxu1 }
 0x170   : > { %v2152_v47 = vpop.f32.mrf.mxu3 }
 0x171   : > { %v2153_v33 = vadd.f32 %v2152_v47, %v2140_v32 }
 0x175   : > { %v2141_v29 = vpop.f32.mrf.mxu2 }
 0x178   : > { %v2154_v30 = vpop.f32.mrf.mxu3 }
 0x185   : > { %v2165_v34 = vpop.f32.mrf.mxu0 }
 0x186   : > { %v2166_v35 = vadd.f32 %v2165_v34, %v2153_v33 }
 0x187   : > { %v2178_v36 = vpop.f32.mrf.mxu1 }
 0x188   : > { %v2179_v37 = vadd.f32 %v2178_v36, %v2166_v35 }
 0x18d   : > { %v2191_v38 = vpop.f32.mrf.mxu2  ;;  %v2167_v44 = vpop.f32.mrf.mxu0 }
 0x18e   : > { %v2192_v39 = vadd.f32 %v2191_v38, %v2179_v37 }
 0x18f   : > { %v2180_v45 = vpop.f32.mrf.mxu1 }
 0x190   : > { %v2204_v40 = vpop.f32.mrf.mxu3 }
 0x191   : > { %v2205_v42 = vadd.f32 %v2204_v40, %v2192_v39 }
 0x193   : > { %v2314_v50 = vadd.f32 %v2205_v42, %v326_v41 }
 0x195   : > { %2318 = vst [vmem:[%s4214_s11 + $0x10] sm:$0xff] %v2314_v50  ;;  %v2193_v48 = vpop.f32.mrf.mxu2 }
 0x198   : > { %v2206_v51 = vpop.f32.mrf.mxu3 }
 0x1a5   : > { %v2217_v52 = vpop.f32.mrf.mxu0 }
 0x1a7   : > { %v2230_v53 = vpop.f32.mrf.mxu1 }
 0x1a8   : > { %v2231_v61 = vadd.f32 %v2230_v53, %v2217_v52 }
 0x1ad   : > { %v2243_v54 = vpop.f32.mrf.mxu2  ;;  %v2219_v56 = vpop.f32.mrf.mxu0 }
 0x1ae   : > { %v2244_v63 = vadd.f32 %v2243_v54, %v2231_v61 }
 0x1af   : > { %v2232_v58 = vpop.f32.mrf.mxu1 }
 0x1b0   : > { %v2256_v55 = vpop.f32.mrf.mxu3 }
 0x1b1   : > { %v2257_v57 = vadd.f32 %v2256_v55, %v2244_v63 }
 0x1b5   : > { %v2245_v59 = vpop.f32.mrf.mxu2 }
 0x1b8   : > { %v2258_v60 = vpop.f32.mrf.mxu3 }
 0x1c5   : > { %v2269_v9 = vpop.f32.mrf.mxu0 }
 0x1c6   : > { %v2270_v1 = vadd.f32 %v2269_v9, %v2257_v57 }
 0x1c7   : > { %v2282_v0 = vpop.f32.mrf.mxu1 }
 0x1c8   : > { %v2283_v2 = vadd.f32 %v2282_v0, %v2270_v1 }
 0x1cd   : > { %v2295_v11 = vpop.f32.mrf.mxu2  ;;  %v2271_v25 = vpop.f32.mrf.mxu0 }
 0x1ce   : > { %v2296_v3 = vadd.f32 %v2295_v11, %v2283_v2  ;;  %v2308_v4 = vpop.f32.mrf.mxu3 }
 0x1cf   : > { %v2284_v6 = vpop.f32.mrf.mxu1 }
 0x1d0   : > { %v2309_v7 = vadd.f32 %v2308_v4, %v2296_v3 }
 0x1d2   : > { %v2315_v26 = vadd.f32 %v2309_v7, %v327_v5  ;;  %2323 = sbr.rel (%p3521_p9) target bundleno = 479 (0x1df), region = 48 }
 0x1d4   : > { %2319 = vst [vmem:[%s4214_s11 + $0x18] sm:$0xff] %v2315_v26 }
 0x1d5   : > { %v2297_v10 = vpop.f32.mrf.mxu2 }
 0x1d6   : > { %v2310_v12 = vpop.f32.mrf.mxu3 }
 0x1d7   : > { %v2324_v13 = vld [vmem:[%s4214_s11] sm:$0xff]  ;;  %v2325_v14 = vld [vmem:[%s4214_s11 + $0x8] sm:$0xff]  ;;  %v2326_v62 = vld [vmem:[%s4214_s11 + $0x10] sm:$0xff] }
 0x1d8   : > { %v2328_v8 = vmax.f32 %v2324_v13, 0.0  ;;  %v2329_v15 = vmax.f32 %v2325_v14, 0.0  ;;  %v2330_v16 = vmax.f32 %v2326_v62, 0.0 }
 0x1da   : > { %2332 = vst [vmem:[%s4214_s11] sm:$0xff] %v2328_v8 }
 0x1db   : > { %v2327_v17 = vld [vmem:[%s4214_s11 + $0x18] sm:$0xff]  ;;  %2333 = vst [vmem:[%s4214_s11 + $0x8] sm:$0xff] %v2329_v15 }
 0x1dc   : > { %v2331_v18 = vmax.f32 %v2327_v17, 0.0  ;;  %2334 = vst [vmem:[%s4214_s11 + $0x10] sm:$0xff] %v2330_v16 }
 0x1de   : > { %2335 = vst [vmem:[%s4214_s11 + $0x18] sm:$0xff] %v2331_v18 }
 0x1df PF: > { %s19_s22 = sadd.s32 1, %s4038_s22   ;;  %s4860_s18 = smov %s4174_s15 }
 0x1e0   : > { %p16_p10 = scmp.ge.s32.totalorder %s19_s22, 34   ;;  %s4861_s23 = sld [smem:[#allocation8_spill]] }
 0x1e1   : > { %s4862_s25 = sld [smem:[#allocation9_spill]]  ;;  %s4863_s12 = smov %s4002_s13 }
 0x1e2   : > { %s4864_s13 = smov %s4006_s14  ;;  %s4865_s14 = smov %s4169_s10 }
 0x1e3   : > { %s4866_s15 = smov %s4014_s16  ;;  %s4867_s16 = smov %s4018_s17 }
 0x1e4   : > { %s4868_s17 = smov %s4860_s18  ;;  %s4869_s18 = smov %s4030_s20 }
 0x1e5   : > { %s4870_s19 = smov %s4034_s21  ;;  %18 = sbr.rel (!%p16_p10) target bundleno = 11 (0xb), region = 96 }
 0x1e6   : > { %s4871_s20 = smov %s4861_s23 }
 0x1e7   : > { %s4872_s21 = smov %s4862_s25 }
 0x1ea   :  { %2366 = vsyncpa [#allocation3], 1 }
 0x1eb   :  { %2368 = vsyncpa [#allocation3 + $0x1], 1 }
 0x1ec   :  { %2369 = vsyncpa [#allocation5], 1 }
 0x1ed   :  { %2371 = vsyncpa [#allocation5 + $0x1], 1 }

// kernel: vgg_forward.7
= control target key start
LH: loop header
LB: loop body
LE: loop exit
PB: predicated region body
PF: predicated region fallthrough
CT: control target
= control target key end

     0   :  { %s7782_s0 = inlined_call_operand.vmem [shape: bf16[8,25088], index: 0, kind: input, shape index: {}]   ;;  %s7783_s1 = inlined_call_operand.hbm [shape: bf16[25088,4096], index: 1, kind: input, shape index: {}]   ;;  %s7784_s2 = inlined_call_operand.hbm [shape: f32[1,4096], index: 2, kind: input, shape index: {}]   ;;  %s7785_s3 = inlined_call_operand.vmem [shape: f32[8,4096], index: 3, kind: output, shape index: {}]  }
   0x1   :  { %7788 = sst [smem:[#allocation10_spill]] %s7783_s1 }
   0x2   :  { %8 = vsyncpa [#allocation3], 0 }
   0x3   :  { %10 = vsyncpa [#allocation3 + $0x1], 0 }
   0x4   :  { %11 = vsyncpa [#allocation5], 0 }
   0x5   :  { %13 = vsyncpa [#allocation5 + $0x1], 0  ;;  %s6509_s12 = smov 0   ;;  %s6511_s13 = smov 0  }
   0x6   :  { %s6513_s14 = smov 0   ;;  %s6515_s15 = smov 0  }
   0x7   :  { %s6517_s16 = smov 0   ;;  %s6519_s17 = smov 0  }
   0x8   :  { %s6521_s18 = smov 0   ;;  %s6523_s19 = smov 0  }
   0x9   :  { %s6525_s20 = smov 0   ;;  %s6527_s21 = smov 0  }
   0xa   :  { %s6529_s22 = smov 0  }
   0xb LB: > { %s31_s23 = sadd.s32 1, %s6476_s20  ;;  %s34_s24 = sadd.s32 1, %s6480_s21  ;;  %s6484_s22 = sphi %s6529_s22, %s19_s22   ;;  %s6480_s21 = sphi %s6527_s21, %s7807_s21   ;;  %s6476_s20 = sphi %s6525_s20, %s7806_s20   ;;  %s6472_s19 = sphi %s6523_s19, %s7805_s19   ;;  %s6468_s18 = sphi %s6521_s18, %s7804_s18   ;;  %s6464_s17 = sphi %s6519_s17, %s7803_s17   ;;  %s6460_s16 = sphi %s6517_s16, %s7802_s16   ;;  %s6456_s15 = sphi %s6515_s15, %s7801_s15   ;;  %s6452_s14 = sphi %s6513_s14, %s7800_s14   ;;  %s6448_s13 = sphi %s6511_s13, %s7799_s13   ;;  %s6444_s12 = sphi %s6509_s12, %s7798_s12  }
   0xc   : > { %p32_p0 = scmp.ge.s32.totalorder %s31_s23, 14  ;;  %p82_p1 = scmp.ne.s32.totalorder %s6464_s17, %s6460_s16 }
   0xd   : > { %p83_p2 = scmp.eq.s32.totalorder %s6484_s22, 0  ;;  %p6238_p4 = scmp.lt.s32.totalorder %s6484_s22, 112 }
   0xe   : > { %s7809_s23 = smov (%p32_p0, %s31_s23), 0  ;;  %s7811_s24 = smov (!%p32_p0, %s34_s24), %s6480_s21 }
   0xf   : > { %7789 = sst [smem:[#allocation8_spill]] %s7809_s23  ;;  %p84_p3 = por %p83_p2, %p82_p1 }
  0x10   : > { %s179_s26 = sand.u32 1, %s6464_s17   ;;  %s3970_s27 = sshll.u32 %s6480_s21, 2 }
  0x11   : > { %s6225_s28 = smul.u32 3584, %s179_s26  ;;  %p6232_p5 = pnand %p6238_p4, %p84_p3 }
  0x12   : > { %s5776_s29 = smul.u32 7168, %s6476_s20  ;;  %s7790_s1 = sld [smem:[#allocation10_spill]] }
  0x13   : > { %s183_s4 = scalar_lea.vmem [#allocation2], %s6225_s28  ;;  %s180_s11 = scalar_lea.sflag [#allocation3], %s179_s26 }
  0x14   : > { %s189_s30 = sadd.s32 %s5776_s29, %s3970_s27  ;;  %s194_s5 = sshll.u32 %s183_s4, 4  ;;  %s195_s5 = int_to_ptr.vmem [resolvable:$true] %s194_s5 }
  0x15   : > { %s3972_s6 = sshll.u32 %s189_s30, 2  ;;  %s6486_s25 = smov 2048  }
  0x16   : > { %s6487_s28 = smov 256   ;;  %s6488_s29 = smov 16  }
  0x17   : > { %p3975_p6 = scmp.ge.s32.totalorder %s6484_s22, 1  ;;  %p221_p7 = scmp.lt.s32.totalorder %s6484_s22, 113 }
  0x18   : > { %s191_s9 = scalar_lea.hbm %s7790_s1, %s3972_s6  ;;  %s70_s30 = ssub.s32 %s6476_s20, %s7809_s23 }
  0x19   : > { %s192_s10 = sshll.u32 %s191_s9, 4  ;;  %p6592_p8 = pnand %p3975_p6, %p221_p7  ;;  %s193_s10 = int_to_ptr.hbm [resolvable:$true] %s192_s10 }
  0x1a   : > { %6234 = dma.hbm_to_vmem [thread:$0]  (!%p6232_p5), %s193_s10, 57344, %s195_s5, %s180_s11, %s6486_s25, %s6487_s28, %s6488_s29  }
  0x1b   : > { %s3966_s26 = sadd.s32 4294967295, %s6484_s22   ;;  %p36_p9 = scmp.ge.s32.totalorder %s7811_s24, 8 }
  0x1c   : > { %p88_p10 = scmp.ne.s32.totalorder %s6460_s16, %s6456_s15  ;;  %p89_p11 = scmp.eq.s32.totalorder %s3966_s26, 0 }
  0x1d   : > { %s7813_s24 = smov (%p36_p9, %s7811_s24), 0  ;;  %s101_s5 = sadd.s32 1, %s6452_s14 }
  0x1e   : > { %7792 = sst [smem:[#allocation9_spill]] %s7813_s24  ;;  %p6603_p12 = por %p89_p11, %p88_p10 }
  0x1f   : > { %s71_s6 = ssub.s32 %s6480_s21, %s7813_s24  ;;  %p114_p13 = scmp.ne.s32.totalorder %s6448_s13, %s6444_s12 }
  0x20   : > { %s72_s7 = sor.u32 %s71_s6, %s70_s30  ;;  %p99_p0 = scmp.eq.s32.totalorder %s71_s6, 0 }
  0x21   : > { %p73_p1 = scmp.eq.s32.totalorder %s72_s7, 0  ;;  %p108_p3 = scmp.ne.s32.totalorder %s6452_s14, %s6448_s13 }
  0x22   : > { %s6615_s8 = scalar_select %p99_p0, %s6452_s14, %s101_s5  }
  0x23   : > { %s7794_s15 = sadd.s32 1, %s6464_s17  ;;  %p6622_p5 = por %p114_p13, %p89_p11 }
  0x24   : > { %s6620_s9 = scalar_select %p73_p1, %s6464_s17, %s7794_s15  }
  0x25   : > { %s204_s11 = sand.u32 1, %s6452_s14   ;;  %p110_p6 = por %p108_p3, %p83_p2 }
  0x26   : > { %s3973_s28 = sshll.u32 %s204_s11, 2  ;;  %s212_s30 = scalar_lea.hbm %s7784_s2, %s3970_s27 }
  0x27   : > { %s214_s26 = sshll.u32 %s212_s30, 4  ;;  %s208_s6 = scalar_lea.vmem [#allocation4], %s3973_s28  ;;  %s215_s26 = int_to_ptr.hbm [resolvable:$true] %s214_s26 }
  0x28   : > { %s216_s5 = sshll.u32 %s208_s6, 4  ;;  %p6235_p7 = pnand %p6238_p4, %p110_p6  ;;  %s217_s5 = int_to_ptr.vmem [resolvable:$true] %s216_s5 }
  0x29   : > { %s205_s7 = scalar_lea.sflag [#allocation5], %s204_s11  ;;  %225 = sbr.rel (%p6592_p8) target bundleno = 669 (0x29d), region = 32 }
  0x2a   : > { %6237 = dma.hbm_to_vmem [thread:$0]  (!%p6235_p7), %s215_s26, 64, %s217_s5, %s205_s7  }
  0x2b   : > { %s227_s15 = sand.u32 (!%p6592_p8), 1, %s6460_s16  }
  0x2c   : > { %s6226_s1 = smul.u32 (!%p6592_p8), 3584, %s227_s15  ;;  %s228_s24 = scalar_lea.sflag (!%p6592_p8), [#allocation3], %s227_s15 }
  0x2e   : > { %s6639_s23 = scalar_lea.vmem [#allocation2], %s6226_s1 }
  0x2f   : > { %6435 = dma.done.wait (%p6603_p12), %s228_s24, 57344  }
  0x30   : > { %6437 = vsyncadd (%p6603_p12), %s228_s24, 4294909952  ;;  %s237_s27 = sand.u32 1, %s6448_s13  }
  0x31   : > { %s3976_s11 = sshll.u32 %s237_s27, 2  ;;  %s238_s28 = scalar_lea.sflag [#allocation5], %s237_s27 }
  0x32   : > { %s241_s12 = scalar_lea.vmem [#allocation4], %s3976_s11 }
  0x33   : > { %6439 = dma.done.wait (%p6622_p5), %s238_s28, 64  }
  0x34   : > { %6441 = vsyncadd (%p6622_p5), %s238_s28, 4294967232  ;;  %s283_s1 = smul.u32 14, %s6468_s18  ;;  %s3978_s4 = sshll.u32 %s6472_s19, 2 }
  0x35   : > { %p299_p2 = scmp.lt.s32.totalorder %s3978_s4, 31  ;;  %p3980_p8 = scmp.ne.s32.totalorder %s6468_s18, 0 }
  0x36   : > { %p286_p4 = scmp.lt.s32.totalorder %s283_s1, 195 }
  0x37   : > { %s7815_s4 = smov (!%p299_p2, %s3978_s4), 31  ;;  %309 = sbr.rel (%p3980_p8) target bundleno = 67 (0x43), region = 44 }
  0x38   : > { %s7817_s1 = smov (!%p286_p4, %s283_s1), 195  ;;  %s3979_s24 = sshll.u32 %s7815_s4, 3 }
  0x39   : > { %s3977_s25 = sshll.u32 %s7817_s1, 2  ;;  %s6655_s26 = scalar_lea.vmem %s7785_s3, %s3979_s24 }
  0x3a   : > { %s6660_s10 = scalar_lea.vmem %s7782_s0, %s3977_s25 }
  0x3c   : > { %v310_v0 = vld [vmem:[%s241_s12] sm:$0xf] }
  0x3d   : > { %v312_v1 = vperm.slane %v310_v0, 0  ;;  %v313_v2 = vperm.slane %v310_v0, 1  ;;  %v314_v3 = vperm.slane %v310_v0, 2  ;;  %v315_v4 = vperm.slane %v310_v0, 3 }
  0x3f   : > { %320 = vst [vmem:[%s6655_s26] sm:$0xff] %v312_v1 }
  0x40   : > { %321 = vst [vmem:[%s6655_s26 + $0x8] sm:$0xff] %v313_v2 }
  0x41   : > { %322 = vst [vmem:[%s6655_s26 + $0x10] sm:$0xff] %v314_v3 }
  0x42   : > { %323 = vst [vmem:[%s6655_s26 + $0x18] sm:$0xff] %v315_v4 }
  0x43 PF: > { %v4095_v5 = vld [vmem:[%s6639_s23 + $0xe0] sm:$0xf]  ;;  %v5807_v6 = vld [vmem:[%s6639_s23 + $0xec] sm:$0xf0]  ;;  %p5773_p9 = scmp.ne.s32.totalorder %s6468_s18, 13 }
  0x44   : > { %v4223_v7 = vld [vmem:[%s6639_s23 + $0x1e0] sm:$0xf]  ;;  %v4096_v8 = vor.u32 %v5807_v6, %v4095_v5  ;;  %v5839_v9 = vld [vmem:[%s6639_s23 + $0x1ec] sm:$0xf0] }
  0x45   : > { %v4351_v10 = vld [vmem:[%s6639_s23 + $0x2e0] sm:$0xf]  ;;  %v5871_v11 = vld [vmem:[%s6639_s23 + $0x2ec] sm:$0xf0]  ;;  %v4224_v12 = vor.u32 %v5839_v9, %v4223_v7 }
  0x46   : > { %v4352_v13 = vor.u32 %v5871_v11, %v4351_v10  ;;  %v4479_v14 = vld [vmem:[%s6639_s23 + $0x3e0] sm:$0xf]  ;;  %v5903_v15 = vld [vmem:[%s6639_s23 + $0x3ec] sm:$0xf0]  ;;  %3072 = vmatpush.bf16.msra.mxu0 %v4096_v8 }
  0x47   : > { %v4079_v16 = vld [vmem:[%s6639_s23 + $0xc0] sm:$0xf]  ;;  %v4480_v17 = vor.u32 %v5903_v15, %v4479_v14  ;;  %v5803_v18 = vld [vmem:[%s6639_s23 + $0xcc] sm:$0xf0]  ;;  %3085 = vmatpush.bf16.msra.mxu1 %v4224_v12 }
  0x48   : > { %v4207_v19 = vld [vmem:[%s6639_s23 + $0x1c0] sm:$0xf]  ;;  %v5835_v20 = vld [vmem:[%s6639_s23 + $0x1cc] sm:$0xf0]  ;;  %3098 = vmatpush.bf16.msra.mxu2 %v4352_v13  ;;  %v4080_v21 = vor.u32 %v5803_v18, %v4079_v16 }
  0x49   : > { %v4208_v22 = vor.u32 %v5835_v20, %v4207_v19  ;;  %v4335_v23 = vld [vmem:[%s6639_s23 + $0x2c0] sm:$0xf]  ;;  %v5867_v24 = vld [vmem:[%s6639_s23 + $0x2cc] sm:$0xf0]  ;;  %3111 = vmatpush.bf16.msra.mxu3 %v4480_v17 }
  0x4a   : > { %v4463_v25 = vld [vmem:[%s6639_s23 + $0x3c0] sm:$0xf]  ;;  %v4336_v26 = vor.u32 %v5867_v24, %v4335_v23  ;;  %v5899_v27 = vld [vmem:[%s6639_s23 + $0x3cc] sm:$0xf0]  ;;  %3073 = vmatpush.bf16.msra.mxu0 %v4080_v21 }
  0x4b   : > { %v4063_v28 = vld [vmem:[%s6639_s23 + $0xa0] sm:$0xf]  ;;  %v5799_v29 = vld [vmem:[%s6639_s23 + $0xac] sm:$0xf0]  ;;  %v4464_v30 = vor.u32 %v5899_v27, %v4463_v25  ;;  %3086 = vmatpush.bf16.msra.mxu1 %v4208_v22 }
  0x4c   : > { %v4191_v31 = vld [vmem:[%s6639_s23 + $0x1a0] sm:$0xf]  ;;  %v5831_v32 = vld [vmem:[%s6639_s23 + $0x1ac] sm:$0xf0]  ;;  %v4064_v34 = vor.u32 %v5799_v29, %v4063_v28  ;;  %3099 = vmatpush.bf16.msra.mxu2 %v4336_v26 }
  0x4d   : > { %v4319_v33 = vld [vmem:[%s6639_s23 + $0x2a0] sm:$0xf]  ;;  %v5863_v35 = vld [vmem:[%s6639_s23 + $0x2ac] sm:$0xf0]  ;;  %v4192_v38 = vor.u32 %v5831_v32, %v4191_v31  ;;  %3112 = vmatpush.bf16.msra.mxu3 %v4464_v30 }
  0x4e   : > { %v4447_v36 = vld [vmem:[%s6639_s23 + $0x3a0] sm:$0xf]  ;;  %v5895_v37 = vld [vmem:[%s6639_s23 + $0x3ac] sm:$0xf0]  ;;  %v4320_v39 = vor.u32 %v5863_v35, %v4319_v33  ;;  %3074 = vmatpush.bf16.msra.mxu0 %v4064_v34 }
  0x4f   : > { %v4047_v40 = vld [vmem:[%s6639_s23 + $0x80] sm:$0xf]  ;;  %v5795_v41 = vld [vmem:[%s6639_s23 + $0x8c] sm:$0xf0]  ;;  %v4448_v43 = vor.u32 %v5895_v37, %v4447_v36  ;;  %3087 = vmatpush.bf16.msra.mxu1 %v4192_v38 }
  0x50   : > { %v4175_v42 = vld [vmem:[%s6639_s23 + $0x180] sm:$0xf]  ;;  %v5827_v44 = vld [vmem:[%s6639_s23 + $0x18c] sm:$0xf0]  ;;  %v4048_v49 = vor.u32 %v5795_v41, %v4047_v40  ;;  %3100 = vmatpush.bf16.msra.mxu2 %v4320_v39 }
  0x51   : > { %v4303_v45 = vld [vmem:[%s6639_s23 + $0x280] sm:$0xf]  ;;  %v5859_v46 = vld [vmem:[%s6639_s23 + $0x28c] sm:$0xf0]  ;;  %v4176_v50 = vor.u32 %v5827_v44, %v4175_v42  ;;  %3113 = vmatpush.bf16.msra.mxu3 %v4448_v43 }
  0x52   : > { %v4431_v47 = vld [vmem:[%s6639_s23 + $0x380] sm:$0xf]  ;;  %v5891_v48 = vld [vmem:[%s6639_s23 + $0x38c] sm:$0xf0]  ;;  %v4304_v51 = vor.u32 %v5859_v46, %v4303_v45  ;;  %3075 = vmatpush.bf16.msra.mxu0 %v4048_v49 }
  0x53   : > { %v4031_v52 = vld [vmem:[%s6639_s23 + $0x60] sm:$0xf]  ;;  %v5791_v53 = vld [vmem:[%s6639_s23 + $0x6c] sm:$0xf0]  ;;  %v4432_v55 = vor.u32 %v5891_v48, %v4431_v47  ;;  %3088 = vmatpush.bf16.msra.mxu1 %v4176_v50 }
  0x54   : > { %v4159_v54 = vld [vmem:[%s6639_s23 + $0x160] sm:$0xf]  ;;  %v5823_v56 = vld [vmem:[%s6639_s23 + $0x16c] sm:$0xf0]  ;;  %v4032_v61 = vor.u32 %v5791_v53, %v4031_v52  ;;  %3101 = vmatpush.bf16.msra.mxu2 %v4304_v51 }
  0x55   : > { %v4287_v57 = vld [vmem:[%s6639_s23 + $0x260] sm:$0xf]  ;;  %v5855_v58 = vld [vmem:[%s6639_s23 + $0x26c] sm:$0xf0]  ;;  %v4160_v62 = vor.u32 %v5823_v56, %v4159_v54  ;;  %3114 = vmatpush.bf16.msra.mxu3 %v4432_v55 }
  0x56   : > { %v4415_v59 = vld [vmem:[%s6639_s23 + $0x360] sm:$0xf]  ;;  %v5887_v60 = vld [vmem:[%s6639_s23 + $0x36c] sm:$0xf0]  ;;  %v4288_v63 = vor.u32 %v5855_v58, %v4287_v57  ;;  %3076 = vmatpush.bf16.msra.mxu0 %v4032_v61 }
  0x57   : > { %v4015_v0 = vld [vmem:[%s6639_s23 + $0x40] sm:$0xf]  ;;  %v5787_v1 = vld [vmem:[%s6639_s23 + $0x4c] sm:$0xf0]  ;;  %v4416_v3 = vor.u32 %v5887_v60, %v4415_v59  ;;  %3089 = vmatpush.bf16.msra.mxu1 %v4160_v62 }
  0x58   : > { %v4143_v2 = vld [vmem:[%s6639_s23 + $0x140] sm:$0xf]  ;;  %v5819_v4 = vld [vmem:[%s6639_s23 + $0x14c] sm:$0xf0]  ;;  %v4016_v9 = vor.u32 %v5787_v1, %v4015_v0  ;;  %3102 = vmatpush.bf16.msra.mxu2 %v4288_v63  ;;  %v329_v63 = vld [vmem:[%s6660_s10 + $0x8] sm:$0xff] }
  0x59   : > { %v4271_v5 = vld [vmem:[%s6639_s23 + $0x240] sm:$0xf]  ;;  %v5851_v6 = vld [vmem:[%s6639_s23 + $0x24c] sm:$0xf0]  ;;  %v4144_v10 = vor.u32 %v5819_v4, %v4143_v2  ;;  %3115 = vmatpush.bf16.msra.mxu3 %v4416_v3  ;;  %v792_v4 = vunpack.c.l.b16 %v329_v63 }
  0x5a   : > { %v4399_v7 = vld [vmem:[%s6639_s23 + $0x340] sm:$0xf]  ;;  %v5883_v8 = vld [vmem:[%s6639_s23 + $0x34c] sm:$0xf0]  ;;  %v4272_v11 = vor.u32 %v5851_v6, %v4271_v5  ;;  %3077 = vmatpush.bf16.msra.mxu0 %v4016_v9  ;;  %v793_v5 = vunpack.c.h.b16 %v329_v63 }
  0x5b   : > { %v3999_v12 = vld [vmem:[%s6639_s23 + $0x20] sm:$0xf]  ;;  %v5783_v13 = vld [vmem:[%s6639_s23 + $0x2c] sm:$0xf0]  ;;  %v4400_v15 = vor.u32 %v5883_v8, %v4399_v7  ;;  %3090 = vmatpush.bf16.msra.mxu1 %v4144_v10  ;;  %v6756_v9 = vpack.c.b16 %v792_v4, %v792_v4 }
  0x5c   : > { %v4127_v14 = vld [vmem:[%s6639_s23 + $0x120] sm:$0xf]  ;;  %v5815_v16 = vld [vmem:[%s6639_s23 + $0x12c] sm:$0xf0]  ;;  %v4000_v21 = vor.u32 %v5783_v13, %v3999_v12  ;;  %3103 = vmatpush.bf16.msra.mxu2 %v4272_v11  ;;  %v6759_v11 = vpack.c.b16 %v793_v5, %v793_v5 }
  0x5d   : > { %v4255_v17 = vld [vmem:[%s6639_s23 + $0x220] sm:$0xf]  ;;  %v5847_v18 = vld [vmem:[%s6639_s23 + $0x22c] sm:$0xf0]  ;;  %v4128_v24 = vor.u32 %v5815_v16, %v4127_v14  ;;  %3116 = vmatpush.bf16.msra.mxu3 %v4400_v15 }
  0x5e   : > { %v4383_v19 = vld [vmem:[%s6639_s23 + $0x320] sm:$0xf]  ;;  %v5879_v20 = vld [vmem:[%s6639_s23 + $0x32c] sm:$0xf0]  ;;  %v4256_v25 = vor.u32 %v5847_v18, %v4255_v17  ;;  %3078 = vmatpush.bf16.msra.mxu0 %v4000_v21 }
  0x5f   : > { %v3983_v22 = vld [vmem:[%s6639_s23] sm:$0xf]  ;;  %v5779_v23 = vld [vmem:[%s6639_s23 + $0xc] sm:$0xf0]  ;;  %v4384_v29 = vor.u32 %v5879_v20, %v4383_v19  ;;  %3091 = vmatpush.bf16.msra.mxu1 %v4128_v24 }
  0x60   : > { %v4111_v26 = vld [vmem:[%s6639_s23 + $0x100] sm:$0xf]  ;;  %v5811_v27 = vld [vmem:[%s6639_s23 + $0x10c] sm:$0xf0]  ;;  %v3984_v36 = vor.u32 %v5779_v23, %v3983_v22  ;;  %3104 = vmatpush.bf16.msra.mxu2 %v4256_v25 }
  0x61   : > { %v4239_v28 = vld [vmem:[%s6639_s23 + $0x200] sm:$0xf]  ;;  %v5843_v30 = vld [vmem:[%s6639_s23 + $0x20c] sm:$0xf0]  ;;  %v4112_v40 = vor.u32 %v5811_v27, %v4111_v26  ;;  %3117 = vmatpush.bf16.msra.mxu3 %v4384_v29 }
  0x62   : > { %v4367_v31 = vld [vmem:[%s6639_s23 + $0x300] sm:$0xf]  ;;  %v5875_v32 = vld [vmem:[%s6639_s23 + $0x30c] sm:$0xf0]  ;;  %v4240_v41 = vor.u32 %v5843_v30, %v4239_v28  ;;  %3079 = vmatpush.bf16.msra.mxu0 %v3984_v36 }
  0x63   : > { %v4607_v33 = vld [vmem:[%s6639_s23 + $0x4e0] sm:$0xf]  ;;  %v5935_v34 = vld [vmem:[%s6639_s23 + $0x4ec] sm:$0xf0]  ;;  %v4368_v44 = vor.u32 %v5875_v32, %v4367_v31  ;;  %3092 = vmatpush.bf16.msra.mxu1 %v4112_v40 }
  0x64   : > { %v4735_v35 = vld [vmem:[%s6639_s23 + $0x5e0] sm:$0xf]  ;;  %v5967_v37 = vld [vmem:[%s6639_s23 + $0x5ec] sm:$0xf0]  ;;  %v4608_v45 = vor.u32 %v5935_v34, %v4607_v33  ;;  %3105 = vmatpush.bf16.msra.mxu2 %v4240_v41 }
  0x65   : > { %v4863_v38 = vld [vmem:[%s6639_s23 + $0x6e0] sm:$0xf]  ;;  %v5999_v39 = vld [vmem:[%s6639_s23 + $0x6ec] sm:$0xf0]  ;;  %v4736_v46 = vor.u32 %v5967_v37, %v4735_v35  ;;  %3118 = vmatpush.bf16.msra.mxu3 %v4368_v44 }
  0x66   : > { %v4991_v42 = vld [vmem:[%s6639_s23 + $0x7e0] sm:$0xf]  ;;  %v6031_v43 = vld [vmem:[%s6639_s23 + $0x7ec] sm:$0xf0]  ;;  %v4864_v47 = vor.u32 %v5999_v39, %v4863_v38  ;;  %3124 = vmatpush.bf16.msrb.mxu0 %v4608_v45 }
  0x67   : > { %v4591_v48 = vld [vmem:[%s6639_s23 + $0x4c0] sm:$0xf]  ;;  %v5931_v49 = vld [vmem:[%s6639_s23 + $0x4cc] sm:$0xf0]  ;;  %v4992_v51 = vor.u32 %v6031_v43, %v4991_v42  ;;  %3137 = vmatpush.bf16.msrb.mxu1 %v4736_v46  ;;  %3106 = vmatmul.bf16.vlgmr.msra.gmra.mxu2 %v6756_v9 }
  0x68   : > { %v4719_v50 = vld [vmem:[%s6639_s23 + $0x5c0] sm:$0xf]  ;;  %v5963_v52 = vld [vmem:[%s6639_s23 + $0x5cc] sm:$0xf0]  ;;  %v4592_v57 = vor.u32 %v5931_v49, %v4591_v48  ;;  %3150 = vmatpush.bf16.msrb.mxu2 %v4864_v47  ;;  %3119 = vmatmul.bf16.vlgmr.msra.gmra.mxu3 %v6759_v11 }
  0x69   : > { %v4847_v53 = vld [vmem:[%s6639_s23 + $0x6c0] sm:$0xf]  ;;  %v5995_v54 = vld [vmem:[%s6639_s23 + $0x6cc] sm:$0xf0]  ;;  %v4720_v59 = vor.u32 %v5963_v52, %v4719_v50  ;;  %3163 = vmatpush.bf16.msrb.mxu3 %v4992_v51 }
  0x6a   : > { %v4975_v55 = vld [vmem:[%s6639_s23 + $0x7c0] sm:$0xf]  ;;  %v6027_v56 = vld [vmem:[%s6639_s23 + $0x7cc] sm:$0xf0]  ;;  %v4848_v60 = vor.u32 %v5995_v54, %v4847_v53  ;;  %3125 = vmatpush.bf16.msrb.mxu0 %v4592_v57 }
  0x6b   : > { %v4575_v58 = vld [vmem:[%s6639_s23 + $0x4a0] sm:$0xf]  ;;  %v5927_v61 = vld [vmem:[%s6639_s23 + $0x4ac] sm:$0xf0]  ;;  %v4976_v0 = vor.u32 %v6027_v56, %v4975_v55  ;;  %3138 = vmatpush.bf16.msrb.mxu1 %v4720_v59 }
  0x6c   : > { %v4703_v62 = vld [vmem:[%s6639_s23 + $0x5a0] sm:$0xf]  ;;  %v5959_v1 = vld [vmem:[%s6639_s23 + $0x5ac] sm:$0xf0]  ;;  %v4576_v8 = vor.u32 %v5927_v61, %v4575_v58  ;;  %3151 = vmatpush.bf16.msrb.mxu2 %v4848_v60 }
  0x6d   : > { %v4831_v2 = vld [vmem:[%s6639_s23 + $0x6a0] sm:$0xf]  ;;  %v5991_v3 = vld [vmem:[%s6639_s23 + $0x6ac] sm:$0xf0]  ;;  %v4704_v12 = vor.u32 %v5959_v1, %v4703_v62  ;;  %3164 = vmatpush.bf16.msrb.mxu3 %v4976_v0 }
  0x6e   : > { %v4959_v6 = vld [vmem:[%s6639_s23 + $0x7a0] sm:$0xf]  ;;  %v6023_v7 = vld [vmem:[%s6639_s23 + $0x7ac] sm:$0xf0]  ;;  %v4832_v13 = vor.u32 %v5991_v3, %v4831_v2  ;;  %3126 = vmatpush.bf16.msrb.mxu0 %v4576_v8  ;;  %v331_v8 = vld [vmem:[%s6660_s10 + $0x18] sm:$0xff] }
  0x6f   : > { %v328_v10 = vld [vmem:[%s6660_s10] sm:$0xff]  ;;  %v5923_v15 = vld [vmem:[%s6639_s23 + $0x48c] sm:$0xf0]  ;;  %v4960_v19 = vor.u32 %v6023_v7, %v4959_v6  ;;  %3139 = vmatpush.bf16.msrb.mxu1 %v4704_v12 }
  0x70   : > { %v4559_v14 = vld [vmem:[%s6639_s23 + $0x480] sm:$0xf]  ;;  %v790_v17 = vunpack.c.l.b16 %v328_v10  ;;  %v791_v18 = vunpack.c.h.b16 %v328_v10  ;;  %v5955_v20 = vld [vmem:[%s6639_s23 + $0x58c] sm:$0xf0]  ;;  %3152 = vmatpush.bf16.msrb.mxu2 %v4832_v13 }
  0x71   : > { %v4687_v16 = vld [vmem:[%s6639_s23 + $0x580] sm:$0xf]  ;;  %v5987_v22 = vld [vmem:[%s6639_s23 + $0x68c] sm:$0xf0]  ;;  %v4560_v27 = vor.u32 %v5923_v15, %v4559_v14  ;;  %3165 = vmatpush.bf16.msrb.mxu3 %v4960_v19 }
  0x72   : > { %v4815_v21 = vld [vmem:[%s6639_s23 + $0x680] sm:$0xf]  ;;  %v6019_v24 = vld [vmem:[%s6639_s23 + $0x78c] sm:$0xf0]  ;;  %v6770_v25 = vpack.c.b16 %v790_v17, %v790_v17  ;;  %v6773_v26 = vpack.c.b16 %v791_v18, %v791_v18  ;;  %v4688_v28 = vor.u32 %v5955_v20, %v4687_v16 }
  0x73   : > { %v4943_v23 = vld [vmem:[%s6639_s23 + $0x780] sm:$0xf]  ;;  %v4816_v29 = vor.u32 %v5987_v22, %v4815_v21  ;;  %v5919_v31 = vld [vmem:[%s6639_s23 + $0x46c] sm:$0xf0]  ;;  %3127 = vmatpush.bf16.msrb.mxu0 %v4560_v27  ;;  %v796_v22 = vunpack.c.l.b16 %v331_v8 }
  0x74   : > { %v4543_v30 = vld [vmem:[%s6639_s23 + $0x460] sm:$0xf]  ;;  %v4944_v33 = vor.u32 %v6019_v24, %v4943_v23  ;;  %v5951_v34 = vld [vmem:[%s6639_s23 + $0x56c] sm:$0xf0]  ;;  %3080 = vmatmul.bf16.vlgmr.msra.gmra.mxu0 %v6770_v25  ;;  %3093 = vmatmul.bf16.vlgmr.msra.gmra.mxu1 %v6773_v26 }
  0x75   : > { %v4671_v32 = vld [vmem:[%s6639_s23 + $0x560] sm:$0xf]  ;;  %v5983_v36 = vld [vmem:[%s6639_s23 + $0x66c] sm:$0xf0]  ;;  %v4544_v39 = vor.u32 %v5919_v31, %v4543_v30  ;;  %3140 = vmatpush.bf16.msrb.mxu1 %v4688_v28  ;;  %3153 = vmatpush.bf16.msrb.mxu2 %v4816_v29  ;;  %v797_v30 = vunpack.c.h.b16 %v331_v8 }
  0x76   : > { %v4799_v35 = vld [vmem:[%s6639_s23 + $0x660] sm:$0xf]  ;;  %v6015_v38 = vld [vmem:[%s6639_s23 + $0x76c] sm:$0xf0]  ;;  %v4672_v40 = vor.u32 %v5951_v34, %v4671_v32  ;;  %3166 = vmatpush.bf16.msrb.mxu3 %v4944_v33 }
  0x77   : > { %v4927_v37 = vld [vmem:[%s6639_s23 + $0x760] sm:$0xf]  ;;  %v4800_v41 = vor.u32 %v5983_v36, %v4799_v35  ;;  %v5915_v43 = vld [vmem:[%s6639_s23 + $0x44c] sm:$0xf0]  ;;  %3128 = vmatpush.bf16.msrb.mxu0 %v4544_v39 }
  0x78   : > { %v4527_v42 = vld [vmem:[%s6639_s23 + $0x440] sm:$0xf]  ;;  %v4928_v45 = vor.u32 %v6015_v38, %v4927_v37  ;;  %v5947_v46 = vld [vmem:[%s6639_s23 + $0x54c] sm:$0xf0] }
  0x79   : > { %v4655_v44 = vld [vmem:[%s6639_s23 + $0x540] sm:$0xf]  ;;  %v5979_v48 = vld [vmem:[%s6639_s23 + $0x64c] sm:$0xf0]  ;;  %v4528_v51 = vor.u32 %v5915_v43, %v4527_v42  ;;  %3141 = vmatpush.bf16.msrb.mxu1 %v4672_v40  ;;  %3154 = vmatpush.bf16.msrb.mxu2 %v4800_v41  ;;  %v6825_v43 = vpack.c.b16 %v796_v22, %v796_v22 }
  0x7a   : > { %v4783_v47 = vld [vmem:[%s6639_s23 + $0x640] sm:$0xf]  ;;  %v6011_v50 = vld [vmem:[%s6639_s23 + $0x74c] sm:$0xf0]  ;;  %v4656_v52 = vor.u32 %v5947_v46, %v4655_v44  ;;  %3167 = vmatpush.bf16.msrb.mxu3 %v4928_v45 }
  0x7b   : > { %v4911_v49 = vld [vmem:[%s6639_s23 + $0x740] sm:$0xf]  ;;  %v4784_v53 = vor.u32 %v5979_v48, %v4783_v47  ;;  %v5911_v55 = vld [vmem:[%s6639_s23 + $0x42c] sm:$0xf0]  ;;  %3129 = vmatpush.bf16.msrb.mxu0 %v4528_v51  ;;  %v6831_v47 = vpack.c.b16 %v797_v30, %v797_v30 }
  0x7c   : > { %v4511_v54 = vld [vmem:[%s6639_s23 + $0x420] sm:$0xf]  ;;  %v4912_v57 = vor.u32 %v6011_v50, %v4911_v49  ;;  %v5943_v58 = vld [vmem:[%s6639_s23 + $0x52c] sm:$0xf0] }
  0x7d   : > { %v4639_v56 = vld [vmem:[%s6639_s23 + $0x520] sm:$0xf]  ;;  %v5975_v60 = vld [vmem:[%s6639_s23 + $0x62c] sm:$0xf0]  ;;  %v4512_v0 = vor.u32 %v5911_v55, %v4511_v54  ;;  %3142 = vmatpush.bf16.msrb.mxu1 %v4656_v52  ;;  %3155 = vmatpush.bf16.msrb.mxu2 %v4784_v53 }
  0x7e   : > { %v4767_v59 = vld [vmem:[%s6639_s23 + $0x620] sm:$0xf]  ;;  %v6007_v62 = vld [vmem:[%s6639_s23 + $0x72c] sm:$0xf0]  ;;  %v4640_v4 = vor.u32 %v5943_v58, %v4639_v56  ;;  %3168 = vmatpush.bf16.msrb.mxu3 %v4912_v57 }
  0x7f   : > { %v4895_v61 = vld [vmem:[%s6639_s23 + $0x720] sm:$0xf]  ;;  %v5907_v1 = vld [vmem:[%s6639_s23 + $0x40c] sm:$0xf0]  ;;  %v4768_v5 = vor.u32 %v5975_v60, %v4767_v59  ;;  %3130 = vmatpush.bf16.msrb.mxu0 %v4512_v0 }
  0x80   : > { %v4495_v63 = vld [vmem:[%s6639_s23 + $0x400] sm:$0xf]  ;;  %v5939_v3 = vld [vmem:[%s6639_s23 + $0x50c] sm:$0xf0]  ;;  %v4896_v10 = vor.u32 %v6007_v62, %v4895_v61 }
  0x81   : > { %v4623_v2 = vld [vmem:[%s6639_s23 + $0x500] sm:$0xf]  ;;  %v5971_v7 = vld [vmem:[%s6639_s23 + $0x60c] sm:$0xf0]  ;;  %v4496_v18 = vor.u32 %v5907_v1, %v4495_v63  ;;  %3143 = vmatpush.bf16.msrb.mxu1 %v4640_v4  ;;  %3156 = vmatpush.bf16.msrb.mxu2 %v4768_v5 }
  0x82   : > { %v4751_v6 = vld [vmem:[%s6639_s23 + $0x600] sm:$0xf]  ;;  %v6003_v13 = vld [vmem:[%s6639_s23 + $0x70c] sm:$0xf0]  ;;  %v4624_v23 = vor.u32 %v5939_v3, %v4623_v2  ;;  %3169 = vmatpush.bf16.msrb.mxu3 %v4896_v10 }
  0x83   : > { %v4879_v12 = vld [vmem:[%s6639_s23 + $0x700] sm:$0xf]  ;;  %v330_v14 = vld [vmem:[%s6660_s10 + $0x10] sm:$0xff]  ;;  %v4752_v24 = vor.u32 %v5971_v7, %v4751_v6  ;;  %3131 = vmatpush.bf16.msrb.mxu0 %v4496_v18 }
  0x84   : > { %v5119_v15 = vld [vmem:[%s6639_s23 + $0x8e0] sm:$0xf]  ;;  %v6063_v16 = vld [vmem:[%s6639_s23 + $0x8ec] sm:$0xf0]  ;;  %v794_v29 = vunpack.c.l.b16 %v330_v14  ;;  %v4880_v31 = vor.u32 %v6003_v13, %v4879_v12  ;;  %v795_v33 = vunpack.c.h.b16 %v330_v14 }
  0x85   : > { %v5247_v17 = vld [vmem:[%s6639_s23 + $0x9e0] sm:$0xf]  ;;  %v6095_v19 = vld [vmem:[%s6639_s23 + $0x9ec] sm:$0xf0]  ;;  %v5120_v32 = vor.u32 %v6063_v16, %v5119_v15  ;;  %3144 = vmatpush.bf16.msrb.mxu1 %v4624_v23  ;;  %3157 = vmatpush.bf16.msrb.mxu2 %v4752_v24 }
  0x86   : > { %v5375_v20 = vld [vmem:[%s6639_s23 + $0xae0] sm:$0xf]  ;;  %v6127_v21 = vld [vmem:[%s6639_s23 + $0xaec] sm:$0xf0]  ;;  %v5248_v34 = vor.u32 %v6095_v19, %v5247_v17  ;;  %v6829_v46 = vpack.c.b16 %v794_v29, %v794_v29  ;;  %3170 = vmatpush.bf16.msrb.mxu3 %v4880_v31  ;;  %v6833_v49 = vpack.c.b16 %v795_v33, %v795_v33 }
  0x87   : > { %v5503_v27 = vld [vmem:[%s6639_s23 + $0xbe0] sm:$0xf]  ;;  %v6159_v28 = vld [vmem:[%s6639_s23 + $0xbec] sm:$0xf0]  ;;  %v5376_v35 = vor.u32 %v6127_v21, %v5375_v20  ;;  %3176 = vmatpush.bf16.msra.mxu0 %v5120_v32 }
  0x88   : > { %v5103_v36 = vld [vmem:[%s6639_s23 + $0x8c0] sm:$0xf]  ;;  %v6059_v37 = vld [vmem:[%s6639_s23 + $0x8cc] sm:$0xf0]  ;;  %v5504_v39 = vor.u32 %v6159_v28, %v5503_v27  ;;  %3158 = vmatmul.bf16.vlgmr.msrb.gmra.mxu2 %v6825_v43  ;;  %3132 = vmatmul.bf16.vlgmr.msrb.gmra.mxu0 %v6829_v46 }
  0x89   : > { %v5231_v38 = vld [vmem:[%s6639_s23 + $0x9c0] sm:$0xf]  ;;  %v6091_v40 = vld [vmem:[%s6639_s23 + $0x9cc] sm:$0xf0]  ;;  %v5104_v48 = vor.u32 %v6059_v37, %v5103_v36  ;;  %3189 = vmatpush.bf16.msra.mxu1 %v5248_v34  ;;  %3202 = vmatpush.bf16.msra.mxu2 %v5376_v35 }
  0x8a   : > { %v5359_v41 = vld [vmem:[%s6639_s23 + $0xac0] sm:$0xf]  ;;  %v6123_v42 = vld [vmem:[%s6639_s23 + $0xacc] sm:$0xf0]  ;;  %v5232_v50 = vor.u32 %v6091_v40, %v5231_v38  ;;  %3215 = vmatpush.bf16.msra.mxu3 %v5504_v39  ;;  %3145 = vmatmul.bf16.vlgmr.msrb.gmra.mxu1 %v6833_v49 }
  0x8b   : > { %v5487_v44 = vld [vmem:[%s6639_s23 + $0xbc0] sm:$0xf]  ;;  %v6155_v45 = vld [vmem:[%s6639_s23 + $0xbcc] sm:$0xf0]  ;;  %v5360_v51 = vor.u32 %v6123_v42, %v5359_v41  ;;  %3171 = vmatmul.bf16.vlgmr.msrb.gmra.mxu3 %v6831_v47  ;;  %3177 = vmatpush.bf16.msra.mxu0 %v5104_v48 }
  0x8c   : > { %v5087_v52 = vld [vmem:[%s6639_s23 + $0x8a0] sm:$0xf]  ;;  %v6055_v53 = vld [vmem:[%s6639_s23 + $0x8ac] sm:$0xf0]  ;;  %v5488_v55 = vor.u32 %v6155_v45, %v5487_v44 }
  0x8d   : > { %v5215_v54 = vld [vmem:[%s6639_s23 + $0x9a0] sm:$0xf]  ;;  %v6087_v56 = vld [vmem:[%s6639_s23 + $0x9ac] sm:$0xf0]  ;;  %v5088_v61 = vor.u32 %v6055_v53, %v5087_v52  ;;  %3190 = vmatpush.bf16.msra.mxu1 %v5232_v50  ;;  %3203 = vmatpush.bf16.msra.mxu2 %v5360_v51 }
  0x8e   : > { %v5343_v57 = vld [vmem:[%s6639_s23 + $0xaa0] sm:$0xf]  ;;  %v6119_v58 = vld [vmem:[%s6639_s23 + $0xaac] sm:$0xf0]  ;;  %v5216_v62 = vor.u32 %v6087_v56, %v5215_v54  ;;  %3216 = vmatpush.bf16.msra.mxu3 %v5488_v55 }
  0x8f   : > { %v5471_v59 = vld [vmem:[%s6639_s23 + $0xba0] sm:$0xf]  ;;  %v6151_v60 = vld [vmem:[%s6639_s23 + $0xbac] sm:$0xf0]  ;;  %v5344_v63 = vor.u32 %v6119_v58, %v5343_v57  ;;  %3178 = vmatpush.bf16.msra.mxu0 %v5088_v61 }
  0x90   : > { %v5071_v0 = vld [vmem:[%s6639_s23 + $0x880] sm:$0xf]  ;;  %v6051_v1 = vld [vmem:[%s6639_s23 + $0x88c] sm:$0xf0]  ;;  %v5472_v3 = vor.u32 %v6151_v60, %v5471_v59 }
  0x91   : > { %v5199_v2 = vld [vmem:[%s6639_s23 + $0x980] sm:$0xf]  ;;  %v6083_v4 = vld [vmem:[%s6639_s23 + $0x98c] sm:$0xf0]  ;;  %v5072_v10 = vor.u32 %v6051_v1, %v5071_v0  ;;  %3191 = vmatpush.bf16.msra.mxu1 %v5216_v62  ;;  %3204 = vmatpush.bf16.msra.mxu2 %v5344_v63 }
  0x92   : > { %v5327_v5 = vld [vmem:[%s6639_s23 + $0xa80] sm:$0xf]  ;;  %v6115_v6 = vld [vmem:[%s6639_s23 + $0xa8c] sm:$0xf0]  ;;  %v5200_v12 = vor.u32 %v6083_v4, %v5199_v2  ;;  %3217 = vmatpush.bf16.msra.mxu3 %v5472_v3  ;;  %v333_v2 = vld [vmem:[%s6660_s10 + $0x28] sm:$0xff] }
  0x93   : > { %v5455_v7 = vld [vmem:[%s6639_s23 + $0xb80] sm:$0xf]  ;;  %v6147_v8 = vld [vmem:[%s6639_s23 + $0xb8c] sm:$0xf0]  ;;  %v5328_v13 = vor.u32 %v6115_v6, %v5327_v5  ;;  %3179 = vmatpush.bf16.msra.mxu0 %v5072_v10  ;;  %v4097_v10 = vld [vmem:[%s6639_s23 + $0xf0] sm:$0xf0] }
  0x94   : > { %v5055_v14 = vld [vmem:[%s6639_s23 + $0x860] sm:$0xf]  ;;  %v6047_v15 = vld [vmem:[%s6639_s23 + $0x86c] sm:$0xf0]  ;;  %v5456_v17 = vor.u32 %v6147_v8, %v5455_v7  ;;  %v5805_v8 = vld [vmem:[%s6639_s23 + $0xe4] sm:$0xf] }
  0x95   : > { %v5183_v16 = vld [vmem:[%s6639_s23 + $0x960] sm:$0xf]  ;;  %v6079_v18 = vld [vmem:[%s6639_s23 + $0x96c] sm:$0xf0]  ;;  %v5056_v23 = vor.u32 %v6047_v15, %v5055_v14  ;;  %3192 = vmatpush.bf16.msra.mxu1 %v5200_v12  ;;  %3205 = vmatpush.bf16.msra.mxu2 %v5328_v13  ;;  %v5837_v15 = vld [vmem:[%s6639_s23 + $0x1e4] sm:$0xf] }
  0x96   : > { %v5311_v19 = vld [vmem:[%s6639_s23 + $0xa60] sm:$0xf]  ;;  %v6111_v20 = vld [vmem:[%s6639_s23 + $0xa6c] sm:$0xf0]  ;;  %v5184_v24 = vor.u32 %v6079_v18, %v5183_v16  ;;  %3218 = vmatpush.bf16.msra.mxu3 %v5456_v17  ;;  %v4225_v16 = vld [vmem:[%s6639_s23 + $0x1f0] sm:$0xf0]  ;;  %v800_v17 = vunpack.c.l.b16 %v333_v2 }
  0x97   : > { %v5439_v21 = vld [vmem:[%s6639_s23 + $0xb60] sm:$0xf]  ;;  %v6143_v22 = vld [vmem:[%s6639_s23 + $0xb6c] sm:$0xf0]  ;;  %v5312_v27 = vor.u32 %v6111_v20, %v5311_v19  ;;  %3180 = vmatpush.bf16.msra.mxu0 %v5056_v23  ;;  %v4100_v23 = vor.u32 %v5805_v8, %v4097_v10 }
  0x98   : > { %v5039_v28 = vld [vmem:[%s6639_s23 + $0x840] sm:$0xf]  ;;  %v6043_v29 = vld [vmem:[%s6639_s23 + $0x84c] sm:$0xf0]  ;;  %v5440_v31 = vor.u32 %v6143_v22, %v5439_v21  ;;  %v801_v21 = vunpack.c.h.b16 %v333_v2  ;;  %v4177_v2 = vld [vmem:[%s6639_s23 + $0x190] sm:$0xf0] }
  0x99   : > { %v5167_v30 = vld [vmem:[%s6639_s23 + $0x940] sm:$0xf]  ;;  %v6075_v32 = vld [vmem:[%s6639_s23 + $0x94c] sm:$0xf0]  ;;  %v5040_v37 = vor.u32 %v6043_v29, %v5039_v28  ;;  %3193 = vmatpush.bf16.msra.mxu1 %v5184_v24  ;;  %3206 = vmatpush.bf16.msra.mxu2 %v5312_v27  ;;  %v4228_v29 = vor.u32 %v5837_v15, %v4225_v16  ;;  %v5821_v15 = vld [vmem:[%s6639_s23 + $0x164] sm:$0xf] }
  0x9a   : > { %v5295_v33 = vld [vmem:[%s6639_s23 + $0xa40] sm:$0xf]  ;;  %v6107_v34 = vld [vmem:[%s6639_s23 + $0xa4c] sm:$0xf0]  ;;  %v5168_v38 = vor.u32 %v6075_v32, %v5167_v30  ;;  %3219 = vmatpush.bf16.msra.mxu3 %v5440_v31  ;;  %v5801_v32 = vld [vmem:[%s6639_s23 + $0xc4] sm:$0xf] }
  0x9b   : > { %v5423_v35 = vld [vmem:[%s6639_s23 + $0xb40] sm:$0xf]  ;;  %v6139_v36 = vld [vmem:[%s6639_s23 + $0xb4c] sm:$0xf0]  ;;  %v5296_v39 = vor.u32 %v6107_v34, %v5295_v33  ;;  %3181 = vmatpush.bf16.msra.mxu0 %v5040_v37  ;;  %v4081_v33 = vld [vmem:[%s6639_s23 + $0xd0] sm:$0xf0]  ;;  %v6905_v34 = vpack.c.b16 %v800_v17, %v800_v17 }
  0x9c   : > { %v5023_v40 = vld [vmem:[%s6639_s23 + $0x820] sm:$0xf]  ;;  %v6039_v41 = vld [vmem:[%s6639_s23 + $0x82c] sm:$0xf0]  ;;  %v5424_v44 = vor.u32 %v6139_v36, %v5423_v35  ;;  %v5833_v36 = vld [vmem:[%s6639_s23 + $0x1c4] sm:$0xf] }
  0x9d   : > { %v5151_v42 = vld [vmem:[%s6639_s23 + $0x920] sm:$0xf]  ;;  %v6071_v45 = vld [vmem:[%s6639_s23 + $0x92c] sm:$0xf0]  ;;  %v5024_v54 = vor.u32 %v6039_v41, %v5023_v40  ;;  %3194 = vmatpush.bf16.msra.mxu1 %v5168_v38  ;;  %3207 = vmatpush.bf16.msra.mxu2 %v5296_v39  ;;  %v4209_v37 = vld [vmem:[%s6639_s23 + $0x1d0] sm:$0xf0]  ;;  %v6911_v38 = vpack.c.b16 %v801_v21, %v801_v21  ;;  %v4084_v41 = vor.u32 %v5801_v32, %v4081_v33 }
  0x9e   : > { %v5279_v48 = vld [vmem:[%s6639_s23 + $0xa20] sm:$0xf]  ;;  %v6103_v50 = vld [vmem:[%s6639_s23 + $0xa2c] sm:$0xf0]  ;;  %v5152_v58 = vor.u32 %v6071_v45, %v5151_v42  ;;  %3220 = vmatpush.bf16.msra.mxu3 %v5424_v44  ;;  %v4161_v16 = vld [vmem:[%s6639_s23 + $0x170] sm:$0xf0] }
  0x9f   : > { %v5407_v51 = vld [vmem:[%s6639_s23 + $0xb20] sm:$0xf]  ;;  %v6135_v52 = vld [vmem:[%s6639_s23 + $0xb2c] sm:$0xf0]  ;;  %v5280_v59 = vor.u32 %v6103_v50, %v5279_v48  ;;  %3182 = vmatpush.bf16.msra.mxu0 %v5024_v54  ;;  %v4212_v48 = vor.u32 %v5833_v36, %v4209_v37  ;;  %v4193_v54 = vld [vmem:[%s6639_s23 + $0x1b0] sm:$0xf0] }
  0xa0   : > { %v5007_v53 = vld [vmem:[%s6639_s23 + $0x800] sm:$0xf]  ;;  %v6035_v55 = vld [vmem:[%s6639_s23 + $0x80c] sm:$0xf0]  ;;  %v5408_v63 = vor.u32 %v6135_v52, %v5407_v51  ;;  %v5797_v51 = vld [vmem:[%s6639_s23 + $0xa4] sm:$0xf] }
  0xa1   : > { %v5135_v56 = vld [vmem:[%s6639_s23 + $0x900] sm:$0xf]  ;;  %v6067_v57 = vld [vmem:[%s6639_s23 + $0x90c] sm:$0xf0]  ;;  %v5008_v6 = vor.u32 %v6035_v55, %v5007_v53  ;;  %3195 = vmatpush.bf16.msra.mxu1 %v5152_v58  ;;  %3208 = vmatpush.bf16.msra.mxu2 %v5280_v59  ;;  %v4065_v52 = vld [vmem:[%s6639_s23 + $0xb0] sm:$0xf0] }
  0xa2   : > { %v5263_v60 = vld [vmem:[%s6639_s23 + $0xa00] sm:$0xf]  ;;  %v6099_v61 = vld [vmem:[%s6639_s23 + $0xa0c] sm:$0xf0]  ;;  %v5136_v13 = vor.u32 %v6067_v57, %v5135_v56  ;;  %3221 = vmatpush.bf16.msra.mxu3 %v5408_v63  ;;  %v5829_v53 = vld [vmem:[%s6639_s23 + $0x1a4] sm:$0xf]  ;;  %v4068_v57 = vor.u32 %v5797_v51, %v4065_v52 }
  0xa3   : > { %v332_v62 = vld [vmem:[%s6660_s10 + $0x20] sm:$0xff]  ;;  %v6131_v1 = vld [vmem:[%s6639_s23 + $0xb0c] sm:$0xf0]  ;;  %v5264_v14 = vor.u32 %v6099_v61, %v5263_v60  ;;  %3183 = vmatpush.bf16.msra.mxu0 %v5008_v6  ;;  %v4196_v61 = vor.u32 %v5829_v53, %v4193_v54 }
  0xa4   : > { %v5391_v0 = vld [vmem:[%s6639_s23 + $0xb00] sm:$0xf]  ;;  %v6191_v4 = vld [vmem:[%s6639_s23 + $0xcec] sm:$0xf0]  ;;  %v798_v12 = vunpack.c.l.b16 %v332_v62  ;;  %v799_v18 = vunpack.c.h.b16 %v332_v62  ;;  %v5793_v63 = vld [vmem:[%s6639_s23 + $0x84] sm:$0xf] }
  0xa5   : > { %v5631_v3 = vld [vmem:[%s6639_s23 + $0xce0] sm:$0xf]  ;;  %v6223_v7 = vld [vmem:[%s6639_s23 + $0xdec] sm:$0xf0]  ;;  %v5392_v19 = vor.u32 %v6131_v1, %v5391_v0  ;;  %3196 = vmatpush.bf16.msra.mxu1 %v5136_v13  ;;  %3209 = vmatpush.bf16.msra.mxu2 %v5264_v14  ;;  %v4049_v0 = vld [vmem:[%s6639_s23 + $0x90] sm:$0xf0] }
  0xa6   : > { %v5759_v5 = vld [vmem:[%s6639_s23 + $0xde0] sm:$0xf]  ;;  %v5632_v20 = vor.u32 %v6191_v4, %v5631_v3  ;;  %v6187_v27 = vld [vmem:[%s6639_s23 + $0xccc] sm:$0xf0]  ;;  %v6900_v30 = vpack.c.b16 %v798_v12, %v798_v12  ;;  %v6907_v35 = vpack.c.b16 %v799_v18, %v799_v18  ;;  %v5825_v1 = vld [vmem:[%s6639_s23 + $0x184] sm:$0xf] }
  0xa7   : > { %v5760_v22 = vor.u32 %v6223_v7, %v5759_v5  ;;  %v5615_v24 = vld [vmem:[%s6639_s23 + $0xcc0] sm:$0xf]  ;;  %v6219_v31 = vld [vmem:[%s6639_s23 + $0xdcc] sm:$0xf0]  ;;  %3222 = vmatpush.bf16.msra.mxu3 %v5392_v19  ;;  %v4052_v5 = vor.u32 %v5793_v63, %v4049_v0  ;;  %v4180_v10 = vor.u32 %v5825_v1, %v4177_v2  ;;  %v5789_v13 = vld [vmem:[%s6639_s23 + $0x64] sm:$0xf] }
  0xa8   : > { %v5743_v28 = vld [vmem:[%s6639_s23 + $0xdc0] sm:$0xf]  ;;  %3228 = vmatpush.bf16.msrb.mxu0 %v5632_v20  ;;  %v5616_v39 = vor.u32 %v6187_v27, %v5615_v24  ;;  %v6183_v44 = vld [vmem:[%s6639_s23 + $0xcac] sm:$0xf0]  ;;  %3210 = vmatmul.bf16.vlgmr.msra.gmra.mxu2 %v6905_v34  ;;  %v4033_v14 = vld [vmem:[%s6639_s23 + $0x70] sm:$0xf0] }
  0xa9   : > { %3241 = vmatpush.bf16.msrb.mxu1 %v5760_v22  ;;  %3254 = vmatpush.bf16.msrb.mxu2 %v4100_v23  ;;  %v5744_v40 = vor.u32 %v6219_v31, %v5743_v28  ;;  %v5599_v42 = vld [vmem:[%s6639_s23 + $0xca0] sm:$0xf]  ;;  %v6215_v50 = vld [vmem:[%s6639_s23 + $0xdac] sm:$0xf0]  ;;  %v4036_v19 = vor.u32 %v5789_v13, %v4033_v14  ;;  %v4164_v23 = vor.u32 %v5821_v15, %v4161_v16  ;;  %v5785_v27 = vld [vmem:[%s6639_s23 + $0x44] sm:$0xf] }
  0xaa   : > { %v5727_v45 = vld [vmem:[%s6639_s23 + $0xda0] sm:$0xf]  ;;  %3184 = vmatmul.bf16.vlgmr.msra.gmra.mxu0 %v6900_v30  ;;  %3197 = vmatmul.bf16.vlgmr.msra.gmra.mxu1 %v6907_v35  ;;  %v5600_v55 = vor.u32 %v6183_v44, %v5599_v42  ;;  %v6179_v59 = vld [vmem:[%s6639_s23 + $0xc8c] sm:$0xf0]  ;;  %v4017_v28 = vld [vmem:[%s6639_s23 + $0x50] sm:$0xf0] }
  0xab   : > { %3267 = vmatpush.bf16.msrb.mxu3 %v4228_v29  ;;  %v5728_v56 = vor.u32 %v6215_v50, %v5727_v45  ;;  %v5583_v58 = vld [vmem:[%s6639_s23 + $0xc80] sm:$0xf]  ;;  %v6211_v62 = vld [vmem:[%s6639_s23 + $0xd8c] sm:$0xf0]  ;;  %v5817_v29 = vld [vmem:[%s6639_s23 + $0x144] sm:$0xf]  ;;  %v4020_v36 = vor.u32 %v5785_v27, %v4017_v28 }
  0xac   : > { %3223 = vmatmul.bf16.vlgmr.msra.gmra.mxu3 %v6911_v38  ;;  %3229 = vmatpush.bf16.msrb.mxu0 %v5616_v39  ;;  %v5711_v60 = vld [vmem:[%s6639_s23 + $0xd80] sm:$0xf]  ;;  %v5584_v3 = vor.u32 %v6179_v59, %v5583_v58  ;;  %v6175_v7 = vld [vmem:[%s6639_s23 + $0xc6c] sm:$0xf0]  ;;  %v4145_v31 = vld [vmem:[%s6639_s23 + $0x150] sm:$0xf0] }
  0xad   : > { %3242 = vmatpush.bf16.msrb.mxu1 %v5744_v40  ;;  %3255 = vmatpush.bf16.msrb.mxu2 %v4084_v41  ;;  %v5712_v4 = vor.u32 %v6211_v62, %v5711_v60  ;;  %v5567_v6 = vld [vmem:[%s6639_s23 + $0xc60] sm:$0xf]  ;;  %v6207_v12 = vld [vmem:[%s6639_s23 + $0xd6c] sm:$0xf0]  ;;  %v4148_v41 = vor.u32 %v5817_v29, %v4145_v31  ;;  %v5781_v44 = vld [vmem:[%s6639_s23 + $0x24] sm:$0xf] }
  0xae   : > { %v5695_v8 = vld [vmem:[%s6639_s23 + $0xd60] sm:$0xf]  ;;  %v5568_v17 = vor.u32 %v6175_v7, %v5567_v6  ;;  %v6171_v21 = vld [vmem:[%s6639_s23 + $0xc4c] sm:$0xf0]  ;;  %v4001_v45 = vld [vmem:[%s6639_s23 + $0x30] sm:$0xf0] }
  0xaf   : > { %3268 = vmatpush.bf16.msrb.mxu3 %v4212_v48  ;;  %v5696_v18 = vor.u32 %v6207_v12, %v5695_v8  ;;  %v5551_v20 = vld [vmem:[%s6639_s23 + $0xc40] sm:$0xf]  ;;  %v6203_v24 = vld [vmem:[%s6639_s23 + $0xd4c] sm:$0xf0]  ;;  %v5813_v48 = vld [vmem:[%s6639_s23 + $0x124] sm:$0xf] }
  0xb0   : > { %3230 = vmatpush.bf16.msrb.mxu0 %v5600_v55  ;;  %v5679_v22 = vld [vmem:[%s6639_s23 + $0xd40] sm:$0xf]  ;;  %v5552_v32 = vor.u32 %v6171_v21, %v5551_v20  ;;  %v6167_v39 = vld [vmem:[%s6639_s23 + $0xc2c] sm:$0xf0]  ;;  %v4129_v50 = vld [vmem:[%s6639_s23 + $0x130] sm:$0xf0] }
  0xb1   : > { %3243 = vmatpush.bf16.msrb.mxu1 %v5728_v56  ;;  %3256 = vmatpush.bf16.msrb.mxu2 %v4068_v57  ;;  %v5680_v33 = vor.u32 %v6203_v24, %v5679_v22  ;;  %v5535_v37 = vld [vmem:[%s6639_s23 + $0xc20] sm:$0xf]  ;;  %v6199_v42 = vld [vmem:[%s6639_s23 + $0xd2c] sm:$0xf0]  ;;  %v4004_v56 = vor.u32 %v5781_v44, %v4001_v45  ;;  %v5777_v58 = vld [vmem:[%s6639_s23 + $0x4] sm:$0xf]  ;;  %v4132_v60 = vor.u32 %v5813_v48, %v4129_v50 }
  0xb2   : > { %v5663_v40 = vld [vmem:[%s6639_s23 + $0xd20] sm:$0xf]  ;;  %v5536_v51 = vor.u32 %v6167_v39, %v5535_v37  ;;  %v6163_v53 = vld [vmem:[%s6639_s23 + $0xc0c] sm:$0xf0]  ;;  %v5809_v62 = vld [vmem:[%s6639_s23 + $0x104] sm:$0xf] }
  0xb3   : > { %3269 = vmatpush.bf16.msrb.mxu3 %v4196_v61  ;;  %v5519_v52 = vld [vmem:[%s6639_s23 + $0xc00] sm:$0xf]  ;;  %v5664_v55 = vor.u32 %v6199_v42, %v5663_v40  ;;  %v6195_v57 = vld [vmem:[%s6639_s23 + $0xd0c] sm:$0xf0]  ;;  %v3985_v61 = vld [vmem:[%s6639_s23 + $0x10] sm:$0xf0] }
  0xb4   : > { %3231 = vmatpush.bf16.msrb.mxu0 %v5584_v3  ;;  %v5647_v54 = vld [vmem:[%s6639_s23 + $0xd00] sm:$0xf]  ;;  %v334_v59 = vld [vmem:[%s6660_s10 + $0x30] sm:$0xff]  ;;  %v5869_v0 = vld [vmem:[%s6639_s23 + $0x2e4] sm:$0xf]  ;;  %v5520_v3 = vor.u32 %v6163_v53, %v5519_v52 }
  0xb5   : > { %3244 = vmatpush.bf16.msrb.mxu1 %v5712_v4  ;;  %3257 = vmatpush.bf16.msrb.mxu2 %v4052_v5  ;;  %v4113_v63 = vld [vmem:[%s6639_s23 + $0x110] sm:$0xf0]  ;;  %v5901_v2 = vld [vmem:[%s6639_s23 + $0x3e4] sm:$0xf]  ;;  %v802_v7 = vunpack.c.l.b16 %v334_v59  ;;  %v5648_v8 = vor.u32 %v6195_v57, %v5647_v54  ;;  %v803_v14 = vunpack.c.h.b16 %v334_v59 }
  0xb6   : > { %v4353_v1 = vld [vmem:[%s6639_s23 + $0x2f0] sm:$0xf0]  ;;  %v5933_v5 = vld [vmem:[%s6639_s23 + $0x4e4] sm:$0xf]  ;;  %v4116_v15 = vor.u32 %v5809_v62, %v4113_v63 }
  0xb7   : > { %3270 = vmatpush.bf16.msrb.mxu3 %v4180_v10  ;;  %v4481_v4 = vld [vmem:[%s6639_s23 + $0x3f0] sm:$0xf0]  ;;  %v3988_v10 = vor.u32 %v5777_v58, %v3985_v61  ;;  %v5965_v12 = vld [vmem:[%s6639_s23 + $0x5e4] sm:$0xf]  ;;  %v4356_v16 = vor.u32 %v5869_v0, %v4353_v1  ;;  %v6982_v29 = vpack.c.b16 %v803_v14, %v803_v14 }
  0xb8   : > { %3232 = vmatpush.bf16.msrb.mxu0 %v5568_v17  ;;  %v4609_v6 = vld [vmem:[%s6639_s23 + $0x4f0] sm:$0xf0]  ;;  %v4484_v17 = vor.u32 %v5901_v2, %v4481_v4  ;;  %v5897_v21 = vld [vmem:[%s6639_s23 + $0x3c4] sm:$0xf] }
  0xb9   : > { %3245 = vmatpush.bf16.msrb.mxu1 %v5696_v18  ;;  %3258 = vmatpush.bf16.msrb.mxu2 %v4036_v19  ;;  %v4737_v13 = vld [vmem:[%s6639_s23 + $0x5f0] sm:$0xf0]  ;;  %v4612_v18 = vor.u32 %v5933_v5, %v4609_v6  ;;  %v5865_v19 = vld [vmem:[%s6639_s23 + $0x2c4] sm:$0xf] }
  0xba   : > { %v4337_v20 = vld [vmem:[%s6639_s23 + $0x2d0] sm:$0xf0]  ;;  %v4740_v22 = vor.u32 %v5965_v12, %v4737_v13  ;;  %v5929_v27 = vld [vmem:[%s6639_s23 + $0x4c4] sm:$0xf] }
  0xbb   : > { %3271 = vmatpush.bf16.msrb.mxu3 %v4164_v23  ;;  %v6977_v23 = vpack.c.b16 %v802_v7, %v802_v7  ;;  %v4465_v24 = vld [vmem:[%s6639_s23 + $0x3d0] sm:$0xf0]  ;;  %v5961_v31 = vld [vmem:[%s6639_s23 + $0x5c4] sm:$0xf] }
  0xbc   : > { %3233 = vmatpush.bf16.msrb.mxu0 %v5552_v32  ;;  %v4593_v28 = vld [vmem:[%s6639_s23 + $0x4d0] sm:$0xf0]  ;;  %v5861_v39 = vld [vmem:[%s6639_s23 + $0x2a4] sm:$0xf] }
  0xbd   : > { %3246 = vmatpush.bf16.msrb.mxu1 %v5680_v33  ;;  %3259 = vmatpush.bf16.msrb.mxu2 %v4020_v36  ;;  %v4721_v32 = vld [vmem:[%s6639_s23 + $0x5d0] sm:$0xf0]  ;;  %v4340_v33 = vor.u32 %v5865_v19, %v4337_v20  ;;  %v4468_v36 = vor.u32 %v5897_v21, %v4465_v24  ;;  %v4596_v37 = vor.u32 %v5929_v27, %v4593_v28  ;;  %v5925_v45 = vld [vmem:[%s6639_s23 + $0x4a4] sm:$0xf] }
  0xbe   : > { %v4321_v40 = vld [vmem:[%s6639_s23 + $0x2b0] sm:$0xf0]  ;;  %v4724_v42 = vor.u32 %v5961_v31, %v4721_v32  ;;  %v5957_v50 = vld [vmem:[%s6639_s23 + $0x5a4] sm:$0xf] }
  0xbf   : > { %3272 = vmatpush.bf16.msrb.mxu3 %v4148_v41  ;;  %v5893_v41 = vld [vmem:[%s6639_s23 + $0x3a4] sm:$0xf]  ;;  %v4449_v44 = vld [vmem:[%s6639_s23 + $0x3b0] sm:$0xf0]  ;;  %v4324_v52 = vor.u32 %v5861_v39, %v4321_v40 }
  0xc0   : > { %3234 = vmatpush.bf16.msrb.mxu0 %v5536_v51  ;;  %v4577_v48 = vld [vmem:[%s6639_s23 + $0x4b0] sm:$0xf0]  ;;  %v4452_v53 = vor.u32 %v5893_v41, %v4449_v44  ;;  %v5889_v57 = vld [vmem:[%s6639_s23 + $0x384] sm:$0xf] }
  0xc1   : > { %3247 = vmatpush.bf16.msrb.mxu1 %v5664_v55  ;;  %3260 = vmatpush.bf16.msrb.mxu2 %v4004_v56  ;;  %v4705_v51 = vld [vmem:[%s6639_s23 + $0x5b0] sm:$0xf0]  ;;  %v4580_v54 = vor.u32 %v5925_v45, %v4577_v48  ;;  %v5857_v55 = vld [vmem:[%s6639_s23 + $0x284] sm:$0xf] }
  0xc2   : > { %v4305_v56 = vld [vmem:[%s6639_s23 + $0x290] sm:$0xf0]  ;;  %v4708_v58 = vor.u32 %v5957_v50, %v4705_v51  ;;  %v5953_v62 = vld [vmem:[%s6639_s23 + $0x584] sm:$0xf] }
  0xc3   : > { %3273 = vmatpush.bf16.msrb.mxu3 %v4132_v60  ;;  %v4433_v59 = vld [vmem:[%s6639_s23 + $0x390] sm:$0xf0]  ;;  %v5921_v60 = vld [vmem:[%s6639_s23 + $0x484] sm:$0xf]  ;;  %v4308_v0 = vor.u32 %v5857_v55, %v4305_v56 }
  0xc4   : > { %3235 = vmatpush.bf16.msrb.mxu0 %v5520_v3  ;;  %v4561_v61 = vld [vmem:[%s6639_s23 + $0x490] sm:$0xf0]  ;;  %v4436_v1 = vor.u32 %v5889_v57, %v4433_v59  ;;  %v5853_v3 = vld [vmem:[%s6639_s23 + $0x264] sm:$0xf] }
  0xc5   : > { %3248 = vmatpush.bf16.msrb.mxu1 %v5648_v8  ;;  %3261 = vmatpush.bf16.msrb.mxu2 %v3988_v10  ;;  %v4689_v63 = vld [vmem:[%s6639_s23 + $0x590] sm:$0xf0]  ;;  %v4564_v2 = vor.u32 %v5921_v60, %v4561_v61  ;;  %v5885_v5 = vld [vmem:[%s6639_s23 + $0x364] sm:$0xf] }
  0xc6   : > { %v4289_v4 = vld [vmem:[%s6639_s23 + $0x270] sm:$0xf0]  ;;  %v4692_v6 = vor.u32 %v5953_v62, %v4689_v63  ;;  %v5917_v8 = vld [vmem:[%s6639_s23 + $0x464] sm:$0xf] }
  0xc7   : > { %3274 = vmatpush.bf16.msrb.mxu3 %v4116_v15  ;;  %3236 = vmatmul.bf16.vlgmr.msrb.gmra.mxu0 %v6977_v23  ;;  %v4417_v7 = vld [vmem:[%s6639_s23 + $0x370] sm:$0xf0]  ;;  %v5949_v12 = vld [vmem:[%s6639_s23 + $0x564] sm:$0xf]  ;;  %v4292_v14 = vor.u32 %v5853_v3, %v4289_v4 }
  0xc8   : > { %3280 = vmatpush.bf16.msra.mxu0 %v4356_v16  ;;  %3249 = vmatmul.bf16.vlgmr.msrb.gmra.mxu1 %v6982_v29  ;;  %v4545_v10 = vld [vmem:[%s6639_s23 + $0x470] sm:$0xf0]  ;;  %v4420_v15 = vor.u32 %v5885_v5, %v4417_v7  ;;  %v5881_v19 = vld [vmem:[%s6639_s23 + $0x344] sm:$0xf] }
  0xc9   : > { %3293 = vmatpush.bf16.msra.mxu1 %v4484_v17  ;;  %3306 = vmatpush.bf16.msra.mxu2 %v4612_v18  ;;  %v4673_v13 = vld [vmem:[%s6639_s23 + $0x570] sm:$0xf0]  ;;  %v4548_v16 = vor.u32 %v5917_v8, %v4545_v10  ;;  %v5849_v17 = vld [vmem:[%s6639_s23 + $0x244] sm:$0xf] }
  0xca   : > { %3262 = vmatmul.bf16.vlgmr.msrb.gmra.mxu2 %v6770_v25  ;;  %3275 = vmatmul.bf16.vlgmr.msrb.gmra.mxu3 %v6773_v26  ;;  %v4273_v18 = vld [vmem:[%s6639_s23 + $0x250] sm:$0xf0]  ;;  %v4676_v20 = vor.u32 %v5949_v12, %v4673_v13  ;;  %v5945_v27 = vld [vmem:[%s6639_s23 + $0x544] sm:$0xf] }
  0xcb   : > { %3319 = vmatpush.bf16.msra.mxu3 %v4740_v22  ;;  %v4401_v21 = vld [vmem:[%s6639_s23 + $0x350] sm:$0xf0]  ;;  %v5913_v22 = vld [vmem:[%s6639_s23 + $0x444] sm:$0xf]  ;;  %v4276_v31 = vor.u32 %v5849_v17, %v4273_v18 }
  0xcc   : > { %3281 = vmatpush.bf16.msra.mxu0 %v4340_v33  ;;  %v4529_v24 = vld [vmem:[%s6639_s23 + $0x450] sm:$0xf0]  ;;  %v4404_v32 = vor.u32 %v5881_v19, %v4401_v21  ;;  %v5877_v39 = vld [vmem:[%s6639_s23 + $0x324] sm:$0xf] }
  0xcd   : > { %3294 = vmatpush.bf16.msra.mxu1 %v4468_v36  ;;  %3307 = vmatpush.bf16.msra.mxu2 %v4596_v37  ;;  %v4657_v28 = vld [vmem:[%s6639_s23 + $0x550] sm:$0xf0]  ;;  %v4532_v33 = vor.u32 %v5913_v22, %v4529_v24  ;;  %v5845_v36 = vld [vmem:[%s6639_s23 + $0x224] sm:$0xf] }
  0xce   : > { %v4257_v37 = vld [vmem:[%s6639_s23 + $0x230] sm:$0xf0]  ;;  %v4660_v40 = vor.u32 %v5945_v27, %v4657_v28  ;;  %v5941_v45 = vld [vmem:[%s6639_s23 + $0x524] sm:$0xf] }
  0xcf   : > { %3320 = vmatpush.bf16.msra.mxu3 %v4724_v42  ;;  %v4385_v41 = vld [vmem:[%s6639_s23 + $0x330] sm:$0xf0]  ;;  %v5909_v42 = vld [vmem:[%s6639_s23 + $0x424] sm:$0xf]  ;;  %v4260_v50 = vor.u32 %v5845_v36, %v4257_v37 }
  0xd0   : > { %3282 = vmatpush.bf16.msra.mxu0 %v4324_v52  ;;  %v4513_v44 = vld [vmem:[%s6639_s23 + $0x430] sm:$0xf0]  ;;  %v5841_v51 = vld [vmem:[%s6639_s23 + $0x204] sm:$0xf] }
  0xd1   : > { %3295 = vmatpush.bf16.msra.mxu1 %v4452_v53  ;;  %3308 = vmatpush.bf16.msra.mxu2 %v4580_v54  ;;  %v4641_v48 = vld [vmem:[%s6639_s23 + $0x530] sm:$0xf0]  ;;  %v4388_v53 = vor.u32 %v5877_v39, %v4385_v41  ;;  %v4516_v54 = vor.u32 %v5909_v42, %v4513_v44  ;;  %v5873_v55 = vld [vmem:[%s6639_s23 + $0x304] sm:$0xf] }
  0xd2   : > { %v4241_v52 = vld [vmem:[%s6639_s23 + $0x210] sm:$0xf0]  ;;  %v5905_v57 = vld [vmem:[%s6639_s23 + $0x404] sm:$0xf] }
  0xd3   : > { %3321 = vmatpush.bf16.msra.mxu3 %v4708_v58  ;;  %v4369_v56 = vld [vmem:[%s6639_s23 + $0x310] sm:$0xf0]  ;;  %v4644_v58 = vor.u32 %v5941_v45, %v4641_v48  ;;  %v5937_v60 = vld [vmem:[%s6639_s23 + $0x504] sm:$0xf] }
  0xd4   : > { %3283 = vmatpush.bf16.msra.mxu0 %v4308_v0  ;;  %v4497_v59 = vld [vmem:[%s6639_s23 + $0x410] sm:$0xf0]  ;;  %v5997_v62 = vld [vmem:[%s6639_s23 + $0x6e4] sm:$0xf]  ;;  %v4372_v5 = vor.u32 %v5873_v55, %v4369_v56 }
  0xd5   : > { %3296 = vmatpush.bf16.msra.mxu1 %v4436_v1  ;;  %3309 = vmatpush.bf16.msra.mxu2 %v4564_v2  ;;  %v4625_v61 = vld [vmem:[%s6639_s23 + $0x510] sm:$0xf0]  ;;  %v6029_v0 = vld [vmem:[%s6639_s23 + $0x7e4] sm:$0xf]  ;;  %v4244_v1 = vor.u32 %v5841_v51, %v4241_v52 }
  0xd6   : > { %v4865_v63 = vld [vmem:[%s6639_s23 + $0x6f0] sm:$0xf0]  ;;  %v6061_v3 = vld [vmem:[%s6639_s23 + $0x8e4] sm:$0xf]  ;;  %v4628_v10 = vor.u32 %v5937_v60, %v4625_v61 }
  0xd7   : > { %3322 = vmatpush.bf16.msra.mxu3 %v4692_v6  ;;  %v4993_v2 = vld [vmem:[%s6639_s23 + $0x7f0] sm:$0xf0]  ;;  %v4500_v6 = vor.u32 %v5905_v57, %v4497_v59  ;;  %v6093_v7 = vld [vmem:[%s6639_s23 + $0x9e4] sm:$0xf]  ;;  %v4868_v12 = vor.u32 %v5997_v62, %v4865_v63 }
  0xd8   : > { %3284 = vmatpush.bf16.msra.mxu0 %v4292_v14  ;;  %v5121_v4 = vld [vmem:[%s6639_s23 + $0x8f0] sm:$0xf0]  ;;  %v4996_v13 = vor.u32 %v6029_v0, %v4993_v2  ;;  %v6025_v17 = vld [vmem:[%s6639_s23 + $0x7c4] sm:$0xf] }
  0xd9   : > { %3297 = vmatpush.bf16.msra.mxu1 %v4420_v15  ;;  %3310 = vmatpush.bf16.msra.mxu2 %v4548_v16  ;;  %v5249_v8 = vld [vmem:[%s6639_s23 + $0x9f0] sm:$0xf0]  ;;  %v5124_v14 = vor.u32 %v6061_v3, %v5121_v4  ;;  %v5993_v15 = vld [vmem:[%s6639_s23 + $0x6c4] sm:$0xf] }
  0xda   : > { %v4849_v16 = vld [vmem:[%s6639_s23 + $0x6d0] sm:$0xf0]  ;;  %v5252_v18 = vor.u32 %v6093_v7, %v5249_v8  ;;  %v6089_v22 = vld [vmem:[%s6639_s23 + $0x9c4] sm:$0xf] }
  0xdb   : > { %3323 = vmatpush.bf16.msra.mxu3 %v4676_v20  ;;  %v4977_v19 = vld [vmem:[%s6639_s23 + $0x7d0] sm:$0xf0]  ;;  %v6057_v20 = vld [vmem:[%s6639_s23 + $0x8c4] sm:$0xf]  ;;  %v4852_v27 = vor.u32 %v5993_v15, %v4849_v16 }
  0xdc   : > { %3285 = vmatpush.bf16.msra.mxu0 %v4276_v31  ;;  %v5105_v21 = vld [vmem:[%s6639_s23 + $0x8d0] sm:$0xf0]  ;;  %v4980_v28 = vor.u32 %v6025_v17, %v4977_v19  ;;  %v6021_v36 = vld [vmem:[%s6639_s23 + $0x7a4] sm:$0xf] }
  0xdd   : > { %3298 = vmatpush.bf16.msra.mxu1 %v4404_v32  ;;  %3311 = vmatpush.bf16.msra.mxu2 %v4532_v33  ;;  %v5233_v24 = vld [vmem:[%s6639_s23 + $0x9d0] sm:$0xf0]  ;;  %v5108_v31 = vor.u32 %v6057_v20, %v5105_v21  ;;  %v5989_v32 = vld [vmem:[%s6639_s23 + $0x6a4] sm:$0xf] }
  0xde   : > { %v4833_v33 = vld [vmem:[%s6639_s23 + $0x6b0] sm:$0xf0]  ;;  %v5236_v37 = vor.u32 %v6089_v22, %v5233_v24  ;;  %v6085_v42 = vld [vmem:[%s6639_s23 + $0x9a4] sm:$0xf] }
  0xdf   : > { %3324 = vmatpush.bf16.msra.mxu3 %v4660_v40  ;;  %v4961_v39 = vld [vmem:[%s6639_s23 + $0x7b0] sm:$0xf0]  ;;  %v6053_v40 = vld [vmem:[%s6639_s23 + $0x8a4] sm:$0xf]  ;;  %v4836_v45 = vor.u32 %v5989_v32, %v4833_v33 }
  0xe0   : > { %3286 = vmatpush.bf16.msra.mxu0 %v4260_v50  ;;  %v5089_v41 = vld [vmem:[%s6639_s23 + $0x8b0] sm:$0xf0]  ;;  %v4964_v48 = vor.u32 %v6021_v36, %v4961_v39  ;;  %v5985_v51 = vld [vmem:[%s6639_s23 + $0x684] sm:$0xf] }
  0xe1   : > { %3299 = vmatpush.bf16.msra.mxu1 %v4388_v53  ;;  %3312 = vmatpush.bf16.msra.mxu2 %v4516_v54  ;;  %v5217_v44 = vld [vmem:[%s6639_s23 + $0x9b0] sm:$0xf0]  ;;  %v5092_v50 = vor.u32 %v6053_v40, %v5089_v41  ;;  %v6017_v53 = vld [vmem:[%s6639_s23 + $0x784] sm:$0xf] }
  0xe2   : > { %v4817_v52 = vld [vmem:[%s6639_s23 + $0x690] sm:$0xf0]  ;;  %v5220_v54 = vor.u32 %v6085_v42, %v5217_v44  ;;  %v6049_v56 = vld [vmem:[%s6639_s23 + $0x884] sm:$0xf] }
  0xe3   : > { %3325 = vmatpush.bf16.msra.mxu3 %v4644_v58  ;;  %v4945_v55 = vld [vmem:[%s6639_s23 + $0x790] sm:$0xf0]  ;;  %v6081_v58 = vld [vmem:[%s6639_s23 + $0x984] sm:$0xf]  ;;  %v4820_v60 = vor.u32 %v5985_v51, %v4817_v52 }
  0xe4   : > { %3287 = vmatpush.bf16.msra.mxu0 %v4244_v1  ;;  %v5073_v57 = vld [vmem:[%s6639_s23 + $0x890] sm:$0xf0]  ;;  %v4948_v61 = vor.u32 %v6017_v53, %v4945_v55  ;;  %v5981_v63 = vld [vmem:[%s6639_s23 + $0x664] sm:$0xf] }
  0xe5   : > { %3300 = vmatpush.bf16.msra.mxu1 %v4372_v5  ;;  %3313 = vmatpush.bf16.msra.mxu2 %v4500_v6  ;;  %v5201_v59 = vld [vmem:[%s6639_s23 + $0x990] sm:$0xf0]  ;;  %v5076_v62 = vor.u32 %v6049_v56, %v5073_v57  ;;  %v6013_v1 = vld [vmem:[%s6639_s23 + $0x764] sm:$0xf] }
  0xe6   : > { %v4801_v0 = vld [vmem:[%s6639_s23 + $0x670] sm:$0xf0]  ;;  %v5204_v2 = vor.u32 %v6081_v58, %v5201_v59  ;;  %v6045_v4 = vld [vmem:[%s6639_s23 + $0x864] sm:$0xf] }
  0xe7   : > { %3326 = vmatpush.bf16.msra.mxu3 %v4628_v10  ;;  %3288 = vmatmul.bf16.vlgmr.msra.gmra.mxu0 %v6756_v9  ;;  %v4929_v3 = vld [vmem:[%s6639_s23 + $0x770] sm:$0xf0]  ;;  %v6077_v6 = vld [vmem:[%s6639_s23 + $0x964] sm:$0xf]  ;;  %v4804_v8 = vor.u32 %v5981_v63, %v4801_v0 }
  0xe8   : > { %3332 = vmatpush.bf16.msrb.mxu0 %v4868_v12  ;;  %3314 = vmatmul.bf16.vlgmr.msra.gmra.mxu2 %v6829_v46  ;;  %v5057_v5 = vld [vmem:[%s6639_s23 + $0x870] sm:$0xf0]  ;;  %v4932_v10 = vor.u32 %v6013_v1, %v4929_v3  ;;  %v6009_v15 = vld [vmem:[%s6639_s23 + $0x744] sm:$0xf] }
  0xe9   : > { %3345 = vmatpush.bf16.msrb.mxu1 %v4996_v13  ;;  %3358 = vmatpush.bf16.msrb.mxu2 %v5124_v14  ;;  %v5185_v7 = vld [vmem:[%s6639_s23 + $0x970] sm:$0xf0]  ;;  %v5060_v12 = vor.u32 %v6045_v4, %v5057_v5  ;;  %v5977_v13 = vld [vmem:[%s6639_s23 + $0x644] sm:$0xf] }
  0xea   : > { %3327 = vmatmul.bf16.vlgmr.msra.gmra.mxu3 %v6833_v49  ;;  %3301 = vmatmul.bf16.vlgmr.msra.gmra.mxu1 %v6759_v11  ;;  %v4785_v14 = vld [vmem:[%s6639_s23 + $0x650] sm:$0xf0]  ;;  %v5188_v16 = vor.u32 %v6077_v6, %v5185_v7  ;;  %v6073_v20 = vld [vmem:[%s6639_s23 + $0x944] sm:$0xf] }
  0xeb   : > { %3371 = vmatpush.bf16.msrb.mxu3 %v5252_v18  ;;  %v4913_v17 = vld [vmem:[%s6639_s23 + $0x750] sm:$0xf0]  ;;  %v6041_v18 = vld [vmem:[%s6639_s23 + $0x844] sm:$0xf]  ;;  %v4788_v24 = vor.u32 %v5977_v13, %v4785_v14  ;;  %v7102_v44 = vpop.f32.mrf.mxu3 }
  0xec   : > { %3333 = vmatpush.bf16.msrb.mxu0 %v4852_v27  ;;  %v5041_v19 = vld [vmem:[%s6639_s23 + $0x850] sm:$0xf0]  ;;  %v5973_v32 = vld [vmem:[%s6639_s23 + $0x624] sm:$0xf] }
  0xed   : > { %3346 = vmatpush.bf16.msrb.mxu1 %v4980_v28  ;;  %3359 = vmatpush.bf16.msrb.mxu2 %v5108_v31  ;;  %v5169_v21 = vld [vmem:[%s6639_s23 + $0x950] sm:$0xf0]  ;;  %v4916_v28 = vor.u32 %v6009_v15, %v4913_v17  ;;  %v5044_v31 = vor.u32 %v6041_v18, %v5041_v19  ;;  %v6005_v36 = vld [vmem:[%s6639_s23 + $0x724] sm:$0xf] }
  0xee   : > { %v4769_v33 = vld [vmem:[%s6639_s23 + $0x630] sm:$0xf0]  ;;  %v5172_v39 = vor.u32 %v6073_v20, %v5169_v21  ;;  %v6037_v41 = vld [vmem:[%s6639_s23 + $0x824] sm:$0xf] }
  0xef   : > { %3372 = vmatpush.bf16.msrb.mxu3 %v5236_v37  ;;  %v7097_v37 = vpop.f32.mrf.mxu2  ;;  %v4897_v40 = vld [vmem:[%s6639_s23 + $0x730] sm:$0xf0]  ;;  %v5969_v51 = vld [vmem:[%s6639_s23 + $0x604] sm:$0xf] }
  0xf0   : > { %3334 = vmatpush.bf16.msrb.mxu0 %v4836_v45  ;;  %v5025_v42 = vld [vmem:[%s6639_s23 + $0x830] sm:$0xf0]  ;;  %v6069_v45 = vld [vmem:[%s6639_s23 + $0x924] sm:$0xf]  ;;  %v4900_v53 = vor.u32 %v6005_v36, %v4897_v40 }
  0xf1   : > { %3347 = vmatpush.bf16.msrb.mxu1 %v4964_v48  ;;  %3360 = vmatpush.bf16.msrb.mxu2 %v5092_v50  ;;  %v7090_v22 = vpop.f32.mrf.mxu0  ;;  %v7092_v27 = vpop.f32.mrf.mxu1  ;;  %v5153_v48 = vld [vmem:[%s6639_s23 + $0x930] sm:$0xf0]  ;;  %v4772_v50 = vor.u32 %v5973_v32, %v4769_v33  ;;  %v6001_v55 = vld [vmem:[%s6639_s23 + $0x704] sm:$0xf] }
  0xf2   : > { %v4753_v52 = vld [vmem:[%s6639_s23 + $0x610] sm:$0xf0]  ;;  %v6033_v57 = vld [vmem:[%s6639_s23 + $0x804] sm:$0xf]  ;;  %v5156_v58 = vor.u32 %v6069_v45, %v5153_v48 }
  0xf3   : > { %3373 = vmatpush.bf16.msrb.mxu3 %v5220_v54  ;;  %v5028_v54 = vor.u32 %v6037_v41, %v5025_v42  ;;  %v4881_v56 = vld [vmem:[%s6639_s23 + $0x710] sm:$0xf0]  ;;  %v6157_v0 = vld [vmem:[%s6639_s23 + $0xbe4] sm:$0xf] }
  0xf4   : > { %3335 = vmatpush.bf16.msrb.mxu0 %v4820_v60  ;;  %v5009_v59 = vld [vmem:[%s6639_s23 + $0x810] sm:$0xf0]  ;;  %v6065_v60 = vld [vmem:[%s6639_s23 + $0x904] sm:$0xf]  ;;  %v4884_v7 = vor.u32 %v6001_v55, %v4881_v56 }
  0xf5   : > { %3348 = vmatpush.bf16.msrb.mxu1 %v4948_v61  ;;  %3361 = vmatpush.bf16.msrb.mxu2 %v5076_v62  ;;  %v5137_v61 = vld [vmem:[%s6639_s23 + $0x910] sm:$0xf0]  ;;  %v6125_v62 = vld [vmem:[%s6639_s23 + $0xae4] sm:$0xf] }
  0xf6   : > { %v5377_v63 = vld [vmem:[%s6639_s23 + $0xaf0] sm:$0xf0]  ;;  %v6189_v4 = vld [vmem:[%s6639_s23 + $0xce4] sm:$0xf]  ;;  %v5140_v14 = vor.u32 %v6065_v60, %v5137_v61 }
  0xf7   : > { %3374 = vmatpush.bf16.msrb.mxu3 %v5204_v2  ;;  %v4756_v2 = vor.u32 %v5969_v51, %v4753_v52  ;;  %v5505_v3 = vld [vmem:[%s6639_s23 + $0xbf0] sm:$0xf0]  ;;  %v3109_v13 = vpop.f32.mrf.mxu2  ;;  %v5380_v15 = vor.u32 %v6125_v62, %v5377_v63  ;;  %v6121_v19 = vld [vmem:[%s6639_s23 + $0xac4] sm:$0xf] }
  0xf8   : > { %3336 = vmatpush.bf16.msrb.mxu0 %v4804_v8  ;;  %v5633_v5 = vld [vmem:[%s6639_s23 + $0xcf0] sm:$0xf0]  ;;  %v5012_v8 = vor.u32 %v6033_v57, %v5009_v59  ;;  %v5508_v17 = vor.u32 %v6157_v0, %v5505_v3  ;;  %v6153_v21 = vld [vmem:[%s6639_s23 + $0xbc4] sm:$0xf] }
  0xf9   : > { %3349 = vmatpush.bf16.msrb.mxu1 %v4932_v10  ;;  %3362 = vmatpush.bf16.msrb.mxu2 %v5060_v12  ;;  %v3083_v1 = vpop.f32.mrf.mxu0  ;;  %v3096_v6 = vpop.f32.mrf.mxu1  ;;  %v6221_v10 = vld [vmem:[%s6639_s23 + $0xde4] sm:$0xf]  ;;  %v5761_v12 = vld [vmem:[%s6639_s23 + $0xdf0] sm:$0xf0]  ;;  %v5636_v18 = vor.u32 %v6189_v4, %v5633_v5 }
  0xfa   : > { %v5361_v20 = vld [vmem:[%s6639_s23 + $0xad0] sm:$0xf0]  ;;  %v6217_v33 = vld [vmem:[%s6639_s23 + $0xdc4] sm:$0xf] }
  0xfb   : > { %3375 = vmatpush.bf16.msrb.mxu3 %v5188_v16  ;;  %v3122_v16 = vpop.f32.mrf.mxu3  ;;  %v5617_v32 = vld [vmem:[%s6639_s23 + $0xcd0] sm:$0xf0]  ;;  %v6117_v42 = vld [vmem:[%s6639_s23 + $0xaa4] sm:$0xf] }
  0xfc   : > { %3337 = vmatpush.bf16.msrb.mxu0 %v4788_v24  ;;  %v5764_v24 = vor.u32 %v6221_v10, %v5761_v12  ;;  %v5745_v36 = vld [vmem:[%s6639_s23 + $0xdd0] sm:$0xf0]  ;;  %v6149_v48 = vld [vmem:[%s6639_s23 + $0xba4] sm:$0xf] }
  0xfd   : > { %3350 = vmatpush.bf16.msrb.mxu1 %v4916_v28  ;;  %3363 = vmatpush.bf16.msrb.mxu2 %v5044_v31  ;;  %v5489_v28 = vld [vmem:[%s6639_s23 + $0xbd0] sm:$0xf0]  ;;  %v6185_v31 = vld [vmem:[%s6639_s23 + $0xcc4] sm:$0xf] }
  0xfe   : > { %v5492_v40 = vor.u32 %v6153_v21, %v5489_v28  ;;  %v5620_v41 = vor.u32 %v6185_v31, %v5617_v32  ;;  %v5345_v45 = vld [vmem:[%s6639_s23 + $0xab0] sm:$0xf0]  ;;  %v6181_v52 = vld [vmem:[%s6639_s23 + $0xca4] sm:$0xf] }
  0xff   : > { %3376 = vmatpush.bf16.msrb.mxu3 %v5172_v39  ;;  %v5364_v39 = vor.u32 %v6121_v19, %v5361_v20  ;;  %v5473_v51 = vld [vmem:[%s6639_s23 + $0xbb0] sm:$0xf0]  ;;  %v5348_v56 = vor.u32 %v6117_v42, %v5345_v45  ;;  %v6113_v59 = vld [vmem:[%s6639_s23 + $0xa84] sm:$0xf] }
 0x100   : > { %3338 = vmatpush.bf16.msrb.mxu0 %v4772_v50  ;;  %v5748_v50 = vor.u32 %v6217_v33, %v5745_v36  ;;  %v5729_v55 = vld [vmem:[%s6639_s23 + $0xdb0] sm:$0xf0]  ;;  %v5476_v57 = vor.u32 %v6149_v48, %v5473_v51  ;;  %v6145_v61 = vld [vmem:[%s6639_s23 + $0xb84] sm:$0xf] }
 0x101   : > { %3351 = vmatpush.bf16.msrb.mxu1 %v4900_v53  ;;  %3364 = vmatpush.bf16.msrb.mxu2 %v5028_v54  ;;  %v5601_v53 = vld [vmem:[%s6639_s23 + $0xcb0] sm:$0xf0]  ;;  %v6213_v54 = vld [vmem:[%s6639_s23 + $0xda4] sm:$0xf] }
 0x102   : > { %v5329_v60 = vld [vmem:[%s6639_s23 + $0xa90] sm:$0xf0]  ;;  %v5732_v62 = vor.u32 %v6213_v54, %v5729_v55  ;;  %v6177_v0 = vld [vmem:[%s6639_s23 + $0xc84] sm:$0xf] }
 0x103   : > { %3377 = vmatpush.bf16.msrb.mxu3 %v5156_v58  ;;  %v5604_v58 = vor.u32 %v6181_v52, %v5601_v53  ;;  %v5457_v63 = vld [vmem:[%s6639_s23 + $0xb90] sm:$0xf0]  ;;  %v5332_v4 = vor.u32 %v6113_v59, %v5329_v60  ;;  %v6141_v12 = vld [vmem:[%s6639_s23 + $0xb64] sm:$0xf] }
 0x104   : > { %3339 = vmatpush.bf16.msrb.mxu0 %v4756_v2  ;;  %v5585_v1 = vld [vmem:[%s6639_s23 + $0xc90] sm:$0xf0]  ;;  %v6209_v2 = vld [vmem:[%s6639_s23 + $0xd84] sm:$0xf]  ;;  %v5460_v6 = vor.u32 %v6145_v61, %v5457_v63 }
 0x105   : > { %3352 = vmatpush.bf16.msrb.mxu1 %v4884_v7  ;;  %3365 = vmatpush.bf16.msrb.mxu2 %v5012_v8  ;;  %v5713_v3 = vld [vmem:[%s6639_s23 + $0xd90] sm:$0xf0]  ;;  %v7150_v5 = vpop.f32.mrf.mxu0  ;;  %v5588_v7 = vor.u32 %v6177_v0, %v5585_v1  ;;  %v6109_v8 = vld [vmem:[%s6639_s23 + $0xa64] sm:$0xf] }
 0x106   : > { %v5313_v10 = vld [vmem:[%s6639_s23 + $0xa70] sm:$0xf0]  ;;  %v6173_v16 = vld [vmem:[%s6639_s23 + $0xc64] sm:$0xf] }
 0x107   : > { %3378 = vmatpush.bf16.msrb.mxu3 %v5140_v14  ;;  %3340 = vmatmul.bf16.vlgmr.msrb.gmra.mxu0 %v6825_v43  ;;  %v7155_v13 = vpop.f32.mrf.mxu1  ;;  %v5716_v14 = vor.u32 %v6209_v2, %v5713_v3  ;;  %v5697_v19 = vld [vmem:[%s6639_s23 + $0xd70] sm:$0xf0]  ;;  %v5316_v20 = vor.u32 %v6109_v8, %v5313_v10  ;;  %v6105_v28 = vld [vmem:[%s6639_s23 + $0xa44] sm:$0xf] }
 0x108   : > { %3384 = vmatpush.bf16.msra.mxu0 %v5380_v15  ;;  %3366 = vmatmul.bf16.vlgmr.msrb.gmra.mxu2 %v6900_v30  ;;  %v5441_v15 = vld [vmem:[%s6639_s23 + $0xb70] sm:$0xf0]  ;;  %v6137_v32 = vld [vmem:[%s6639_s23 + $0xb44] sm:$0xf] }
 0x109   : > { %3397 = vmatpush.bf16.msra.mxu1 %v5508_v17  ;;  %3410 = vmatpush.bf16.msra.mxu2 %v5636_v18  ;;  %v5569_v17 = vld [vmem:[%s6639_s23 + $0xc70] sm:$0xf0]  ;;  %v6205_v18 = vld [vmem:[%s6639_s23 + $0xd64] sm:$0xf]  ;;  %v5444_v21 = vor.u32 %v6141_v12, %v5441_v15 }
 0x10a   : > { %3353 = vmatmul.bf16.vlgmr.msrb.gmra.mxu1 %v6831_v47  ;;  %3379 = vmatmul.bf16.vlgmr.msrb.gmra.mxu3 %v6907_v35  ;;  %v5297_v31 = vld [vmem:[%s6639_s23 + $0xa50] sm:$0xf0]  ;;  %v5700_v36 = vor.u32 %v6205_v18, %v5697_v19  ;;  %v6201_v45 = vld [vmem:[%s6639_s23 + $0xd44] sm:$0xf]  ;;  %v4103_v18 = vld [vmem:[%s6639_s23 + $0xe8] sm:$0xf] }
 0x10b   : > { %3423 = vmatpush.bf16.msra.mxu3 %v5764_v24  ;;  %v5572_v24 = vor.u32 %v6173_v16, %v5569_v17  ;;  %v7165_v33 = vpop.f32.mrf.mxu2  ;;  %v5681_v48 = vld [vmem:[%s6639_s23 + $0xd50] sm:$0xf0]  ;;  %v6101_v54 = vld [vmem:[%s6639_s23 + $0xa24] sm:$0xf]  ;;  %v5808_v19 = vld [vmem:[%s6639_s23 + $0xf4] sm:$0xf0] }
 0x10c   : > { %3385 = vmatpush.bf16.msra.mxu0 %v5364_v39  ;;  %v5425_v39 = vld [vmem:[%s6639_s23 + $0xb50] sm:$0xf0]  ;;  %v6165_v60 = vld [vmem:[%s6639_s23 + $0xc24] sm:$0xf] }
 0x10d   : > { %3398 = vmatpush.bf16.msra.mxu1 %v5492_v40  ;;  %3411 = vmatpush.bf16.msra.mxu2 %v5620_v41  ;;  %v6169_v40 = vld [vmem:[%s6639_s23 + $0xc44] sm:$0xf]  ;;  %v5553_v41 = vld [vmem:[%s6639_s23 + $0xc50] sm:$0xf0]  ;;  %v3135_v51 = vpop.f32.mrf.mxu0  ;;  %v5428_v52 = vor.u32 %v6137_v32, %v5425_v39  ;;  %v4487_v39 = vld [vmem:[%s6639_s23 + $0x3e8] sm:$0xf] }
 0x10e   : > { %v7170_v42 = vpop.f32.mrf.mxu3  ;;  %v5556_v53 = vor.u32 %v6169_v40, %v5553_v41  ;;  %v5281_v55 = vld [vmem:[%s6639_s23 + $0xa30] sm:$0xf0]  ;;  %v6097_v1 = vld [vmem:[%s6639_s23 + $0xa04] sm:$0xf]  ;;  %v5904_v40 = vld [vmem:[%s6639_s23 + $0x3f4] sm:$0xf0] }
 0x10f   : > { %3424 = vmatpush.bf16.msra.mxu3 %v5748_v50  ;;  %v5300_v50 = vor.u32 %v6105_v28, %v5297_v31  ;;  %v5409_v59 = vld [vmem:[%s6639_s23 + $0xb30] sm:$0xf0]  ;;  %v5284_v0 = vor.u32 %v6101_v54, %v5281_v55  ;;  %v6161_v8 = vld [vmem:[%s6639_s23 + $0xc04] sm:$0xf]  ;;  %v4359_v28 = vld [vmem:[%s6639_s23 + $0x2e8] sm:$0xf]  ;;  %v4488_v54 = vor.u32 %v5904_v40, %v4487_v39 }
 0x110   : > { %3386 = vmatpush.bf16.msra.mxu0 %v5348_v56  ;;  %v6133_v56 = vld [vmem:[%s6639_s23 + $0xb24] sm:$0xf]  ;;  %v5537_v61 = vld [vmem:[%s6639_s23 + $0xc30] sm:$0xf0]  ;;  %v5872_v31 = vld [vmem:[%s6639_s23 + $0x2f4] sm:$0xf0] }
 0x111   : > { %3399 = vmatpush.bf16.msra.mxu1 %v5476_v57  ;;  %3412 = vmatpush.bf16.msra.mxu2 %v5604_v58  ;;  %v3148_v57 = vpop.f32.mrf.mxu1  ;;  %v5684_v58 = vor.u32 %v6201_v45, %v5681_v48  ;;  %v5665_v63 = vld [vmem:[%s6639_s23 + $0xd30] sm:$0xf0]  ;;  %v5412_v3 = vor.u32 %v6133_v56, %v5409_v59  ;;  %v6193_v15 = vld [vmem:[%s6639_s23 + $0xd04] sm:$0xf]  ;;  %v4104_v45 = vor.u32 %v5808_v19, %v4103_v18  ;;  %v4087_v51 = vld [vmem:[%s6639_s23 + $0xc8] sm:$0xf] }
 0x112   : > { %v5265_v2 = vld [vmem:[%s6639_s23 + $0xa10] sm:$0xf0]  ;;  %v5836_v55 = vld [vmem:[%s6639_s23 + $0x1d4] sm:$0xf0]  ;;  %v4343_v56 = vld [vmem:[%s6639_s23 + $0x2c8] sm:$0xf] }
 0x113   : > { %3425 = vmatpush.bf16.msra.mxu3 %v5732_v62  ;;  %v6197_v62 = vld [vmem:[%s6639_s23 + $0xd24] sm:$0xf]  ;;  %v3161_v10 = vpop.f32.mrf.mxu2  ;;  %v5649_v16 = vld [vmem:[%s6639_s23 + $0xd10] sm:$0xf0]  ;;  %v5868_v57 = vld [vmem:[%s6639_s23 + $0x2d4] sm:$0xf0] }
 0x114   : > { %3387 = vmatpush.bf16.msra.mxu0 %v5332_v4  ;;  %v5540_v4 = vor.u32 %v6165_v60, %v5537_v61  ;;  %v5668_v12 = vor.u32 %v6197_v62, %v5665_v63  ;;  %v5652_v41 = vor.u32 %v6193_v15, %v5649_v16  ;;  %v5900_v59 = vld [vmem:[%s6639_s23 + $0x3d4] sm:$0xf0]  ;;  %v3095_v60 = vadd.f32 %v7092_v27, %v7090_v22  ;;  %v4327_v22 = vld [vmem:[%s6639_s23 + $0x2a8] sm:$0xf] }
 0x115   : > { %3400 = vmatpush.bf16.msra.mxu1 %v5460_v6  ;;  %3413 = vmatpush.bf16.msra.mxu2 %v5588_v7  ;;  %v6129_v6 = vld [vmem:[%s6639_s23 + $0xb04] sm:$0xf]  ;;  %v5393_v7 = vld [vmem:[%s6639_s23 + $0xb10] sm:$0xf0]  ;;  %v4344_v63 = vor.u32 %v5868_v57, %v4343_v56  ;;  %v5864_v27 = vld [vmem:[%s6639_s23 + $0x2b4] sm:$0xf0] }
 0x116   : > { %v3174_v17 = vpop.f32.mrf.mxu3  ;;  %v5396_v32 = vor.u32 %v6129_v6, %v5393_v7  ;;  %v4455_v6 = vld [vmem:[%s6639_s23 + $0x3a8] sm:$0xf]  ;;  %v5896_v7 = vld [vmem:[%s6639_s23 + $0x3b4] sm:$0xf0] }
 0x117   : > { %3426 = vmatpush.bf16.msra.mxu3 %v5716_v14  ;;  %v5521_v14 = vld [vmem:[%s6639_s23 + $0xc10] sm:$0xf0]  ;;  %v4055_v15 = vld [vmem:[%s6639_s23 + $0x88] sm:$0xf]  ;;  %v5796_v16 = vld [vmem:[%s6639_s23 + $0x94] sm:$0xf0]  ;;  %v4456_v18 = vor.u32 %v5896_v7, %v4455_v6 }
 0x118   : > { %3388 = vmatpush.bf16.msra.mxu0 %v5316_v20  ;;  %v4231_v20 = vld [vmem:[%s6639_s23 + $0x1e8] sm:$0xf]  ;;  %v5828_v19 = vld [vmem:[%s6639_s23 + $0x194] sm:$0xf0] }
 0x119   : > { %3401 = vmatpush.bf16.msra.mxu1 %v5444_v21  ;;  %3414 = vmatpush.bf16.msra.mxu2 %v5572_v24  ;;  %v5268_v21 = vor.u32 %v6097_v1, %v5265_v2  ;;  %v5840_v24 = vld [vmem:[%s6639_s23 + $0x1f4] sm:$0xf0]  ;;  %v4199_v2 = vld [vmem:[%s6639_s23 + $0x1a8] sm:$0xf] }
 0x11a   : > { %v4232_v48 = vor.u32 %v5840_v24, %v4231_v20  ;;  %v5800_v1 = vld [vmem:[%s6639_s23 + $0xb4] sm:$0xf0]  ;;  %v4183_v17 = vld [vmem:[%s6639_s23 + $0x188] sm:$0xf] }
 0x11b   : > { %3427 = vmatpush.bf16.msra.mxu3 %v5700_v36  ;;  %v5524_v36 = vor.u32 %v6161_v8, %v5521_v14  ;;  %v3108_v8 = vadd.f32 %v7097_v37, %v3095_v60  ;;  %v4328_v14 = vor.u32 %v5864_v27, %v4327_v22  ;;  %v4311_v37 = vld [vmem:[%s6639_s23 + $0x288] sm:$0xf]  ;;  %v5860_v20 = vld [vmem:[%s6639_s23 + $0x294] sm:$0xf0]  ;;  %v4184_v39 = vor.u32 %v5828_v19, %v4183_v17 }
 0x11c   : > { %3389 = vmatpush.bf16.msra.mxu0 %v5300_v50  ;;  %v4360_v50 = vor.u32 %v5872_v31, %v4359_v28  ;;  %v4439_v24 = vld [vmem:[%s6639_s23 + $0x388] sm:$0xf]  ;;  %v5892_v28 = vld [vmem:[%s6639_s23 + $0x394] sm:$0xf0]  ;;  %v4312_v40 = vor.u32 %v5860_v20, %v4311_v37 }
 0x11d   : > { %3402 = vmatpush.bf16.msra.mxu1 %v5428_v52  ;;  %3415 = vmatpush.bf16.msra.mxu2 %v5556_v53  ;;  %v5804_v52 = vld [vmem:[%s6639_s23 + $0xd4] sm:$0xf0]  ;;  %v4215_v53 = vld [vmem:[%s6639_s23 + $0x1c8] sm:$0xf]  ;;  %v3121_v31 = vadd.f32 %v7102_v44, %v3108_v8 }
 0x11e   : > { %v4088_v61 = vor.u32 %v5804_v52, %v4087_v51  ;;  %v4216_v62 = vor.u32 %v5836_v55, %v4215_v53  ;;  %v5824_v51 = vld [vmem:[%s6639_s23 + $0x174] sm:$0xf0]  ;;  %v4295_v44 = vld [vmem:[%s6639_s23 + $0x268] sm:$0xf] }
 0x11f   : > { %3428 = vmatpush.bf16.msra.mxu3 %v5684_v58  ;;  %v4471_v58 = vld [vmem:[%s6639_s23 + $0x3c8] sm:$0xf]  ;;  %v5856_v52 = vld [vmem:[%s6639_s23 + $0x274] sm:$0xf0]  ;;  %v3134_v55 = vadd.f32 %v7150_v5, %v3121_v31 }
 0x120   : > { %3390 = vmatpush.bf16.msra.mxu0 %v5284_v0  ;;  %v4071_v0 = vld [vmem:[%s6639_s23 + $0xa8] sm:$0xf]  ;;  %v5788_v60 = vld [vmem:[%s6639_s23 + $0x54] sm:$0xf0] }
 0x121   : > { %3403 = vmatpush.bf16.msra.mxu1 %v5412_v3  ;;  %3416 = vmatpush.bf16.msra.mxu2 %v5540_v4  ;;  %v4472_v3 = vor.u32 %v5900_v59, %v4471_v58  ;;  %v5832_v4 = vld [vmem:[%s6639_s23 + $0x1b4] sm:$0xf0]  ;;  %v4072_v10 = vor.u32 %v5800_v1, %v4071_v0  ;;  %v4423_v53 = vld [vmem:[%s6639_s23 + $0x368] sm:$0xf]  ;;  %v4296_v58 = vor.u32 %v5856_v52, %v4295_v44 }
 0x122   : > { %v4023_v59 = vld [vmem:[%s6639_s23 + $0x48] sm:$0xf]  ;;  %v5820_v0 = vld [vmem:[%s6639_s23 + $0x154] sm:$0xf0]  ;;  %v3147_v27 = vadd.f32 %v7155_v13, %v3134_v55 }
 0x123   : > { %3429 = vmatpush.bf16.msra.mxu3 %v5668_v12  ;;  %v4200_v12 = vor.u32 %v5832_v4, %v4199_v2  ;;  %v4279_v1 = vld [vmem:[%s6639_s23 + $0x248] sm:$0xf]  ;;  %v5852_v5 = vld [vmem:[%s6639_s23 + $0x254] sm:$0xf0]  ;;  %v4024_v6 = vor.u32 %v5788_v60, %v4023_v59 }
 0x124   : > { %3391 = vmatpush.bf16.msra.mxu0 %v5268_v21  ;;  %v5884_v4 = vld [vmem:[%s6639_s23 + $0x354] sm:$0xf0]  ;;  %v4263_v13 = vld [vmem:[%s6639_s23 + $0x228] sm:$0xf]  ;;  %v3160_v20 = vadd.f32 %v7165_v33, %v3147_v27 }
 0x125   : > { %3404 = vmatpush.bf16.msra.mxu1 %v5396_v32  ;;  %3417 = vmatpush.bf16.msra.mxu2 %v5524_v36  ;;  %v4056_v32 = vor.u32 %v5796_v16, %v4055_v15  ;;  %v4135_v15 = vld [vmem:[%s6639_s23 + $0x128] sm:$0xf]  ;;  %v5816_v17 = vld [vmem:[%s6639_s23 + $0x134] sm:$0xf0] }
 0x126   : > { %v4391_v19 = vld [vmem:[%s6639_s23 + $0x328] sm:$0xf]  ;;  %v5880_v37 = vld [vmem:[%s6639_s23 + $0x334] sm:$0xf0] }
 0x127   : > { %3430 = vmatpush.bf16.msra.mxu3 %v5652_v41  ;;  %3392 = vmatmul.bf16.vlgmr.msra.gmra.mxu0 %v6905_v34  ;;  %v7227_v21 = vpop.f32.mrf.mxu0  ;;  %v7232_v36 = vpop.f32.mrf.mxu1  ;;  %v4039_v41 = vld [vmem:[%s6639_s23 + $0x68] sm:$0xf]  ;;  %v5780_v31 = vld [vmem:[%s6639_s23 + $0x14] sm:$0xf0]  ;;  %v4392_v33 = vor.u32 %v5880_v37, %v4391_v19 }
 0x128   : > { %3436 = vmatpush.bf16.msrb.mxu0 %v4104_v45  ;;  %3418 = vmatmul.bf16.vlgmr.msra.gmra.mxu2 %v6977_v23  ;;  %v5792_v45 = vld [vmem:[%s6639_s23 + $0x74] sm:$0xf0]  ;;  %v4615_v52 = vld [vmem:[%s6639_s23 + $0x4e8] sm:$0xf] }
 0x129   : > { %3449 = vmatpush.bf16.msrb.mxu1 %v4232_v48  ;;  %3462 = vmatpush.bf16.msrb.mxu2 %v4360_v50  ;;  %v4167_v48 = vld [vmem:[%s6639_s23 + $0x168] sm:$0xf]  ;;  %v4440_v50 = vor.u32 %v5892_v28, %v4439_v24  ;;  %v4040_v56 = vor.u32 %v5792_v45, %v4039_v41  ;;  %v5812_v41 = vld [vmem:[%s6639_s23 + $0x114] sm:$0xf0] }
 0x12a   : > { %3405 = vmatmul.bf16.vlgmr.msra.gmra.mxu1 %v6911_v38  ;;  %3431 = vmatmul.bf16.vlgmr.msra.gmra.mxu3 %v6982_v29  ;;  %v4168_v57 = vor.u32 %v5824_v51, %v4167_v48  ;;  %v3991_v28 = vld [vmem:[%s6639_s23 + $0x8] sm:$0xf]  ;;  %v5844_v48 = vld [vmem:[%s6639_s23 + $0x214] sm:$0xf0] }
 0x12b   : > { %3475 = vmatpush.bf16.msrb.mxu3 %v4488_v54  ;;  %v5888_v54 = vld [vmem:[%s6639_s23 + $0x374] sm:$0xf0]  ;;  %v4247_v45 = vld [vmem:[%s6639_s23 + $0x208] sm:$0xf] }
 0x12c   : > { %3437 = vmatpush.bf16.msrb.mxu0 %v4088_v61  ;;  %v4151_v61 = vld [vmem:[%s6639_s23 + $0x148] sm:$0xf]  ;;  %v5876_v51 = vld [vmem:[%s6639_s23 + $0x314] sm:$0xf0] }
 0x12d   : > { %3450 = vmatpush.bf16.msrb.mxu1 %v4216_v62  ;;  %3463 = vmatpush.bf16.msrb.mxu2 %v4344_v63  ;;  %v4424_v62 = vor.u32 %v5888_v54, %v4423_v53  ;;  %v7246_v63 = vpop.f32.mrf.mxu2  ;;  %v4152_v8 = vor.u32 %v5820_v0, %v4151_v61  ;;  %v5936_v53 = vld [vmem:[%s6639_s23 + $0x4f4] sm:$0xf0]  ;;  %v4743_v54 = vld [vmem:[%s6639_s23 + $0x5e8] sm:$0xf] }
 0x12e   : > { %v4871_v59 = vld [vmem:[%s6639_s23 + $0x6e8] sm:$0xf]  ;;  %v6000_v60 = vld [vmem:[%s6639_s23 + $0x6f4] sm:$0xf0] }
 0x12f   : > { %3476 = vmatpush.bf16.msrb.mxu3 %v4472_v3  ;;  %v7251_v2 = vpop.f32.mrf.mxu3  ;;  %v4407_v3 = vld [vmem:[%s6639_s23 + $0x348] sm:$0xf]  ;;  %v3187_v22 = vpop.f32.mrf.mxu0  ;;  %v5928_v37 = vld [vmem:[%s6639_s23 + $0x4b4] sm:$0xf0] }
 0x130   : > { %3438 = vmatpush.bf16.msrb.mxu0 %v4072_v10  ;;  %v3200_v7 = vpop.f32.mrf.mxu1  ;;  %v4280_v10 = vor.u32 %v5852_v5, %v4279_v1  ;;  %v4408_v16 = vor.u32 %v5884_v4, %v4407_v3  ;;  %v4999_v0 = vld [vmem:[%s6639_s23 + $0x7e8] sm:$0xf]  ;;  %v6032_v1 = vld [vmem:[%s6639_s23 + $0x7f4] sm:$0xf0]  ;;  %v4616_v3 = vor.u32 %v5936_v53, %v4615_v52  ;;  %v4872_v22 = vor.u32 %v6000_v60, %v4871_v59  ;;  %v324_v60 = vld [vmem:[%s6655_s26] sm:$0xff] }
 0x131   : > { %3451 = vmatpush.bf16.msrb.mxu1 %v4200_v12  ;;  %3464 = vmatpush.bf16.msrb.mxu2 %v4328_v14  ;;  %v4007_v12 = vld [vmem:[%s6639_s23 + $0x28] sm:$0xf]  ;;  %v5784_v14 = vld [vmem:[%s6639_s23 + $0x34] sm:$0xf0] }
 0x132   : > { %v4008_v24 = vor.u32 %v5784_v14, %v4007_v12  ;;  %v4599_v27 = vld [vmem:[%s6639_s23 + $0x4c8] sm:$0xf]  ;;  %v5996_v14 = vld [vmem:[%s6639_s23 + $0x6d4] sm:$0xf0] }
 0x133   : > { %3477 = vmatpush.bf16.msrb.mxu3 %v4456_v18  ;;  %v5848_v18 = vld [vmem:[%s6639_s23 + $0x234] sm:$0xf0]  ;;  %v4727_v7 = vld [vmem:[%s6639_s23 + $0x5c8] sm:$0xf] }
 0x134   : > { %3439 = vmatpush.bf16.msrb.mxu0 %v4056_v32  ;;  %v4136_v32 = vor.u32 %v5816_v17, %v4135_v15  ;;  %v4855_v12 = vld [vmem:[%s6639_s23 + $0x6c8] sm:$0xf]  ;;  %v6028_v15 = vld [vmem:[%s6639_s23 + $0x7d4] sm:$0xf0] }
 0x135   : > { %3452 = vmatpush.bf16.msrb.mxu1 %v4184_v39  ;;  %3465 = vmatpush.bf16.msrb.mxu2 %v4312_v40  ;;  %v4264_v39 = vor.u32 %v5848_v18, %v4263_v13  ;;  %v4119_v40 = vld [vmem:[%s6639_s23 + $0x108] sm:$0xf]  ;;  %v3213_v44 = vpop.f32.mrf.mxu2  ;;  %v4856_v18 = vor.u32 %v5996_v14, %v4855_v12  ;;  %v5956_v52 = vld [vmem:[%s6639_s23 + $0x594] sm:$0xf0] }
 0x136   : > { %v4120_v61 = vor.u32 %v5812_v41, %v4119_v40  ;;  %v4583_v19 = vld [vmem:[%s6639_s23 + $0x4a8] sm:$0xf]  ;;  %v6024_v40 = vld [vmem:[%s6639_s23 + $0x7b4] sm:$0xf0] }
 0x137   : > { %3478 = vmatpush.bf16.msrb.mxu3 %v4440_v50  ;;  %v4375_v50 = vld [vmem:[%s6639_s23 + $0x308] sm:$0xf]  ;;  %v3226_v55 = vpop.f32.mrf.mxu3 }
 0x138   : > { %3440 = vmatpush.bf16.msrb.mxu0 %v4040_v56  ;;  %v3173_v56 = vadd.f32 %v7170_v42, %v3160_v20  ;;  %v4376_v42 = vor.u32 %v5876_v51, %v4375_v50  ;;  %v4711_v20 = vld [vmem:[%s6639_s23 + $0x5a8] sm:$0xf] }
 0x139   : > { %3453 = vmatpush.bf16.msrb.mxu1 %v4168_v57  ;;  %3466 = vmatpush.bf16.msrb.mxu2 %v4296_v58  ;;  %v3992_v57 = vor.u32 %v5780_v31, %v3991_v28  ;;  %v5968_v58 = vld [vmem:[%s6639_s23 + $0x5f4] sm:$0xf0]  ;;  %v4695_v50 = vld [vmem:[%s6639_s23 + $0x588] sm:$0xf] }
 0x13a   : > { %v3186_v5 = vadd.f32 %v7227_v21, %v3173_v56  ;;  %v4744_v4 = vor.u32 %v5968_v58, %v4743_v54  ;;  %v4983_v21 = vld [vmem:[%s6639_s23 + $0x7c8] sm:$0xf]  ;;  %v5960_v31 = vld [vmem:[%s6639_s23 + $0x5b4] sm:$0xf0] }
 0x13b   : > { %3479 = vmatpush.bf16.msrb.mxu3 %v4424_v62  ;;  %v4248_v62 = vor.u32 %v5844_v48, %v4247_v45  ;;  %v4984_v28 = vor.u32 %v6028_v15, %v4983_v21  ;;  %v4712_v41 = vor.u32 %v5960_v31, %v4711_v20  ;;  %v5924_v48 = vld [vmem:[%s6639_s23 + $0x494] sm:$0xf0]  ;;  %v4823_v53 = vld [vmem:[%s6639_s23 + $0x688] sm:$0xf] }
 0x13c   : > { %3441 = vmatpush.bf16.msrb.mxu0 %v4024_v6  ;;  %v5932_v6 = vld [vmem:[%s6639_s23 + $0x4d4] sm:$0xf0]  ;;  %v4951_v56 = vld [vmem:[%s6639_s23 + $0x788] sm:$0xf] }
 0x13d   : > { %3454 = vmatpush.bf16.msrb.mxu1 %v4152_v8  ;;  %3467 = vmatpush.bf16.msrb.mxu2 %v4280_v10  ;;  %v5000_v8 = vor.u32 %v6032_v1, %v4999_v0  ;;  %v5964_v10 = vld [vmem:[%s6639_s23 + $0x5d4] sm:$0xf0]  ;;  %v4600_v17 = vor.u32 %v5932_v6, %v4599_v27  ;;  %v4551_v0 = vld [vmem:[%s6639_s23 + $0x468] sm:$0xf] }
 0x13e   : > { %v4728_v13 = vor.u32 %v5964_v10, %v4727_v7  ;;  %v5988_v54 = vld [vmem:[%s6639_s23 + $0x694] sm:$0xf0]  ;;  %v4935_v6 = vld [vmem:[%s6639_s23 + $0x768] sm:$0xf] }
 0x13f   : > { %3480 = vmatpush.bf16.msrb.mxu3 %v4408_v16  ;;  %v3199_v16 = vadd.f32 %v7232_v36, %v3186_v5  ;;  %v4839_v36 = vld [vmem:[%s6639_s23 + $0x6a8] sm:$0xf]  ;;  %v5920_v1 = vld [vmem:[%s6639_s23 + $0x474] sm:$0xf0] }
 0x140   : > { %3442 = vmatpush.bf16.msrb.mxu0 %v4008_v24  ;;  %v4679_v5 = vld [vmem:[%s6639_s23 + $0x568] sm:$0xf]  ;;  %v5984_v27 = vld [vmem:[%s6639_s23 + $0x674] sm:$0xf0]  ;;  %v4552_v10 = vor.u32 %v5920_v1, %v4551_v0 }
 0x141   : > { %3455 = vmatpush.bf16.msrb.mxu1 %v4136_v32  ;;  %3468 = vmatpush.bf16.msrb.mxu2 %v4264_v39  ;;  %v3212_v24 = vadd.f32 %v7246_v63, %v3199_v16  ;;  %v5992_v32 = vld [vmem:[%s6639_s23 + $0x6b4] sm:$0xf0]  ;;  %v4967_v39 = vld [vmem:[%s6639_s23 + $0x7a8] sm:$0xf]  ;;  %v4584_v63 = vor.u32 %v5928_v37, %v4583_v19 }
 0x142   : > { %v4840_v45 = vor.u32 %v5992_v32, %v4839_v36  ;;  %v4968_v44 = vor.u32 %v6024_v40, %v4967_v39  ;;  %v6016_v7 = vld [vmem:[%s6639_s23 + $0x774] sm:$0xf0]  ;;  %v4535_v21 = vld [vmem:[%s6639_s23 + $0x448] sm:$0xf] }
 0x143   : > { %3481 = vmatpush.bf16.msrb.mxu3 %v4392_v33  ;;  %v4567_v33 = vld [vmem:[%s6639_s23 + $0x488] sm:$0xf]  ;;  %v3225_v51 = vadd.f32 %v7251_v2, %v3212_v24  ;;  %v5916_v15 = vld [vmem:[%s6639_s23 + $0x454] sm:$0xf0] }
 0x144   : > { %3443 = vmatpush.bf16.msrb.mxu0 %v3992_v57  ;;  %v3237_v55 = vpop.f32.mrf.mxu0  ;;  %v6020_v57 = vld [vmem:[%s6639_s23 + $0x794] sm:$0xf0]  ;;  %v4568_v59 = vor.u32 %v5924_v48, %v4567_v33  ;;  %v4663_v16 = vld [vmem:[%s6639_s23 + $0x548] sm:$0xf]  ;;  %v4536_v36 = vor.u32 %v5916_v15, %v4535_v21 }
 0x145   : > { %3456 = vmatpush.bf16.msrb.mxu1 %v4120_v61  ;;  %3469 = vmatpush.bf16.msrb.mxu2 %v4248_v62  ;;  %v3238_v58 = vadd.f32 %v3237_v55, %v3225_v51  ;;  %v3250_v2 = vpop.f32.mrf.mxu1  ;;  %v4696_v61 = vor.u32 %v5956_v52, %v4695_v50  ;;  %v4824_v62 = vor.u32 %v5988_v54, %v4823_v53  ;;  %v5980_v19 = vld [vmem:[%s6639_s23 + $0x654] sm:$0xf0]  ;;  %v4919_v20 = vld [vmem:[%s6639_s23 + $0x748] sm:$0xf] }
 0x146   : > { %v6012_v24 = vld [vmem:[%s6639_s23 + $0x754] sm:$0xf0]  ;;  %v4647_v33 = vld [vmem:[%s6639_s23 + $0x528] sm:$0xf] }
 0x147   : > { %3482 = vmatpush.bf16.msrb.mxu3 %v4376_v42  ;;  %3444 = vmatmul.bf16.vlgmr.msrb.gmra.mxu0 %v6770_v25  ;;  %v4952_v42 = vor.u32 %v6020_v57, %v4951_v56  ;;  %v4920_v48 = vor.u32 %v6012_v24, %v4919_v20  ;;  %v5944_v50 = vld [vmem:[%s6639_s23 + $0x534] sm:$0xf0]  ;;  %v4775_v51 = vld [vmem:[%s6639_s23 + $0x628] sm:$0xf] }
 0x148   : > { %3488 = vmatpush.bf16.msra.mxu0 %v4616_v3  ;;  %3470 = vmatmul.bf16.vlgmr.msrb.gmra.mxu2 %v6756_v9  ;;  %v3251_v3 = vadd.f32 %v3250_v2, %v3238_v58  ;;  %v4903_v52 = vld [vmem:[%s6639_s23 + $0x728] sm:$0xf]  ;;  %v6008_v53 = vld [vmem:[%s6639_s23 + $0x734] sm:$0xf0]  ;;  %v4648_v57 = vor.u32 %v5944_v50, %v4647_v33 }
 0x149   : > { %3501 = vmatpush.bf16.msra.mxu1 %v4744_v4  ;;  %3514 = vmatpush.bf16.msra.mxu2 %v4872_v22  ;;  %v5952_v4 = vld [vmem:[%s6639_s23 + $0x574] sm:$0xf0]  ;;  %v4807_v22 = vld [vmem:[%s6639_s23 + $0x668] sm:$0xf] }
 0x14a   : > { %3483 = vmatmul.bf16.vlgmr.msrb.gmra.mxu3 %v6759_v11  ;;  %3457 = vmatmul.bf16.vlgmr.msrb.gmra.mxu1 %v6773_v26  ;;  %v4680_v12 = vor.u32 %v5952_v4, %v4679_v5  ;;  %v4808_v14 = vor.u32 %v5984_v27, %v4807_v22  ;;  %v4503_v55 = vld [vmem:[%s6639_s23 + $0x408] sm:$0xf]  ;;  %v5908_v56 = vld [vmem:[%s6639_s23 + $0x414] sm:$0xf0] }
 0x14b   : > { %3527 = vmatpush.bf16.msra.mxu3 %v5000_v8  ;;  %v3800_v8 = vadd.f32 %v3251_v3, %v324_v60  ;;  %v5940_v60 = vld [vmem:[%s6639_s23 + $0x514] sm:$0xf0]  ;;  %v4759_v2 = vld [vmem:[%s6639_s23 + $0x608] sm:$0xf]  ;;  %v4504_v27 = vor.u32 %v5908_v56, %v4503_v55 }
 0x14c   : > { %3489 = vmatpush.bf16.msra.mxu0 %v4600_v17  ;;  %v4936_v17 = vor.u32 %v6016_v7, %v4935_v6  ;;  %v3239_v31 = vpop.f32.mrf.mxu0  ;;  %v4887_v0 = vld [vmem:[%s6639_s23 + $0x708] sm:$0xf]  ;;  %v6004_v1 = vld [vmem:[%s6639_s23 + $0x714] sm:$0xf0] }
 0x14d   : > { %3502 = vmatpush.bf16.msra.mxu1 %v4728_v13  ;;  %3515 = vmatpush.bf16.msra.mxu2 %v4856_v18  ;;  %3804 = vst [vmem:[%s6655_s26] sm:$0xff] %v3800_v8  ;;  %v5948_v13 = vld [vmem:[%s6639_s23 + $0x554] sm:$0xf0]  ;;  %v4791_v18 = vld [vmem:[%s6639_s23 + $0x648] sm:$0xf]  ;;  %v3263_v37 = vpop.f32.mrf.mxu2  ;;  %v3252_v39 = vpop.f32.mrf.mxu1  ;;  %v4888_v15 = vor.u32 %v6004_v1, %v4887_v0 }
 0x14e   : > { %v4664_v40 = vor.u32 %v5948_v13, %v4663_v16  ;;  %v6064_v3 = vld [vmem:[%s6639_s23 + $0x8f4] sm:$0xf0]  ;;  %v5255_v4 = vld [vmem:[%s6639_s23 + $0x9e8] sm:$0xf] }
 0x14f   : > { %3528 = vmatpush.bf16.msra.mxu3 %v4984_v28  ;;  %v3276_v28 = vpop.f32.mrf.mxu3  ;;  %v6096_v6 = vld [vmem:[%s6639_s23 + $0x9f4] sm:$0xf0]  ;;  %v5383_v7 = vld [vmem:[%s6639_s23 + $0xae8] sm:$0xf] }
 0x150   : > { %3490 = vmatpush.bf16.msra.mxu0 %v4584_v63  ;;  %v7332_v32 = vadd.f32 %v3276_v28, %v3263_v37  ;;  %v4792_v63 = vor.u32 %v5980_v19, %v4791_v18  ;;  %v6128_v8 = vld [vmem:[%s6639_s23 + $0xaf4] sm:$0xf0]  ;;  %v5111_v18 = vld [vmem:[%s6639_s23 + $0x8c8] sm:$0xf] }
 0x151   : > { %3503 = vmatpush.bf16.msra.mxu1 %v4712_v41  ;;  %3516 = vmatpush.bf16.msra.mxu2 %v4840_v45  ;;  %v4519_v41 = vld [vmem:[%s6639_s23 + $0x428] sm:$0xf]  ;;  %v5912_v45 = vld [vmem:[%s6639_s23 + $0x434] sm:$0xf0]  ;;  %v5384_v13 = vor.u32 %v6128_v8, %v5383_v7 }
 0x152   : > { %v4520_v54 = vor.u32 %v5912_v45, %v4519_v41  ;;  %v6160_v21 = vld [vmem:[%s6639_s23 + $0xbf4] sm:$0xf0]  ;;  %v5239_v37 = vld [vmem:[%s6639_s23 + $0x9c8] sm:$0xf] }
 0x153   : > { %3529 = vmatpush.bf16.msra.mxu3 %v4968_v44  ;;  %v5976_v44 = vld [vmem:[%s6639_s23 + $0x634] sm:$0xf0]  ;;  %v5367_v28 = vld [vmem:[%s6639_s23 + $0xac8] sm:$0xf] }
 0x154   : > { %3491 = vmatpush.bf16.msra.mxu0 %v4568_v59  ;;  %v4776_v58 = vor.u32 %v5976_v44, %v4775_v51  ;;  %v4631_v59 = vld [vmem:[%s6639_s23 + $0x508] sm:$0xf]  ;;  %v6060_v19 = vld [vmem:[%s6639_s23 + $0x8d4] sm:$0xf0] }
 0x155   : > { %3504 = vmatpush.bf16.msra.mxu1 %v4696_v61  ;;  %3517 = vmatpush.bf16.msra.mxu2 %v4824_v62  ;;  %v4904_v61 = vor.u32 %v6008_v53, %v4903_v52  ;;  %v5972_v62 = vld [vmem:[%s6639_s23 + $0x614] sm:$0xf0]  ;;  %v3265_v5 = vpop.f32.mrf.mxu2  ;;  %v5095_v45 = vld [vmem:[%s6639_s23 + $0x8a8] sm:$0xf] }
 0x156   : > { %v6092_v24 = vld [vmem:[%s6639_s23 + $0x9d4] sm:$0xf0]  ;;  %v5351_v44 = vld [vmem:[%s6639_s23 + $0xaa8] sm:$0xf] }
 0x157   : > { %3530 = vmatpush.bf16.msra.mxu3 %v4952_v42  ;;  %v5127_v42 = vld [vmem:[%s6639_s23 + $0x8e8] sm:$0xf]  ;;  %v3278_v22 = vpop.f32.mrf.mxu3  ;;  %v6124_v31 = vld [vmem:[%s6639_s23 + $0xad4] sm:$0xf0] }
 0x158   : > { %3492 = vmatpush.bf16.msra.mxu0 %v4552_v10  ;;  %v4632_v10 = vor.u32 %v5940_v60, %v4631_v59  ;;  %v5128_v16 = vor.u32 %v6064_v3, %v5127_v42  ;;  %v6156_v39 = vld [vmem:[%s6639_s23 + $0xbd4] sm:$0xf0]  ;;  %v5368_v41 = vor.u32 %v6124_v31, %v5367_v28  ;;  %v5479_v53 = vld [vmem:[%s6639_s23 + $0xba8] sm:$0xf] }
 0x159   : > { %3505 = vmatpush.bf16.msra.mxu1 %v4680_v12  ;;  %3518 = vmatpush.bf16.msra.mxu2 %v4808_v14  ;;  %v4760_v12 = vor.u32 %v5972_v62, %v4759_v2  ;;  %v5511_v14 = vld [vmem:[%s6639_s23 + $0xbe8] sm:$0xf]  ;;  %v6056_v33 = vld [vmem:[%s6639_s23 + $0x8b4] sm:$0xf0] }
 0x15a   : > { %v5512_v20 = vor.u32 %v6160_v21, %v5511_v14  ;;  %v6088_v51 = vld [vmem:[%s6639_s23 + $0x9b4] sm:$0xf0]  ;;  %v5096_v55 = vor.u32 %v6056_v33, %v5095_v45  ;;  %v5207_v60 = vld [vmem:[%s6639_s23 + $0x988] sm:$0xf] }
 0x15b   : > { %3531 = vmatpush.bf16.msra.mxu3 %v4936_v17  ;;  %v5256_v17 = vor.u32 %v6096_v6, %v5255_v4  ;;  %v6120_v52 = vld [vmem:[%s6639_s23 + $0xab4] sm:$0xf0]  ;;  %v5335_v62 = vld [vmem:[%s6639_s23 + $0xa88] sm:$0xf] }
 0x15c   : > { %3493 = vmatpush.bf16.msra.mxu0 %v4536_v36  ;;  %v5495_v36 = vld [vmem:[%s6639_s23 + $0xbc8] sm:$0xf]  ;;  %v6052_v59 = vld [vmem:[%s6639_s23 + $0x894] sm:$0xf0] }
 0x15d   : > { %3506 = vmatpush.bf16.msra.mxu1 %v4664_v40  ;;  %3519 = vmatpush.bf16.msra.mxu2 %v4792_v63  ;;  %v5112_v40 = vor.u32 %v6060_v19, %v5111_v18  ;;  %v5240_v63 = vor.u32 %v6092_v24, %v5239_v37  ;;  %v5496_v50 = vor.u32 %v6156_v39, %v5495_v36  ;;  %v6116_v0 = vld [vmem:[%s6639_s23 + $0xa94] sm:$0xf0]  ;;  %v5463_v1 = vld [vmem:[%s6639_s23 + $0xb88] sm:$0xf] }
 0x15e   : > { %v6148_v5 = vld [vmem:[%s6639_s23 + $0xb94] sm:$0xf0]  ;;  %v5336_v22 = vor.u32 %v6116_v0, %v5335_v62  ;;  %v5191_v7 = vld [vmem:[%s6639_s23 + $0x968] sm:$0xf] }
 0x15f   : > { %3532 = vmatpush.bf16.msra.mxu3 %v4920_v48  ;;  %v5223_v48 = vld [vmem:[%s6639_s23 + $0x9a8] sm:$0xf]  ;;  %v6048_v6 = vld [vmem:[%s6639_s23 + $0x874] sm:$0xf0] }
 0x160   : > { %3494 = vmatpush.bf16.msra.mxu0 %v4520_v54  ;;  %v6152_v54 = vld [vmem:[%s6639_s23 + $0xbb4] sm:$0xf0]  ;;  %v5224_v56 = vor.u32 %v6088_v51, %v5223_v48  ;;  %v5319_v14 = vld [vmem:[%s6639_s23 + $0xa68] sm:$0xf] }
 0x161   : > { %3507 = vmatpush.bf16.msra.mxu1 %v4648_v57  ;;  %3520 = vmatpush.bf16.msra.mxu2 %v4776_v58  ;;  %v5352_v57 = vor.u32 %v6120_v52, %v5351_v44  ;;  %v5079_v58 = vld [vmem:[%s6639_s23 + $0x888] sm:$0xf]  ;;  %v5480_v2 = vor.u32 %v6152_v54, %v5479_v53  ;;  %v6112_v21 = vld [vmem:[%s6639_s23 + $0xa74] sm:$0xf0] }
 0x162   : > { %v5080_v42 = vor.u32 %v6052_v59, %v5079_v58  ;;  %v5320_v18 = vor.u32 %v6112_v21, %v5319_v14  ;;  %v5047_v19 = vld [vmem:[%s6639_s23 + $0x848] sm:$0xf]  ;;  %v6044_v37 = vld [vmem:[%s6639_s23 + $0x854] sm:$0xf0] }
 0x163   : > { %3533 = vmatpush.bf16.msra.mxu3 %v4904_v61  ;;  %v6084_v61 = vld [vmem:[%s6639_s23 + $0x994] sm:$0xf0]  ;;  %v5303_v36 = vld [vmem:[%s6639_s23 + $0xa48] sm:$0xf]  ;;  %v5048_v45 = vor.u32 %v6044_v37, %v5047_v19  ;;  %v5838_v37 = vld [vmem:[%s6639_s23 + $0x1ec] sm:$0xf] }
 0x164   : > { %3495 = vmatpush.bf16.msra.mxu0 %v4504_v27  ;;  %v7386_v3 = vpop.f32.mrf.mxu0  ;;  %v5208_v4 = vor.u32 %v6084_v61, %v5207_v60  ;;  %v5063_v27 = vld [vmem:[%s6639_s23 + $0x868] sm:$0xf]  ;;  %v6076_v31 = vld [vmem:[%s6639_s23 + $0x954] sm:$0xf0] }
 0x165   : > { %3508 = vmatpush.bf16.msra.mxu1 %v4632_v10  ;;  %3521 = vmatpush.bf16.msra.mxu2 %v4760_v12  ;;  %v5464_v10 = vor.u32 %v6148_v5, %v5463_v1  ;;  %v6080_v12 = vld [vmem:[%s6639_s23 + $0x974] sm:$0xf0]  ;;  %v5031_v51 = vld [vmem:[%s6639_s23 + $0x828] sm:$0xf] }
 0x166   : > { %v6108_v39 = vld [vmem:[%s6639_s23 + $0xa54] sm:$0xf0]  ;;  %v5159_v52 = vld [vmem:[%s6639_s23 + $0x928] sm:$0xf] }
 0x167   : > { %3534 = vmatpush.bf16.msra.mxu3 %v4888_v15  ;;  %3496 = vmatmul.bf16.vlgmr.msra.gmra.mxu0 %v6829_v46  ;;  %v7391_v8 = vpop.f32.mrf.mxu1  ;;  %v5447_v15 = vld [vmem:[%s6639_s23 + $0xb68] sm:$0xf]  ;;  %v6040_v44 = vld [vmem:[%s6639_s23 + $0x834] sm:$0xf0] }
 0x168   : > { %3540 = vmatpush.bf16.msrb.mxu0 %v5128_v16  ;;  %3522 = vmatmul.bf16.vlgmr.msra.gmra.mxu2 %v6825_v43  ;;  %v6144_v16 = vld [vmem:[%s6639_s23 + $0xb74] sm:$0xf0]  ;;  %v5415_v58 = vld [vmem:[%s6639_s23 + $0xb28] sm:$0xf]  ;;  %v5032_v60 = vor.u32 %v6040_v44, %v5031_v51  ;;  %v4089_v51 = vld [vmem:[%s6639_s23 + $0xd8] sm:$0xf0] }
 0x169   : > { %3553 = vmatpush.bf16.msrb.mxu1 %v5256_v17  ;;  %3566 = vmatpush.bf16.msrb.mxu2 %v5384_v13  ;;  %v5064_v17 = vor.u32 %v6048_v6, %v5063_v27  ;;  %v5192_v13 = vor.u32 %v6080_v12, %v5191_v7  ;;  %v5448_v28 = vor.u32 %v6144_v16, %v5447_v15  ;;  %v6136_v59 = vld [vmem:[%s6639_s23 + $0xb34] sm:$0xf0]  ;;  %v5143_v1 = vld [vmem:[%s6639_s23 + $0x908] sm:$0xf]  ;;  %v5834_v44 = vld [vmem:[%s6639_s23 + $0x1cc] sm:$0xf] }
 0x16a   : > { %3535 = vmatmul.bf16.vlgmr.msra.gmra.mxu3 %v6831_v47  ;;  %3509 = vmatmul.bf16.vlgmr.msra.gmra.mxu1 %v6833_v49  ;;  %v6036_v61 = vld [vmem:[%s6639_s23 + $0x814] sm:$0xf0]  ;;  %v5399_v6 = vld [vmem:[%s6639_s23 + $0xb08] sm:$0xf] }
 0x16b   : > { %3579 = vmatpush.bf16.msrb.mxu3 %v5512_v20  ;;  %v5175_v20 = vld [vmem:[%s6639_s23 + $0x948] sm:$0xf]  ;;  %v7401_v24 = vpop.f32.mrf.mxu2  ;;  %v6068_v5 = vld [vmem:[%s6639_s23 + $0x914] sm:$0xf0] }
 0x16c   : > { %3541 = vmatpush.bf16.msrb.mxu0 %v5112_v40  ;;  %v3291_v33 = vpop.f32.mrf.mxu0  ;;  %v5176_v48 = vor.u32 %v6076_v31, %v5175_v20  ;;  %v6100_v27 = vld [vmem:[%s6639_s23 + $0xa14] sm:$0xf0]  ;;  %v5639_v12 = vld [vmem:[%s6639_s23 + $0xce8] sm:$0xf]  ;;  %v4233_v20 = vld [vmem:[%s6639_s23 + $0x1f8] sm:$0xf0] }
 0x16d   : > { %3554 = vmatpush.bf16.msrb.mxu1 %v5240_v63  ;;  %3567 = vmatpush.bf16.msrb.mxu2 %v5368_v41  ;;  %v7406_v40 = vpop.f32.mrf.mxu3  ;;  %v5431_v63 = vld [vmem:[%s6639_s23 + $0xb48] sm:$0xf]  ;;  %v6140_v41 = vld [vmem:[%s6639_s23 + $0xb54] sm:$0xf0]  ;;  %v4236_v33 = vor.u32 %v5838_v37, %v4233_v20 }
 0x16e   : > { %v5432_v54 = vor.u32 %v6140_v41, %v5431_v63  ;;  %v6132_v7 = vld [vmem:[%s6639_s23 + $0xb14] sm:$0xf0]  ;;  %v5767_v21 = vld [vmem:[%s6639_s23 + $0xde8] sm:$0xf] }
 0x16f   : > { %3580 = vmatpush.bf16.msrb.mxu3 %v5496_v50  ;;  %v5304_v50 = vor.u32 %v6108_v39, %v5303_v36  ;;  %v3304_v53 = vpop.f32.mrf.mxu1  ;;  %v6192_v14 = vld [vmem:[%s6639_s23 + $0xcf4] sm:$0xf0]  ;;  %v5623_v63 = vld [vmem:[%s6639_s23 + $0xcc8] sm:$0xf] }
 0x170   : > { %3542 = vmatpush.bf16.msrb.mxu0 %v5096_v55  ;;  %v6072_v55 = vld [vmem:[%s6639_s23 + $0x934] sm:$0xf0]  ;;  %v5640_v31 = vor.u32 %v6192_v14, %v5639_v12  ;;  %v4057_v12 = vld [vmem:[%s6639_s23 + $0x98] sm:$0xf0]  ;;  %v5703_v20 = vld [vmem:[%s6639_s23 + $0xd68] sm:$0xf] }
 0x171   : > { %3555 = vmatpush.bf16.msrb.mxu1 %v5224_v56  ;;  %3568 = vmatpush.bf16.msrb.mxu2 %v5352_v57  ;;  %v5287_v56 = vld [vmem:[%s6639_s23 + $0xa28] sm:$0xf]  ;;  %v6104_v57 = vld [vmem:[%s6639_s23 + $0xa34] sm:$0xf0]  ;;  %v5160_v62 = vor.u32 %v6072_v55, %v5159_v52  ;;  %v4217_v52 = vld [vmem:[%s6639_s23 + $0x1d8] sm:$0xf0] }
 0x172   : > { %v5288_v0 = vor.u32 %v6104_v57, %v5287_v56  ;;  %v6224_v16 = vld [vmem:[%s6639_s23 + $0xdf4] sm:$0xf0]  ;;  %v5607_v56 = vld [vmem:[%s6639_s23 + $0xca8] sm:$0xf] }
 0x173   : > { %3581 = vmatpush.bf16.msrb.mxu3 %v5480_v2  ;;  %v5015_v2 = vld [vmem:[%s6639_s23 + $0x808] sm:$0xf]  ;;  %v5768_v36 = vor.u32 %v6224_v16, %v5767_v21  ;;  %v6188_v41 = vld [vmem:[%s6639_s23 + $0xcd4] sm:$0xf0]  ;;  %v5826_v21 = vld [vmem:[%s6639_s23 + $0x18c] sm:$0xf] }
 0x174   : > { %3543 = vmatpush.bf16.msrb.mxu0 %v5080_v42  ;;  %v5271_v42 = vld [vmem:[%s6639_s23 + $0xa08] sm:$0xf]  ;;  %v5016_v15 = vor.u32 %v6036_v61, %v5015_v2  ;;  %v5624_v53 = vor.u32 %v6188_v41, %v5623_v63  ;;  %v6184_v57 = vld [vmem:[%s6639_s23 + $0xcb4] sm:$0xf0]  ;;  %v5798_v2 = vld [vmem:[%s6639_s23 + $0xac] sm:$0xf] }
 0x175   : > { %3556 = vmatpush.bf16.msrb.mxu1 %v5208_v4  ;;  %3569 = vmatpush.bf16.msrb.mxu2 %v5336_v22  ;;  %v3317_v4 = vpop.f32.mrf.mxu2  ;;  %v5416_v22 = vor.u32 %v6136_v59, %v5415_v58  ;;  %v5272_v19 = vor.u32 %v6100_v27, %v5271_v42  ;;  %v5735_v58 = vld [vmem:[%s6639_s23 + $0xda8] sm:$0xf]  ;;  %v4220_v59 = vor.u32 %v5834_v44, %v4217_v52  ;;  %v4073_v61 = vld [vmem:[%s6639_s23 + $0xb8] sm:$0xf0]  ;;  %v6176_v37 = vld [vmem:[%s6639_s23 + $0xc74] sm:$0xf0] }
 0x176   : > { %v4076_v42 = vor.u32 %v5798_v2, %v4073_v61  ;;  %v5591_v4 = vld [vmem:[%s6639_s23 + $0xc88] sm:$0xf]  ;;  %v5822_v63 = vld [vmem:[%s6639_s23 + $0x16c] sm:$0xf]  ;;  %v4169_v41 = vld [vmem:[%s6639_s23 + $0x178] sm:$0xf0] }
 0x177   : > { %3582 = vmatpush.bf16.msrb.mxu3 %v5464_v10  ;;  %v3330_v10 = vpop.f32.mrf.mxu3  ;;  %v5719_v27 = vld [vmem:[%s6639_s23 + $0xd88] sm:$0xf]  ;;  %v6172_v44 = vld [vmem:[%s6639_s23 + $0xc54] sm:$0xf0] }
 0x178   : > { %3544 = vmatpush.bf16.msrb.mxu0 %v5064_v17  ;;  %v5806_v17 = vld [vmem:[%s6639_s23 + $0xec] sm:$0xf]  ;;  %v5687_v52 = vld [vmem:[%s6639_s23 + $0xd48] sm:$0xf] }
 0x179   : > { %3557 = vmatpush.bf16.msrb.mxu1 %v5192_v13  ;;  %3570 = vmatpush.bf16.msrb.mxu2 %v5320_v18  ;;  %v4105_v13 = vld [vmem:[%s6639_s23 + $0xf8] sm:$0xf0]  ;;  %v5144_v18 = vor.u32 %v6068_v5, %v5143_v1  ;;  %v5608_v1 = vor.u32 %v6184_v57, %v5607_v56  ;;  %v5794_v10 = vld [vmem:[%s6639_s23 + $0x8c] sm:$0xf] }
 0x17a   : > { %v4108_v39 = vor.u32 %v5806_v17, %v4105_v13  ;;  %v5786_v56 = vld [vmem:[%s6639_s23 + $0x4c] sm:$0xf]  ;;  %v4025_v57 = vld [vmem:[%s6639_s23 + $0x58] sm:$0xf0] }
 0x17b   : > { %3583 = vmatpush.bf16.msrb.mxu3 %v5448_v28  ;;  %v5400_v28 = vor.u32 %v6132_v7, %v5399_v6  ;;  %v6212_v7 = vld [vmem:[%s6639_s23 + $0xd94] sm:$0xf0] }
 0x17c   : > { %3545 = vmatpush.bf16.msrb.mxu0 %v5048_v45  ;;  %v5751_v45 = vld [vmem:[%s6639_s23 + $0xdc8] sm:$0xf]  ;;  %v5720_v13 = vor.u32 %v6212_v7, %v5719_v27  ;;  %v5782_v27 = vld [vmem:[%s6639_s23 + $0x2c] sm:$0xf] }
 0x17d   : > { %3558 = vmatpush.bf16.msrb.mxu1 %v5176_v48  ;;  %3571 = vmatpush.bf16.msrb.mxu2 %v5304_v50  ;;  %v6220_v48 = vld [vmem:[%s6639_s23 + $0xdd4] sm:$0xf0]  ;;  %v5802_v50 = vld [vmem:[%s6639_s23 + $0xcc] sm:$0xf] }
 0x17e   : > { %v4092_v55 = vor.u32 %v5802_v50, %v4089_v51  ;;  %v5559_v51 = vld [vmem:[%s6639_s23 + $0xc48] sm:$0xf]  ;;  %v5814_v7 = vld [vmem:[%s6639_s23 + $0x12c] sm:$0xf] }
 0x17f   : > { %3584 = vmatpush.bf16.msrb.mxu3 %v5432_v54  ;;  %v5752_v54 = vor.u32 %v6220_v48, %v5751_v45 }
 0x180   : > { %3546 = vmatpush.bf16.msrb.mxu0 %v5032_v60  ;;  %v6216_v60 = vld [vmem:[%s6639_s23 + $0xdb4] sm:$0xf0] }
 0x181   : > { %3559 = vmatpush.bf16.msrb.mxu1 %v5160_v62  ;;  %3572 = vmatpush.bf16.msrb.mxu2 %v5288_v0  ;;  %v5830_v62 = vld [vmem:[%s6639_s23 + $0x1ac] sm:$0xf]  ;;  %v4201_v0 = vld [vmem:[%s6639_s23 + $0x1b8] sm:$0xf0]  ;;  %v5736_v5 = vor.u32 %v6216_v60, %v5735_v58  ;;  %v5560_v60 = vor.u32 %v6172_v44, %v5559_v51 }
 0x182   : > { %v4204_v6 = vor.u32 %v5830_v62, %v4201_v0  ;;  %v4028_v0 = vor.u32 %v5786_v56, %v4025_v57  ;;  %v4617_v51 = vld [vmem:[%s6639_s23 + $0x4f8] sm:$0xf0] }
 0x183   : > { %3585 = vmatpush.bf16.msrb.mxu3 %v5416_v22  ;;  %v6180_v22 = vld [vmem:[%s6639_s23 + $0xc94] sm:$0xf0]  ;;  %v4745_v56 = vld [vmem:[%s6639_s23 + $0x5f8] sm:$0xf0] }
 0x184   : > { %3547 = vmatpush.bf16.msrb.mxu0 %v5016_v15  ;;  %v7460_v14 = vpop.f32.mrf.mxu0  ;;  %v4185_v15 = vld [vmem:[%s6639_s23 + $0x198] sm:$0xf0]  ;;  %v5592_v16 = vor.u32 %v6180_v22, %v5591_v4  ;;  %v6200_v22 = vld [vmem:[%s6639_s23 + $0xd34] sm:$0xf0] }
 0x185   : > { %3560 = vmatpush.bf16.msrb.mxu1 %v5144_v18  ;;  %3573 = vmatpush.bf16.msrb.mxu2 %v5272_v19  ;;  %v4060_v18 = vor.u32 %v5794_v10, %v4057_v12  ;;  %v5575_v19 = vld [vmem:[%s6639_s23 + $0xc68] sm:$0xf] }
 0x186   : > { %v5576_v45 = vor.u32 %v6176_v37, %v5575_v19  ;;  %v5527_v12 = vld [vmem:[%s6639_s23 + $0xc08] sm:$0xf]  ;;  %v6196_v19 = vld [vmem:[%s6639_s23 + $0xd14] sm:$0xf0]  ;;  %v5778_v37 = vld [vmem:[%s6639_s23 + $0xc] sm:$0xf] }
 0x187   : > { %3586 = vmatpush.bf16.msrb.mxu3 %v5400_v28  ;;  %3548 = vmatmul.bf16.vlgmr.msrb.gmra.mxu0 %v6900_v30  ;;  %v7464_v17 = vpop.f32.mrf.mxu1  ;;  %v4188_v28 = vor.u32 %v5826_v21, %v4185_v15  ;;  %v6164_v21 = vld [vmem:[%s6639_s23 + $0xc14] sm:$0xf0] }
 0x188   : > { %3592 = vmatpush.bf16.msra.mxu0 %v5640_v31  ;;  %3574 = vmatmul.bf16.vlgmr.msrb.gmra.mxu2 %v6905_v34  ;;  %v6208_v31 = vld [vmem:[%s6639_s23 + $0xd74] sm:$0xf0] }
 0x189   : > { %3605 = vmatpush.bf16.msra.mxu1 %v5768_v36  ;;  %3618 = vmatpush.bf16.msra.mxu2 %v4108_v39  ;;  %v5790_v36 = vld [vmem:[%s6639_s23 + $0x6c] sm:$0xf]  ;;  %v4041_v39 = vld [vmem:[%s6639_s23 + $0x78] sm:$0xf0]  ;;  %v5704_v48 = vor.u32 %v6208_v31, %v5703_v20 }
 0x18a   : > { %3561 = vmatmul.bf16.vlgmr.msrb.gmra.mxu1 %v6907_v35  ;;  %3587 = vmatmul.bf16.vlgmr.msrb.gmra.mxu3 %v6911_v38  ;;  %v4044_v50 = vor.u32 %v5790_v36, %v4041_v39  ;;  %v5810_v31 = vld [vmem:[%s6639_s23 + $0x10c] sm:$0xf]  ;;  %v4121_v36 = vld [vmem:[%s6639_s23 + $0x118] sm:$0xf0] }
 0x18b   : > { %3631 = vmatpush.bf16.msra.mxu3 %v4236_v33  ;;  %v3290_v33 = vadd.f32 %v7386_v3, %v7332_v32  ;;  %v5818_v32 = vld [vmem:[%s6639_s23 + $0x14c] sm:$0xf]  ;;  %v4153_v3 = vld [vmem:[%s6639_s23 + $0x158] sm:$0xf0]  ;;  %v4124_v57 = vor.u32 %v5810_v31, %v4121_v36 }
 0x18c   : > { %3593 = vmatpush.bf16.msra.mxu0 %v5624_v53  ;;  %v4172_v53 = vor.u32 %v5822_v63, %v4169_v41  ;;  %v4156_v4 = vor.u32 %v5818_v32, %v4153_v3  ;;  %v4361_v63 = vld [vmem:[%s6639_s23 + $0x2f8] sm:$0xf0]  ;;  %v5902_v41 = vld [vmem:[%s6639_s23 + $0x3ec] sm:$0xf] }
 0x18d   : > { %3606 = vmatpush.bf16.msra.mxu1 %v5752_v54  ;;  %3619 = vmatpush.bf16.msra.mxu2 %v4092_v55  ;;  %v7479_v54 = vpop.f32.mrf.mxu2  ;;  %v6204_v55 = vld [vmem:[%s6639_s23 + $0xd54] sm:$0xf0]  ;;  %v7484_v58 = vpop.f32.mrf.mxu3  ;;  %v3303_v61 = vadd.f32 %v7391_v8, %v3290_v33  ;;  %v4137_v8 = vld [vmem:[%s6639_s23 + $0x138] sm:$0xf0]  ;;  %v5528_v33 = vor.u32 %v6164_v21, %v5527_v12  ;;  %v5890_v31 = vld [vmem:[%s6639_s23 + $0x38c] sm:$0xf] }
 0x18e   : > { %v5688_v62 = vor.u32 %v6204_v55, %v5687_v52  ;;  %v4140_v20 = vor.u32 %v5814_v7, %v4137_v8  ;;  %v5966_v55 = vld [vmem:[%s6639_s23 + $0x5ec] sm:$0xf]  ;;  %v4329_v8 = vld [vmem:[%s6639_s23 + $0x2b8] sm:$0xf0] }
 0x18f   : > { %3632 = vmatpush.bf16.msra.mxu3 %v4220_v59  ;;  %v3343_v59 = vpop.f32.mrf.mxu0  ;;  %v3356_v2 = vpop.f32.mrf.mxu1  ;;  %v3316_v15 = vadd.f32 %v7401_v24, %v3303_v61  ;;  %v5870_v24 = vld [vmem:[%s6639_s23 + $0x2ec] sm:$0xf]  ;;  %v4457_v21 = vld [vmem:[%s6639_s23 + $0x3b8] sm:$0xf0] }
 0x190   : > { %3594 = vmatpush.bf16.msra.mxu0 %v5608_v1  ;;  %v5543_v1 = vld [vmem:[%s6639_s23 + $0xc28] sm:$0xf]  ;;  %v4364_v32 = vor.u32 %v5870_v24, %v4361_v63  ;;  %v5866_v2 = vld [vmem:[%s6639_s23 + $0x2cc] sm:$0xf] }
 0x191   : > { %3607 = vmatpush.bf16.msra.mxu1 %v5736_v5  ;;  %3620 = vmatpush.bf16.msra.mxu2 %v4076_v42  ;;  %v6168_v5 = vld [vmem:[%s6639_s23 + $0xc34] sm:$0xf0]  ;;  %v5671_v42 = vld [vmem:[%s6639_s23 + $0xd28] sm:$0xf]  ;;  %v3329_v44 = vadd.f32 %v7406_v40, %v3316_v15  ;;  %v4345_v40 = vld [vmem:[%s6639_s23 + $0x2d8] sm:$0xf0] }
 0x192   : > { %v5544_v10 = vor.u32 %v6168_v5, %v5543_v1  ;;  %v5898_v61 = vld [vmem:[%s6639_s23 + $0x3cc] sm:$0xf]  ;;  %v4601_v5 = vld [vmem:[%s6639_s23 + $0x4d8] sm:$0xf0] }
 0x193   : > { %3633 = vmatpush.bf16.msra.mxu3 %v4204_v6  ;;  %v4009_v6 = vld [vmem:[%s6639_s23 + $0x38] sm:$0xf0]  ;;  %v3342_v3 = vadd.f32 %v7460_v14, %v3329_v44  ;;  %v5930_v1 = vld [vmem:[%s6639_s23 + $0x4cc] sm:$0xf]  ;;  %v4348_v14 = vor.u32 %v5866_v2, %v4345_v40 }
 0x194   : > { %3595 = vmatpush.bf16.msra.mxu0 %v5592_v16  ;;  %v5672_v16 = vor.u32 %v6200_v22, %v5671_v42  ;;  %v5962_v42 = vld [vmem:[%s6639_s23 + $0x5cc] sm:$0xf] }
 0x195   : > { %3608 = vmatpush.bf16.msra.mxu1 %v5720_v13  ;;  %3621 = vmatpush.bf16.msra.mxu2 %v4060_v18  ;;  %v4012_v13 = vor.u32 %v5782_v27, %v4009_v6  ;;  %v5655_v18 = vld [vmem:[%s6639_s23 + $0xd08] sm:$0xf]  ;;  %v3369_v39 = vpop.f32.mrf.mxu2  ;;  %v3355_v22 = vadd.f32 %v7464_v17, %v3342_v3  ;;  %v4604_v6 = vor.u32 %v5930_v1, %v4601_v5  ;;  %v5862_v7 = vld [vmem:[%s6639_s23 + $0x2ac] sm:$0xf] }
 0x196   : > { %v5656_v52 = vor.u32 %v6196_v19, %v5655_v18  ;;  %v5926_v15 = vld [vmem:[%s6639_s23 + $0x4ac] sm:$0xf]  ;;  %v4713_v18 = vld [vmem:[%s6639_s23 + $0x5b8] sm:$0xf0]  ;;  %v4332_v19 = vor.u32 %v5862_v7, %v4329_v8 }
 0x197   : > { %3634 = vmatpush.bf16.msra.mxu3 %v4188_v28  ;;  %v3993_v28 = vld [vmem:[%s6639_s23 + $0x18] sm:$0xf0]  ;;  %v3368_v17 = vadd.f32 %v7479_v54, %v3355_v22  ;;  %v5858_v54 = vld [vmem:[%s6639_s23 + $0x28c] sm:$0xf] }
 0x198   : > { %3596 = vmatpush.bf16.msra.mxu0 %v5576_v45  ;;  %v3382_v45 = vpop.f32.mrf.mxu3  ;;  %v4441_v39 = vld [vmem:[%s6639_s23 + $0x398] sm:$0xf0]  ;;  %v5922_v24 = vld [vmem:[%s6639_s23 + $0x48c] sm:$0xf] }
 0x199   : > { %3609 = vmatpush.bf16.msra.mxu1 %v5704_v48  ;;  %3622 = vmatpush.bf16.msra.mxu2 %v4044_v50  ;;  %v4489_v48 = vld [vmem:[%s6639_s23 + $0x3f8] sm:$0xf0]  ;;  %v5934_v50 = vld [vmem:[%s6639_s23 + $0x4ec] sm:$0xf]  ;;  %v3381_v63 = vadd.f32 %v7484_v58, %v3368_v17 }
 0x19a   : > { %v4492_v59 = vor.u32 %v5902_v41, %v4489_v48  ;;  %v4697_v45 = vld [vmem:[%s6639_s23 + $0x598] sm:$0xf0]  ;;  %v5886_v58 = vld [vmem:[%s6639_s23 + $0x36c] sm:$0xf] }
 0x19b   : > { %3635 = vmatpush.bf16.msra.mxu3 %v4172_v53  ;;  %v3996_v53 = vor.u32 %v5778_v37, %v3993_v28  ;;  %v4313_v28 = vld [vmem:[%s6639_s23 + $0x298] sm:$0xf0]  ;;  %v5950_v3 = vld [vmem:[%s6639_s23 + $0x56c] sm:$0xf] }
 0x19c   : > { %3597 = vmatpush.bf16.msra.mxu0 %v5560_v60  ;;  %v4620_v60 = vor.u32 %v5934_v50, %v4617_v51  ;;  %v4444_v51 = vor.u32 %v5890_v31, %v4441_v39  ;;  %v5882_v1 = vld [vmem:[%s6639_s23 + $0x34c] sm:$0xf]  ;;  %v4537_v22 = vld [vmem:[%s6639_s23 + $0x458] sm:$0xf0] }
 0x19d   : > { %3610 = vmatpush.bf16.msra.mxu1 %v5688_v62  ;;  %3623 = vmatpush.bf16.msra.mxu2 %v4028_v0  ;;  %v4748_v62 = vor.u32 %v5966_v55, %v4745_v56  ;;  %v4473_v0 = vld [vmem:[%s6639_s23 + $0x3d8] sm:$0xf0]  ;;  %v5946_v7 = vld [vmem:[%s6639_s23 + $0x54c] sm:$0xf] }
 0x19e   : > { %v4476_v27 = vor.u32 %v5898_v61, %v4473_v0  ;;  %v4425_v56 = vld [vmem:[%s6639_s23 + $0x378] sm:$0xf0]  ;;  %v5942_v39 = vld [vmem:[%s6639_s23 + $0x52c] sm:$0xf] }
 0x19f   : > { %3636 = vmatpush.bf16.msra.mxu3 %v4156_v4  ;;  %v4729_v4 = vld [vmem:[%s6639_s23 + $0x5d8] sm:$0xf0]  ;;  %v4428_v40 = vor.u32 %v5886_v58, %v4425_v56 }
 0x1a0   : > { %3598 = vmatpush.bf16.msra.mxu0 %v5544_v10  ;;  %v5894_v10 = vld [vmem:[%s6639_s23 + $0x3ac] sm:$0xf]  ;;  %v4732_v12 = vor.u32 %v5962_v42, %v4729_v4  ;;  %v4281_v0 = vld [vmem:[%s6639_s23 + $0x258] sm:$0xf0] }
 0x1a1   : > { %3611 = vmatpush.bf16.msra.mxu1 %v5672_v16  ;;  %3624 = vmatpush.bf16.msra.mxu2 %v4012_v13  ;;  %v4585_v16 = vld [vmem:[%s6639_s23 + $0x4b8] sm:$0xf0]  ;;  %v5958_v13 = vld [vmem:[%s6639_s23 + $0x5ac] sm:$0xf]  ;;  %v4460_v37 = vor.u32 %v5894_v10, %v4457_v21 }
 0x1a2   : > { %v4716_v36 = vor.u32 %v5958_v13, %v4713_v18  ;;  %v4409_v4 = vld [vmem:[%s6639_s23 + $0x358] sm:$0xf0]  ;;  %v5846_v18 = vld [vmem:[%s6639_s23 + $0x22c] sm:$0xf] }
 0x1a3   : > { %3637 = vmatpush.bf16.msra.mxu3 %v4140_v20  ;;  %v4588_v20 = vor.u32 %v5926_v15, %v4585_v16  ;;  %v4665_v8 = vld [vmem:[%s6639_s23 + $0x558] sm:$0xf0]  ;;  %v4412_v17 = vor.u32 %v5882_v1, %v4409_v4 }
 0x1a4   : > { %3599 = vmatpush.bf16.msra.mxu0 %v5528_v33  ;;  %v3393_v41 = vpop.f32.mrf.mxu0  ;;  %v4316_v33 = vor.u32 %v5858_v54, %v4313_v28  ;;  %v4393_v54 = vld [vmem:[%s6639_s23 + $0x338] sm:$0xf0]  ;;  %v5910_v28 = vld [vmem:[%s6639_s23 + $0x42c] sm:$0xf] }
 0x1a5   : > { %3612 = vmatpush.bf16.msra.mxu1 %v5656_v52  ;;  %3625 = vmatpush.bf16.msra.mxu2 %v3996_v53  ;;  %v3394_v50 = vadd.f32 %v3393_v41, %v3381_v63  ;;  %v5854_v52 = vld [vmem:[%s6639_s23 + $0x26c] sm:$0xf]  ;;  %v4297_v53 = vld [vmem:[%s6639_s23 + $0x278] sm:$0xf0] }
 0x1a6   : > { %v4521_v31 = vld [vmem:[%s6639_s23 + $0x438] sm:$0xf0]  ;;  %v5842_v63 = vld [vmem:[%s6639_s23 + $0x20c] sm:$0xf] }
 0x1a7   : > { %3638 = vmatpush.bf16.msra.mxu3 %v4124_v57  ;;  %3600 = vmatmul.bf16.vlgmr.msra.gmra.mxu0 %v6977_v23  ;;  %v3406_v48 = vpop.f32.mrf.mxu1  ;;  %v5918_v57 = vld [vmem:[%s6639_s23 + $0x46c] sm:$0xf]  ;;  %v4249_v41 = vld [vmem:[%s6639_s23 + $0x218] sm:$0xf0] }
 0x1a8   : > { %3644 = vmatpush.bf16.msrb.mxu0 %v4364_v32  ;;  %3613 = vmatmul.bf16.vlgmr.msra.gmra.mxu1 %v6982_v29  ;;  %v4553_v32 = vld [vmem:[%s6639_s23 + $0x478] sm:$0xf0]  ;;  %v3407_v2 = vadd.f32 %v3406_v48, %v3394_v50  ;;  %v5906_v50 = vld [vmem:[%s6639_s23 + $0x40c] sm:$0xf] }
 0x1a9   : > { %3657 = vmatpush.bf16.msrb.mxu1 %v4492_v59  ;;  %3670 = vmatpush.bf16.msrb.mxu2 %v4620_v60  ;;  %v4681_v59 = vld [vmem:[%s6639_s23 + $0x578] sm:$0xf0]  ;;  %v4300_v60 = vor.u32 %v5854_v52, %v4297_v53  ;;  %v4556_v61 = vor.u32 %v5918_v57, %v4553_v32  ;;  %v5938_v52 = vld [vmem:[%s6639_s23 + $0x50c] sm:$0xf] }
 0x1aa   : > { %3626 = vmatmul.bf16.vlgmr.msra.gmra.mxu2 %v6770_v25  ;;  %3639 = vmatmul.bf16.vlgmr.msra.gmra.mxu3 %v6773_v26  ;;  %v4569_v25 = vld [vmem:[%s6639_s23 + $0x498] sm:$0xf0]  ;;  %v5954_v26 = vld [vmem:[%s6639_s23 + $0x58c] sm:$0xf]  ;;  %v4684_v5 = vor.u32 %v5950_v3, %v4681_v59  ;;  %v4252_v3 = vor.u32 %v5842_v63, %v4249_v41 }
 0x1ab   : > { %3683 = vmatpush.bf16.msrb.mxu3 %v4748_v62  ;;  %v4572_v44 = vor.u32 %v5922_v24, %v4569_v25  ;;  %v4700_v55 = vor.u32 %v5954_v26, %v4697_v45  ;;  %v5850_v62 = vld [vmem:[%s6639_s23 + $0x24c] sm:$0xf]  ;;  %v3419_v42 = vpop.f32.mrf.mxu2  ;;  %v4649_v24 = vld [vmem:[%s6639_s23 + $0x538] sm:$0xf0] }
 0x1ac   : > { %3645 = vmatpush.bf16.msrb.mxu0 %v4348_v14  ;;  %v5914_v14 = vld [vmem:[%s6639_s23 + $0x44c] sm:$0xf]  ;;  %v3395_v10 = vpop.f32.mrf.mxu0  ;;  %v4284_v21 = vor.u32 %v5850_v62, %v4281_v0  ;;  %v4377_v48 = vld [vmem:[%s6639_s23 + $0x318] sm:$0xf0] }
 0x1ad   : > { %3658 = vmatpush.bf16.msrb.mxu1 %v4476_v27  ;;  %3671 = vmatpush.bf16.msrb.mxu2 %v4604_v6  ;;  %v3420_v27 = vadd.f32 %v3419_v42, %v3407_v2  ;;  %v3432_v6 = vpop.f32.mrf.mxu3  ;;  %v4540_v13 = vor.u32 %v5914_v14, %v4537_v22  ;;  %v5874_v26 = vld [vmem:[%s6639_s23 + $0x30c] sm:$0xf]  ;;  %v4633_v53 = vld [vmem:[%s6639_s23 + $0x518] sm:$0xf0] }
 0x1ae   : > { %v4873_v56 = vld [vmem:[%s6639_s23 + $0x6f8] sm:$0xf0]  ;;  %v6030_v57 = vld [vmem:[%s6639_s23 + $0x7ec] sm:$0xf]  ;;  %v4636_v1 = vor.u32 %v5938_v52, %v4633_v53 }
 0x1af   : > { %3684 = vmatpush.bf16.msrb.mxu3 %v4732_v12  ;;  %v325_v12 = vld [vmem:[%s6655_s26 + $0x8] sm:$0xff]  ;;  %v3408_v15 = vpop.f32.mrf.mxu1  ;;  %v3433_v16 = vadd.f32 %v3432_v6, %v3420_v27  ;;  %v5001_v59 = vld [vmem:[%s6639_s23 + $0x7f8] sm:$0xf0] }
 0x1b0   : > { %3646 = vmatpush.bf16.msrb.mxu0 %v4332_v19  ;;  %v4265_v19 = vld [vmem:[%s6639_s23 + $0x238] sm:$0xf0]  ;;  %v6094_v62 = vld [vmem:[%s6639_s23 + $0x9ec] sm:$0xf]  ;;  %v5004_v42 = vor.u32 %v6030_v57, %v5001_v59 }
 0x1b1   : > { %3659 = vmatpush.bf16.msrb.mxu1 %v4460_v37  ;;  %3672 = vmatpush.bf16.msrb.mxu2 %v4588_v20  ;;  %v5878_v37 = vld [vmem:[%s6639_s23 + $0x32c] sm:$0xf]  ;;  %v4668_v20 = vor.u32 %v5946_v7, %v4665_v8  ;;  %v4268_v25 = vor.u32 %v5846_v18, %v4265_v19  ;;  %v5129_v2 = vld [vmem:[%s6639_s23 + $0x8f8] sm:$0xf0] }
 0x1b2   : > { %v4396_v45 = vor.u32 %v5878_v37, %v4393_v54  ;;  %v5257_v0 = vld [vmem:[%s6639_s23 + $0x9f8] sm:$0xf0]  ;;  %v5994_v14 = vld [vmem:[%s6639_s23 + $0x6cc] sm:$0xf] }
 0x1b3   : > { %3685 = vmatpush.bf16.msrb.mxu3 %v4716_v36  ;;  %v3801_v36 = vadd.f32 %v3433_v16, %v325_v12  ;;  %v3421_v58 = vpop.f32.mrf.mxu2  ;;  %v4857_v22 = vld [vmem:[%s6639_s23 + $0x6d8] sm:$0xf0]  ;;  %v6026_v27 = vld [vmem:[%s6639_s23 + $0x7cc] sm:$0xf]  ;;  %v5260_v6 = vor.u32 %v6094_v62, %v5257_v0 }
 0x1b4   : > { %3647 = vmatpush.bf16.msrb.mxu0 %v4316_v33  ;;  %v4524_v33 = vor.u32 %v5910_v28, %v4521_v31  ;;  %v4985_v7 = vld [vmem:[%s6639_s23 + $0x7d8] sm:$0xf0]  ;;  %v6058_v8 = vld [vmem:[%s6639_s23 + $0x8cc] sm:$0xf]  ;;  %v4860_v15 = vor.u32 %v5994_v14, %v4857_v22 }
 0x1b5   : > { %3660 = vmatpush.bf16.msrb.mxu1 %v4444_v51  ;;  %3673 = vmatpush.bf16.msrb.mxu2 %v4572_v44  ;;  %3805 = vst [vmem:[%s6655_s26 + $0x8] sm:$0xff] %v3801_v36  ;;  %v4652_v51 = vor.u32 %v5942_v39, %v4649_v24  ;;  %v4505_v44 = vld [vmem:[%s6639_s23 + $0x418] sm:$0xf0]  ;;  %v3434_v32 = vpop.f32.mrf.mxu3  ;;  %v6090_v12 = vld [vmem:[%s6639_s23 + $0x9cc] sm:$0xf]  ;;  %v4988_v16 = vor.u32 %v6026_v27, %v4985_v7 }
 0x1b6   : > { %v5113_v10 = vld [vmem:[%s6639_s23 + $0x8d8] sm:$0xf0]  ;;  %v6022_v19 = vld [vmem:[%s6639_s23 + $0x7ac] sm:$0xf] }
 0x1b7   : > { %3686 = vmatpush.bf16.msrb.mxu3 %v4700_v55  ;;  %v5998_v55 = vld [vmem:[%s6639_s23 + $0x6ec] sm:$0xf]  ;;  %v4841_v18 = vld [vmem:[%s6639_s23 + $0x6b8] sm:$0xf0] }
 0x1b8   : > { %3648 = vmatpush.bf16.msrb.mxu0 %v4300_v60  ;;  %v6062_v60 = vld [vmem:[%s6639_s23 + $0x8ec] sm:$0xf]  ;;  %v5097_v28 = vld [vmem:[%s6639_s23 + $0x8b8] sm:$0xf0] }
 0x1b9   : > { %3661 = vmatpush.bf16.msrb.mxu1 %v4428_v40  ;;  %3674 = vmatpush.bf16.msrb.mxu2 %v4556_v61  ;;  %v4380_v40 = vor.u32 %v5874_v26, %v4377_v48  ;;  %v4508_v61 = vor.u32 %v5906_v50, %v4505_v44  ;;  %v5132_v4 = vor.u32 %v6062_v60, %v5129_v2  ;;  %v6054_v54 = vld [vmem:[%s6639_s23 + $0x8ac] sm:$0xf]  ;;  %v5225_v36 = vld [vmem:[%s6639_s23 + $0x9b8] sm:$0xf0] }
 0x1ba   : > { %v6086_v31 = vld [vmem:[%s6639_s23 + $0x9ac] sm:$0xf]  ;;  %v5100_v24 = vor.u32 %v6054_v54, %v5097_v28  ;;  %v4825_v63 = vld [vmem:[%s6639_s23 + $0x698] sm:$0xf0] }
 0x1bb   : > { %3687 = vmatpush.bf16.msrb.mxu3 %v4684_v5  ;;  %v4876_v5 = vor.u32 %v5998_v55, %v4873_v56  ;;  %v4953_v41 = vld [vmem:[%s6639_s23 + $0x798] sm:$0xf0]  ;;  %v6050_v26 = vld [vmem:[%s6639_s23 + $0x88c] sm:$0xf] }
 0x1bc   : > { %3649 = vmatpush.bf16.msrb.mxu0 %v4284_v21  ;;  %v5241_v21 = vld [vmem:[%s6639_s23 + $0x9d8] sm:$0xf0]  ;;  %v5982_v52 = vld [vmem:[%s6639_s23 + $0x66c] sm:$0xf] }
 0x1bd   : > { %3662 = vmatpush.bf16.msrb.mxu1 %v4412_v17  ;;  %3675 = vmatpush.bf16.msrb.mxu2 %v4540_v13  ;;  %v5116_v17 = vor.u32 %v6058_v8, %v5113_v10  ;;  %v5990_v13 = vld [vmem:[%s6639_s23 + $0x6ac] sm:$0xf]  ;;  %v5244_v37 = vor.u32 %v6090_v12, %v5241_v21  ;;  %v5209_v48 = vld [vmem:[%s6639_s23 + $0x998] sm:$0xf0] }
 0x1be   : > { %v4844_v39 = vor.u32 %v5990_v13, %v4841_v18  ;;  %v4809_v53 = vld [vmem:[%s6639_s23 + $0x678] sm:$0xf0]  ;;  %v6014_v58 = vld [vmem:[%s6639_s23 + $0x76c] sm:$0xf] }
 0x1bf   : > { %3688 = vmatpush.bf16.msrb.mxu3 %v4668_v20  ;;  %v4969_v20 = vld [vmem:[%s6639_s23 + $0x7b8] sm:$0xf0]  ;;  %v6046_v32 = vld [vmem:[%s6639_s23 + $0x86c] sm:$0xf] }
 0x1c0   : > { %3650 = vmatpush.bf16.msrb.mxu0 %v4268_v25  ;;  %v5986_v25 = vld [vmem:[%s6639_s23 + $0x68c] sm:$0xf]  ;;  %v4937_v57 = vld [vmem:[%s6639_s23 + $0x778] sm:$0xf0] }
 0x1c1   : > { %3663 = vmatpush.bf16.msrb.mxu1 %v4396_v45  ;;  %3676 = vmatpush.bf16.msrb.mxu2 %v4524_v33  ;;  %v5081_v45 = vld [vmem:[%s6639_s23 + $0x898] sm:$0xf0]  ;;  %v6082_v33 = vld [vmem:[%s6639_s23 + $0x98c] sm:$0xf] }
 0x1c2   : > { %v5084_v44 = vor.u32 %v6050_v26, %v5081_v45  ;;  %v5212_v56 = vor.u32 %v6082_v33, %v5209_v48  ;;  %v6078_v60 = vld [vmem:[%s6639_s23 + $0x96c] sm:$0xf]  ;;  %v5193_v2 = vld [vmem:[%s6639_s23 + $0x978] sm:$0xf0] }
 0x1c3   : > { %3689 = vmatpush.bf16.msrb.mxu3 %v4652_v51  ;;  %v5978_v0 = vld [vmem:[%s6639_s23 + $0x64c] sm:$0xf]  ;;  %v4921_v14 = vld [vmem:[%s6639_s23 + $0x758] sm:$0xf0] }
 0x1c4   : > { %3651 = vmatpush.bf16.msrb.mxu0 %v4252_v3  ;;  %v3445_v50 = vpop.f32.mrf.mxu0  ;;  %v5065_v3 = vld [vmem:[%s6639_s23 + $0x878] sm:$0xf0]  ;;  %v6042_v22 = vld [vmem:[%s6639_s23 + $0x84c] sm:$0xf] }
 0x1c5   : > { %3664 = vmatpush.bf16.msrb.mxu1 %v4380_v40  ;;  %3677 = vmatpush.bf16.msrb.mxu2 %v4508_v61  ;;  %v4812_v40 = vor.u32 %v5982_v52, %v4809_v53  ;;  %v4940_v61 = vor.u32 %v6014_v58, %v4937_v57  ;;  %v5068_v62 = vor.u32 %v6046_v32, %v5065_v3  ;;  %v5049_v27 = vld [vmem:[%s6639_s23 + $0x858] sm:$0xf0]  ;;  %v6074_v8 = vld [vmem:[%s6639_s23 + $0x94c] sm:$0xf] }
 0x1c6   : > { %v5177_v10 = vld [vmem:[%s6639_s23 + $0x958] sm:$0xf0]  ;;  %v5974_v13 = vld [vmem:[%s6639_s23 + $0x62c] sm:$0xf] }
 0x1c7   : > { %3690 = vmatpush.bf16.msrb.mxu3 %v4636_v1  ;;  %3652 = vmatmul.bf16.vlgmr.msrb.gmra.mxu0 %v6756_v9  ;;  %v6018_v9 = vld [vmem:[%s6639_s23 + $0x78c] sm:$0xf]  ;;  %v3458_v55 = vpop.f32.mrf.mxu1  ;;  %v4793_v1 = vld [vmem:[%s6639_s23 + $0x658] sm:$0xf0] }
 0x1c8   : > { %3696 = vmatpush.bf16.msra.mxu0 %v4876_v5  ;;  %3678 = vmatmul.bf16.vlgmr.msrb.gmra.mxu2 %v6829_v46  ;;  %v4972_v46 = vor.u32 %v6022_v19, %v4969_v20  ;;  %v4956_v51 = vor.u32 %v6018_v9, %v4953_v41  ;;  %v3459_v59 = vadd.f32 %v3458_v55, %v3445_v50  ;;  %v6010_v5 = vld [vmem:[%s6639_s23 + $0x74c] sm:$0xf]  ;;  %v4777_v18 = vld [vmem:[%s6639_s23 + $0x638] sm:$0xf0] }
 0x1c9   : > { %3709 = vmatpush.bf16.msra.mxu1 %v5004_v42  ;;  %3722 = vmatpush.bf16.msra.mxu2 %v5132_v4  ;;  %v5196_v4 = vor.u32 %v6078_v60, %v5193_v2  ;;  %v4796_v12 = vor.u32 %v5978_v0, %v4793_v1  ;;  %v6006_v19 = vld [vmem:[%s6639_s23 + $0x72c] sm:$0xf]  ;;  %v5180_v20 = vor.u32 %v6074_v8, %v5177_v10  ;;  %v4905_v54 = vld [vmem:[%s6639_s23 + $0x738] sm:$0xf0] }
 0x1ca   : > { %3691 = vmatmul.bf16.vlgmr.msrb.gmra.mxu3 %v6833_v49  ;;  %3665 = vmatmul.bf16.vlgmr.msrb.gmra.mxu1 %v6759_v11  ;;  %v5228_v49 = vor.u32 %v6086_v31, %v5225_v36  ;;  %v4828_v11 = vor.u32 %v5986_v25, %v4825_v63  ;;  %v6038_v28 = vld [vmem:[%s6639_s23 + $0x82c] sm:$0xf]  ;;  %v5033_v31 = vld [vmem:[%s6639_s23 + $0x838] sm:$0xf0]  ;;  %v4908_v63 = vor.u32 %v6006_v19, %v4905_v54 }
 0x1cb   : > { %3735 = vmatpush.bf16.msra.mxu3 %v5260_v6  ;;  %v3471_v42 = vpop.f32.mrf.mxu2  ;;  %v6070_v36 = vld [vmem:[%s6639_s23 + $0x92c] sm:$0xf]  ;;  %v4761_v25 = vld [vmem:[%s6639_s23 + $0x618] sm:$0xf0]  ;;  %v5036_v9 = vor.u32 %v6038_v28, %v5033_v31 }
 0x1cc   : > { %3697 = vmatpush.bf16.msra.mxu0 %v4860_v15  ;;  %v3472_v6 = vadd.f32 %v3471_v42, %v3459_v59  ;;  %v3447_v15 = vpop.f32.mrf.mxu0  ;;  %v4889_v41 = vld [vmem:[%s6639_s23 + $0x718] sm:$0xf0]  ;;  %v6034_v26 = vld [vmem:[%s6639_s23 + $0x80c] sm:$0xf] }
 0x1cd   : > { %3710 = vmatpush.bf16.msra.mxu1 %v4988_v16  ;;  %3723 = vmatpush.bf16.msra.mxu2 %v5116_v17  ;;  %v3484_v7 = vpop.f32.mrf.mxu3  ;;  %v4924_v16 = vor.u32 %v6010_v5, %v4921_v14  ;;  %v5052_v17 = vor.u32 %v6042_v22, %v5049_v27  ;;  %v5017_v48 = vld [vmem:[%s6639_s23 + $0x818] sm:$0xf0]  ;;  %v6158_v53 = vld [vmem:[%s6639_s23 + $0xbec] sm:$0xf] }
 0x1ce   : > { %v7633_v21 = vadd.f32 %v3484_v7, %v3472_v6  ;;  %v5145_v50 = vld [vmem:[%s6639_s23 + $0x918] sm:$0xf0]  ;;  %v5020_v3 = vor.u32 %v6034_v26, %v5017_v48  ;;  %v6222_v59 = vld [vmem:[%s6639_s23 + $0xdec] sm:$0xf] }
 0x1cf   : > { %3736 = vmatpush.bf16.msra.mxu3 %v5244_v37  ;;  %v3460_v37 = vpop.f32.mrf.mxu1  ;;  %v5385_v52 = vld [vmem:[%s6639_s23 + $0xaf8] sm:$0xf0]  ;;  %v6122_v0 = vld [vmem:[%s6639_s23 + $0xacc] sm:$0xf] }
 0x1d0   : > { %3698 = vmatpush.bf16.msra.mxu0 %v4844_v39  ;;  %v5161_v39 = vld [vmem:[%s6639_s23 + $0x938] sm:$0xf0]  ;;  %v6154_v5 = vld [vmem:[%s6639_s23 + $0xbcc] sm:$0xf] }
 0x1d1   : > { %3711 = vmatpush.bf16.msra.mxu1 %v4972_v46  ;;  %3724 = vmatpush.bf16.msra.mxu2 %v5100_v24  ;;  %v4780_v46 = vor.u32 %v5974_v13, %v4777_v18  ;;  %v5970_v24 = vld [vmem:[%s6639_s23 + $0x60c] sm:$0xf]  ;;  %v5164_v33 = vor.u32 %v6070_v36, %v5161_v39  ;;  %v5513_v55 = vld [vmem:[%s6639_s23 + $0xbf8] sm:$0xf0] }
 0x1d2   : > { %v4764_v58 = vor.u32 %v5970_v24, %v4761_v25  ;;  %v5641_v57 = vld [vmem:[%s6639_s23 + $0xcf8] sm:$0xf0]  ;;  %v6186_v14 = vld [vmem:[%s6639_s23 + $0xccc] sm:$0xf] }
 0x1d3   : > { %3737 = vmatpush.bf16.msra.mxu3 %v5228_v49  ;;  %v6002_v49 = vld [vmem:[%s6639_s23 + $0x70c] sm:$0xf]  ;;  %v3473_v45 = vpop.f32.mrf.mxu2  ;;  %v5769_v60 = vld [vmem:[%s6639_s23 + $0xdf8] sm:$0xf0] }
 0x1d4   : > { %3699 = vmatpush.bf16.msra.mxu0 %v4828_v11  ;;  %v6066_v11 = vld [vmem:[%s6639_s23 + $0x90c] sm:$0xf]  ;;  %v4892_v32 = vor.u32 %v6002_v49, %v4889_v41  ;;  %v5369_v1 = vld [vmem:[%s6639_s23 + $0xad8] sm:$0xf0]  ;;  %v5772_v42 = vor.u32 %v6222_v59, %v5769_v60 }
 0x1d5   : > { %3712 = vmatpush.bf16.msra.mxu1 %v4956_v51  ;;  %3725 = vmatpush.bf16.msra.mxu2 %v5084_v44  ;;  %v3486_v51 = vpop.f32.mrf.mxu3  ;;  %v6126_v44 = vld [vmem:[%s6639_s23 + $0xaec] sm:$0xf]  ;;  %v5148_v2 = vor.u32 %v6066_v11, %v5145_v50  ;;  %v5625_v22 = vld [vmem:[%s6639_s23 + $0xcd8] sm:$0xf0]  ;;  %v5372_v7 = vor.u32 %v6122_v0, %v5369_v1 }
 0x1d6   : > { %v6218_v27 = vld [vmem:[%s6639_s23 + $0xdcc] sm:$0xf]  ;;  %v5753_v6 = vld [vmem:[%s6639_s23 + $0xdd8] sm:$0xf0]  ;;  %v5628_v10 = vor.u32 %v6186_v14, %v5625_v22 }
 0x1d7   : > { %3738 = vmatpush.bf16.msra.mxu3 %v5212_v56  ;;  %v6190_v56 = vld [vmem:[%s6639_s23 + $0xcec] sm:$0xf]  ;;  %v5353_v15 = vld [vmem:[%s6639_s23 + $0xab8] sm:$0xf0] }
 0x1d8   : > { %3700 = vmatpush.bf16.msra.mxu0 %v4812_v40  ;;  %v5388_v40 = vor.u32 %v6126_v44, %v5385_v52  ;;  %v5481_v13 = vld [vmem:[%s6639_s23 + $0xbb8] sm:$0xf0]  ;;  %v6182_v18 = vld [vmem:[%s6639_s23 + $0xcac] sm:$0xf] }
 0x1d9   : > { %3713 = vmatpush.bf16.msra.mxu1 %v4940_v61  ;;  %3726 = vmatpush.bf16.msra.mxu2 %v5068_v62  ;;  %v5516_v61 = vor.u32 %v6158_v53, %v5513_v55  ;;  %v5644_v62 = vor.u32 %v6190_v56, %v5641_v57  ;;  %v5609_v19 = vld [vmem:[%s6639_s23 + $0xcb8] sm:$0xf0]  ;;  %v6214_v37 = vld [vmem:[%s6639_s23 + $0xdac] sm:$0xf] }
 0x1da   : > { %v5612_v28 = vor.u32 %v6182_v18, %v5609_v19  ;;  %v6114_v31 = vld [vmem:[%s6639_s23 + $0xa8c] sm:$0xf]  ;;  %v5337_v36 = vld [vmem:[%s6639_s23 + $0xa98] sm:$0xf0] }
 0x1db   : > { %3739 = vmatpush.bf16.msra.mxu3 %v5196_v4  ;;  %v5497_v4 = vld [vmem:[%s6639_s23 + $0xbd8] sm:$0xf0]  ;;  %v6110_v26 = vld [vmem:[%s6639_s23 + $0xa6c] sm:$0xf] }
 0x1dc   : > { %3701 = vmatpush.bf16.msra.mxu0 %v4796_v12  ;;  %v5500_v8 = vor.u32 %v6154_v5, %v5497_v4  ;;  %v6118_v12 = vld [vmem:[%s6639_s23 + $0xaac] sm:$0xf]  ;;  %v5465_v39 = vld [vmem:[%s6639_s23 + $0xb98] sm:$0xf0] }
 0x1dd   : > { %3714 = vmatpush.bf16.msra.mxu1 %v4924_v16  ;;  %3727 = vmatpush.bf16.msra.mxu2 %v5052_v17  ;;  %v6150_v16 = vld [vmem:[%s6639_s23 + $0xbac] sm:$0xf]  ;;  %v5756_v17 = vor.u32 %v6218_v27, %v5753_v6  ;;  %v5593_v24 = vld [vmem:[%s6639_s23 + $0xc98] sm:$0xf0] }
 0x1de   : > { %v5484_v54 = vor.u32 %v6150_v16, %v5481_v13  ;;  %v5721_v25 = vld [vmem:[%s6639_s23 + $0xd98] sm:$0xf0]  ;;  %v6174_v51 = vld [vmem:[%s6639_s23 + $0xc6c] sm:$0xf] }
 0x1df   : > { %3740 = vmatpush.bf16.msra.mxu3 %v5180_v20  ;;  %v5737_v20 = vld [vmem:[%s6639_s23 + $0xdb8] sm:$0xf0]  ;;  %v6206_v52 = vld [vmem:[%s6639_s23 + $0xd6c] sm:$0xf] }
 0x1e0   : > { %3702 = vmatpush.bf16.msra.mxu0 %v4780_v46  ;;  %v6178_v46 = vld [vmem:[%s6639_s23 + $0xc8c] sm:$0xf]  ;;  %v5321_v45 = vld [vmem:[%s6639_s23 + $0xa78] sm:$0xf0] }
 0x1e1   : > { %3715 = vmatpush.bf16.msra.mxu1 %v4908_v63  ;;  %3728 = vmatpush.bf16.msra.mxu2 %v5036_v9  ;;  %v5340_v63 = vor.u32 %v6114_v31, %v5337_v36  ;;  %v5596_v41 = vor.u32 %v6178_v46, %v5593_v24  ;;  %v5449_v50 = vld [vmem:[%s6639_s23 + $0xb78] sm:$0xf0]  ;;  %v6106_v57 = vld [vmem:[%s6639_s23 + $0xa4c] sm:$0xf] }
 0x1e2   : > { %v5577_v44 = vld [vmem:[%s6639_s23 + $0xc78] sm:$0xf0]  ;;  %v6202_v0 = vld [vmem:[%s6639_s23 + $0xd4c] sm:$0xf] }
 0x1e3   : > { %3741 = vmatpush.bf16.msra.mxu3 %v5164_v33  ;;  %v6142_v33 = vld [vmem:[%s6639_s23 + $0xb6c] sm:$0xf]  ;;  %v5705_v53 = vld [vmem:[%s6639_s23 + $0xd78] sm:$0xf0]  ;;  %v5580_v56 = vor.u32 %v6174_v51, %v5577_v44 }
 0x1e4   : > { %3703 = vmatpush.bf16.msra.mxu0 %v4764_v58  ;;  %v7687_v9 = vpop.f32.mrf.mxu0  ;;  %v5324_v58 = vor.u32 %v6110_v26, %v5321_v45  ;;  %v5452_v55 = vor.u32 %v6142_v33, %v5449_v50  ;;  %v5708_v60 = vor.u32 %v6206_v52, %v5705_v53  ;;  %v5689_v1 = vld [vmem:[%s6639_s23 + $0xd58] sm:$0xf0]  ;;  %v6102_v22 = vld [vmem:[%s6639_s23 + $0xa2c] sm:$0xf] }
 0x1e5   : > { %3716 = vmatpush.bf16.msra.mxu1 %v4892_v32  ;;  %3729 = vmatpush.bf16.msra.mxu2 %v5020_v3  ;;  %v5305_v32 = vld [vmem:[%s6639_s23 + $0xa58] sm:$0xf0]  ;;  %v6138_v3 = vld [vmem:[%s6639_s23 + $0xb4c] sm:$0xf]  ;;  %v3498_v26 = vadd.f32 %v7687_v9, %v7633_v21 }
 0x1e6   : > { %v5308_v5 = vor.u32 %v6106_v57, %v5305_v32  ;;  %v5289_v27 = vld [vmem:[%s6639_s23 + $0xa38] sm:$0xf0]  ;;  %v6134_v6 = vld [vmem:[%s6639_s23 + $0xb2c] sm:$0xf] }
 0x1e7   : > { %3742 = vmatpush.bf16.msra.mxu3 %v5148_v2  ;;  %3704 = vmatmul.bf16.vlgmr.msra.gmra.mxu0 %v6825_v43  ;;  %v5356_v43 = vor.u32 %v6118_v12, %v5353_v15  ;;  %v7692_v48 = vpop.f32.mrf.mxu1  ;;  %v5433_v2 = vld [vmem:[%s6639_s23 + $0xb58] sm:$0xf0]  ;;  %v6166_v12 = vld [vmem:[%s6639_s23 + $0xc2c] sm:$0xf]  ;;  %v5292_v13 = vor.u32 %v6102_v22, %v5289_v27 }
 0x1e8   : > { %3748 = vmatpush.bf16.msrb.mxu0 %v5388_v40  ;;  %3730 = vmatmul.bf16.vlgmr.msra.gmra.mxu2 %v6900_v30  ;;  %v6146_v30 = vld [vmem:[%s6639_s23 + $0xb8c] sm:$0xf]  ;;  %v5436_v4 = vor.u32 %v6138_v3, %v5433_v2  ;;  %v5545_v15 = vld [vmem:[%s6639_s23 + $0xc38] sm:$0xf0]  ;;  %v3511_v50 = vadd.f32 %v7692_v48, %v3498_v26 }
 0x1e9   : > { %3761 = vmatpush.bf16.msrb.mxu1 %v5516_v61  ;;  %3774 = vmatpush.bf16.msrb.mxu2 %v5644_v62  ;;  %v5468_v49 = vor.u32 %v6146_v30, %v5465_v39  ;;  %v6170_v40 = vld [vmem:[%s6639_s23 + $0xc4c] sm:$0xf]  ;;  %v5561_v61 = vld [vmem:[%s6639_s23 + $0xc58] sm:$0xf0]  ;;  %v5548_v19 = vor.u32 %v6166_v12, %v5545_v15 }
 0x1ea   : > { %3717 = vmatmul.bf16.vlgmr.msra.gmra.mxu1 %v6831_v47  ;;  %3743 = vmatmul.bf16.vlgmr.msra.gmra.mxu3 %v6907_v35  ;;  %v5740_v47 = vor.u32 %v6214_v37, %v5737_v20  ;;  %v6210_v35 = vld [vmem:[%s6639_s23 + $0xd8c] sm:$0xf]  ;;  %v5564_v14 = vor.u32 %v6170_v40, %v5561_v61  ;;  %v5273_v20 = vld [vmem:[%s6639_s23 + $0xa18] sm:$0xf0] }
 0x1eb   : > { %3787 = vmatpush.bf16.msrb.mxu3 %v5772_v42  ;;  %v5724_v11 = vor.u32 %v6210_v35, %v5721_v25  ;;  %v7702_v59 = vpop.f32.mrf.mxu2  ;;  %v6198_v16 = vld [vmem:[%s6639_s23 + $0xd2c] sm:$0xf]  ;;  %v5401_v31 = vld [vmem:[%s6639_s23 + $0xb18] sm:$0xf0] }
 0x1ec   : > { %3749 = vmatpush.bf16.msrb.mxu0 %v5372_v7  ;;  %v3499_v42 = vpop.f32.mrf.mxu0  ;;  %v6098_v37 = vld [vmem:[%s6639_s23 + $0xa0c] sm:$0xf]  ;;  %v5529_v30 = vld [vmem:[%s6639_s23 + $0xc18] sm:$0xf0] }
 0x1ed   : > { %3762 = vmatpush.bf16.msrb.mxu1 %v5500_v8  ;;  %3775 = vmatpush.bf16.msrb.mxu2 %v5628_v10  ;;  %v7707_v62 = vpop.f32.mrf.mxu3  ;;  %v5692_v8 = vor.u32 %v6202_v0, %v5689_v1  ;;  %v5417_v10 = vld [vmem:[%s6639_s23 + $0xb38] sm:$0xf0]  ;;  %v6162_v36 = vld [vmem:[%s6639_s23 + $0xc0c] sm:$0xf]  ;;  %v5276_v24 = vor.u32 %v6098_v37, %v5273_v20 }
 0x1ee   : > { %v5420_v18 = vor.u32 %v6134_v6, %v5417_v10  ;;  %v6194_v39 = vld [vmem:[%s6639_s23 + $0xd0c] sm:$0xf]  ;;  %v5657_v46 = vld [vmem:[%s6639_s23 + $0xd18] sm:$0xf0]  ;;  %v5532_v25 = vor.u32 %v6162_v36, %v5529_v30 }
 0x1ef   : > { %3788 = vmatpush.bf16.msrb.mxu3 %v5756_v17  ;;  %v3512_v7 = vpop.f32.mrf.mxu1  ;;  %v5673_v17 = vld [vmem:[%s6639_s23 + $0xd38] sm:$0xf0] }
 0x1f0   : > { %3750 = vmatpush.bf16.msrb.mxu0 %v5356_v43  ;;  %v6130_v43 = vld [vmem:[%s6639_s23 + $0xb0c] sm:$0xf] }
 0x1f1   : > { %3763 = vmatpush.bf16.msrb.mxu1 %v5484_v54  ;;  %3776 = vmatpush.bf16.msrb.mxu2 %v5612_v28  ;;  %v5676_v28 = vor.u32 %v6198_v16, %v5673_v17  ;;  %v5404_v35 = vor.u32 %v6130_v43, %v5401_v31 }
 0x1f3   : > { %3789 = vmatpush.bf16.msrb.mxu3 %v5740_v47  ;;  %v3525_v54 = vpop.f32.mrf.mxu2 }
 0x1f4   : > { %3751 = vmatpush.bf16.msrb.mxu0 %v5340_v63  ;;  %v5660_v63 = vor.u32 %v6194_v39, %v5657_v46 }
 0x1f5   : > { %3764 = vmatpush.bf16.msrb.mxu1 %v5468_v49  ;;  %3777 = vmatpush.bf16.msrb.mxu2 %v5596_v41  ;;  %v3538_v47 = vpop.f32.mrf.mxu3 }
 0x1f7   : > { %3790 = vmatpush.bf16.msrb.mxu3 %v5724_v11 }
 0x1f8   : > { %3752 = vmatpush.bf16.msrb.mxu0 %v5324_v58 }
 0x1f9   : > { %3765 = vmatpush.bf16.msrb.mxu1 %v5452_v55  ;;  %3778 = vmatpush.bf16.msrb.mxu2 %v5580_v56  ;;  %v326_v56 = vld [vmem:[%s6655_s26 + $0x10] sm:$0xff] }
 0x1fb   : > { %3791 = vmatpush.bf16.msrb.mxu3 %v5708_v60 }
 0x1fc   : > { %3753 = vmatpush.bf16.msrb.mxu0 %v5308_v5 }
 0x1fd   : > { %3766 = vmatpush.bf16.msrb.mxu1 %v5436_v4  ;;  %3779 = vmatpush.bf16.msrb.mxu2 %v5564_v14 }
 0x1ff   : > { %3792 = vmatpush.bf16.msrb.mxu3 %v5692_v8 }
 0x200   : > { %3754 = vmatpush.bf16.msrb.mxu0 %v5292_v13 }
 0x201   : > { %3767 = vmatpush.bf16.msrb.mxu1 %v5420_v18  ;;  %3780 = vmatpush.bf16.msrb.mxu2 %v5548_v19 }
 0x203   : > { %3793 = vmatpush.bf16.msrb.mxu3 %v5676_v28 }
 0x204   : > { %3755 = vmatpush.bf16.msrb.mxu0 %v5276_v24  ;;  %v3549_v49 = vpop.f32.mrf.mxu0 }
 0x205   : > { %3768 = vmatpush.bf16.msrb.mxu1 %v5404_v35  ;;  %3781 = vmatpush.bf16.msrb.mxu2 %v5532_v25  ;;  %v327_v35 = vld [vmem:[%s6655_s26 + $0x18] sm:$0xff] }
 0x207   : > { %3794 = vmatpush.bf16.msrb.mxu3 %v5660_v63  ;;  %3756 = vmatmul.bf16.vlgmr.msrb.gmra.mxu0 %v6905_v34  ;;  %v3562_v41 = vpop.f32.mrf.mxu1  ;;  %v3524_v34 = vadd.f32 %v7702_v59, %v3511_v50 }
 0x208   : > { %3769 = vmatmul.bf16.vlgmr.msrb.gmra.mxu1 %v6911_v38  ;;  %3782 = vmatmul.bf16.vlgmr.msrb.gmra.mxu2 %v6977_v23 }
 0x209   : > { %v3537_v23 = vadd.f32 %v7707_v62, %v3524_v34 }
 0x20a   : > { %3795 = vmatmul.bf16.vlgmr.msrb.gmra.mxu3 %v6982_v29 }
 0x20b   : > { %v3575_v45 = vpop.f32.mrf.mxu2  ;;  %v3550_v29 = vadd.f32 %v3549_v49, %v3537_v23 }
 0x20c   : > { %v3551_v11 = vpop.f32.mrf.mxu0 }
 0x20d   : > { %v3588_v33 = vpop.f32.mrf.mxu3  ;;  %v3563_v52 = vadd.f32 %v3562_v41, %v3550_v29 }
 0x20f   : > { %v3564_v51 = vpop.f32.mrf.mxu1  ;;  %v3576_v53 = vadd.f32 %v3575_v45, %v3563_v52 }
 0x211   : > { %v3589_v58 = vadd.f32 %v3588_v33, %v3576_v53 }
 0x213   : > { %v3577_v38 = vpop.f32.mrf.mxu2 }
 0x215   : > { %v3590_v44 = vpop.f32.mrf.mxu3 }
 0x224   : > { %v3601_v55 = vpop.f32.mrf.mxu0 }
 0x225   : > { %v3602_v21 = vadd.f32 %v3601_v55, %v3589_v58  ;;  %v3614_v9 = vpop.f32.mrf.mxu1 }
 0x227   : > { %v3615_v57 = vadd.f32 %v3614_v9, %v3602_v21 }
 0x229   : > { %v3802_v32 = vadd.f32 %v3615_v57, %v326_v56 }
 0x22b   : > { %3806 = vst [vmem:[%s6655_s26 + $0x10] sm:$0xff] %v3802_v32 }
 0x22c   : > { %v3603_v60 = vpop.f32.mrf.mxu0 }
 0x22d   : > { %v3627_v48 = vpop.f32.mrf.mxu2  ;;  %v3640_v3 = vpop.f32.mrf.mxu3 }
 0x22e   : > { %v3641_v2 = vadd.f32 %v3640_v3, %v3627_v48  ;;  %v3616_v59 = vpop.f32.mrf.mxu1 }
 0x235   : > { %v3629_v40 = vpop.f32.mrf.mxu2  ;;  %v3642_v61 = vpop.f32.mrf.mxu3 }
 0x244   : > { %v3653_v0 = vpop.f32.mrf.mxu0 }
 0x245   : > { %v3654_v7 = vadd.f32 %v3653_v0, %v3641_v2 }
 0x247   : > { %v3666_v62 = vpop.f32.mrf.mxu1 }
 0x248   : > { %v3667_v15 = vadd.f32 %v3666_v62, %v3654_v7 }
 0x24b   : > { %v3679_v1 = vpop.f32.mrf.mxu2 }
 0x24c   : > { %v3655_v42 = vpop.f32.mrf.mxu0  ;;  %v3680_v17 = vadd.f32 %v3679_v1, %v3667_v15 }
 0x24d   : > { %v3692_v5 = vpop.f32.mrf.mxu3 }
 0x24e   : > { %v3693_v19 = vadd.f32 %v3692_v5, %v3680_v17 }
 0x24f   : > { %v3668_v4 = vpop.f32.mrf.mxu1 }
 0x253   : > { %v3681_v14 = vpop.f32.mrf.mxu2 }
 0x255   : > { %v3694_v22 = vpop.f32.mrf.mxu3 }
 0x264   : > { %v3705_v27 = vpop.f32.mrf.mxu0 }
 0x265   : > { %v3706_v37 = vadd.f32 %v3705_v27, %v3693_v19 }
 0x267   : > { %v3718_v6 = vpop.f32.mrf.mxu1 }
 0x268   : > { %v3719_v20 = vadd.f32 %v3718_v6, %v3706_v37 }
 0x26b   : > { %v3731_v8 = vpop.f32.mrf.mxu2 }
 0x26c   : > { %v3707_v12 = vpop.f32.mrf.mxu0  ;;  %v3732_v43 = vadd.f32 %v3731_v8, %v3719_v20 }
 0x26d   : > { %v3744_v10 = vpop.f32.mrf.mxu3 }
 0x26e   : > { %v3745_v54 = vadd.f32 %v3744_v10, %v3732_v43 }
 0x26f   : > { %v3720_v16 = vpop.f32.mrf.mxu1 }
 0x273   : > { %v3733_v13 = vpop.f32.mrf.mxu2 }
 0x275   : > { %v3746_v18 = vpop.f32.mrf.mxu3 }
 0x284   : > { %v3757_v28 = vpop.f32.mrf.mxu0 }
 0x285   : > { %v3770_v31 = vpop.f32.mrf.mxu1  ;;  %v3758_v36 = vadd.f32 %v3757_v28, %v3745_v54 }
 0x287   : > { %v3771_v30 = vadd.f32 %v3770_v31, %v3758_v36 }
 0x28b   : > { %v3783_v47 = vpop.f32.mrf.mxu2 }
 0x28c   : > { %v3784_v39 = vadd.f32 %v3783_v47, %v3771_v30  ;;  %v3759_v24 = vpop.f32.mrf.mxu0 }
 0x28d   : > { %v3796_v46 = vpop.f32.mrf.mxu3  ;;  %v3772_v25 = vpop.f32.mrf.mxu1 }
 0x28e   : > { %v3797_v63 = vadd.f32 %v3796_v46, %v3784_v39 }
 0x290   : > { %v3803_v49 = vadd.f32 %v3797_v63, %v327_v35 }
 0x291   : > { %3811 = sbr.rel (%p5773_p9) target bundleno = 669 (0x29d), region = 48 }
 0x292   : > { %3807 = vst [vmem:[%s6655_s26 + $0x18] sm:$0xff] %v3803_v49 }
 0x293   : > { %v3785_v41 = vpop.f32.mrf.mxu2 }
 0x295   : > { %v3798_v26 = vpop.f32.mrf.mxu3 }
 0x296   : > { %v3812_v45 = vld [vmem:[%s6655_s26] sm:$0xff]  ;;  %v3813_v33 = vld [vmem:[%s6655_s26 + $0x8] sm:$0xff]  ;;  %v3814_v11 = vld [vmem:[%s6655_s26 + $0x10] sm:$0xff] }
 0x297   : > { %v3816_v50 = vmax.f32 %v3812_v45, 0.0  ;;  %v3817_v51 = vmax.f32 %v3813_v33, 0.0  ;;  %v3818_v34 = vmax.f32 %v3814_v11, 0.0 }
 0x299   : > { %v3815_v38 = vld [vmem:[%s6655_s26 + $0x18] sm:$0xff]  ;;  %3820 = vst [vmem:[%s6655_s26] sm:$0xff] %v3816_v50 }
 0x29a   : > { %v3819_v44 = vmax.f32 %v3815_v38, 0.0  ;;  %3821 = vst [vmem:[%s6655_s26 + $0x8] sm:$0xff] %v3817_v51 }
 0x29b   : > { %3822 = vst [vmem:[%s6655_s26 + $0x10] sm:$0xff] %v3818_v34 }
 0x29c   : > { %3823 = vst [vmem:[%s6655_s26 + $0x18] sm:$0xff] %v3819_v44 }
 0x29d PF: > { %s19_s22 = sadd.s32 1, %s6484_s22   ;;  %s7796_s23 = sld [smem:[#allocation8_spill]] }
 0x29e   : > { %p16_p10 = scmp.ge.s32.totalorder %s19_s22, 114   ;;  %s7797_s7 = sld [smem:[#allocation9_spill]] }
 0x29f   : > { %s7798_s12 = smov %s6448_s13  ;;  %s7799_s13 = smov %s6452_s14 }
 0x2a0   : > { %s7800_s14 = smov %s6615_s8  ;;  %s7801_s15 = smov %s6460_s16 }
 0x2a1   : > { %s7802_s16 = smov %s6464_s17  ;;  %s7803_s17 = smov %s6620_s9 }
 0x2a2   : > { %s7804_s18 = smov %s6476_s20  ;;  %s7805_s19 = smov %s6480_s21 }
 0x2a3   : > { %s7806_s20 = smov %s7796_s23  ;;  %18 = sbr.rel (!%p16_p10) target bundleno = 11 (0xb), region = 96 }
 0x2a4   : > { %s7807_s21 = smov %s7797_s7 }
 0x2a8   :  { %3854 = vsyncpa [#allocation3], 1 }
 0x2a9   :  { %3856 = vsyncpa [#allocation3 + $0x1], 1 }
 0x2aa   :  { %3857 = vsyncpa [#allocation5], 1 }
 0x2ab   :  { %3859 = vsyncpa [#allocation5 + $0x1], 1 }

// kernel: vgg_forward.9
= control target key start
LH: loop header
LB: loop body
LE: loop exit
PB: predicated region body
PF: predicated region fallthrough
CT: control target
= control target key end

     0   :  { %8 = vsyncpa [#allocation3], 0  ;;  %s4645_s0 = inlined_call_operand.vmem [shape: bf16[8,4096], index: 0, kind: input, shape index: {}]   ;;  %s4646_s1 = inlined_call_operand.hbm [shape: bf16[4096,1024], index: 1, kind: input, shape index: {}]   ;;  %s4647_s2 = inlined_call_operand.vmem [shape: f32[1,1024], index: 2, kind: input, shape index: {}]   ;;  %s4648_s3 = inlined_call_operand.vmem [shape: f32[8,1024], index: 3, kind: output, shape index: {}]  }
   0x1   :  { %10 = vsyncpa [#allocation3 + $0x1], 0  ;;  %s3922_s12 = smov 0   ;;  %s3924_s13 = smov 0  }
   0x2   :  { %s3926_s14 = smov 0   ;;  %s3928_s15 = smov 0  }
   0x3   :  { %s3930_s16 = smov 0   ;;  %s3932_s17 = smov 0  }
   0x4   :  { %s3934_s18 = smov 0   ;;  %s3936_s19 = smov 0  }
   0x5 LB: > { %s2427_s20 = sadd.s32 4294967295, %s3897_s19   ;;  %s28_s21 = sadd.s32 1, %s3889_s17  ;;  %s3897_s19 = sphi %s3936_s19, %s16_s19   ;;  %s3893_s18 = sphi %s3934_s18, %s4660_s18   ;;  %s3889_s17 = sphi %s3932_s17, %s4659_s17   ;;  %s3885_s16 = sphi %s3930_s16, %s4658_s16   ;;  %s3881_s15 = sphi %s3928_s15, %s4657_s15   ;;  %s3877_s14 = sphi %s3926_s14, %s4656_s14   ;;  %s3873_s13 = sphi %s3924_s13, %s4655_s13   ;;  %s3869_s12 = sphi %s3922_s12, %s4654_s12  }
   0x6   : > { %p29_p0 = scmp.ge.s32.totalorder %s28_s21, 4  ;;  %s31_s22 = sadd.s32 1, %s3893_s18 }
   0x7   : > { %s72_s23 = sadd.s32 1, %s3877_s14  ;;  %p79_p1 = scmp.ne.s32.totalorder %s3877_s14, %s3873_s13 }
   0x8   : > { %s4662_s21 = smov (%p29_p0, %s28_s21), 0  ;;  %s4664_s22 = smov (!%p29_p0, %s31_s22), %s3893_s18 }
   0x9   : > { %s67_s24 = ssub.s32 %s3889_s17, %s4662_s21  ;;  %p80_p2 = scmp.eq.s32.totalorder %s3897_s19, 0 }
   0xa   : > { %p33_p3 = scmp.ge.s32.totalorder %s4664_s22, 2  ;;  %p85_p4 = scmp.ne.s32.totalorder %s3873_s13, %s3869_s12 }
   0xb   : > { %p3973_p5 = por %p80_p2, %p79_p1  ;;  %p86_p6 = scmp.eq.s32.totalorder %s2427_s20, 0 }
   0xc   : > { %s4666_s22 = smov (%p33_p3, %s4664_s22), 0  ;;  %p3733_p8 = scmp.lt.s32.totalorder %s3897_s19, 8 }
   0xd   : > { %4651 = sst [smem:[#allocation5_spill]] %s4666_s22  ;;  %p3979_p7 = por %p86_p6, %p85_p4 }
   0xe   : > { %s68_s27 = ssub.s32 %s3893_s18, %s4666_s22  ;;  %s176_s29 = sand.u32 1, %s3877_s14  }
   0xf   : > { %s69_s28 = sor.u32 %s68_s27, %s67_s24  ;;  %s2431_s30 = sshll.u32 %s176_s29, 11 }
  0x10   : > { %p70_p9 = scmp.eq.s32.totalorder %s69_s28, 0  ;;  %s2433_s4 = sshll.u32 %s3893_s18, 2 }
  0x11   : > { %s3470_s6 = sshll.u32 %s3889_s17, 10  ;;  %s180_s8 = scalar_lea.vmem [#allocation2], %s2431_s30 }
  0x12   : > { %s3989_s5 = scalar_select %p70_p9, %s3877_s14, %s72_s23  }
  0x13   : > { %s186_s7 = sadd.s32 %s3470_s6, %s2433_s4  ;;  %s191_s9 = sshll.u32 %s180_s8, 4  ;;  %s192_s9 = int_to_ptr.vmem [resolvable:$true] %s191_s9 }
  0x14   : > { %s2435_s10 = sshll.u32 %s186_s7, 2  ;;  %p3730_p10 = pnand %p3733_p8, %p3973_p5 }
  0x15   : > { %s188_s20 = scalar_lea.hbm %s4646_s1, %s2435_s10  ;;  %s177_s27 = scalar_lea.sflag [#allocation3], %s176_s29 }
  0x16   : > { %s189_s24 = sshll.u32 %s188_s20, 4  ;;  %s3899_s23 = smov 512   ;;  %s190_s24 = int_to_ptr.hbm [resolvable:$true] %s189_s24 }
  0x17   : > { %s3900_s28 = smov 256   ;;  %s3901_s22 = smov 16  }
  0x18   : > { %3732 = dma.hbm_to_vmem [thread:$0]  (!%p3730_p10), %s190_s24, 32768, %s192_s9, %s177_s27, %s3899_s23, %s3900_s28, %s3901_s22  }
  0x19   : > { %p2436_p11 = scmp.ge.s32.totalorder %s3897_s19, 1  ;;  %p207_p12 = scmp.lt.s32.totalorder %s3897_s19, 9 }
  0x1b   : > { %p208_p13 = pnand %p2436_p11, %p207_p12 }
  0x1c   : > { %s213_s30 = sand.u32 (!%p208_p13), 1, %s3873_s13  }
  0x1d   : > { %211 = sbr.rel (%p208_p13) target bundleno = 455 (0x1c7), region = 32  ;;  %s2437_s4 = sshll.u32 (!%p208_p13), %s213_s30, 11 }
  0x1e   : > { %s214_s6 = scalar_lea.sflag (!%p208_p13), [#allocation3], %s213_s30  ;;  %s4002_s7 = scalar_lea.vmem (!%p208_p13), [#allocation2], %s2437_s4 }
  0x22   : > { %3864 = dma.done.wait (%p3979_p7), %s214_s6, 32768  }
  0x23   : > { %3866 = vsyncadd (%p3979_p7), %s214_s6, 4294934528  ;;  %s2438_s25 = sshll.u32 %s3881_s15, 3  ;;  %s2440_s22 = sshll.u32 %s3885_s16, 2 }
  0x24   : > { %p261_p0 = scmp.lt.s32.totalorder %s2438_s25, 31  ;;  %p271_p1 = scmp.lt.s32.totalorder %s2440_s22, 7 }
  0x25   : > { %p2443_p2 = scmp.ne.s32.totalorder %s3881_s15, 0 }
  0x26   : > { %s4668_s25 = smov (!%p261_p0, %s2438_s25), 31  ;;  %s4670_s22 = smov (!%p271_p1, %s2440_s22), 7 }
  0x27   : > { %s2439_s29 = sshll.u32 %s4668_s25, 2  ;;  %s273_s20 = scalar_lea.vmem %s4647_s2, %s4670_s22 }
  0x28   : > { %s4013_s10 = scalar_lea.vmem %s4645_s0, %s2439_s29  ;;  %s2442_s26 = sshll.u32 %s4670_s22, 3 }
  0x29   : > { %s4021_s23 = scalar_lea.vmem %s4648_s3, %s2442_s26  ;;  %288 = sbr.rel (%p2443_p2) target bundleno = 53 (0x35), region = 40 }
  0x2e   : > { %v289_v0 = vld [vmem:[%s273_s20] sm:$0xf] }
  0x2f   : > { %v291_v1 = vperm.slane %v289_v0, 0  ;;  %v292_v2 = vperm.slane %v289_v0, 1  ;;  %v293_v3 = vperm.slane %v289_v0, 2  ;;  %v294_v4 = vperm.slane %v289_v0, 3 }
  0x31   : > { %299 = vst [vmem:[%s4021_s23] sm:$0xff] %v291_v1 }
  0x32   : > { %300 = vst [vmem:[%s4021_s23 + $0x8] sm:$0xff] %v292_v2 }
  0x33   : > { %301 = vst [vmem:[%s4021_s23 + $0x10] sm:$0xff] %v293_v3 }
  0x34   : > { %302 = vst [vmem:[%s4021_s23 + $0x18] sm:$0xff] %v294_v4 }
  0x35 PF: > { %v2558_v5 = vld [vmem:[%s4002_s7 + $0xe0] sm:$0xf]  ;;  %v3501_v6 = vld [vmem:[%s4002_s7 + $0xec] sm:$0xf0] }
  0x36   : > { %v2686_v7 = vld [vmem:[%s4002_s7 + $0x1e0] sm:$0xf]  ;;  %v2559_v8 = vor.u32 %v3501_v6, %v2558_v5  ;;  %v3533_v9 = vld [vmem:[%s4002_s7 + $0x1ec] sm:$0xf0] }
  0x37   : > { %v2814_v10 = vld [vmem:[%s4002_s7 + $0x2e0] sm:$0xf]  ;;  %v3565_v11 = vld [vmem:[%s4002_s7 + $0x2ec] sm:$0xf0]  ;;  %v2687_v12 = vor.u32 %v3533_v9, %v2686_v7 }
  0x38   : > { %v2815_v13 = vor.u32 %v3565_v11, %v2814_v10  ;;  %v2942_v14 = vld [vmem:[%s4002_s7 + $0x3e0] sm:$0xf]  ;;  %v3597_v15 = vld [vmem:[%s4002_s7 + $0x3ec] sm:$0xf0]  ;;  %1875 = vmatpush.bf16.msra.mxu0 %v2559_v8 }
  0x39   : > { %v2542_v16 = vld [vmem:[%s4002_s7 + $0xc0] sm:$0xf]  ;;  %v2943_v17 = vor.u32 %v3597_v15, %v2942_v14  ;;  %v3497_v18 = vld [vmem:[%s4002_s7 + $0xcc] sm:$0xf0]  ;;  %1888 = vmatpush.bf16.msra.mxu1 %v2687_v12 }
  0x3a   : > { %v2670_v19 = vld [vmem:[%s4002_s7 + $0x1c0] sm:$0xf]  ;;  %v3529_v20 = vld [vmem:[%s4002_s7 + $0x1cc] sm:$0xf0]  ;;  %1901 = vmatpush.bf16.msra.mxu2 %v2815_v13  ;;  %v2543_v21 = vor.u32 %v3497_v18, %v2542_v16 }
  0x3b   : > { %v2671_v22 = vor.u32 %v3529_v20, %v2670_v19  ;;  %v2798_v23 = vld [vmem:[%s4002_s7 + $0x2c0] sm:$0xf]  ;;  %v3561_v24 = vld [vmem:[%s4002_s7 + $0x2cc] sm:$0xf0]  ;;  %1914 = vmatpush.bf16.msra.mxu3 %v2943_v17 }
  0x3c   : > { %v2926_v25 = vld [vmem:[%s4002_s7 + $0x3c0] sm:$0xf]  ;;  %v2799_v26 = vor.u32 %v3561_v24, %v2798_v23  ;;  %v3593_v27 = vld [vmem:[%s4002_s7 + $0x3cc] sm:$0xf0]  ;;  %1876 = vmatpush.bf16.msra.mxu0 %v2543_v21 }
  0x3d   : > { %v2526_v28 = vld [vmem:[%s4002_s7 + $0xa0] sm:$0xf]  ;;  %v3493_v29 = vld [vmem:[%s4002_s7 + $0xac] sm:$0xf0]  ;;  %v2927_v30 = vor.u32 %v3593_v27, %v2926_v25  ;;  %1889 = vmatpush.bf16.msra.mxu1 %v2671_v22 }
  0x3e   : > { %v2654_v31 = vld [vmem:[%s4002_s7 + $0x1a0] sm:$0xf]  ;;  %v3525_v32 = vld [vmem:[%s4002_s7 + $0x1ac] sm:$0xf0]  ;;  %v2527_v34 = vor.u32 %v3493_v29, %v2526_v28  ;;  %1902 = vmatpush.bf16.msra.mxu2 %v2799_v26 }
  0x3f   : > { %v2782_v33 = vld [vmem:[%s4002_s7 + $0x2a0] sm:$0xf]  ;;  %v3557_v35 = vld [vmem:[%s4002_s7 + $0x2ac] sm:$0xf0]  ;;  %v2655_v38 = vor.u32 %v3525_v32, %v2654_v31  ;;  %1915 = vmatpush.bf16.msra.mxu3 %v2927_v30 }
  0x40   : > { %v2910_v36 = vld [vmem:[%s4002_s7 + $0x3a0] sm:$0xf]  ;;  %v3589_v37 = vld [vmem:[%s4002_s7 + $0x3ac] sm:$0xf0]  ;;  %v2783_v39 = vor.u32 %v3557_v35, %v2782_v33  ;;  %1877 = vmatpush.bf16.msra.mxu0 %v2527_v34 }
  0x41   : > { %v2510_v40 = vld [vmem:[%s4002_s7 + $0x80] sm:$0xf]  ;;  %v3489_v41 = vld [vmem:[%s4002_s7 + $0x8c] sm:$0xf0]  ;;  %v2911_v43 = vor.u32 %v3589_v37, %v2910_v36  ;;  %1890 = vmatpush.bf16.msra.mxu1 %v2655_v38 }
  0x42   : > { %v2638_v42 = vld [vmem:[%s4002_s7 + $0x180] sm:$0xf]  ;;  %v3521_v44 = vld [vmem:[%s4002_s7 + $0x18c] sm:$0xf0]  ;;  %v2511_v49 = vor.u32 %v3489_v41, %v2510_v40  ;;  %1903 = vmatpush.bf16.msra.mxu2 %v2783_v39 }
  0x43   : > { %v2766_v45 = vld [vmem:[%s4002_s7 + $0x280] sm:$0xf]  ;;  %v3553_v46 = vld [vmem:[%s4002_s7 + $0x28c] sm:$0xf0]  ;;  %v2639_v50 = vor.u32 %v3521_v44, %v2638_v42  ;;  %1916 = vmatpush.bf16.msra.mxu3 %v2911_v43 }
  0x44   : > { %v2894_v47 = vld [vmem:[%s4002_s7 + $0x380] sm:$0xf]  ;;  %v3585_v48 = vld [vmem:[%s4002_s7 + $0x38c] sm:$0xf0]  ;;  %v2767_v51 = vor.u32 %v3553_v46, %v2766_v45  ;;  %1878 = vmatpush.bf16.msra.mxu0 %v2511_v49 }
  0x45   : > { %v2494_v52 = vld [vmem:[%s4002_s7 + $0x60] sm:$0xf]  ;;  %v3485_v53 = vld [vmem:[%s4002_s7 + $0x6c] sm:$0xf0]  ;;  %v2895_v55 = vor.u32 %v3585_v48, %v2894_v47  ;;  %1891 = vmatpush.bf16.msra.mxu1 %v2639_v50 }
  0x46   : > { %v2622_v54 = vld [vmem:[%s4002_s7 + $0x160] sm:$0xf]  ;;  %v3517_v56 = vld [vmem:[%s4002_s7 + $0x16c] sm:$0xf0]  ;;  %v2495_v61 = vor.u32 %v3485_v53, %v2494_v52  ;;  %1904 = vmatpush.bf16.msra.mxu2 %v2767_v51 }
  0x47   : > { %v2750_v57 = vld [vmem:[%s4002_s7 + $0x260] sm:$0xf]  ;;  %v3549_v58 = vld [vmem:[%s4002_s7 + $0x26c] sm:$0xf0]  ;;  %v2623_v62 = vor.u32 %v3517_v56, %v2622_v54  ;;  %1917 = vmatpush.bf16.msra.mxu3 %v2895_v55 }
  0x48   : > { %v2878_v59 = vld [vmem:[%s4002_s7 + $0x360] sm:$0xf]  ;;  %v3581_v60 = vld [vmem:[%s4002_s7 + $0x36c] sm:$0xf0]  ;;  %v2751_v63 = vor.u32 %v3549_v58, %v2750_v57  ;;  %1879 = vmatpush.bf16.msra.mxu0 %v2495_v61 }
  0x49   : > { %v2478_v0 = vld [vmem:[%s4002_s7 + $0x40] sm:$0xf]  ;;  %v3481_v1 = vld [vmem:[%s4002_s7 + $0x4c] sm:$0xf0]  ;;  %v2879_v3 = vor.u32 %v3581_v60, %v2878_v59  ;;  %1892 = vmatpush.bf16.msra.mxu1 %v2623_v62 }
  0x4a   : > { %v2606_v2 = vld [vmem:[%s4002_s7 + $0x140] sm:$0xf]  ;;  %v3513_v4 = vld [vmem:[%s4002_s7 + $0x14c] sm:$0xf0]  ;;  %v2479_v9 = vor.u32 %v3481_v1, %v2478_v0  ;;  %1905 = vmatpush.bf16.msra.mxu2 %v2751_v63  ;;  %v308_v63 = vld [vmem:[%s4013_s10 + $0x8] sm:$0xff] }
  0x4b   : > { %v2734_v5 = vld [vmem:[%s4002_s7 + $0x240] sm:$0xf]  ;;  %v3545_v6 = vld [vmem:[%s4002_s7 + $0x24c] sm:$0xf0]  ;;  %v2607_v10 = vor.u32 %v3513_v4, %v2606_v2  ;;  %1918 = vmatpush.bf16.msra.mxu3 %v2879_v3  ;;  %v573_v4 = vunpack.c.l.b16 %v308_v63 }
  0x4c   : > { %v2862_v7 = vld [vmem:[%s4002_s7 + $0x340] sm:$0xf]  ;;  %v3577_v8 = vld [vmem:[%s4002_s7 + $0x34c] sm:$0xf0]  ;;  %v2735_v11 = vor.u32 %v3545_v6, %v2734_v5  ;;  %1880 = vmatpush.bf16.msra.mxu0 %v2479_v9  ;;  %v574_v5 = vunpack.c.h.b16 %v308_v63 }
  0x4d   : > { %v2462_v12 = vld [vmem:[%s4002_s7 + $0x20] sm:$0xf]  ;;  %v3477_v13 = vld [vmem:[%s4002_s7 + $0x2c] sm:$0xf0]  ;;  %v2863_v15 = vor.u32 %v3577_v8, %v2862_v7  ;;  %1893 = vmatpush.bf16.msra.mxu1 %v2607_v10  ;;  %v4117_v9 = vpack.c.b16 %v573_v4, %v573_v4 }
  0x4e   : > { %v2590_v14 = vld [vmem:[%s4002_s7 + $0x120] sm:$0xf]  ;;  %v3509_v16 = vld [vmem:[%s4002_s7 + $0x12c] sm:$0xf0]  ;;  %v2463_v21 = vor.u32 %v3477_v13, %v2462_v12  ;;  %1906 = vmatpush.bf16.msra.mxu2 %v2735_v11  ;;  %v4120_v11 = vpack.c.b16 %v574_v5, %v574_v5 }
  0x4f   : > { %v2718_v17 = vld [vmem:[%s4002_s7 + $0x220] sm:$0xf]  ;;  %v3541_v18 = vld [vmem:[%s4002_s7 + $0x22c] sm:$0xf0]  ;;  %v2591_v24 = vor.u32 %v3509_v16, %v2590_v14  ;;  %1919 = vmatpush.bf16.msra.mxu3 %v2863_v15 }
  0x50   : > { %v2846_v19 = vld [vmem:[%s4002_s7 + $0x320] sm:$0xf]  ;;  %v3573_v20 = vld [vmem:[%s4002_s7 + $0x32c] sm:$0xf0]  ;;  %v2719_v25 = vor.u32 %v3541_v18, %v2718_v17  ;;  %1881 = vmatpush.bf16.msra.mxu0 %v2463_v21 }
  0x51   : > { %v2446_v22 = vld [vmem:[%s4002_s7] sm:$0xf]  ;;  %v3473_v23 = vld [vmem:[%s4002_s7 + $0xc] sm:$0xf0]  ;;  %v2847_v29 = vor.u32 %v3573_v20, %v2846_v19  ;;  %1894 = vmatpush.bf16.msra.mxu1 %v2591_v24 }
  0x52   : > { %v2574_v26 = vld [vmem:[%s4002_s7 + $0x100] sm:$0xf]  ;;  %v3505_v27 = vld [vmem:[%s4002_s7 + $0x10c] sm:$0xf0]  ;;  %v2447_v36 = vor.u32 %v3473_v23, %v2446_v22  ;;  %1907 = vmatpush.bf16.msra.mxu2 %v2719_v25 }
  0x53   : > { %v2702_v28 = vld [vmem:[%s4002_s7 + $0x200] sm:$0xf]  ;;  %v3537_v30 = vld [vmem:[%s4002_s7 + $0x20c] sm:$0xf0]  ;;  %v2575_v40 = vor.u32 %v3505_v27, %v2574_v26  ;;  %1920 = vmatpush.bf16.msra.mxu3 %v2847_v29 }
  0x54   : > { %v2830_v31 = vld [vmem:[%s4002_s7 + $0x300] sm:$0xf]  ;;  %v3569_v32 = vld [vmem:[%s4002_s7 + $0x30c] sm:$0xf0]  ;;  %v2703_v41 = vor.u32 %v3537_v30, %v2702_v28  ;;  %1882 = vmatpush.bf16.msra.mxu0 %v2447_v36 }
  0x55   : > { %v3070_v33 = vld [vmem:[%s4002_s7 + $0x4e0] sm:$0xf]  ;;  %v3629_v34 = vld [vmem:[%s4002_s7 + $0x4ec] sm:$0xf0]  ;;  %v2831_v44 = vor.u32 %v3569_v32, %v2830_v31  ;;  %1895 = vmatpush.bf16.msra.mxu1 %v2575_v40 }
  0x56   : > { %v3198_v35 = vld [vmem:[%s4002_s7 + $0x5e0] sm:$0xf]  ;;  %v3661_v37 = vld [vmem:[%s4002_s7 + $0x5ec] sm:$0xf0]  ;;  %v3071_v45 = vor.u32 %v3629_v34, %v3070_v33  ;;  %1908 = vmatpush.bf16.msra.mxu2 %v2703_v41 }
  0x57   : > { %v3326_v38 = vld [vmem:[%s4002_s7 + $0x6e0] sm:$0xf]  ;;  %v3693_v39 = vld [vmem:[%s4002_s7 + $0x6ec] sm:$0xf0]  ;;  %v3199_v46 = vor.u32 %v3661_v37, %v3198_v35  ;;  %1921 = vmatpush.bf16.msra.mxu3 %v2831_v44 }
  0x58   : > { %v3454_v42 = vld [vmem:[%s4002_s7 + $0x7e0] sm:$0xf]  ;;  %v3725_v43 = vld [vmem:[%s4002_s7 + $0x7ec] sm:$0xf0]  ;;  %v3327_v47 = vor.u32 %v3693_v39, %v3326_v38  ;;  %1927 = vmatpush.bf16.msrb.mxu0 %v3071_v45 }
  0x59   : > { %v3054_v48 = vld [vmem:[%s4002_s7 + $0x4c0] sm:$0xf]  ;;  %v3625_v49 = vld [vmem:[%s4002_s7 + $0x4cc] sm:$0xf0]  ;;  %v3455_v51 = vor.u32 %v3725_v43, %v3454_v42  ;;  %1940 = vmatpush.bf16.msrb.mxu1 %v3199_v46  ;;  %1909 = vmatmul.bf16.vlgmr.msra.gmra.mxu2 %v4117_v9 }
  0x5a   : > { %v3182_v50 = vld [vmem:[%s4002_s7 + $0x5c0] sm:$0xf]  ;;  %v3657_v52 = vld [vmem:[%s4002_s7 + $0x5cc] sm:$0xf0]  ;;  %v3055_v57 = vor.u32 %v3625_v49, %v3054_v48  ;;  %1953 = vmatpush.bf16.msrb.mxu2 %v3327_v47  ;;  %1922 = vmatmul.bf16.vlgmr.msra.gmra.mxu3 %v4120_v11 }
  0x5b   : > { %v3310_v53 = vld [vmem:[%s4002_s7 + $0x6c0] sm:$0xf]  ;;  %v3689_v54 = vld [vmem:[%s4002_s7 + $0x6cc] sm:$0xf0]  ;;  %v3183_v59 = vor.u32 %v3657_v52, %v3182_v50  ;;  %1966 = vmatpush.bf16.msrb.mxu3 %v3455_v51 }
  0x5c   : > { %v3438_v55 = vld [vmem:[%s4002_s7 + $0x7c0] sm:$0xf]  ;;  %v3721_v56 = vld [vmem:[%s4002_s7 + $0x7cc] sm:$0xf0]  ;;  %v3311_v60 = vor.u32 %v3689_v54, %v3310_v53  ;;  %1928 = vmatpush.bf16.msrb.mxu0 %v3055_v57 }
  0x5d   : > { %v3038_v58 = vld [vmem:[%s4002_s7 + $0x4a0] sm:$0xf]  ;;  %v3621_v61 = vld [vmem:[%s4002_s7 + $0x4ac] sm:$0xf0]  ;;  %v3439_v0 = vor.u32 %v3721_v56, %v3438_v55  ;;  %1941 = vmatpush.bf16.msrb.mxu1 %v3183_v59 }
  0x5e   : > { %v3166_v62 = vld [vmem:[%s4002_s7 + $0x5a0] sm:$0xf]  ;;  %v3653_v1 = vld [vmem:[%s4002_s7 + $0x5ac] sm:$0xf0]  ;;  %v3039_v8 = vor.u32 %v3621_v61, %v3038_v58  ;;  %1954 = vmatpush.bf16.msrb.mxu2 %v3311_v60 }
  0x5f   : > { %v3294_v2 = vld [vmem:[%s4002_s7 + $0x6a0] sm:$0xf]  ;;  %v3685_v3 = vld [vmem:[%s4002_s7 + $0x6ac] sm:$0xf0]  ;;  %v3167_v12 = vor.u32 %v3653_v1, %v3166_v62  ;;  %1967 = vmatpush.bf16.msrb.mxu3 %v3439_v0 }
  0x60   : > { %v3422_v6 = vld [vmem:[%s4002_s7 + $0x7a0] sm:$0xf]  ;;  %v3717_v7 = vld [vmem:[%s4002_s7 + $0x7ac] sm:$0xf0]  ;;  %v3295_v13 = vor.u32 %v3685_v3, %v3294_v2  ;;  %1929 = vmatpush.bf16.msrb.mxu0 %v3039_v8  ;;  %v310_v8 = vld [vmem:[%s4013_s10 + $0x18] sm:$0xff] }
  0x61   : > { %v307_v10 = vld [vmem:[%s4013_s10] sm:$0xff]  ;;  %v3617_v15 = vld [vmem:[%s4002_s7 + $0x48c] sm:$0xf0]  ;;  %v3423_v19 = vor.u32 %v3717_v7, %v3422_v6  ;;  %1942 = vmatpush.bf16.msrb.mxu1 %v3167_v12 }
  0x62   : > { %v3022_v14 = vld [vmem:[%s4002_s7 + $0x480] sm:$0xf]  ;;  %v571_v17 = vunpack.c.l.b16 %v307_v10  ;;  %v572_v18 = vunpack.c.h.b16 %v307_v10  ;;  %v3649_v20 = vld [vmem:[%s4002_s7 + $0x58c] sm:$0xf0]  ;;  %1955 = vmatpush.bf16.msrb.mxu2 %v3295_v13 }
  0x63   : > { %v3150_v16 = vld [vmem:[%s4002_s7 + $0x580] sm:$0xf]  ;;  %v3681_v22 = vld [vmem:[%s4002_s7 + $0x68c] sm:$0xf0]  ;;  %v3023_v27 = vor.u32 %v3617_v15, %v3022_v14  ;;  %1968 = vmatpush.bf16.msrb.mxu3 %v3423_v19  ;;  %v3499_v15 = vld [vmem:[%s4002_s7 + $0xe4] sm:$0xf] }
  0x64   : > { %v3278_v21 = vld [vmem:[%s4002_s7 + $0x680] sm:$0xf]  ;;  %v3713_v24 = vld [vmem:[%s4002_s7 + $0x78c] sm:$0xf0]  ;;  %v4131_v25 = vpack.c.b16 %v571_v17, %v571_v17  ;;  %v4134_v26 = vpack.c.b16 %v572_v18, %v572_v18  ;;  %v3151_v28 = vor.u32 %v3649_v20, %v3150_v16  ;;  %v2560_v16 = vld [vmem:[%s4002_s7 + $0xf0] sm:$0xf0] }
  0x65   : > { %v3406_v23 = vld [vmem:[%s4002_s7 + $0x780] sm:$0xf]  ;;  %v3279_v29 = vor.u32 %v3681_v22, %v3278_v21  ;;  %v3613_v31 = vld [vmem:[%s4002_s7 + $0x46c] sm:$0xf0]  ;;  %1930 = vmatpush.bf16.msrb.mxu0 %v3023_v27  ;;  %v3531_v17 = vld [vmem:[%s4002_s7 + $0x1e4] sm:$0xf]  ;;  %v577_v22 = vunpack.c.l.b16 %v310_v8 }
  0x66   : > { %v3006_v30 = vld [vmem:[%s4002_s7 + $0x460] sm:$0xf]  ;;  %v3407_v33 = vor.u32 %v3713_v24, %v3406_v23  ;;  %v3645_v34 = vld [vmem:[%s4002_s7 + $0x56c] sm:$0xf0]  ;;  %1883 = vmatmul.bf16.vlgmr.msra.gmra.mxu0 %v4131_v25  ;;  %1896 = vmatmul.bf16.vlgmr.msra.gmra.mxu1 %v4134_v26  ;;  %v2688_v19 = vld [vmem:[%s4002_s7 + $0x1f0] sm:$0xf0] }
  0x67   : > { %v3134_v32 = vld [vmem:[%s4002_s7 + $0x560] sm:$0xf]  ;;  %v3677_v36 = vld [vmem:[%s4002_s7 + $0x66c] sm:$0xf0]  ;;  %v3007_v39 = vor.u32 %v3613_v31, %v3006_v30  ;;  %1943 = vmatpush.bf16.msrb.mxu1 %v3151_v28  ;;  %1956 = vmatpush.bf16.msrb.mxu2 %v3279_v29  ;;  %v3563_v20 = vld [vmem:[%s4002_s7 + $0x2e4] sm:$0xf]  ;;  %v578_v30 = vunpack.c.h.b16 %v310_v8 }
  0x68   : > { %v3262_v35 = vld [vmem:[%s4002_s7 + $0x660] sm:$0xf]  ;;  %v3709_v38 = vld [vmem:[%s4002_s7 + $0x76c] sm:$0xf0]  ;;  %v3135_v40 = vor.u32 %v3645_v34, %v3134_v32  ;;  %1969 = vmatpush.bf16.msrb.mxu3 %v3407_v33  ;;  %v2816_v21 = vld [vmem:[%s4002_s7 + $0x2f0] sm:$0xf0]  ;;  %v2563_v32 = vor.u32 %v3499_v15, %v2560_v16  ;;  %v2691_v34 = vor.u32 %v3531_v17, %v2688_v19 }
  0x69   : > { %v3390_v37 = vld [vmem:[%s4002_s7 + $0x760] sm:$0xf]  ;;  %v3263_v41 = vor.u32 %v3677_v36, %v3262_v35  ;;  %v3609_v43 = vld [vmem:[%s4002_s7 + $0x44c] sm:$0xf0]  ;;  %1931 = vmatpush.bf16.msrb.mxu0 %v3007_v39  ;;  %v3595_v27 = vld [vmem:[%s4002_s7 + $0x3e4] sm:$0xf]  ;;  %v2819_v35 = vor.u32 %v3563_v20, %v2816_v21 }
  0x6a   : > { %v2990_v42 = vld [vmem:[%s4002_s7 + $0x440] sm:$0xf]  ;;  %v3391_v45 = vor.u32 %v3709_v38, %v3390_v37  ;;  %v3641_v46 = vld [vmem:[%s4002_s7 + $0x54c] sm:$0xf0]  ;;  %v2944_v28 = vld [vmem:[%s4002_s7 + $0x3f0] sm:$0xf0] }
  0x6b   : > { %v3118_v44 = vld [vmem:[%s4002_s7 + $0x540] sm:$0xf]  ;;  %v3673_v48 = vld [vmem:[%s4002_s7 + $0x64c] sm:$0xf0]  ;;  %v2991_v51 = vor.u32 %v3609_v43, %v2990_v42  ;;  %1944 = vmatpush.bf16.msrb.mxu1 %v3135_v40  ;;  %1957 = vmatpush.bf16.msrb.mxu2 %v3263_v41  ;;  %v3495_v36 = vld [vmem:[%s4002_s7 + $0xc4] sm:$0xf]  ;;  %v2947_v39 = vor.u32 %v3595_v27, %v2944_v28  ;;  %v4186_v43 = vpack.c.b16 %v577_v22, %v577_v22 }
  0x6c   : > { %v3246_v47 = vld [vmem:[%s4002_s7 + $0x640] sm:$0xf]  ;;  %v3705_v50 = vld [vmem:[%s4002_s7 + $0x74c] sm:$0xf0]  ;;  %v3119_v52 = vor.u32 %v3641_v46, %v3118_v44  ;;  %1970 = vmatpush.bf16.msrb.mxu3 %v3391_v45  ;;  %v2544_v37 = vld [vmem:[%s4002_s7 + $0xd0] sm:$0xf0] }
  0x6d   : > { %v3374_v49 = vld [vmem:[%s4002_s7 + $0x740] sm:$0xf]  ;;  %v3247_v53 = vor.u32 %v3673_v48, %v3246_v47  ;;  %v3605_v55 = vld [vmem:[%s4002_s7 + $0x42c] sm:$0xf0]  ;;  %1932 = vmatpush.bf16.msrb.mxu0 %v2991_v51  ;;  %v3527_v38 = vld [vmem:[%s4002_s7 + $0x1c4] sm:$0xf]  ;;  %v4192_v47 = vpack.c.b16 %v578_v30, %v578_v30  ;;  %v2547_v48 = vor.u32 %v3495_v36, %v2544_v37 }
  0x6e   : > { %v2974_v54 = vld [vmem:[%s4002_s7 + $0x420] sm:$0xf]  ;;  %v3375_v57 = vor.u32 %v3705_v50, %v3374_v49  ;;  %v3637_v58 = vld [vmem:[%s4002_s7 + $0x52c] sm:$0xf0]  ;;  %v2672_v40 = vld [vmem:[%s4002_s7 + $0x1d0] sm:$0xf0] }
  0x6f   : > { %v3102_v56 = vld [vmem:[%s4002_s7 + $0x520] sm:$0xf]  ;;  %v3669_v60 = vld [vmem:[%s4002_s7 + $0x62c] sm:$0xf0]  ;;  %v2975_v0 = vor.u32 %v3605_v55, %v2974_v54  ;;  %1945 = vmatpush.bf16.msrb.mxu1 %v3119_v52  ;;  %1958 = vmatpush.bf16.msrb.mxu2 %v3247_v53  ;;  %v3559_v41 = vld [vmem:[%s4002_s7 + $0x2c4] sm:$0xf]  ;;  %v2675_v50 = vor.u32 %v3527_v38, %v2672_v40 }
  0x70   : > { %v3230_v59 = vld [vmem:[%s4002_s7 + $0x620] sm:$0xf]  ;;  %v3701_v62 = vld [vmem:[%s4002_s7 + $0x72c] sm:$0xf0]  ;;  %v3103_v4 = vor.u32 %v3637_v58, %v3102_v56  ;;  %1971 = vmatpush.bf16.msrb.mxu3 %v3375_v57  ;;  %v2800_v42 = vld [vmem:[%s4002_s7 + $0x2d0] sm:$0xf0] }
  0x71   : > { %v3358_v61 = vld [vmem:[%s4002_s7 + $0x720] sm:$0xf]  ;;  %v3601_v1 = vld [vmem:[%s4002_s7 + $0x40c] sm:$0xf0]  ;;  %v3231_v5 = vor.u32 %v3669_v60, %v3230_v59  ;;  %1933 = vmatpush.bf16.msrb.mxu0 %v2975_v0  ;;  %v3591_v44 = vld [vmem:[%s4002_s7 + $0x3c4] sm:$0xf]  ;;  %v2803_v51 = vor.u32 %v3559_v41, %v2800_v42 }
  0x72   : > { %v2958_v63 = vld [vmem:[%s4002_s7 + $0x400] sm:$0xf]  ;;  %v3633_v3 = vld [vmem:[%s4002_s7 + $0x50c] sm:$0xf0]  ;;  %v3359_v10 = vor.u32 %v3701_v62, %v3358_v61  ;;  %v2928_v45 = vld [vmem:[%s4002_s7 + $0x3d0] sm:$0xf0] }
  0x73   : > { %v3086_v2 = vld [vmem:[%s4002_s7 + $0x500] sm:$0xf]  ;;  %v3665_v7 = vld [vmem:[%s4002_s7 + $0x60c] sm:$0xf0]  ;;  %v2959_v18 = vor.u32 %v3601_v1, %v2958_v63  ;;  %1946 = vmatpush.bf16.msrb.mxu1 %v3103_v4  ;;  %1959 = vmatpush.bf16.msrb.mxu2 %v3231_v5  ;;  %v3491_v52 = vld [vmem:[%s4002_s7 + $0xa4] sm:$0xf]  ;;  %v2931_v55 = vor.u32 %v3591_v44, %v2928_v45 }
  0x74   : > { %v3214_v6 = vld [vmem:[%s4002_s7 + $0x600] sm:$0xf]  ;;  %v3697_v13 = vld [vmem:[%s4002_s7 + $0x70c] sm:$0xf0]  ;;  %v3087_v23 = vor.u32 %v3633_v3, %v3086_v2  ;;  %1972 = vmatpush.bf16.msrb.mxu3 %v3359_v10  ;;  %v2528_v53 = vld [vmem:[%s4002_s7 + $0xb0] sm:$0xf0] }
  0x75   : > { %v3342_v12 = vld [vmem:[%s4002_s7 + $0x700] sm:$0xf]  ;;  %v309_v14 = vld [vmem:[%s4013_s10 + $0x10] sm:$0xff]  ;;  %v3215_v24 = vor.u32 %v3665_v7, %v3214_v6  ;;  %1934 = vmatpush.bf16.msrb.mxu0 %v2959_v18  ;;  %v3523_v54 = vld [vmem:[%s4002_s7 + $0x1a4] sm:$0xf]  ;;  %v2531_v61 = vor.u32 %v3491_v52, %v2528_v53 }
  0x76   : > { %v575_v29 = vunpack.c.l.b16 %v309_v14  ;;  %v3343_v31 = vor.u32 %v3697_v13, %v3342_v12  ;;  %v576_v33 = vunpack.c.h.b16 %v309_v14  ;;  %v2656_v56 = vld [vmem:[%s4002_s7 + $0x1b0] sm:$0xf0]  ;;  %v3555_v57 = vld [vmem:[%s4002_s7 + $0x2a4] sm:$0xf] }
  0x77   : > { %1947 = vmatpush.bf16.msrb.mxu1 %v3087_v23  ;;  %1960 = vmatpush.bf16.msrb.mxu2 %v3215_v24  ;;  %v2784_v58 = vld [vmem:[%s4002_s7 + $0x2b0] sm:$0xf0]  ;;  %v3587_v59 = vld [vmem:[%s4002_s7 + $0x3a4] sm:$0xf]  ;;  %v2659_v62 = vor.u32 %v3523_v54, %v2656_v56 }
  0x78   : > { %v4190_v46 = vpack.c.b16 %v575_v29, %v575_v29  ;;  %1973 = vmatpush.bf16.msrb.mxu3 %v3343_v31  ;;  %v4194_v49 = vpack.c.b16 %v576_v33, %v576_v33  ;;  %v2912_v60 = vld [vmem:[%s4002_s7 + $0x3b0] sm:$0xf0]  ;;  %v2787_v63 = vor.u32 %v3555_v57, %v2784_v58  ;;  %v3487_v0 = vld [vmem:[%s4002_s7 + $0x84] sm:$0xf] }
  0x79   : > { %1979 = vmatpush.bf16.msra.mxu0 %v2563_v32  ;;  %v2512_v1 = vld [vmem:[%s4002_s7 + $0x90] sm:$0xf0]  ;;  %v3519_v2 = vld [vmem:[%s4002_s7 + $0x184] sm:$0xf]  ;;  %v2915_v3 = vor.u32 %v3587_v59, %v2912_v60 }
  0x7a   : > { %1961 = vmatmul.bf16.vlgmr.msrb.gmra.mxu2 %v4186_v43  ;;  %1935 = vmatmul.bf16.vlgmr.msrb.gmra.mxu0 %v4190_v46  ;;  %v2640_v4 = vld [vmem:[%s4002_s7 + $0x190] sm:$0xf0]  ;;  %v3551_v5 = vld [vmem:[%s4002_s7 + $0x284] sm:$0xf]  ;;  %v2515_v10 = vor.u32 %v3487_v0, %v2512_v1 }
  0x7b   : > { %1992 = vmatpush.bf16.msra.mxu1 %v2691_v34  ;;  %2005 = vmatpush.bf16.msra.mxu2 %v2819_v35  ;;  %v2768_v6 = vld [vmem:[%s4002_s7 + $0x290] sm:$0xf0]  ;;  %v3583_v7 = vld [vmem:[%s4002_s7 + $0x384] sm:$0xf]  ;;  %v2643_v12 = vor.u32 %v3519_v2, %v2640_v4 }
  0x7c   : > { %2018 = vmatpush.bf16.msra.mxu3 %v2947_v39  ;;  %1948 = vmatmul.bf16.vlgmr.msrb.gmra.mxu1 %v4194_v49  ;;  %v2896_v8 = vld [vmem:[%s4002_s7 + $0x390] sm:$0xf0]  ;;  %v2771_v13 = vor.u32 %v3551_v5, %v2768_v6  ;;  %v3483_v14 = vld [vmem:[%s4002_s7 + $0x64] sm:$0xf] }
  0x7d   : > { %1974 = vmatmul.bf16.vlgmr.msrb.gmra.mxu3 %v4192_v47  ;;  %1980 = vmatpush.bf16.msra.mxu0 %v2547_v48  ;;  %v2496_v15 = vld [vmem:[%s4002_s7 + $0x70] sm:$0xf0]  ;;  %v3515_v16 = vld [vmem:[%s4002_s7 + $0x164] sm:$0xf]  ;;  %v2899_v17 = vor.u32 %v3583_v7, %v2896_v8 }
  0x7e   : > { %v2624_v18 = vld [vmem:[%s4002_s7 + $0x170] sm:$0xf0]  ;;  %v3547_v19 = vld [vmem:[%s4002_s7 + $0x264] sm:$0xf]  ;;  %v2499_v23 = vor.u32 %v3483_v14, %v2496_v15 }
  0x7f   : > { %1993 = vmatpush.bf16.msra.mxu1 %v2675_v50  ;;  %2006 = vmatpush.bf16.msra.mxu2 %v2803_v51  ;;  %v2752_v20 = vld [vmem:[%s4002_s7 + $0x270] sm:$0xf0]  ;;  %v3579_v21 = vld [vmem:[%s4002_s7 + $0x364] sm:$0xf]  ;;  %v2627_v24 = vor.u32 %v3515_v16, %v2624_v18 }
  0x80   : > { %2019 = vmatpush.bf16.msra.mxu3 %v2931_v55  ;;  %v2880_v22 = vld [vmem:[%s4002_s7 + $0x370] sm:$0xf0]  ;;  %v2755_v27 = vor.u32 %v3547_v19, %v2752_v20  ;;  %v3479_v28 = vld [vmem:[%s4002_s7 + $0x44] sm:$0xf] }
  0x81   : > { %1981 = vmatpush.bf16.msra.mxu0 %v2531_v61  ;;  %v2480_v29 = vld [vmem:[%s4002_s7 + $0x50] sm:$0xf0]  ;;  %v3511_v30 = vld [vmem:[%s4002_s7 + $0x144] sm:$0xf]  ;;  %v2883_v31 = vor.u32 %v3579_v21, %v2880_v22 }
  0x82   : > { %v2608_v32 = vld [vmem:[%s4002_s7 + $0x150] sm:$0xf0]  ;;  %v3543_v33 = vld [vmem:[%s4002_s7 + $0x244] sm:$0xf]  ;;  %v2483_v37 = vor.u32 %v3479_v28, %v2480_v29 }
  0x83   : > { %1994 = vmatpush.bf16.msra.mxu1 %v2659_v62  ;;  %2007 = vmatpush.bf16.msra.mxu2 %v2787_v63  ;;  %v2736_v34 = vld [vmem:[%s4002_s7 + $0x250] sm:$0xf0]  ;;  %v3575_v35 = vld [vmem:[%s4002_s7 + $0x344] sm:$0xf]  ;;  %v2611_v38 = vor.u32 %v3511_v30, %v2608_v32 }
  0x84   : > { %2020 = vmatpush.bf16.msra.mxu3 %v2915_v3  ;;  %v2864_v36 = vld [vmem:[%s4002_s7 + $0x350] sm:$0xf0]  ;;  %v2739_v39 = vor.u32 %v3543_v33, %v2736_v34  ;;  %v3475_v40 = vld [vmem:[%s4002_s7 + $0x24] sm:$0xf] }
  0x85   : > { %1982 = vmatpush.bf16.msra.mxu0 %v2515_v10  ;;  %v2464_v41 = vld [vmem:[%s4002_s7 + $0x30] sm:$0xf0]  ;;  %v3507_v42 = vld [vmem:[%s4002_s7 + $0x124] sm:$0xf]  ;;  %v2867_v44 = vor.u32 %v3575_v35, %v2864_v36 }
  0x86   : > { %v2592_v45 = vld [vmem:[%s4002_s7 + $0x130] sm:$0xf0]  ;;  %v3539_v48 = vld [vmem:[%s4002_s7 + $0x224] sm:$0xf]  ;;  %v2467_v53 = vor.u32 %v3475_v40, %v2464_v41 }
  0x87   : > { %1995 = vmatpush.bf16.msra.mxu1 %v2643_v12  ;;  %2008 = vmatpush.bf16.msra.mxu2 %v2771_v13  ;;  %v2720_v50 = vld [vmem:[%s4002_s7 + $0x230] sm:$0xf0]  ;;  %v3571_v51 = vld [vmem:[%s4002_s7 + $0x324] sm:$0xf]  ;;  %v2595_v56 = vor.u32 %v3507_v42, %v2592_v45 }
  0x88   : > { %2021 = vmatpush.bf16.msra.mxu3 %v2899_v17  ;;  %v2848_v52 = vld [vmem:[%s4002_s7 + $0x330] sm:$0xf0]  ;;  %v3471_v54 = vld [vmem:[%s4002_s7 + $0x4] sm:$0xf]  ;;  %v2723_v57 = vor.u32 %v3539_v48, %v2720_v50 }
  0x89   : > { %1983 = vmatpush.bf16.msra.mxu0 %v2499_v23  ;;  %v2448_v55 = vld [vmem:[%s4002_s7 + $0x10] sm:$0xf0]  ;;  %v3503_v58 = vld [vmem:[%s4002_s7 + $0x104] sm:$0xf]  ;;  %v2851_v61 = vor.u32 %v3571_v51, %v2848_v52 }
  0x8a   : > { %v2576_v59 = vld [vmem:[%s4002_s7 + $0x110] sm:$0xf0]  ;;  %v3535_v60 = vld [vmem:[%s4002_s7 + $0x204] sm:$0xf]  ;;  %v2451_v4 = vor.u32 %v3471_v54, %v2448_v55 }
  0x8b   : > { %1996 = vmatpush.bf16.msra.mxu1 %v2627_v24  ;;  %2009 = vmatpush.bf16.msra.mxu2 %v2755_v27  ;;  %v2704_v62 = vld [vmem:[%s4002_s7 + $0x210] sm:$0xf0]  ;;  %v3567_v63 = vld [vmem:[%s4002_s7 + $0x304] sm:$0xf]  ;;  %v2579_v8 = vor.u32 %v3503_v58, %v2576_v59 }
  0x8c   : > { %2022 = vmatpush.bf16.msra.mxu3 %v2883_v31  ;;  %v2832_v0 = vld [vmem:[%s4002_s7 + $0x310] sm:$0xf0]  ;;  %v3627_v1 = vld [vmem:[%s4002_s7 + $0x4e4] sm:$0xf]  ;;  %v2707_v10 = vor.u32 %v3535_v60, %v2704_v62 }
  0x8d   : > { %1984 = vmatpush.bf16.msra.mxu0 %v2483_v37  ;;  %v3072_v2 = vld [vmem:[%s4002_s7 + $0x4f0] sm:$0xf0]  ;;  %v3659_v3 = vld [vmem:[%s4002_s7 + $0x5e4] sm:$0xf]  ;;  %v2835_v14 = vor.u32 %v3567_v63, %v2832_v0 }
  0x8e   : > { %v3200_v5 = vld [vmem:[%s4002_s7 + $0x5f0] sm:$0xf0]  ;;  %v3691_v6 = vld [vmem:[%s4002_s7 + $0x6e4] sm:$0xf]  ;;  %v3075_v15 = vor.u32 %v3627_v1, %v3072_v2 }
  0x8f   : > { %1997 = vmatpush.bf16.msra.mxu1 %v2611_v38  ;;  %2010 = vmatpush.bf16.msra.mxu2 %v2739_v39  ;;  %v3328_v7 = vld [vmem:[%s4002_s7 + $0x6f0] sm:$0xf0]  ;;  %v3723_v12 = vld [vmem:[%s4002_s7 + $0x7e4] sm:$0xf]  ;;  %v3203_v16 = vor.u32 %v3659_v3, %v3200_v5 }
  0x90   : > { %2023 = vmatpush.bf16.msra.mxu3 %v2867_v44  ;;  %v3456_v13 = vld [vmem:[%s4002_s7 + $0x7f0] sm:$0xf0]  ;;  %v3331_v17 = vor.u32 %v3691_v6, %v3328_v7  ;;  %v3623_v18 = vld [vmem:[%s4002_s7 + $0x4c4] sm:$0xf] }
  0x91   : > { %1985 = vmatpush.bf16.msra.mxu0 %v2467_v53  ;;  %v3056_v19 = vld [vmem:[%s4002_s7 + $0x4d0] sm:$0xf0]  ;;  %v3655_v20 = vld [vmem:[%s4002_s7 + $0x5c4] sm:$0xf]  ;;  %v3459_v21 = vor.u32 %v3723_v12, %v3456_v13 }
  0x92   : > { %v3184_v22 = vld [vmem:[%s4002_s7 + $0x5d0] sm:$0xf0]  ;;  %v3687_v23 = vld [vmem:[%s4002_s7 + $0x6c4] sm:$0xf]  ;;  %v3059_v29 = vor.u32 %v3623_v18, %v3056_v19 }
  0x93   : > { %1998 = vmatpush.bf16.msra.mxu1 %v2595_v56  ;;  %2011 = vmatpush.bf16.msra.mxu2 %v2723_v57  ;;  %v3312_v24 = vld [vmem:[%s4002_s7 + $0x6d0] sm:$0xf0]  ;;  %v3719_v27 = vld [vmem:[%s4002_s7 + $0x7c4] sm:$0xf]  ;;  %v3187_v30 = vor.u32 %v3655_v20, %v3184_v22 }
  0x94   : > { %2024 = vmatpush.bf16.msra.mxu3 %v2851_v61  ;;  %v3440_v28 = vld [vmem:[%s4002_s7 + $0x7d0] sm:$0xf0]  ;;  %v3315_v31 = vor.u32 %v3687_v23, %v3312_v24  ;;  %v3619_v32 = vld [vmem:[%s4002_s7 + $0x4a4] sm:$0xf] }
  0x95   : > { %1986 = vmatpush.bf16.msra.mxu0 %v2451_v4  ;;  %v3040_v33 = vld [vmem:[%s4002_s7 + $0x4b0] sm:$0xf0]  ;;  %v3651_v34 = vld [vmem:[%s4002_s7 + $0x5a4] sm:$0xf]  ;;  %v3443_v35 = vor.u32 %v3719_v27, %v3440_v28 }
  0x96   : > { %v3168_v36 = vld [vmem:[%s4002_s7 + $0x5b0] sm:$0xf0]  ;;  %v3683_v37 = vld [vmem:[%s4002_s7 + $0x6a4] sm:$0xf]  ;;  %v3043_v41 = vor.u32 %v3619_v32, %v3040_v33 }
  0x97   : > { %1999 = vmatpush.bf16.msra.mxu1 %v2579_v8  ;;  %2012 = vmatpush.bf16.msra.mxu2 %v2707_v10  ;;  %v3296_v38 = vld [vmem:[%s4002_s7 + $0x6b0] sm:$0xf0]  ;;  %v3715_v39 = vld [vmem:[%s4002_s7 + $0x7a4] sm:$0xf]  ;;  %v3171_v42 = vor.u32 %v3651_v34, %v3168_v36 }
  0x98   : > { %2025 = vmatpush.bf16.msra.mxu3 %v2835_v14  ;;  %v3424_v40 = vld [vmem:[%s4002_s7 + $0x7b0] sm:$0xf0]  ;;  %1987 = vmatmul.bf16.vlgmr.msra.gmra.mxu0 %v4131_v25  ;;  %v3299_v44 = vor.u32 %v3683_v37, %v3296_v38  ;;  %v3615_v45 = vld [vmem:[%s4002_s7 + $0x484] sm:$0xf] }
  0x99   : > { %2031 = vmatpush.bf16.msrb.mxu0 %v3075_v15  ;;  %v3024_v48 = vld [vmem:[%s4002_s7 + $0x490] sm:$0xf0]  ;;  %v3647_v50 = vld [vmem:[%s4002_s7 + $0x584] sm:$0xf]  ;;  %v3427_v51 = vor.u32 %v3715_v39, %v3424_v40 }
  0x9a   : > { %2013 = vmatmul.bf16.vlgmr.msra.gmra.mxu2 %v4117_v9  ;;  %2000 = vmatmul.bf16.vlgmr.msra.gmra.mxu1 %v4134_v26  ;;  %v3152_v52 = vld [vmem:[%s4002_s7 + $0x590] sm:$0xf0]  ;;  %v3679_v53 = vld [vmem:[%s4002_s7 + $0x684] sm:$0xf]  ;;  %v3027_v57 = vor.u32 %v3615_v45, %v3024_v48  ;;  %v2566_v48 = vld [vmem:[%s4002_s7 + $0xe8] sm:$0xf] }
  0x9b   : > { %2044 = vmatpush.bf16.msrb.mxu1 %v3203_v16  ;;  %2057 = vmatpush.bf16.msrb.mxu2 %v3331_v17  ;;  %v3280_v54 = vld [vmem:[%s4002_s7 + $0x690] sm:$0xf0]  ;;  %v3711_v55 = vld [vmem:[%s4002_s7 + $0x784] sm:$0xf]  ;;  %v3155_v58 = vor.u32 %v3647_v50, %v3152_v52  ;;  %v3502_v50 = vld [vmem:[%s4002_s7 + $0xf4] sm:$0xf0] }
  0x9c   : > { %2070 = vmatpush.bf16.msrb.mxu3 %v3459_v21  ;;  %v3408_v56 = vld [vmem:[%s4002_s7 + $0x790] sm:$0xf0]  ;;  %v3283_v59 = vor.u32 %v3679_v53, %v3280_v54  ;;  %v3611_v60 = vld [vmem:[%s4002_s7 + $0x464] sm:$0xf]  ;;  %v3534_v53 = vld [vmem:[%s4002_s7 + $0x1f4] sm:$0xf0] }
  0x9d   : > { %2026 = vmatmul.bf16.vlgmr.msra.gmra.mxu3 %v4120_v11  ;;  %2032 = vmatpush.bf16.msrb.mxu0 %v3059_v29  ;;  %v3008_v61 = vld [vmem:[%s4002_s7 + $0x470] sm:$0xf0]  ;;  %v3643_v62 = vld [vmem:[%s4002_s7 + $0x564] sm:$0xf]  ;;  %v3411_v63 = vor.u32 %v3711_v55, %v3408_v56  ;;  %v2822_v54 = vld [vmem:[%s4002_s7 + $0x2e8] sm:$0xf] }
  0x9e   : > { %v3136_v0 = vld [vmem:[%s4002_s7 + $0x570] sm:$0xf0]  ;;  %v3675_v1 = vld [vmem:[%s4002_s7 + $0x664] sm:$0xf]  ;;  %v3011_v5 = vor.u32 %v3611_v60, %v3008_v61  ;;  %v3566_v55 = vld [vmem:[%s4002_s7 + $0x2f4] sm:$0xf0]  ;;  %v2567_v61 = vor.u32 %v3502_v50, %v2566_v48 }
  0x9f   : > { %2045 = vmatpush.bf16.msrb.mxu1 %v3187_v30  ;;  %2058 = vmatpush.bf16.msrb.mxu2 %v3315_v31  ;;  %v3264_v2 = vld [vmem:[%s4002_s7 + $0x670] sm:$0xf0]  ;;  %v3707_v3 = vld [vmem:[%s4002_s7 + $0x764] sm:$0xf]  ;;  %v3139_v6 = vor.u32 %v3643_v62, %v3136_v0  ;;  %v2550_v0 = vld [vmem:[%s4002_s7 + $0xc8] sm:$0xf] }
  0xa0   : > { %2071 = vmatpush.bf16.msrb.mxu3 %v3443_v35  ;;  %v3392_v4 = vld [vmem:[%s4002_s7 + $0x770] sm:$0xf0]  ;;  %v3267_v7 = vor.u32 %v3675_v1, %v3264_v2  ;;  %v3607_v8 = vld [vmem:[%s4002_s7 + $0x444] sm:$0xf]  ;;  %v3498_v1 = vld [vmem:[%s4002_s7 + $0xd4] sm:$0xf0] }
  0xa1   : > { %2033 = vmatpush.bf16.msrb.mxu0 %v3043_v41  ;;  %v2992_v10 = vld [vmem:[%s4002_s7 + $0x450] sm:$0xf0]  ;;  %v3639_v12 = vld [vmem:[%s4002_s7 + $0x544] sm:$0xf]  ;;  %v3395_v13 = vor.u32 %v3707_v3, %v3392_v4  ;;  %v2678_v2 = vld [vmem:[%s4002_s7 + $0x1c8] sm:$0xf] }
  0xa2   : > { %v3120_v14 = vld [vmem:[%s4002_s7 + $0x550] sm:$0xf0]  ;;  %v3671_v15 = vld [vmem:[%s4002_s7 + $0x644] sm:$0xf]  ;;  %v2995_v19 = vor.u32 %v3607_v8, %v2992_v10  ;;  %v3530_v4 = vld [vmem:[%s4002_s7 + $0x1d4] sm:$0xf0]  ;;  %v2551_v10 = vor.u32 %v3498_v1, %v2550_v0 }
  0xa3   : > { %2046 = vmatpush.bf16.msrb.mxu1 %v3171_v42  ;;  %2059 = vmatpush.bf16.msrb.mxu2 %v3299_v44  ;;  %v3248_v16 = vld [vmem:[%s4002_s7 + $0x650] sm:$0xf0]  ;;  %v3703_v17 = vld [vmem:[%s4002_s7 + $0x744] sm:$0xf]  ;;  %v3123_v20 = vor.u32 %v3639_v12, %v3120_v14  ;;  %v3594_v8 = vld [vmem:[%s4002_s7 + $0x3d4] sm:$0xf0]  ;;  %v2679_v12 = vor.u32 %v3530_v4, %v2678_v2 }
  0xa4   : > { %2072 = vmatpush.bf16.msrb.mxu3 %v3427_v51  ;;  %v3376_v18 = vld [vmem:[%s4002_s7 + $0x750] sm:$0xf0]  ;;  %v3251_v21 = vor.u32 %v3671_v15, %v3248_v16  ;;  %v3603_v22 = vld [vmem:[%s4002_s7 + $0x424] sm:$0xf]  ;;  %v2694_v51 = vld [vmem:[%s4002_s7 + $0x1e8] sm:$0xf] }
  0xa5   : > { %2034 = vmatpush.bf16.msrb.mxu0 %v3027_v57  ;;  %v2976_v23 = vld [vmem:[%s4002_s7 + $0x430] sm:$0xf0]  ;;  %v3635_v24 = vld [vmem:[%s4002_s7 + $0x524] sm:$0xf]  ;;  %v3379_v27 = vor.u32 %v3703_v17, %v3376_v18  ;;  %v2695_v62 = vor.u32 %v3534_v53, %v2694_v51  ;;  %v2534_v14 = vld [vmem:[%s4002_s7 + $0xa8] sm:$0xf] }
  0xa6   : > { %v3104_v28 = vld [vmem:[%s4002_s7 + $0x530] sm:$0xf0]  ;;  %v3667_v29 = vld [vmem:[%s4002_s7 + $0x624] sm:$0xf]  ;;  %v2979_v33 = vor.u32 %v3603_v22, %v2976_v23  ;;  %v3494_v15 = vld [vmem:[%s4002_s7 + $0xb4] sm:$0xf0] }
  0xa7   : > { %2047 = vmatpush.bf16.msrb.mxu1 %v3155_v58  ;;  %2060 = vmatpush.bf16.msrb.mxu2 %v3283_v59  ;;  %v3232_v30 = vld [vmem:[%s4002_s7 + $0x630] sm:$0xf0]  ;;  %v3699_v31 = vld [vmem:[%s4002_s7 + $0x724] sm:$0xf]  ;;  %v3107_v36 = vor.u32 %v3635_v24, %v3104_v28  ;;  %v2950_v58 = vld [vmem:[%s4002_s7 + $0x3e8] sm:$0xf]  ;;  %v2535_v23 = vor.u32 %v3494_v15, %v2534_v14 }
  0xa8   : > { %2073 = vmatpush.bf16.msrb.mxu3 %v3411_v63  ;;  %v3360_v32 = vld [vmem:[%s4002_s7 + $0x730] sm:$0xf0]  ;;  %v3599_v34 = vld [vmem:[%s4002_s7 + $0x404] sm:$0xf]  ;;  %v3235_v37 = vor.u32 %v3667_v29, %v3232_v30  ;;  %v3598_v59 = vld [vmem:[%s4002_s7 + $0x3f4] sm:$0xf0]  ;;  %v2823_v63 = vor.u32 %v3566_v55, %v2822_v54 }
  0xa9   : > { %2035 = vmatpush.bf16.msrb.mxu0 %v3011_v5  ;;  %v2960_v35 = vld [vmem:[%s4002_s7 + $0x410] sm:$0xf0]  ;;  %v3631_v38 = vld [vmem:[%s4002_s7 + $0x504] sm:$0xf]  ;;  %v3363_v41 = vor.u32 %v3699_v31, %v3360_v32  ;;  %v2951_v3 = vor.u32 %v3598_v59, %v2950_v58  ;;  %v2806_v5 = vld [vmem:[%s4002_s7 + $0x2c8] sm:$0xf] }
  0xaa   : > { %v3088_v39 = vld [vmem:[%s4002_s7 + $0x510] sm:$0xf0]  ;;  %v3663_v40 = vld [vmem:[%s4002_s7 + $0x604] sm:$0xf]  ;;  %v2963_v52 = vor.u32 %v3599_v34, %v2960_v35  ;;  %v2662_v16 = vld [vmem:[%s4002_s7 + $0x1a8] sm:$0xf] }
  0xab   : > { %2048 = vmatpush.bf16.msrb.mxu1 %v3139_v6  ;;  %2061 = vmatpush.bf16.msrb.mxu2 %v3267_v7  ;;  %v3216_v42 = vld [vmem:[%s4002_s7 + $0x610] sm:$0xf0]  ;;  %v3695_v44 = vld [vmem:[%s4002_s7 + $0x704] sm:$0xf]  ;;  %v3091_v56 = vor.u32 %v3631_v38, %v3088_v39  ;;  %v3562_v6 = vld [vmem:[%s4002_s7 + $0x2d4] sm:$0xf0] }
  0xac   : > { %2074 = vmatpush.bf16.msrb.mxu3 %v3395_v13  ;;  %v3344_v45 = vld [vmem:[%s4002_s7 + $0x710] sm:$0xf0]  ;;  %v3219_v57 = vor.u32 %v3663_v40, %v3216_v42  ;;  %v2934_v7 = vld [vmem:[%s4002_s7 + $0x3c8] sm:$0xf]  ;;  %v2807_v13 = vor.u32 %v3562_v6, %v2806_v5  ;;  %v3526_v18 = vld [vmem:[%s4002_s7 + $0x1b4] sm:$0xf0] }
  0xad   : > { %2036 = vmatpush.bf16.msrb.mxu0 %v2995_v19  ;;  %v3347_v60 = vor.u32 %v3695_v44, %v3344_v45  ;;  %v2935_v17 = vor.u32 %v3594_v8, %v2934_v7  ;;  %v2790_v19 = vld [vmem:[%s4002_s7 + $0x2a8] sm:$0xf]  ;;  %v3590_v22 = vld [vmem:[%s4002_s7 + $0x3b4] sm:$0xf0]  ;;  %v2663_v24 = vor.u32 %v3526_v18, %v2662_v16 }
  0xae   : > { %v2518_v28 = vld [vmem:[%s4002_s7 + $0x88] sm:$0xf]  ;;  %v3490_v29 = vld [vmem:[%s4002_s7 + $0x94] sm:$0xf0] }
  0xaf   : > { %2049 = vmatpush.bf16.msrb.mxu1 %v3123_v20  ;;  %2062 = vmatpush.bf16.msrb.mxu2 %v3251_v21  ;;  %v3558_v20 = vld [vmem:[%s4002_s7 + $0x2b4] sm:$0xf0]  ;;  %v2918_v21 = vld [vmem:[%s4002_s7 + $0x3a8] sm:$0xf] }
  0xb0   : > { %2075 = vmatpush.bf16.msrb.mxu3 %v3379_v27  ;;  %v2791_v27 = vor.u32 %v3558_v20, %v2790_v19  ;;  %v2646_v30 = vld [vmem:[%s4002_s7 + $0x188] sm:$0xf]  ;;  %v2919_v31 = vor.u32 %v3590_v22, %v2918_v21  ;;  %v3522_v32 = vld [vmem:[%s4002_s7 + $0x194] sm:$0xf0] }
  0xb1   : > { %2037 = vmatpush.bf16.msrb.mxu0 %v2979_v33  ;;  %v2774_v33 = vld [vmem:[%s4002_s7 + $0x288] sm:$0xf]  ;;  %v3554_v34 = vld [vmem:[%s4002_s7 + $0x294] sm:$0xf0]  ;;  %v2647_v38 = vor.u32 %v3522_v32, %v2646_v30 }
  0xb2   : > { %v2902_v35 = vld [vmem:[%s4002_s7 + $0x388] sm:$0xf]  ;;  %v2775_v39 = vor.u32 %v3554_v34, %v2774_v33  ;;  %v3518_v45 = vld [vmem:[%s4002_s7 + $0x174] sm:$0xf0] }
  0xb3   : > { %2050 = vmatpush.bf16.msrb.mxu1 %v3107_v36  ;;  %2063 = vmatpush.bf16.msrb.mxu2 %v3235_v37  ;;  %v3586_v36 = vld [vmem:[%s4002_s7 + $0x394] sm:$0xf0]  ;;  %v2519_v37 = vor.u32 %v3490_v29, %v2518_v28  ;;  %v2502_v40 = vld [vmem:[%s4002_s7 + $0x68] sm:$0xf] }
  0xb4   : > { %2076 = vmatpush.bf16.msrb.mxu3 %v3363_v41  ;;  %v3486_v41 = vld [vmem:[%s4002_s7 + $0x74] sm:$0xf0]  ;;  %v2630_v42 = vld [vmem:[%s4002_s7 + $0x168] sm:$0xf]  ;;  %v2903_v44 = vor.u32 %v3586_v36, %v2902_v35 }
  0xb5   : > { %2038 = vmatpush.bf16.msrb.mxu0 %v2963_v52  ;;  %v2758_v48 = vld [vmem:[%s4002_s7 + $0x268] sm:$0xf]  ;;  %v3550_v50 = vld [vmem:[%s4002_s7 + $0x274] sm:$0xf0]  ;;  %v2503_v53 = vor.u32 %v3486_v41, %v2502_v40  ;;  %v2631_v54 = vor.u32 %v3518_v45, %v2630_v42 }
  0xb6   : > { %v2886_v51 = vld [vmem:[%s4002_s7 + $0x368] sm:$0xf]  ;;  %v3582_v52 = vld [vmem:[%s4002_s7 + $0x374] sm:$0xf0]  ;;  %v2759_v55 = vor.u32 %v3550_v50, %v2758_v48 }
  0xb7   : > { %2051 = vmatpush.bf16.msrb.mxu1 %v3091_v56  ;;  %2064 = vmatpush.bf16.msrb.mxu2 %v3219_v57  ;;  %v2486_v56 = vld [vmem:[%s4002_s7 + $0x48] sm:$0xf]  ;;  %v3482_v57 = vld [vmem:[%s4002_s7 + $0x54] sm:$0xf0]  ;;  %v2887_v59 = vor.u32 %v3582_v52, %v2886_v51 }
  0xb8   : > { %2077 = vmatpush.bf16.msrb.mxu3 %v3347_v60  ;;  %2039 = vmatmul.bf16.vlgmr.msrb.gmra.mxu0 %v4190_v46  ;;  %v2614_v58 = vld [vmem:[%s4002_s7 + $0x148] sm:$0xf]  ;;  %v3514_v60 = vld [vmem:[%s4002_s7 + $0x154] sm:$0xf0]  ;;  %v2487_v1 = vor.u32 %v3482_v57, %v2486_v56 }
  0xb9   : > { %2083 = vmatpush.bf16.msra.mxu0 %v2567_v61  ;;  %v2742_v61 = vld [vmem:[%s4002_s7 + $0x248] sm:$0xf]  ;;  %v3578_v0 = vld [vmem:[%s4002_s7 + $0x354] sm:$0xf0]  ;;  %v2615_v2 = vor.u32 %v3514_v60, %v2614_v58 }
  0xba   : > { %2065 = vmatmul.bf16.vlgmr.msrb.gmra.mxu2 %v4186_v43  ;;  %2052 = vmatmul.bf16.vlgmr.msrb.gmra.mxu1 %v4194_v49  ;;  %v2470_v4 = vld [vmem:[%s4002_s7 + $0x28] sm:$0xf]  ;;  %v3478_v5 = vld [vmem:[%s4002_s7 + $0x34] sm:$0xf0] }
  0xbb   : > { %2096 = vmatpush.bf16.msra.mxu1 %v2695_v62  ;;  %2109 = vmatpush.bf16.msra.mxu2 %v2823_v63  ;;  %v3546_v62 = vld [vmem:[%s4002_s7 + $0x254] sm:$0xf0]  ;;  %v2870_v63 = vld [vmem:[%s4002_s7 + $0x348] sm:$0xf]  ;;  %v2471_v15 = vor.u32 %v3478_v5, %v2470_v4 }
  0xbc   : > { %2122 = vmatpush.bf16.msra.mxu3 %v2951_v3  ;;  %v2743_v3 = vor.u32 %v3546_v62, %v2742_v61  ;;  %v2598_v6 = vld [vmem:[%s4002_s7 + $0x128] sm:$0xf]  ;;  %v2871_v7 = vor.u32 %v3578_v0, %v2870_v63  ;;  %v3510_v8 = vld [vmem:[%s4002_s7 + $0x134] sm:$0xf0] }
  0xbd   : > { %2078 = vmatmul.bf16.vlgmr.msrb.gmra.mxu3 %v4192_v47  ;;  %2084 = vmatpush.bf16.msra.mxu0 %v2551_v10  ;;  %v2726_v10 = vld [vmem:[%s4002_s7 + $0x228] sm:$0xf]  ;;  %v3574_v14 = vld [vmem:[%s4002_s7 + $0x334] sm:$0xf0]  ;;  %v2599_v18 = vor.u32 %v3510_v8, %v2598_v6 }
  0xbe   : > { %v2454_v16 = vld [vmem:[%s4002_s7 + $0x8] sm:$0xf]  ;;  %v3506_v21 = vld [vmem:[%s4002_s7 + $0x114] sm:$0xf0] }
  0xbf   : > { %2097 = vmatpush.bf16.msra.mxu1 %v2679_v12  ;;  %2110 = vmatpush.bf16.msra.mxu2 %v2807_v13  ;;  %v3542_v12 = vld [vmem:[%s4002_s7 + $0x234] sm:$0xf0]  ;;  %v2854_v13 = vld [vmem:[%s4002_s7 + $0x328] sm:$0xf] }
  0xc0   : > { %2123 = vmatpush.bf16.msra.mxu3 %v2935_v17  ;;  %v3474_v17 = vld [vmem:[%s4002_s7 + $0x14] sm:$0xf0]  ;;  %v2727_v19 = vor.u32 %v3542_v12, %v2726_v10  ;;  %v2582_v20 = vld [vmem:[%s4002_s7 + $0x108] sm:$0xf] }
  0xc1   : > { %2085 = vmatpush.bf16.msra.mxu0 %v2535_v23  ;;  %v2710_v22 = vld [vmem:[%s4002_s7 + $0x208] sm:$0xf]  ;;  %v2855_v23 = vor.u32 %v3574_v14, %v2854_v13  ;;  %v3570_v28 = vld [vmem:[%s4002_s7 + $0x314] sm:$0xf0]  ;;  %v2455_v32 = vor.u32 %v3474_v17, %v2454_v16  ;;  %v2583_v36 = vor.u32 %v3506_v21, %v2582_v20 }
  0xc2   : > { %v3078_v29 = vld [vmem:[%s4002_s7 + $0x4e8] sm:$0xf]  ;;  %v3630_v30 = vld [vmem:[%s4002_s7 + $0x4f4] sm:$0xf0] }
  0xc3   : > { %2098 = vmatpush.bf16.msra.mxu1 %v2663_v24  ;;  %2111 = vmatpush.bf16.msra.mxu2 %v2791_v27  ;;  %v3538_v24 = vld [vmem:[%s4002_s7 + $0x214] sm:$0xf0]  ;;  %v2838_v27 = vld [vmem:[%s4002_s7 + $0x308] sm:$0xf]  ;;  %v3079_v41 = vor.u32 %v3630_v30, %v3078_v29 }
  0xc4   : > { %2124 = vmatpush.bf16.msra.mxu3 %v2919_v31  ;;  %v3206_v31 = vld [vmem:[%s4002_s7 + $0x5e8] sm:$0xf]  ;;  %v3662_v33 = vld [vmem:[%s4002_s7 + $0x5f4] sm:$0xf0]  ;;  %v2839_v40 = vor.u32 %v3570_v28, %v2838_v27 }
  0xc5   : > { %2086 = vmatpush.bf16.msra.mxu0 %v2519_v37  ;;  %v3334_v34 = vld [vmem:[%s4002_s7 + $0x6e8] sm:$0xf]  ;;  %v3694_v35 = vld [vmem:[%s4002_s7 + $0x6f4] sm:$0xf0]  ;;  %v2711_v37 = vor.u32 %v3538_v24, %v2710_v22  ;;  %v3207_v42 = vor.u32 %v3662_v33, %v3206_v31 }
  0xc6   : > { %v3062_v45 = vld [vmem:[%s4002_s7 + $0x4c8] sm:$0xf]  ;;  %v3626_v48 = vld [vmem:[%s4002_s7 + $0x4d4] sm:$0xf0] }
  0xc7   : > { %2099 = vmatpush.bf16.msra.mxu1 %v2647_v38  ;;  %2112 = vmatpush.bf16.msra.mxu2 %v2775_v39  ;;  %v3462_v38 = vld [vmem:[%s4002_s7 + $0x7e8] sm:$0xf]  ;;  %v3726_v39 = vld [vmem:[%s4002_s7 + $0x7f4] sm:$0xf0]  ;;  %v3063_v57 = vor.u32 %v3626_v48, %v3062_v45 }
  0xc8   : > { %2125 = vmatpush.bf16.msra.mxu3 %v2903_v44  ;;  %v3335_v44 = vor.u32 %v3694_v35, %v3334_v34  ;;  %v3190_v50 = vld [vmem:[%s4002_s7 + $0x5c8] sm:$0xf]  ;;  %v3463_v51 = vor.u32 %v3726_v39, %v3462_v38  ;;  %v3658_v52 = vld [vmem:[%s4002_s7 + $0x5d4] sm:$0xf0] }
  0xc9   : > { %2087 = vmatpush.bf16.msra.mxu0 %v2503_v53  ;;  %v3318_v53 = vld [vmem:[%s4002_s7 + $0x6c8] sm:$0xf]  ;;  %v3722_v56 = vld [vmem:[%s4002_s7 + $0x7d4] sm:$0xf0]  ;;  %v3191_v58 = vor.u32 %v3658_v52, %v3190_v50 }
  0xca   : > { %v3046_v60 = vld [vmem:[%s4002_s7 + $0x4a8] sm:$0xf]  ;;  %v3622_v61 = vld [vmem:[%s4002_s7 + $0x4b4] sm:$0xf0] }
  0xcb   : > { %2100 = vmatpush.bf16.msra.mxu1 %v2631_v54  ;;  %2113 = vmatpush.bf16.msra.mxu2 %v2759_v55  ;;  %v3690_v54 = vld [vmem:[%s4002_s7 + $0x6d4] sm:$0xf0]  ;;  %v3446_v55 = vld [vmem:[%s4002_s7 + $0x7c8] sm:$0xf]  ;;  %v3047_v5 = vor.u32 %v3622_v61, %v3046_v60 }
  0xcc   : > { %2126 = vmatpush.bf16.msra.mxu3 %v2887_v59  ;;  %v3319_v59 = vor.u32 %v3690_v54, %v3318_v53  ;;  %v3174_v62 = vld [vmem:[%s4002_s7 + $0x5a8] sm:$0xf]  ;;  %v3447_v63 = vor.u32 %v3722_v56, %v3446_v55  ;;  %v3654_v0 = vld [vmem:[%s4002_s7 + $0x5b4] sm:$0xf0] }
  0xcd   : > { %2088 = vmatpush.bf16.msra.mxu0 %v2487_v1  ;;  %v3302_v1 = vld [vmem:[%s4002_s7 + $0x6a8] sm:$0xf]  ;;  %v3718_v4 = vld [vmem:[%s4002_s7 + $0x7b4] sm:$0xf0]  ;;  %v3175_v6 = vor.u32 %v3654_v0, %v3174_v62 }
  0xce   : > { %v3030_v8 = vld [vmem:[%s4002_s7 + $0x488] sm:$0xf]  ;;  %v3618_v10 = vld [vmem:[%s4002_s7 + $0x494] sm:$0xf0] }
  0xcf   : > { %2101 = vmatpush.bf16.msra.mxu1 %v2615_v2  ;;  %2114 = vmatpush.bf16.msra.mxu2 %v2743_v3  ;;  %v3686_v2 = vld [vmem:[%s4002_s7 + $0x6b4] sm:$0xf0]  ;;  %v3430_v3 = vld [vmem:[%s4002_s7 + $0x7a8] sm:$0xf] }
  0xd0   : > { %2127 = vmatpush.bf16.msra.mxu3 %v2871_v7  ;;  %v3303_v7 = vor.u32 %v3686_v2, %v3302_v1  ;;  %v3158_v12 = vld [vmem:[%s4002_s7 + $0x588] sm:$0xf]  ;;  %v3431_v13 = vor.u32 %v3718_v4, %v3430_v3  ;;  %v3650_v14 = vld [vmem:[%s4002_s7 + $0x594] sm:$0xf0] }
  0xd1   : > { %2089 = vmatpush.bf16.msra.mxu0 %v2471_v15  ;;  %v3286_v15 = vld [vmem:[%s4002_s7 + $0x688] sm:$0xf]  ;;  %v3682_v16 = vld [vmem:[%s4002_s7 + $0x694] sm:$0xf0]  ;;  %v3159_v20 = vor.u32 %v3650_v14, %v3158_v12 }
  0xd2   : > { %v3414_v17 = vld [vmem:[%s4002_s7 + $0x788] sm:$0xf]  ;;  %v3287_v21 = vor.u32 %v3682_v16, %v3286_v15  ;;  %v3646_v28 = vld [vmem:[%s4002_s7 + $0x574] sm:$0xf0]  ;;  %v3500_v15 = vld [vmem:[%s4002_s7 + $0xec] sm:$0xf] }
  0xd3   : > { %2102 = vmatpush.bf16.msra.mxu1 %v2599_v18  ;;  %2115 = vmatpush.bf16.msra.mxu2 %v2727_v19  ;;  %v3714_v18 = vld [vmem:[%s4002_s7 + $0x794] sm:$0xf0]  ;;  %v3031_v19 = vor.u32 %v3618_v10, %v3030_v8  ;;  %v3014_v22 = vld [vmem:[%s4002_s7 + $0x468] sm:$0xf]  ;;  %v2568_v16 = vld [vmem:[%s4002_s7 + $0xf8] sm:$0xf0] }
  0xd4   : > { %2128 = vmatpush.bf16.msra.mxu3 %v2855_v23  ;;  %v3614_v23 = vld [vmem:[%s4002_s7 + $0x474] sm:$0xf0]  ;;  %v3142_v24 = vld [vmem:[%s4002_s7 + $0x568] sm:$0xf]  ;;  %v3415_v27 = vor.u32 %v3714_v18, %v3414_v17  ;;  %v3532_v17 = vld [vmem:[%s4002_s7 + $0x1ec] sm:$0xf] }
  0xd5   : > { %2090 = vmatpush.bf16.msra.mxu0 %v2455_v32  ;;  %v3270_v29 = vld [vmem:[%s4002_s7 + $0x668] sm:$0xf]  ;;  %v3678_v30 = vld [vmem:[%s4002_s7 + $0x674] sm:$0xf0]  ;;  %v3015_v33 = vor.u32 %v3614_v23, %v3014_v22  ;;  %v3143_v34 = vor.u32 %v3646_v28, %v3142_v24  ;;  %v2824_v22 = vld [vmem:[%s4002_s7 + $0x2f8] sm:$0xf0] }
  0xd6   : > { %v3398_v31 = vld [vmem:[%s4002_s7 + $0x768] sm:$0xf]  ;;  %v3710_v32 = vld [vmem:[%s4002_s7 + $0x774] sm:$0xf0]  ;;  %v3271_v35 = vor.u32 %v3678_v30, %v3270_v29  ;;  %v3596_v28 = vld [vmem:[%s4002_s7 + $0x3ec] sm:$0xf] }
  0xd7   : > { %2103 = vmatpush.bf16.msra.mxu1 %v2583_v36  ;;  %2116 = vmatpush.bf16.msra.mxu2 %v2711_v37  ;;  %v2998_v36 = vld [vmem:[%s4002_s7 + $0x448] sm:$0xf]  ;;  %v3610_v37 = vld [vmem:[%s4002_s7 + $0x454] sm:$0xf0]  ;;  %v3399_v39 = vor.u32 %v3710_v32, %v3398_v31  ;;  %v2952_v29 = vld [vmem:[%s4002_s7 + $0x3f8] sm:$0xf0]  ;;  %v2571_v32 = vor.u32 %v3500_v15, %v2568_v16 }
  0xd8   : > { %2129 = vmatpush.bf16.msra.mxu3 %v2839_v40  ;;  %2091 = vmatmul.bf16.vlgmr.msra.gmra.mxu0 %v4131_v25  ;;  %v3126_v38 = vld [vmem:[%s4002_s7 + $0x548] sm:$0xf]  ;;  %v3642_v40 = vld [vmem:[%s4002_s7 + $0x554] sm:$0xf0]  ;;  %v2999_v50 = vor.u32 %v3610_v37, %v2998_v36  ;;  %v3496_v37 = vld [vmem:[%s4002_s7 + $0xcc] sm:$0xf] }
  0xd9   : > { %2135 = vmatpush.bf16.msrb.mxu0 %v3079_v41  ;;  %v3254_v41 = vld [vmem:[%s4002_s7 + $0x648] sm:$0xf]  ;;  %v3706_v45 = vld [vmem:[%s4002_s7 + $0x754] sm:$0xf0]  ;;  %v3127_v52 = vor.u32 %v3642_v40, %v3126_v38  ;;  %v2552_v38 = vld [vmem:[%s4002_s7 + $0xd8] sm:$0xf0]  ;;  %v2955_v40 = vor.u32 %v3596_v28, %v2952_v29 }
  0xda   : > { %2117 = vmatmul.bf16.vlgmr.msra.gmra.mxu2 %v4117_v9  ;;  %2104 = vmatmul.bf16.vlgmr.msra.gmra.mxu1 %v4134_v26  ;;  %v2982_v54 = vld [vmem:[%s4002_s7 + $0x428] sm:$0xf]  ;;  %v3606_v55 = vld [vmem:[%s4002_s7 + $0x434] sm:$0xf0]  ;;  %v2760_v28 = vld [vmem:[%s4002_s7 + $0x278] sm:$0xf0] }
  0xdb   : > { %2148 = vmatpush.bf16.msrb.mxu1 %v3207_v42  ;;  %2161 = vmatpush.bf16.msrb.mxu2 %v3335_v44  ;;  %v3674_v42 = vld [vmem:[%s4002_s7 + $0x654] sm:$0xf0]  ;;  %v3382_v44 = vld [vmem:[%s4002_s7 + $0x748] sm:$0xf]  ;;  %v2983_v1 = vor.u32 %v3606_v55, %v2982_v54  ;;  %v3492_v54 = vld [vmem:[%s4002_s7 + $0xac] sm:$0xf] }
  0xdc   : > { %2174 = vmatpush.bf16.msrb.mxu3 %v3463_v51  ;;  %v3255_v53 = vor.u32 %v3674_v42, %v3254_v41  ;;  %v3110_v56 = vld [vmem:[%s4002_s7 + $0x528] sm:$0xf]  ;;  %v3670_v61 = vld [vmem:[%s4002_s7 + $0x634] sm:$0xf0]  ;;  %v2680_v41 = vld [vmem:[%s4002_s7 + $0x1d8] sm:$0xf0] }
  0xdd   : > { %2130 = vmatmul.bf16.vlgmr.msra.gmra.mxu3 %v4120_v11  ;;  %2136 = vmatpush.bf16.msrb.mxu0 %v3063_v57  ;;  %v4439_v57 = vpop.f32.mrf.mxu2  ;;  %v3238_v60 = vld [vmem:[%s4002_s7 + $0x628] sm:$0xf]  ;;  %v4444_v62 = vpop.f32.mrf.mxu3  ;;  %v3702_v0 = vld [vmem:[%s4002_s7 + $0x734] sm:$0xf0]  ;;  %v3560_v42 = vld [vmem:[%s4002_s7 + $0x2cc] sm:$0xf] }
  0xde   : > { %v2966_v2 = vld [vmem:[%s4002_s7 + $0x408] sm:$0xf]  ;;  %v3602_v3 = vld [vmem:[%s4002_s7 + $0x414] sm:$0xf0]  ;;  %v2536_v55 = vld [vmem:[%s4002_s7 + $0xb8] sm:$0xf0] }
  0xdf   : > { %2149 = vmatpush.bf16.msrb.mxu1 %v3191_v58  ;;  %2162 = vmatpush.bf16.msrb.mxu2 %v3319_v59  ;;  %v3383_v58 = vor.u32 %v3706_v45, %v3382_v44  ;;  %v3638_v59 = vld [vmem:[%s4002_s7 + $0x534] sm:$0xf0]  ;;  %v3222_v8 = vld [vmem:[%s4002_s7 + $0x608] sm:$0xf]  ;;  %v2808_v44 = vld [vmem:[%s4002_s7 + $0x2d8] sm:$0xf0] }
  0xe0   : > { %2175 = vmatpush.bf16.msrb.mxu3 %v3447_v63  ;;  %v3366_v63 = vld [vmem:[%s4002_s7 + $0x728] sm:$0xf]  ;;  %v3111_v4 = vor.u32 %v3638_v59, %v3110_v56  ;;  %v3666_v12 = vld [vmem:[%s4002_s7 + $0x614] sm:$0xf0]  ;;  %v3592_v45 = vld [vmem:[%s4002_s7 + $0x3cc] sm:$0xf] }
  0xe1   : > { %2137 = vmatpush.bf16.msrb.mxu0 %v3047_v5  ;;  %v3239_v5 = vor.u32 %v3670_v61, %v3238_v60  ;;  %v3367_v10 = vor.u32 %v3702_v0, %v3366_v63  ;;  %v3698_v14 = vld [vmem:[%s4002_s7 + $0x714] sm:$0xf0]  ;;  %v3524_v56 = vld [vmem:[%s4002_s7 + $0x1ac] sm:$0xf]  ;;  %v2664_v59 = vld [vmem:[%s4002_s7 + $0x1b8] sm:$0xf0]  ;;  %v2539_v0 = vor.u32 %v3492_v54, %v2536_v55 }
  0xe2   : > { %v3556_v60 = vld [vmem:[%s4002_s7 + $0x2ac] sm:$0xf]  ;;  %v2792_v61 = vld [vmem:[%s4002_s7 + $0x2b8] sm:$0xf0] }
  0xe3   : > { %2150 = vmatpush.bf16.msrb.mxu1 %v3175_v6  ;;  %2163 = vmatpush.bf16.msrb.mxu2 %v3303_v7  ;;  %v1884_v48 = vpop.f32.mrf.mxu0  ;;  %v1897_v51 = vpop.f32.mrf.mxu1  ;;  %v3094_v6 = vld [vmem:[%s4002_s7 + $0x508] sm:$0xf]  ;;  %v3634_v7 = vld [vmem:[%s4002_s7 + $0x514] sm:$0xf0]  ;;  %v3588_v63 = vld [vmem:[%s4002_s7 + $0x3ac] sm:$0xf] }
  0xe4   : > { %2176 = vmatpush.bf16.msrb.mxu3 %v3431_v13  ;;  %v3350_v13 = vld [vmem:[%s4002_s7 + $0x708] sm:$0xf]  ;;  %v3095_v24 = vor.u32 %v3634_v7, %v3094_v6  ;;  %v1898_v36 = vadd.f32 %v1897_v51, %v1884_v48  ;;  %v2555_v48 = vor.u32 %v3496_v37, %v2552_v38  ;;  %v3520_v6 = vld [vmem:[%s4002_s7 + $0x18c] sm:$0xf]  ;;  %v2472_v55 = vld [vmem:[%s4002_s7 + $0x38] sm:$0xf0] }
  0xe5   : > { %2138 = vmatpush.bf16.msrb.mxu0 %v3031_v19  ;;  %v2967_v19 = vor.u32 %v3602_v3, %v2966_v2  ;;  %v1912_v30 = vpop.f32.mrf.mxu2  ;;  %v3351_v31 = vor.u32 %v3698_v14, %v3350_v13  ;;  %v2667_v2 = vor.u32 %v3524_v56, %v2664_v59  ;;  %v2795_v3 = vor.u32 %v3556_v60, %v2792_v61  ;;  %v3584_v13 = vld [vmem:[%s4002_s7 + $0x38c] sm:$0xf]  ;;  %v2904_v14 = vld [vmem:[%s4002_s7 + $0x398] sm:$0xf0] }
  0xe6   : > { %v3580_v29 = vld [vmem:[%s4002_s7 + $0x36c] sm:$0xf]  ;;  %v2888_v30 = vld [vmem:[%s4002_s7 + $0x378] sm:$0xf0] }
  0xe7   : > { %2151 = vmatpush.bf16.msrb.mxu1 %v3159_v20  ;;  %2164 = vmatpush.bf16.msrb.mxu2 %v3287_v21  ;;  %v2696_v20 = vld [vmem:[%s4002_s7 + $0x1f8] sm:$0xf0]  ;;  %v3564_v21 = vld [vmem:[%s4002_s7 + $0x2ec] sm:$0xf] }
  0xe8   : > { %2177 = vmatpush.bf16.msrb.mxu3 %v3415_v27  ;;  %v3223_v27 = vor.u32 %v3666_v12, %v3222_v8  ;;  %v2648_v8 = vld [vmem:[%s4002_s7 + $0x198] sm:$0xf0]  ;;  %v3512_v37 = vld [vmem:[%s4002_s7 + $0x14c] sm:$0xf] }
  0xe9   : > { %2139 = vmatpush.bf16.msrb.mxu0 %v3015_v33  ;;  %v1925_v33 = vpop.f32.mrf.mxu3  ;;  %v2776_v12 = vld [vmem:[%s4002_s7 + $0x298] sm:$0xf0]  ;;  %v2651_v16 = vor.u32 %v3520_v6, %v2648_v8  ;;  %v3476_v54 = vld [vmem:[%s4002_s7 + $0x2c] sm:$0xf] }
  0xea   : > { %v3508_v56 = vld [vmem:[%s4002_s7 + $0x12c] sm:$0xf]  ;;  %v2475_v8 = vor.u32 %v3476_v54, %v2472_v55 }
  0xeb   : > { %2152 = vmatpush.bf16.msrb.mxu1 %v3143_v34  ;;  %2165 = vmatpush.bf16.msrb.mxu2 %v3271_v35  ;;  %v1886_v18 = vpop.f32.mrf.mxu0  ;;  %v1899_v23 = vpop.f32.mrf.mxu1  ;;  %v2699_v34 = vor.u32 %v3532_v17, %v2696_v20  ;;  %v2827_v35 = vor.u32 %v3564_v21, %v2824_v22  ;;  %v3516_v20 = vld [vmem:[%s4002_s7 + $0x16c] sm:$0xf] }
  0xec   : > { %2178 = vmatpush.bf16.msrb.mxu3 %v3399_v39  ;;  %v3528_v39 = vld [vmem:[%s4002_s7 + $0x1cc] sm:$0xf]  ;;  %v2907_v23 = vor.u32 %v3584_v13, %v2904_v14 }
  0xed   : > { %2140 = vmatpush.bf16.msrb.mxu0 %v2999_v50  ;;  %v2936_v50 = vld [vmem:[%s4002_s7 + $0x3d8] sm:$0xf0]  ;;  %v2683_v51 = vor.u32 %v3528_v39, %v2680_v41  ;;  %v3484_v18 = vld [vmem:[%s4002_s7 + $0x6c] sm:$0xf]  ;;  %v2891_v39 = vor.u32 %v3580_v29, %v2888_v30 }
  0xee   : > { %v3544_v41 = vld [vmem:[%s4002_s7 + $0x24c] sm:$0xf]  ;;  %v3208_v29 = vld [vmem:[%s4002_s7 + $0x5f8] sm:$0xf0] }
  0xef   : > { %2153 = vmatpush.bf16.msrb.mxu1 %v3127_v52  ;;  %2166 = vmatpush.bf16.msrb.mxu2 %v3255_v53  ;;  %v2811_v52 = vor.u32 %v3560_v42, %v2808_v44  ;;  %v1911_v53 = vadd.f32 %v4439_v57, %v1898_v36  ;;  %v2920_v57 = vld [vmem:[%s4002_s7 + $0x3b8] sm:$0xf0]  ;;  %v3572_v6 = vld [vmem:[%s4002_s7 + $0x32c] sm:$0xf] }
  0xf0   : > { %2179 = vmatpush.bf16.msrb.mxu3 %v3383_v58  ;;  %v2939_v58 = vor.u32 %v3592_v45, %v2936_v50  ;;  %v2923_v7 = vor.u32 %v3588_v63, %v2920_v57  ;;  %v2488_v36 = vld [vmem:[%s4002_s7 + $0x58] sm:$0xf0]  ;;  %v3576_v50 = vld [vmem:[%s4002_s7 + $0x34c] sm:$0xf]  ;;  %v4518_v57 = vld [vmem:[%s4021_s23 + $0x10] sm:$0xff] }
  0xf1   : > { %2141 = vmatpush.bf16.msrb.mxu0 %v2983_v1  ;;  %v1924_v1 = vadd.f32 %v4444_v62, %v1911_v53  ;;  %v2744_v42 = vld [vmem:[%s4002_s7 + $0x258] sm:$0xf0]  ;;  %v4515_v63 = vld [vmem:[%s4021_s23 + $0x8] sm:$0xff] }
  0xf2   : > { %v2747_v60 = vor.u32 %v3544_v41, %v2744_v42  ;;  %v3692_v30 = vld [vmem:[%s4002_s7 + $0x6ec] sm:$0xf]  ;;  %v3064_v41 = vld [vmem:[%s4002_s7 + $0x4d8] sm:$0xf0] }
  0xf3   : > { %2154 = vmatpush.bf16.msrb.mxu1 %v3111_v4  ;;  %2167 = vmatpush.bf16.msrb.mxu2 %v3239_v5  ;;  %v3488_v4 = vld [vmem:[%s4002_s7 + $0x8c] sm:$0xf]  ;;  %v2520_v5 = vld [vmem:[%s4002_s7 + $0x98] sm:$0xf0] }
  0xf4   : > { %2180 = vmatpush.bf16.msrb.mxu3 %v3367_v10  ;;  %v3552_v10 = vld [vmem:[%s4002_s7 + $0x28c] sm:$0xf]  ;;  %v2523_v62 = vor.u32 %v3488_v4, %v2520_v5  ;;  %v2728_v5 = vld [vmem:[%s4002_s7 + $0x238] sm:$0xf0] }
  0xf5   : > { %2142 = vmatpush.bf16.msrb.mxu0 %v2967_v19  ;;  %v2779_v17 = vor.u32 %v3552_v10, %v2776_v12  ;;  %v2504_v19 = vld [vmem:[%s4002_s7 + $0x78] sm:$0xf0]  ;;  %v3540_v4 = vld [vmem:[%s4002_s7 + $0x22c] sm:$0xf] }
  0xf6   : > { %v3472_v10 = vld [vmem:[%s4002_s7 + $0xc] sm:$0xf]  ;;  %v2456_v12 = vld [vmem:[%s4002_s7 + $0x18] sm:$0xf0]  ;;  %v2731_v14 = vor.u32 %v3540_v4, %v2728_v5 }
  0xf7   : > { %2155 = vmatpush.bf16.msrb.mxu1 %v3095_v24  ;;  %2168 = vmatpush.bf16.msrb.mxu2 %v3223_v27  ;;  %v1936_v15 = vpop.f32.mrf.mxu0  ;;  %v2632_v24 = vld [vmem:[%s4002_s7 + $0x178] sm:$0xf0]  ;;  %v3548_v27 = vld [vmem:[%s4002_s7 + $0x26c] sm:$0xf] }
  0xf8   : > { %2181 = vmatpush.bf16.msrb.mxu3 %v3351_v31  ;;  %2143 = vmatmul.bf16.vlgmr.msrb.gmra.mxu0 %v4190_v46  ;;  %v1937_v21 = vadd.f32 %v1936_v15, %v1924_v1  ;;  %v2635_v33 = vor.u32 %v3516_v20, %v2632_v24  ;;  %v2584_v15 = vld [vmem:[%s4002_s7 + $0x118] sm:$0xf0]  ;;  %v3568_v20 = vld [vmem:[%s4002_s7 + $0x30c] sm:$0xf] }
  0xf9   : > { %2187 = vmatpush.bf16.msra.mxu0 %v2571_v32  ;;  %v1949_v22 = vpop.f32.mrf.mxu1  ;;  %v2507_v32 = vor.u32 %v3484_v18, %v2504_v19  ;;  %v2712_v19 = vld [vmem:[%s4002_s7 + $0x218] sm:$0xf0]  ;;  %v3656_v42 = vld [vmem:[%s4002_s7 + $0x5cc] sm:$0xf] }
  0xfa   : > { %2169 = vmatmul.bf16.vlgmr.msrb.gmra.mxu2 %v4186_v43  ;;  %2156 = vmatmul.bf16.vlgmr.msrb.gmra.mxu1 %v4194_v49  ;;  %v1950_v31 = vadd.f32 %v1949_v22, %v1937_v21  ;;  %v2840_v21 = vld [vmem:[%s4002_s7 + $0x318] sm:$0xf0] }
  0xfb   : > { %2200 = vmatpush.bf16.msra.mxu1 %v2699_v34  ;;  %2213 = vmatpush.bf16.msra.mxu2 %v2827_v35  ;;  %v2763_v34 = vor.u32 %v3548_v27, %v2760_v28  ;;  %v3480_v35 = vld [vmem:[%s4002_s7 + $0x4c] sm:$0xf]  ;;  %v3080_v24 = vld [vmem:[%s4002_s7 + $0x4f8] sm:$0xf0]  ;;  %v2459_v28 = vor.u32 %v3472_v10, %v2456_v12 }
  0xfc   : > { %2226 = vmatpush.bf16.msra.mxu3 %v2955_v40  ;;  %v2616_v40 = vld [vmem:[%s4002_s7 + $0x158] sm:$0xf0]  ;;  %v3660_v27 = vld [vmem:[%s4002_s7 + $0x5ec] sm:$0xf] }
  0xfd   : > { %2182 = vmatmul.bf16.vlgmr.msrb.gmra.mxu3 %v4192_v47  ;;  %2188 = vmatpush.bf16.msra.mxu0 %v2555_v48  ;;  %v1962_v38 = vpop.f32.mrf.mxu2  ;;  %v2872_v48 = vld [vmem:[%s4002_s7 + $0x358] sm:$0xf0]  ;;  %v2619_v59 = vor.u32 %v3512_v37, %v2616_v40  ;;  %v3624_v40 = vld [vmem:[%s4002_s7 + $0x4cc] sm:$0xf] }
  0xfe   : > { %v1963_v44 = vadd.f32 %v1962_v38, %v1950_v31  ;;  %v2875_v1 = vor.u32 %v3576_v50, %v2872_v48  ;;  %v3336_v31 = vld [vmem:[%s4002_s7 + $0x6f8] sm:$0xf0]  ;;  %v3211_v38 = vor.u32 %v3660_v27, %v3208_v29  ;;  %v3688_v50 = vld [vmem:[%s4002_s7 + $0x6cc] sm:$0xf] }
  0xff   : > { %2201 = vmatpush.bf16.msra.mxu1 %v2683_v51  ;;  %2214 = vmatpush.bf16.msra.mxu2 %v2811_v52  ;;  %v303_v51 = vld [vmem:[%s4021_s23] sm:$0xff]  ;;  %v2491_v52 = vor.u32 %v3480_v35, %v2488_v36  ;;  %v3464_v35 = vld [vmem:[%s4002_s7 + $0x7f8] sm:$0xf0]  ;;  %v2843_v36 = vor.u32 %v3568_v20, %v2840_v21  ;;  %v3644_v20 = vld [vmem:[%s4002_s7 + $0x56c] sm:$0xf] }
 0x100   : > { %2227 = vmatpush.bf16.msra.mxu3 %v2939_v58  ;;  %v1975_v45 = vpop.f32.mrf.mxu3  ;;  %v1938_v58 = vpop.f32.mrf.mxu0  ;;  %v3320_v48 = vld [vmem:[%s4002_s7 + $0x6d8] sm:$0xf0] }
 0x101   : > { %2189 = vmatpush.bf16.msra.mxu0 %v2539_v0  ;;  %v1976_v53 = vadd.f32 %v1975_v45, %v1963_v44  ;;  %v1951_v61 = vpop.f32.mrf.mxu1  ;;  %v4521_v0 = vld [vmem:[%s4021_s23 + $0x18] sm:$0xff]  ;;  %v3323_v55 = vor.u32 %v3688_v50, %v3320_v48 }
 0x102   : > { %v3192_v45 = vld [vmem:[%s4002_s7 + $0x5d8] sm:$0xf0] }
 0x103   : > { %2202 = vmatpush.bf16.msra.mxu1 %v2667_v2  ;;  %2215 = vmatpush.bf16.msra.mxu2 %v2795_v3  ;;  %v2291_v2 = vadd.f32 %v1976_v53, %v303_v51  ;;  %v2600_v3 = vld [vmem:[%s4002_s7 + $0x138] sm:$0xf0]  ;;  %v3720_v51 = vld [vmem:[%s4002_s7 + $0x7cc] sm:$0xf]  ;;  %v3067_v53 = vor.u32 %v3624_v40, %v3064_v41  ;;  %v3195_v54 = vor.u32 %v3656_v42, %v3192_v45 }
 0x104   : > { %2228 = vmatpush.bf16.msra.mxu3 %v2923_v7  ;;  %v2856_v7 = vld [vmem:[%s4002_s7 + $0x338] sm:$0xf0]  ;;  %v2603_v13 = vor.u32 %v3508_v56, %v2600_v3  ;;  %v3620_v56 = vld [vmem:[%s4002_s7 + $0x4ac] sm:$0xf] }
 0x105   : > { %2190 = vmatpush.bf16.msra.mxu0 %v2523_v62  ;;  %2295 = vst [vmem:[%s4021_s23] sm:$0xff] %v2291_v2  ;;  %v3504_v62 = vld [vmem:[%s4002_s7 + $0x10c] sm:$0xf]  ;;  %v2859_v18 = vor.u32 %v3572_v6, %v2856_v7  ;;  %v3048_v58 = vld [vmem:[%s4002_s7 + $0x4b8] sm:$0xf0] }
 0x106   : > { %v3176_v61 = vld [vmem:[%s4002_s7 + $0x5b8] sm:$0xf0]  ;;  %v3716_v3 = vld [vmem:[%s4002_s7 + $0x7ac] sm:$0xf]  ;;  %v3051_v5 = vor.u32 %v3620_v56, %v3048_v58 }
 0x107   : > { %2203 = vmatpush.bf16.msra.mxu1 %v2651_v16  ;;  %2216 = vmatpush.bf16.msra.mxu2 %v2779_v17  ;;  %v3536_v16 = vld [vmem:[%s4002_s7 + $0x20c] sm:$0xf]  ;;  %v1964_v17 = vpop.f32.mrf.mxu2  ;;  %v3304_v2 = vld [vmem:[%s4002_s7 + $0x6b8] sm:$0xf0] }
 0x108   : > { %2229 = vmatpush.bf16.msra.mxu3 %v2907_v23  ;;  %v1977_v22 = vpop.f32.mrf.mxu3  ;;  %v3628_v23 = vld [vmem:[%s4002_s7 + $0x4ec] sm:$0xf]  ;;  %v3432_v4 = vld [vmem:[%s4002_s7 + $0x7b8] sm:$0xf0] }
 0x109   : > { %2191 = vmatpush.bf16.msra.mxu0 %v2507_v32  ;;  %v2587_v32 = vor.u32 %v3504_v62, %v2584_v15  ;;  %v3083_v37 = vor.u32 %v3628_v23, %v3080_v24  ;;  %v3616_v7 = vld [vmem:[%s4002_s7 + $0x48c] sm:$0xf]  ;;  %v3435_v10 = vor.u32 %v3716_v3, %v3432_v4  ;;  %v3160_v12 = vld [vmem:[%s4002_s7 + $0x598] sm:$0xf0] }
 0x10a   : > { %v3416_v62 = vld [vmem:[%s4002_s7 + $0x798] sm:$0xf0]  ;;  %v3676_v24 = vld [vmem:[%s4002_s7 + $0x66c] sm:$0xf] }
 0x10b   : > { %2204 = vmatpush.bf16.msra.mxu1 %v2635_v33  ;;  %2217 = vmatpush.bf16.msra.mxu2 %v2763_v34  ;;  %v2715_v33 = vor.u32 %v3536_v16, %v2712_v19  ;;  %v3724_v34 = vld [vmem:[%s4002_s7 + $0x7ec] sm:$0xf]  ;;  %v3016_v19 = vld [vmem:[%s4002_s7 + $0x478] sm:$0xf0] }
 0x10c   : > { %2230 = vmatpush.bf16.msra.mxu3 %v2891_v39  ;;  %v3339_v39 = vor.u32 %v3692_v30, %v3336_v31  ;;  %v3467_v44 = vor.u32 %v3724_v34, %v3464_v35  ;;  %v3144_v23 = vld [vmem:[%s4002_s7 + $0x578] sm:$0xf0]  ;;  %v3640_v35 = vld [vmem:[%s4002_s7 + $0x54c] sm:$0xf] }
 0x10d   : > { %2192 = vmatpush.bf16.msra.mxu0 %v2491_v52  ;;  %v3448_v52 = vld [vmem:[%s4002_s7 + $0x7d8] sm:$0xf0]  ;;  %v3147_v31 = vor.u32 %v3644_v20, %v3144_v23  ;;  %v3704_v42 = vld [vmem:[%s4002_s7 + $0x74c] sm:$0xf] }
 0x10e   : > { %v3272_v27 = vld [vmem:[%s4002_s7 + $0x678] sm:$0xf0] }
 0x10f   : > { %2205 = vmatpush.bf16.msra.mxu1 %v2619_v59  ;;  %2218 = vmatpush.bf16.msra.mxu2 %v2747_v60  ;;  %v3652_v59 = vld [vmem:[%s4002_s7 + $0x5ac] sm:$0xf]  ;;  %v3451_v60 = vor.u32 %v3720_v51, %v3448_v52  ;;  %v3400_v29 = vld [vmem:[%s4002_s7 + $0x778] sm:$0xf0] }
 0x110   : > { %2231 = vmatpush.bf16.msra.mxu3 %v2875_v1  ;;  %v3684_v1 = vld [vmem:[%s4002_s7 + $0x6ac] sm:$0xf]  ;;  %v3000_v34 = vld [vmem:[%s4002_s7 + $0x458] sm:$0xf0] }
 0x111   : > { %2193 = vmatpush.bf16.msra.mxu0 %v2475_v8  ;;  %v3307_v6 = vor.u32 %v3684_v1, %v3304_v2  ;;  %v3032_v8 = vld [vmem:[%s4002_s7 + $0x498] sm:$0xf0]  ;;  %v3604_v52 = vld [vmem:[%s4002_s7 + $0x42c] sm:$0xf] }
 0x112   : > { %v3256_v40 = vld [vmem:[%s4002_s7 + $0x658] sm:$0xf0] }
 0x113   : > { %2206 = vmatpush.bf16.msra.mxu1 %v2603_v13  ;;  %2219 = vmatpush.bf16.msra.mxu2 %v2731_v14  ;;  %v3288_v13 = vld [vmem:[%s4002_s7 + $0x698] sm:$0xf0]  ;;  %v3712_v14 = vld [vmem:[%s4002_s7 + $0x78c] sm:$0xf] }
 0x114   : > { %2232 = vmatpush.bf16.msra.mxu3 %v2859_v18  ;;  %v3612_v18 = vld [vmem:[%s4002_s7 + $0x46c] sm:$0xf]  ;;  %v3419_v22 = vor.u32 %v3712_v14, %v3416_v62  ;;  %v3112_v58 = vld [vmem:[%s4002_s7 + $0x538] sm:$0xf0] }
 0x115   : > { %2194 = vmatpush.bf16.msra.mxu0 %v2459_v28  ;;  %v4573_v15 = vpop.f32.mrf.mxu0  ;;  %v3708_v28 = vld [vmem:[%s4002_s7 + $0x76c] sm:$0xf]  ;;  %v3019_v30 = vor.u32 %v3612_v18, %v3016_v19  ;;  %v3368_v1 = vld [vmem:[%s4002_s7 + $0x738] sm:$0xf0] }
 0x116   : > { %v3352_v14 = vld [vmem:[%s4002_s7 + $0x718] sm:$0xf0] }
 0x117   : > { %2207 = vmatpush.bf16.msra.mxu1 %v2587_v32  ;;  %2220 = vmatpush.bf16.msra.mxu2 %v2715_v33  ;;  %v4578_v21 = vpop.f32.mrf.mxu1  ;;  %v3275_v32 = vor.u32 %v3676_v24, %v3272_v27  ;;  %v3608_v33 = vld [vmem:[%s4002_s7 + $0x44c] sm:$0xf] }
 0x118   : > { %2233 = vmatpush.bf16.msra.mxu3 %v2843_v36  ;;  %2195 = vmatmul.bf16.vlgmr.msra.gmra.mxu0 %v4131_v25  ;;  %v3680_v25 = vld [vmem:[%s4002_s7 + $0x68c] sm:$0xf]  ;;  %v3003_v45 = vor.u32 %v3608_v33, %v3000_v34  ;;  %v2002_v18 = vadd.f32 %v4578_v21, %v4573_v15 }
 0x119   : > { %2239 = vmatpush.bf16.msrb.mxu0 %v3083_v37  ;;  %v3291_v17 = vor.u32 %v3680_v25, %v3288_v13  ;;  %v3403_v37 = vor.u32 %v3708_v28, %v3400_v29  ;;  %v3696_v13 = vld [vmem:[%s4002_s7 + $0x70c] sm:$0xf] }
 0x11a   : > { %2221 = vmatmul.bf16.vlgmr.msra.gmra.mxu2 %v4117_v9  ;;  %2208 = vmatmul.bf16.vlgmr.msra.gmra.mxu1 %v4134_v26  ;;  %v3179_v9 = vor.u32 %v3652_v59, %v3176_v61  ;;  %v3035_v26 = vor.u32 %v3616_v7, %v3032_v8  ;;  %v3668_v59 = vld [vmem:[%s4002_s7 + $0x62c] sm:$0xf] }
 0x11b   : > { %2252 = vmatpush.bf16.msrb.mxu1 %v3211_v38  ;;  %2265 = vmatpush.bf16.msrb.mxu2 %v3339_v39  ;;  %v3128_v38 = vld [vmem:[%s4002_s7 + $0x558] sm:$0xf0]  ;;  %v3672_v39 = vld [vmem:[%s4002_s7 + $0x64c] sm:$0xf] }
 0x11c   : > { %2278 = vmatpush.bf16.msrb.mxu3 %v3467_v44  ;;  %v3384_v44 = vld [vmem:[%s4002_s7 + $0x758] sm:$0xf0]  ;;  %v3131_v48 = vor.u32 %v3640_v35, %v3128_v38  ;;  %v3259_v51 = vor.u32 %v3672_v39, %v3256_v40  ;;  %v3700_v61 = vld [vmem:[%s4002_s7 + $0x72c] sm:$0xf] }
 0x11d   : > { %2234 = vmatmul.bf16.vlgmr.msra.gmra.mxu3 %v4120_v11  ;;  %2240 = vmatpush.bf16.msrb.mxu0 %v3067_v53  ;;  %v3648_v11 = vld [vmem:[%s4002_s7 + $0x58c] sm:$0xf]  ;;  %v2014_v36 = vpop.f32.mrf.mxu2  ;;  %v1990_v50 = vpop.f32.mrf.mxu0  ;;  %v2984_v53 = vld [vmem:[%s4002_s7 + $0x438] sm:$0xf0]  ;;  %v3387_v56 = vor.u32 %v3704_v42, %v3384_v44  ;;  %v3371_v8 = vor.u32 %v3700_v61, %v3368_v1 }
 0x11e   : > { %v3163_v16 = vor.u32 %v3648_v11, %v3160_v12  ;;  %v2987_v2 = vor.u32 %v3604_v52, %v2984_v53  ;;  %v3096_v11 = vld [vmem:[%s4002_s7 + $0x518] sm:$0xf0]  ;;  %v2015_v19 = vadd.f32 %v2014_v36, %v2002_v18 }
 0x11f   : > { %2253 = vmatpush.bf16.msrb.mxu1 %v3195_v54  ;;  %2266 = vmatpush.bf16.msrb.mxu2 %v3323_v55  ;;  %v3636_v54 = vld [vmem:[%s4002_s7 + $0x52c] sm:$0xf]  ;;  %v2003_v55 = vpop.f32.mrf.mxu1  ;;  %v3224_v12 = vld [vmem:[%s4002_s7 + $0x618] sm:$0xf0] }
 0x120   : > { %2279 = vmatpush.bf16.msrb.mxu3 %v3451_v60  ;;  %v2027_v41 = vpop.f32.mrf.mxu3  ;;  %v3240_v60 = vld [vmem:[%s4002_s7 + $0x638] sm:$0xf0]  ;;  %v3115_v3 = vor.u32 %v3636_v54, %v3112_v58 }
 0x121   : > { %2241 = vmatpush.bf16.msrb.mxu0 %v3051_v5  ;;  %v3243_v4 = vor.u32 %v3668_v59, %v3240_v60  ;;  %v3600_v5 = vld [vmem:[%s4002_s7 + $0x40c] sm:$0xf]  ;;  %v2028_v20 = vadd.f32 %v2027_v41, %v2015_v19 }
 0x123   : > { %2254 = vmatpush.bf16.msrb.mxu1 %v3179_v9  ;;  %2267 = vmatpush.bf16.msrb.mxu2 %v3307_v6  ;;  %v2968_v9 = vld [vmem:[%s4002_s7 + $0x418] sm:$0xf0]  ;;  %v3632_v6 = vld [vmem:[%s4002_s7 + $0x50c] sm:$0xf] }
 0x124   : > { %2280 = vmatpush.bf16.msrb.mxu3 %v3435_v10  ;;  %v3664_v10 = vld [vmem:[%s4002_s7 + $0x60c] sm:$0xf]  ;;  %v2971_v62 = vor.u32 %v3600_v5, %v2968_v9 }
 0x125   : > { %2242 = vmatpush.bf16.msrb.mxu0 %v3035_v26  ;;  %v2016_v7 = vpop.f32.mrf.mxu2  ;;  %v3099_v26 = vor.u32 %v3632_v6, %v3096_v11 }
 0x127   : > { %2255 = vmatpush.bf16.msrb.mxu1 %v3163_v16  ;;  %2268 = vmatpush.bf16.msrb.mxu2 %v3291_v17  ;;  %v3227_v16 = vor.u32 %v3664_v10, %v3224_v12  ;;  %v3355_v17 = vor.u32 %v3696_v13, %v3352_v14 }
 0x128   : > { %2281 = vmatpush.bf16.msrb.mxu3 %v3419_v22  ;;  %v2029_v25 = vpop.f32.mrf.mxu3 }
 0x129   : > { %2243 = vmatpush.bf16.msrb.mxu0 %v3019_v30 }
 0x12b   : > { %2256 = vmatpush.bf16.msrb.mxu1 %v3147_v31  ;;  %2269 = vmatpush.bf16.msrb.mxu2 %v3275_v32 }
 0x12c   : > { %2282 = vmatpush.bf16.msrb.mxu3 %v3403_v37 }
 0x12d   : > { %2244 = vmatpush.bf16.msrb.mxu0 %v3003_v45 }
 0x12f   : > { %2257 = vmatpush.bf16.msrb.mxu1 %v3131_v48  ;;  %2270 = vmatpush.bf16.msrb.mxu2 %v3259_v51 }
 0x130   : > { %2283 = vmatpush.bf16.msrb.mxu3 %v3387_v56 }
 0x131   : > { %2245 = vmatpush.bf16.msrb.mxu0 %v2987_v2 }
 0x133   : > { %2258 = vmatpush.bf16.msrb.mxu1 %v3115_v3  ;;  %2271 = vmatpush.bf16.msrb.mxu2 %v3243_v4 }
 0x134   : > { %2284 = vmatpush.bf16.msrb.mxu3 %v3371_v8 }
 0x135   : > { %2246 = vmatpush.bf16.msrb.mxu0 %v2971_v62  ;;  %v2040_v22 = vpop.f32.mrf.mxu0 }
 0x136   : > { %v2041_v23 = vadd.f32 %v2040_v22, %v2028_v20 }
 0x137   : > { %2259 = vmatpush.bf16.msrb.mxu1 %v3099_v26  ;;  %2272 = vmatpush.bf16.msrb.mxu2 %v3227_v16  ;;  %v2053_v24 = vpop.f32.mrf.mxu1 }
 0x138   : > { %2285 = vmatpush.bf16.msrb.mxu3 %v3355_v17  ;;  %2247 = vmatmul.bf16.vlgmr.msrb.gmra.mxu0 %v4190_v46  ;;  %v2054_v27 = vadd.f32 %v2053_v24, %v2041_v23 }
 0x13a   : > { %2260 = vmatmul.bf16.vlgmr.msrb.gmra.mxu1 %v4194_v49  ;;  %2273 = vmatmul.bf16.vlgmr.msrb.gmra.mxu2 %v4186_v43 }
 0x13b   : > { %2286 = vmatmul.bf16.vlgmr.msrb.gmra.mxu3 %v4192_v47 }
 0x13d   : > { %v2066_v15 = vpop.f32.mrf.mxu2  ;;  %v2042_v30 = vpop.f32.mrf.mxu0 }
 0x13e   : > { %v2067_v21 = vadd.f32 %v2066_v15, %v2054_v27 }
 0x13f   : > { %v2055_v31 = vpop.f32.mrf.mxu1 }
 0x140   : > { %v2079_v28 = vpop.f32.mrf.mxu3 }
 0x141   : > { %v2080_v29 = vadd.f32 %v2079_v28, %v2067_v21 }
 0x143   : > { %v2292_v46 = vadd.f32 %v2080_v29, %v4515_v63 }
 0x145   : > { %2296 = vst [vmem:[%s4021_s23 + $0x8] sm:$0xff] %v2292_v46  ;;  %v2068_v32 = vpop.f32.mrf.mxu2 }
 0x148   : > { %v2081_v49 = vpop.f32.mrf.mxu3 }
 0x155   : > { %v2092_v33 = vpop.f32.mrf.mxu0 }
 0x157   : > { %v2105_v43 = vpop.f32.mrf.mxu1 }
 0x158   : > { %v2106_v39 = vadd.f32 %v2105_v43, %v2092_v33 }
 0x15d   : > { %v2118_v34 = vpop.f32.mrf.mxu2  ;;  %v2094_v35 = vpop.f32.mrf.mxu0 }
 0x15e   : > { %v2119_v40 = vadd.f32 %v2118_v34, %v2106_v39 }
 0x15f   : > { %v2107_v36 = vpop.f32.mrf.mxu1 }
 0x160   : > { %v2131_v47 = vpop.f32.mrf.mxu3 }
 0x161   : > { %v2132_v41 = vadd.f32 %v2131_v47, %v2119_v40 }
 0x165   : > { %v2120_v37 = vpop.f32.mrf.mxu2 }
 0x168   : > { %v2133_v38 = vpop.f32.mrf.mxu3 }
 0x175   : > { %v2144_v42 = vpop.f32.mrf.mxu0 }
 0x176   : > { %v2145_v44 = vadd.f32 %v2144_v42, %v2132_v41 }
 0x177   : > { %v2157_v45 = vpop.f32.mrf.mxu1 }
 0x178   : > { %v2158_v50 = vadd.f32 %v2157_v45, %v2145_v44 }
 0x17d   : > { %v2170_v63 = vpop.f32.mrf.mxu2  ;;  %v2146_v53 = vpop.f32.mrf.mxu0 }
 0x17e   : > { %v2171_v48 = vadd.f32 %v2170_v63, %v2158_v50 }
 0x17f   : > { %v2159_v54 = vpop.f32.mrf.mxu1 }
 0x180   : > { %v2183_v51 = vpop.f32.mrf.mxu3 }
 0x181   : > { %v2184_v52 = vadd.f32 %v2183_v51, %v2171_v48 }
 0x183   : > { %v2293_v55 = vadd.f32 %v2184_v52, %v4518_v57 }
 0x185   : > { %2297 = vst [vmem:[%s4021_s23 + $0x10] sm:$0xff] %v2293_v55  ;;  %v2172_v56 = vpop.f32.mrf.mxu2 }
 0x188   : > { %v2185_v58 = vpop.f32.mrf.mxu3 }
 0x195   : > { %v2196_v59 = vpop.f32.mrf.mxu0 }
 0x197   : > { %v2209_v60 = vpop.f32.mrf.mxu1 }
 0x198   : > { %v2210_v9 = vadd.f32 %v2209_v60, %v2196_v59 }
 0x19d   : > { %v2222_v61 = vpop.f32.mrf.mxu2  ;;  %v2198_v2 = vpop.f32.mrf.mxu0 }
 0x19e   : > { %v2223_v6 = vadd.f32 %v2222_v61, %v2210_v9 }
 0x19f   : > { %v2211_v3 = vpop.f32.mrf.mxu1 }
 0x1a0   : > { %v2235_v1 = vpop.f32.mrf.mxu3 }
 0x1a1   : > { %v2236_v7 = vadd.f32 %v2235_v1, %v2223_v6 }
 0x1a5   : > { %v2224_v4 = vpop.f32.mrf.mxu2 }
 0x1a8   : > { %v2237_v5 = vpop.f32.mrf.mxu3 }
 0x1b5   : > { %v2248_v8 = vpop.f32.mrf.mxu0 }
 0x1b6   : > { %v2249_v10 = vadd.f32 %v2248_v8, %v2236_v7 }
 0x1b7   : > { %v2261_v11 = vpop.f32.mrf.mxu1 }
 0x1b8   : > { %v2262_v12 = vadd.f32 %v2261_v11, %v2249_v10 }
 0x1bd   : > { %v2274_v57 = vpop.f32.mrf.mxu2  ;;  %v2250_v14 = vpop.f32.mrf.mxu0 }
 0x1be   : > { %v2275_v25 = vadd.f32 %v2274_v57, %v2262_v12  ;;  %v2287_v13 = vpop.f32.mrf.mxu3 }
 0x1bf   : > { %v2263_v62 = vpop.f32.mrf.mxu1 }
 0x1c0   : > { %v2288_v26 = vadd.f32 %v2287_v13, %v2275_v25 }
 0x1c2   : > { %v2294_v16 = vadd.f32 %v2288_v26, %v4521_v0 }
 0x1c4   : > { %2298 = vst [vmem:[%s4021_s23 + $0x18] sm:$0xff] %v2294_v16 }
 0x1c5   : > { %v2276_v17 = vpop.f32.mrf.mxu2 }
 0x1c6   : > { %v2289_v18 = vpop.f32.mrf.mxu3 }
 0x1c7 PF: > { %s16_s19 = sadd.s32 1, %s3897_s19   ;;  %s4653_s28 = sld [smem:[#allocation5_spill]] }
 0x1c8   : > { %p13_p3 = scmp.ge.s32.totalorder %s16_s19, 10   ;;  %s4654_s12 = smov %s3873_s13 }
 0x1c9   : > { %s4655_s13 = smov %s3877_s14  ;;  %s4656_s14 = smov %s3989_s5 }
 0x1ca   : > { %s4657_s15 = smov %s3889_s17  ;;  %s4658_s16 = smov %s3893_s18 }
 0x1cb   : > { %s4659_s17 = smov %s4662_s21  ;;  %15 = sbr.rel (!%p13_p3) target bundleno = 5 (0x5), region = 82 }
 0x1cd   : > { %s4660_s18 = smov %s4653_s28 }
 0x1d0   :  { %2329 = vsyncpa [#allocation3], 1 }
 0x1d1   :  { %2331 = vsyncpa [#allocation3 + $0x1], 1 }

</bundles_post_ra>
